<compile_context>
chip_gen: v5e
topology: v5e:2x2
jax: 0.10.0
libtpu: 0.0.40
codegen_flags: <defaults>
</compile_context>

<pallas_src>
import math
import functools

import jax
import jax.numpy as jnp
from jax import lax
from jax.experimental import pallas as pl
from jax.experimental.pallas import tpu as pltpu

_SQRT_2 = math.sqrt(2.0)
_VMEM_LIMIT = 32 * 1024 * 1024   # portable across v5e / v6e / v7x


# --------------------------------------------------------------------------
# exact-ish GELU (erf via Abramowitz & Stegun; reciprocal on the EUP)
# --------------------------------------------------------------------------
def _erf(x):
    a1, a2, a3, a4, a5 = 0.254829592, -0.284496736, 1.421413741, -1.453152027, 1.061405429
    p = 0.3275911
    s = jnp.where(x >= 0.0, 1.0, -1.0)
    ax = jnp.abs(x)
    t = pl.reciprocal(1.0 + p * ax, approx=True)
    poly = ((((a5 * t + a4) * t + a3) * t + a2) * t + a1) * t
    return s * (1.0 - poly * jnp.exp(-ax * ax))


def _gelu(x):
    return 0.5 * x * (1.0 + _erf(x * (1.0 / _SQRT_2)))


# --------------------------------------------------------------------------
# tiling helpers (divisor-based so grids always divide exactly)
# --------------------------------------------------------------------------
def _largest_divisor_leq(n, cap):
    for d in range(min(n, cap), 0, -1):
        if n % d == 0:
            return d
    return 1


def _pick_row_tile(M, row_bytes, cap_bytes=4 << 20, max_rows=2048):
    """Largest multiple-of-8 divisor of M within the VMEM budget (>=2 steps if possible)."""
    cap = max(8, min(max_rows, cap_bytes // max(row_bytes, 1)))

    def search(limit):
        v = min(limit, cap)
        v -= v % 8
        while v >= 8:
            if M % v == 0:
                return v
            v -= 8
        return None

    d = search(M)
    if d is None:
        return M                      # fallback: whole M as one block (small/odd M)
    if d == M and M >= 16:
        d2 = search(M // 2)           # prefer >=2 grid steps (pipelining / megacore)
        if d2 is not None:
            return d2
    return d


def _pick_bt_tile(BT, frame_bytes, cap_bytes=512 << 10):
    """Frames (b,t) per block for the spatial-conv kernel (leading dim, any divisor)."""
    cap = max(1, cap_bytes // max(frame_bytes, 1))
    d = _largest_divisor_leq(BT, cap)
    if d == BT and BT > 1:
        d = _largest_divisor_leq(BT, max(1, BT // 2))
    return d


def _pick_lane_tile(HWC, C, cap=2048):
    """Lane-block for the temporal kernel: divisor of H*W*C, multiple of lcm(128,C)."""
    step = C * 128 // math.gcd(C, 128)
    best = None
    d = (min(HWC, cap) // step) * step
    while d >= step:
        if HWC % d == 0:
            best = d
            break
        d -= step
    if best is None:
        return HWC                    # fallback: full lane dim
    if best == HWC and HWC // step >= 2:
        d = (min(HWC // 2, cap) // step) * step
        while d >= step:
            if HWC % d == 0:
                return d
            d -= step
    return best


# --------------------------------------------------------------------------
# Kernel 1: down projection + GELU   (rows of M, large parallel tiles)
# --------------------------------------------------------------------------
def _down_proj_kernel(x_ref, w_ref, b_ref, o_ref):
    acc = jnp.dot(x_ref[...], w_ref[...], preferred_element_type=jnp.float32)
    o_ref[...] = _gelu(acc + b_ref[...])


def _down_proj(x2d, w, b):
    M, K = x2d.shape
    N = w.shape[1]
    tm = _pick_row_tile(M, 4 * (K + N))
    return pl.pallas_call(
        _down_proj_kernel,
        grid=(M // tm,),
        in_specs=[pl.BlockSpec((tm, K), lambda i: (i, 0)),
                  pl.BlockSpec((K, N), lambda i: (0, 0)),
                  pl.BlockSpec((1, N), lambda i: (0, 0))],
        out_specs=pl.BlockSpec((tm, N), lambda i: (i, 0)),
        out_shape=jax.ShapeDtypeStruct((M, N), jnp.float32),
        compiler_params=pltpu.CompilerParams(
            dimension_semantics=("parallel",),
            vmem_limit_bytes=_VMEM_LIMIT),
    )(x2d, w, b)


# --------------------------------------------------------------------------
# Kernel 2a: depthwise spatial convs (1,3,3) and (1,5,5)
#   layout (B*T, H, W*C): H on sublanes, W*C on lanes; shifts via pltpu.roll
#   + boundary masks; the 25 shifted values are shared between both branches.
#   H-boundary mask is applied once per row-shift (hoisted out of the dj loop).
# --------------------------------------------------------------------------
def _spatial_kernel(x_ref, w3_ref, b3_ref, w5_ref, b5_ref, z3_ref, z5_ref, *, C, W):
    x = x_ref[...]                                   # (t_bt, H, W*C)
    H = x.shape[1]
    WC = x.shape[2]
    h_idx = lax.broadcasted_iota(jnp.int32, x.shape, 1)
    l_idx = lax.broadcasted_iota(jnp.int32, x.shape, 2)   # lane = w*C + c
    wmask = {dj: (l_idx >= -dj * C) & (l_idx < (W - dj) * C)
             for dj in range(-2, 3) if dj != 0}

    acc3 = jnp.zeros_like(x)
    acc5 = jnp.zeros_like(x)
    for di in range(-2, 3):
        if di == 0:
            xh = x
        else:
            xh = pltpu.roll(x, shift=(-di) % H, axis=1)
            xh = jnp.where((h_idx >= -di) & (h_idx < H - di), xh, 0.0)
        for dj in range(-2, 3):
            if dj == 0:
                sm = xh
            else:
                s = pltpu.roll(xh, shift=(-dj * C) % WC, axis=2)
                sm = jnp.where(wmask[dj], s, 0.0)
            acc5 = acc5 + w5_ref[(di + 2) * 5 + (dj + 2)] * sm
            if -1 <= di <= 1 and -1 <= dj <= 1:
                acc3 = acc3 + w3_ref[(di + 1) * 3 + (dj + 1)] * sm
    z3_ref[...] = acc3 + b3_ref[0]
    z5_ref[...] = acc5 + b5_ref[0]


def _spatial_convs(xs, p, *, C, W):
    BT, H, WC = xs.shape
    # per-channel weights tiled across W so they broadcast on the (w,c) lane dim
    w3s_t = jnp.tile(p["w3s"], (1, W))
    b3s_t = jnp.tile(p["b3s"], (1, W))
    w5s_t = jnp.tile(p["w5s"], (1, W))
    b5s_t = jnp.tile(p["b5s"], (1, W))
    t_bt = _pick_bt_tile(BT, H * WC * 4)
    kernel = functools.partial(_spatial_kernel, C=C, W=W)
    frame = pl.BlockSpec((t_bt, H, WC), lambda i: (i, 0, 0))
    z3, z5 = pl.pallas_call(
        kernel,
        grid=(BT // t_bt,),
        in_specs=[frame,
                  pl.BlockSpec((9, WC), lambda i: (0, 0)),
                  pl.BlockSpec((1, WC), lambda i: (0, 0)),
                  pl.BlockSpec((25, WC), lambda i: (0, 0)),
                  pl.BlockSpec((1, WC), lambda i: (0, 0))],
        out_specs=[frame, frame],
        out_shape=[jax.ShapeDtypeStruct((BT, H, WC), jnp.float32),
                   jax.ShapeDtypeStruct((BT, H, WC), jnp.float32)],
        compiler_params=pltpu.CompilerParams(
            dimension_semantics=("parallel",),
            vmem_limit_bytes=_VMEM_LIMIT),
    )(xs, w3s_t, b3s_t, w5s_t, b5s_t)
    return z3, z5


# --------------------------------------------------------------------------
# Kernel 2b: depthwise temporal convs (3,1,1) and (5,1,1) + partial BN stats
#   layout (B, T, H*W*C): T on sublanes, spatial*channel slab on lanes.
#   Temporal zero-padding of the intermediate is realized by the masks
#   (matching PyTorch, which pads the biased spatial output with zeros).
# --------------------------------------------------------------------------
def _temporal_kernel(z3_ref, z5_ref, w3_ref, b3_ref, w5_ref, b5_ref, oh_ref,
                     y3_ref, y5_ref, st_ref):
    z3 = z3_ref[0]                                   # (T, t_s)
    z5 = z5_ref[0]
    T = z3.shape[0]
    t_idx = lax.broadcasted_iota(jnp.int32, z3.shape, 0)

    def tconv(z, w_ref, k):
        p = k // 2
        acc = jnp.zeros_like(z)
        for di in range(-p, p + 1):
            if di == 0:
                sm = z
            else:
                s = pltpu.roll(z, shift=(-di) % T, axis=0)
                sm = jnp.where((t_idx >= -di) & (t_idx < T - di), s, 0.0)
            acc = acc + w_ref[di + p] * sm
        return acc

    y3 = tconv(z3, w3_ref, 3) + b3_ref[0]
    y5 = tconv(z5, w5_ref, 5) + b5_ref[0]
    y3_ref[0] = y3
    y5_ref[0] = y5

    # partial per-channel BN statistics: [sum y3, sum y3^2, sum y5, sum y5^2]
    red = jnp.concatenate(
        [jnp.sum(y3, axis=0, keepdims=True),
         jnp.sum(y3 * y3, axis=0, keepdims=True),
         jnp.sum(y5, axis=0, keepdims=True),
         jnp.sum(y5 * y5, axis=0, keepdims=True)], axis=0)       # (4, t_s)
    st_ref[0, 0] = jnp.dot(red, oh_ref[...], preferred_element_type=jnp.float32)


def _temporal_convs(z3, z5, p, *, C):
    B, T, HWC = z3.shape
    t_s = _pick_lane_tile(HWC, C)
    n_s = HWC // t_s
    rep = t_s // C
    w3t_t = jnp.tile(p["w3t"], (1, rep))
    b3t_t = jnp.tile(p["b3t"], (1, rep))
    w5t_t = jnp.tile(p["w5t"], (1, rep))
    b5t_t = jnp.tile(p["b5t"], (1, rep))
    onehot = jnp.tile(jnp.eye(C, dtype=jnp.float32), (rep, 1))   # (t_s, C)

    zspec = pl.BlockSpec((1, T, t_s), lambda b, j: (b, 0, j))

    def wspec(shape):
        return pl.BlockSpec(shape, lambda b, j: (0,) * len(shape))

    y3, y5, stats = pl.pallas_call(
        _temporal_kernel,
        grid=(B, n_s),
        in_specs=[zspec, zspec,
                  wspec((3, t_s)), wspec((1, t_s)),
                  wspec((5, t_s)), wspec((1, t_s)),
                  wspec((t_s, C))],
        out_specs=[zspec, zspec,
                   pl.BlockSpec((1, 1, 4, C), lambda b, j: (b, j, 0, 0))],
        out_shape=[jax.ShapeDtypeStruct((B, T, HWC), jnp.float32),
                   jax.ShapeDtypeStruct((B, T, HWC), jnp.float32),
                   jax.ShapeDtypeStruct((B, n_s, 4, C), jnp.float32)],
        compiler_params=pltpu.CompilerParams(
            dimension_semantics=("parallel", "parallel"),
            vmem_limit_bytes=_VMEM_LIMIT),
    )(z3, z5, w3t_t, b3t_t, w5t_t, b5t_t, onehot)
    return y3, y5, stats


# --------------------------------------------------------------------------
# Kernel 3: BN normalize + ReLU + FFT-branch sum, folded pointwise conv +
#           up projection + GELU + both residuals   (rows of M, parallel)
# --------------------------------------------------------------------------
def _finalize_kernel(y3_ref, y5_ref, xf_ref, h_ref, xres_ref, bn_ref,
                     wup_ref, wc_ref, bc_ref, o_ref):
    bn = bn_ref[...]                                  # (4, C): sc3, sh3, sc5, sh5
    s = (jnp.maximum(y3_ref[...] * bn[0] + bn[1], 0.0) +
         jnp.maximum(y5_ref[...] * bn[2] + bn[3], 0.0) +
         xf_ref[...])
    # (h + s@w_pw + b_pw)@w_up + b_up  ==  h@w_up + s@Wc + bc
    y = (jnp.dot(h_ref[...], wup_ref[...], preferred_element_type=jnp.float32) +
         jnp.dot(s, wc_ref[...], preferred_element_type=jnp.float32) +
         bc_ref[...])
    o_ref[...] = xres_ref[...] + _gelu(y)


def _finalize(y3, y5, xf, h, xres, bn, w_up, wc, bc):
    M, C = h.shape
    Cin = xres.shape[1]
    Cout = w_up.shape[1]
    tm = _pick_row_tile(M, 4 * (4 * C + Cin + Cout))

    def rspec(n):
        return pl.BlockSpec((tm, n), lambda i: (i, 0))

    def cspec(a, b):
        return pl.BlockSpec((a, b), lambda i: (0, 0))

    return pl.pallas_call(
        _finalize_kernel,
        grid=(M // tm,),
        in_specs=[rspec(C), rspec(C), rspec(C), rspec(C), rspec(Cin),
                  cspec(4, C), cspec(C, Cout), cspec(C, Cout), cspec(1, Cout)],
        out_specs=rspec(Cout),
        out_shape=jax.ShapeDtypeStruct((M, Cout), jnp.float32),
        compiler_params=pltpu.CompilerParams(
            dimension_semantics=("parallel",),
            vmem_limit_bytes=_VMEM_LIMIT),
    )(y3, y5, xf, h, xres, bn, w_up, wc, bc)


# --------------------------------------------------------------------------
# Full forward (inter_stage=False path)
# --------------------------------------------------------------------------
def med_adapter_forward(x, params, T, atten_last_stage=None):
    B_, L, Cin = x.shape
    B = B_ // T
    H = W = int(math.isqrt(L))
    C = params["w_down"].shape[1]
    Cout = params["w_up"].shape[1]
    M = B_ * L

    x2d = x.reshape(M, Cin)                                   # outer residual
    h2d = _down_proj(x2d, params["w_down"], params["b_down"])  # GELU(Linear), (M, C)

    # Frequency branch (plain JAX): fftn over (T,H,W), per-T scale/shift, ifftn, abs.
    # TODO(synk): FFT has no Pallas/Mosaic equivalent; computed outside the kernels.
    x5 = h2d.reshape(B, T, H, W, C)
    xc = jnp.fft.fftn(x5, axes=(1, 2, 3))
    fw = params["fw"].reshape(1, T, 1, 1, 1)
    fb = params["fb"].reshape(1, T, 1, 1, 1)
    x2f = jnp.abs(jnp.fft.ifftn(xc * fw + fb, axes=(1, 2, 3))).astype(jnp.float32)
    x2f = x2f.reshape(M, C)

    # Kernel 2a: spatial depthwise convs (lane-dense (B*T, H, W*C) layout, no pad)
    xs = h2d.reshape(B * T, H, W * C)
    z3, z5 = _spatial_convs(xs, params, C=C, W=W)

    # Kernel 2b: temporal depthwise convs + partial BN statistics
    # (the reshape below is a free metadata op: same HBM bytes, no relayout)
    y3, y5, stats = _temporal_convs(z3.reshape(B, T, H * W * C),
                                    z5.reshape(B, T, H * W * C),
                                    params, C=C)

    # Global (batch-mode) BatchNorm statistics -> per-channel scale/shift (tiny, JAX)
    st = stats.sum(axis=(0, 1))                     # (4, C)
    n = jnp.float32(M)
    mean3, ex2_3, mean5, ex2_5 = st[0] / n, st[1] / n, st[2] / n, st[3] / n
    var3 = jnp.maximum(ex2_3 - mean3 * mean3, 0.0)
    var5 = jnp.maximum(ex2_5 - mean5 * mean5, 0.0)
    sc3 = params["g3"][0] * lax.rsqrt(var3 + 1e-5)
    sh3 = params["be3"][0] - mean3 * sc3
    sc5 = params["g5"][0] * lax.rsqrt(var5 + 1e-5)
    sh5 = params["be5"][0] - mean5 * sc5
    bn = jnp.stack([sc3, sh3, sc5, sh5], axis=0)    # (4, C)

    # Fold the 1x1x1 pointwise conv into the up projection (tiny matmuls, JAX)
    wc = params["w_pw"] @ params["w_up"]                      # (C, Cout)
    bc = params["b_pw"] @ params["w_up"] + params["b_up"]     # (1, Cout)

    out2d = _finalize(y3.reshape(M, C), y5.reshape(M, C), x2f, h2d, x2d,
                      bn, params["w_up"], wc, bc)
    out = out2d.reshape(B_, L, Cout)
    return out, atten_last_stage


# --------------------------------------------------------------------------
# Deterministic parameter construction (shapes from MedAdapter.__init__)
# --------------------------------------------------------------------------
def make_params(key, in_chan, out_chan, hidden, T):
    ks = jax.random.split(key, 12)
    r = lambda k, shape: 0.1 * jax.random.normal(k, shape, jnp.float32)
    return dict(
        w_down=r(ks[0], (in_chan, hidden)), b_down=r(ks[1], (1, hidden)),
        # depthwise conv weights stored as (kH*kW, C) / (kT, C)
        w3s=r(ks[2], (9, hidden)),  b3s=r(ks[3], (1, hidden)),
        w3t=r(ks[4], (3, hidden)),  b3t=r(ks[5], (1, hidden)),
        w5s=r(ks[6], (25, hidden)), b5s=r(ks[7], (1, hidden)),
        w5t=r(ks[8], (5, hidden)),  b5t=r(ks[9], (1, hidden)),
        # BatchNorm3d affine params at PyTorch init (gamma=1, beta=0)
        g3=jnp.ones((1, hidden), jnp.float32), be3=jnp.zeros((1, hidden), jnp.float32),
        g5=jnp.ones((1, hidden), jnp.float32), be5=jnp.zeros((1, hidden), jnp.float32),
        # 1x1x1 pointwise conv, stored (C_in, C_out)
        w_pw=r(ks[10], (hidden, hidden)), b_pw=r(ks[11], (1, hidden)),
        # frequency weight/bias at PyTorch init (torch.ones([1,1,T,1,1]))
        fw=jnp.ones((T,), jnp.float32), fb=jnp.ones((T,), jnp.float32),
        # up projection
        w_up=r(jax.random.fold_in(key, 100), (hidden, out_chan)),
        b_up=r(jax.random.fold_in(key, 101), (1, out_chan)),
    )


if __name__ == "__main__":
    key = jax.random.PRNGKey(0)
    B, T, H, W = 1, 8, 8, 8          # T == input_img_size
    in_chan, ratio = 48, 6
    out_chan = in_chan               # required for the outer residual add
    hidden = in_chan // ratio        # 8
    B_, L = B * T, H * W

    kx, kp = jax.random.split(key)
    x = jax.random.normal(kx, (B_, L, in_chan), jnp.float32)
    params = make_params(kp, in_chan, out_chan, hidden, T)

    fwd = jax.jit(functools.partial(med_adapter_forward, T=T))
    out, attn_state = fwd(x, params)
    out = jax.block_until_ready(out)
    assert out.shape == (B_, L, out_chan) and out.dtype == jnp.float32
    assert bool(jnp.all(jnp.isfinite(out)))
    print("KERNEL_OK")
</pallas_src>

<mosaic_0001>
module attributes {stable_mosaic.version = 11 : i64} {
  func.func @_down_proj_kernel(%arg0: i32, %arg1: memref<256x48xf32, #tpu.memory_space<vmem>>, %arg2: memref<48x8xf32, #tpu.memory_space<vmem>>, %arg3: memref<1x8xf32, #tpu.memory_space<vmem>>, %arg4: memref<256x8xf32, #tpu.memory_space<vmem>>) attributes {dimension_semantics = [#tpu.dimension_semantics<parallel>], iteration_bounds = array<i64: 2>, scalar_prefetch = 0 : i64, scratch_operands = 0 : i64, tpu.core_type = #tpu.core_type<tc>, window_params = [{transform_indices = @transform_0, window_bounds = array<i64: 256, 48>}, {pipeline_mode = #tpu.pipeline_mode<synchronous>, transform_indices = @transform_1, window_bounds = array<i64: 48, 8>}, {pipeline_mode = #tpu.pipeline_mode<synchronous>, transform_indices = @transform_2, window_bounds = array<i64: 1, 8>}, {transform_indices = @transform_3, window_bounds = array<i64: 256, 8>}]} {
    %c0 = arith.constant 0 : index
    %c0_0 = arith.constant 0 : index
    %0 = vector.load %arg1[%c0, %c0_0] : memref<256x48xf32, #tpu.memory_space<vmem>>, vector<256x48xf32>
    %c0_1 = arith.constant 0 : index
    %c0_2 = arith.constant 0 : index
    %1 = vector.load %arg2[%c0_1, %c0_2] : memref<48x8xf32, #tpu.memory_space<vmem>>, vector<48x8xf32>
    %cst = arith.constant dense<0.000000e+00> : vector<256x8xf32>
    %2 = tpu.matmul %0, %1, %cst {dimension_numbers = #tpu.dot_dimension_numbers<[1], [0], [0], [1], [0, 0, 1, 1], [], []>} : vector<256x48xf32>, vector<48x8xf32>, vector<256x8xf32> -> vector<256x8xf32>
    %c0_3 = arith.constant 0 : index
    %c0_4 = arith.constant 0 : index
    %3 = vector.load %arg3[%c0_3, %c0_4] : memref<1x8xf32, #tpu.memory_space<vmem>>, vector<1x8xf32>
    %4 = vector.broadcast %3 : vector<1x8xf32> to vector<256x8xf32>
    %5 = arith.addf %2, %4 : vector<256x8xf32>
    %cst_5 = arith.constant 5.000000e-01 : f32
    %6 = vector.broadcast %cst_5 : f32 to vector<256x8xf32>
    %7 = arith.mulf %6, %5 : vector<256x8xf32>
    %cst_6 = arith.constant 0.707106769 : f32
    %8 = vector.broadcast %cst_6 : f32 to vector<256x8xf32>
    %9 = arith.mulf %5, %8 : vector<256x8xf32>
    %cst_7 = arith.constant 0.000000e+00 : f32
    %10 = vector.broadcast %cst_7 : f32 to vector<256x8xf32>
    %11 = arith.cmpf oge, %9, %10 : vector<256x8xf32>
    %cst_8 = arith.constant 1.000000e+00 : f32
    %cst_9 = arith.constant -1.000000e+00 : f32
    %12 = vector.broadcast %cst_8 : f32 to vector<256x8xf32>
    %13 = vector.broadcast %cst_9 : f32 to vector<256x8xf32>
    %14 = arith.select %11, %12, %13 : vector<256x8xi1>, vector<256x8xf32>
    %15 = math.absf %9 : vector<256x8xf32>
    %cst_10 = arith.constant 0.327591091 : f32
    %16 = vector.broadcast %cst_10 : f32 to vector<256x8xf32>
    %17 = arith.mulf %16, %15 : vector<256x8xf32>
    %cst_11 = arith.constant 1.000000e+00 : f32
    %18 = vector.broadcast %cst_11 : f32 to vector<256x8xf32>
    %19 = arith.addf %18, %17 : vector<256x8xf32>
    %20 = tpu.reciprocal %19 {approx = true} : vector<256x8xf32> -> vector<256x8xf32>
    %cst_12 = arith.constant 1.06140542 : f32
    %21 = vector.broadcast %cst_12 : f32 to vector<256x8xf32>
    %22 = arith.mulf %21, %20 : vector<256x8xf32>
    %cst_13 = arith.constant -1.45315206 : f32
    %23 = vector.broadcast %cst_13 : f32 to vector<256x8xf32>
    %24 = arith.addf %22, %23 : vector<256x8xf32>
    %25 = arith.mulf %24, %20 : vector<256x8xf32>
    %cst_14 = arith.constant 1.42141378 : f32
    %26 = vector.broadcast %cst_14 : f32 to vector<256x8xf32>
    %27 = arith.addf %25, %26 : vector<256x8xf32>
    %28 = arith.mulf %27, %20 : vector<256x8xf32>
    %cst_15 = arith.constant -0.284496725 : f32
    %29 = vector.broadcast %cst_15 : f32 to vector<256x8xf32>
    %30 = arith.addf %28, %29 : vector<256x8xf32>
    %31 = arith.mulf %30, %20 : vector<256x8xf32>
    %cst_16 = arith.constant 0.254829586 : f32
    %32 = vector.broadcast %cst_16 : f32 to vector<256x8xf32>
    %33 = arith.addf %31, %32 : vector<256x8xf32>
    %34 = arith.mulf %33, %20 : vector<256x8xf32>
    %cst_17 = arith.constant 0.000000e+00 : f32
    %35 = vector.broadcast %cst_17 : f32 to vector<256x8xf32>
    %36 = arith.subf %35, %15 : vector<256x8xf32>
    %37 = arith.mulf %36, %15 : vector<256x8xf32>
    %38 = math.exp %37 : vector<256x8xf32>
    %39 = arith.mulf %34, %38 : vector<256x8xf32>
    %cst_18 = arith.constant 1.000000e+00 : f32
    %40 = vector.broadcast %cst_18 : f32 to vector<256x8xf32>
    %41 = arith.subf %40, %39 : vector<256x8xf32>
    %42 = arith.mulf %14, %41 : vector<256x8xf32>
    %cst_19 = arith.constant 1.000000e+00 : f32
    %43 = vector.broadcast %cst_19 : f32 to vector<256x8xf32>
    %44 = arith.addf %43, %42 : vector<256x8xf32>
    %45 = arith.mulf %7, %44 : vector<256x8xf32>
    %c0_20 = arith.constant 0 : index
    %c0_21 = arith.constant 0 : index
    %46 = vector.load %arg4[%c0_20, %c0_21] : memref<256x8xf32, #tpu.memory_space<vmem>>, vector<256x8xf32>
    tpu.vector_store %arg4[%c0_20, %c0_21], %45 {strides = array<i32>} : memref<256x8xf32, #tpu.memory_space<vmem>>, vector<256x8xf32>,
    return
  }
  func.func @transform_0(%arg0: i32) -> (i32, i32) {
    %c0_i32 = arith.constant 0 : i32
    %c0_i32_0 = arith.constant 0 : i32
    return %arg0, %c0_i32 : i32, i32
  }
  func.func @transform_1(%arg0: i32) -> (i32, i32) {
    %c0_i32 = arith.constant 0 : i32
    %c0_i32_0 = arith.constant 0 : i32
    %c0_i32_1 = arith.constant 0 : i32
    return %c0_i32, %c0_i32_0 : i32, i32
  }
  func.func @transform_2(%arg0: i32) -> (i32, i32) {
    %c0_i32 = arith.constant 0 : i32
    %c0_i32_0 = arith.constant 0 : i32
    %c0_i32_1 = arith.constant 0 : i32
    return %c0_i32, %c0_i32_0 : i32, i32
  }
  func.func @transform_3(%arg0: i32) -> (i32, i32) {
    %c0_i32 = arith.constant 0 : i32
    %c0_i32_0 = arith.constant 0 : i32
    return %arg0, %c0_i32 : i32, i32
  }
}

module attributes {stable_mosaic.version = 11 : i64} {
  func.func @_spatial_kernel(%arg0: i32, %arg1: memref<4x8x64xf32, #tpu.memory_space<vmem>>, %arg2: memref<9x64xf32, #tpu.memory_space<vmem>>, %arg3: memref<1x64xf32, #tpu.memory_space<vmem>>, %arg4: memref<25x64xf32, #tpu.memory_space<vmem>>, %arg5: memref<1x64xf32, #tpu.memory_space<vmem>>, %arg6: memref<4x8x64xf32, #tpu.memory_space<vmem>>, %arg7: memref<4x8x64xf32, #tpu.memory_space<vmem>>) attributes {dimension_semantics = [#tpu.dimension_semantics<parallel>], iteration_bounds = array<i64: 2>, scalar_prefetch = 0 : i64, scratch_operands = 0 : i64, tpu.core_type = #tpu.core_type<tc>, window_params = [{transform_indices = @transform_0, window_bounds = array<i64: 4, 8, 64>}, {pipeline_mode = #tpu.pipeline_mode<synchronous>, transform_indices = @transform_1, window_bounds = array<i64: 9, 64>}, {pipeline_mode = #tpu.pipeline_mode<synchronous>, transform_indices = @transform_2, window_bounds = array<i64: 1, 64>}, {pipeline_mode = #tpu.pipeline_mode<synchronous>, transform_indices = @transform_3, window_bounds = array<i64: 25, 64>}, {pipeline_mode = #tpu.pipeline_mode<synchronous>, transform_indices = @transform_4, window_bounds = array<i64: 1, 64>}, {transform_indices = @transform_5, window_bounds = array<i64: 4, 8, 64>}, {transform_indices = @transform_6, window_bounds = array<i64: 4, 8, 64>}]} {
    %c0 = arith.constant 0 : index
    %c0_0 = arith.constant 0 : index
    %c0_1 = arith.constant 0 : index
    %0 = vector.load %arg1[%c0, %c0_0, %c0_1] : memref<4x8x64xf32, #tpu.memory_space<vmem>>, vector<4x8x64xf32>
    %1 = tpu.iota {dimensions = array<i32: 1>} : vector<4x8x64xi32>
    %2 = tpu.iota {dimensions = array<i32: 2>} : vector<4x8x64xi32>
    %c16_i32 = arith.constant 16 : i32
    %3 = vector.broadcast %c16_i32 : i32 to vector<4x8x64xi32>
    %4 = arith.cmpi sge, %2, %3 : vector<4x8x64xi32>
    %c80_i32 = arith.constant 80 : i32
    %5 = vector.broadcast %c80_i32 : i32 to vector<4x8x64xi32>
    %6 = arith.cmpi slt, %2, %5 : vector<4x8x64xi32>
    %7 = arith.andi %4, %6 : vector<4x8x64xi1>
    %c8_i32 = arith.constant 8 : i32
    %8 = vector.broadcast %c8_i32 : i32 to vector<4x8x64xi32>
    %9 = arith.cmpi sge, %2, %8 : vector<4x8x64xi32>
    %c72_i32 = arith.constant 72 : i32
    %10 = vector.broadcast %c72_i32 : i32 to vector<4x8x64xi32>
    %11 = arith.cmpi slt, %2, %10 : vector<4x8x64xi32>
    %12 = arith.andi %9, %11 : vector<4x8x64xi1>
    %c-8_i32 = arith.constant -8 : i32
    %13 = vector.broadcast %c-8_i32 : i32 to vector<4x8x64xi32>
    %14 = arith.cmpi sge, %2, %13 : vector<4x8x64xi32>
    %c56_i32 = arith.constant 56 : i32
    %15 = vector.broadcast %c56_i32 : i32 to vector<4x8x64xi32>
    %16 = arith.cmpi slt, %2, %15 : vector<4x8x64xi32>
    %17 = arith.andi %14, %16 : vector<4x8x64xi1>
    %c-16_i32 = arith.constant -16 : i32
    %18 = vector.broadcast %c-16_i32 : i32 to vector<4x8x64xi32>
    %19 = arith.cmpi sge, %2, %18 : vector<4x8x64xi32>
    %c48_i32 = arith.constant 48 : i32
    %20 = vector.broadcast %c48_i32 : i32 to vector<4x8x64xi32>
    %21 = arith.cmpi slt, %2, %20 : vector<4x8x64xi32>
    %22 = arith.andi %19, %21 : vector<4x8x64xi1>
    %cst = arith.constant 0.000000e+00 : f32
    %23 = vector.broadcast %cst : f32 to vector<4x8x64xf32>
    %cst_2 = arith.constant 0.000000e+00 : f32
    %24 = vector.broadcast %cst_2 : f32 to vector<4x8x64xf32>
    %c2_i32 = arith.constant 2 : i32
    %25 = tpu.dynamic_rotate %0 by %c2_i32 dim 1 : vector<4x8x64xf32>, i32 -> vector<4x8x64xf32>
    %c2_i32_3 = arith.constant 2 : i32
    %26 = vector.broadcast %c2_i32_3 : i32 to vector<4x8x64xi32>
    %27 = arith.cmpi sge, %1, %26 : vector<4x8x64xi32>
    %c10_i32 = arith.constant 10 : i32
    %28 = vector.broadcast %c10_i32 : i32 to vector<4x8x64xi32>
    %29 = arith.cmpi slt, %1, %28 : vector<4x8x64xi32>
    %30 = arith.andi %27, %29 : vector<4x8x64xi1>
    %cst_4 = arith.constant 0.000000e+00 : f32
    %31 = vector.broadcast %cst_4 : f32 to vector<4x8x64xf32>
    %32 = arith.select %30, %25, %31 : vector<4x8x64xi1>, vector<4x8x64xf32>
    %c16_i32_5 = arith.constant 16 : i32
    %33 = tpu.dynamic_rotate %32 by %c16_i32_5 dim 2 : vector<4x8x64xf32>, i32 -> vector<4x8x64xf32>
    %cst_6 = arith.constant 0.000000e+00 : f32
    %34 = vector.broadcast %cst_6 : f32 to vector<4x8x64xf32>
    %35 = arith.select %7, %33, %34 : vector<4x8x64xi1>, vector<4x8x64xf32>
    %c0_7 = arith.constant 0 : index
    %c0_8 = arith.constant 0 : index
    %36 = vector.load %arg4[%c0_7, %c0_8] : memref<25x64xf32, #tpu.memory_space<vmem>>, vector<1x64xf32>
    %37 = vector.shape_cast %36 : vector<1x64xf32> to vector<64xf32>
    %38 = vector.shape_cast %37 : vector<64xf32> to vector<1x1x64xf32>
    %39 = vector.broadcast %38 : vector<1x1x64xf32> to vector<4x8x64xf32>
    %40 = arith.mulf %39, %35 : vector<4x8x64xf32>
    %41 = arith.addf %24, %40 : vector<4x8x64xf32>
    %c8_i32_9 = arith.constant 8 : i32
    %42 = tpu.dynamic_rotate %32 by %c8_i32_9 dim 2 : vector<4x8x64xf32>, i32 -> vector<4x8x64xf32>
    %cst_10 = arith.constant 0.000000e+00 : f32
    %43 = vector.broadcast %cst_10 : f32 to vector<4x8x64xf32>
    %44 = arith.select %12, %42, %43 : vector<4x8x64xi1>, vector<4x8x64xf32>
    %c1 = arith.constant 1 : index
    %c0_11 = arith.constant 0 : index
    %45 = vector.load %arg4[%c1, %c0_11] : memref<25x64xf32, #tpu.memory_space<vmem>>, vector<1x64xf32>
    %46 = vector.shape_cast %45 : vector<1x64xf32> to vector<64xf32>
    %47 = vector.shape_cast %46 : vector<64xf32> to vector<1x1x64xf32>
    %48 = vector.broadcast %47 : vector<1x1x64xf32> to vector<4x8x64xf32>
    %49 = arith.mulf %48, %44 : vector<4x8x64xf32>
    %50 = arith.addf %41, %49 : vector<4x8x64xf32>
    %c2 = arith.constant 2 : index
    %c0_12 = arith.constant 0 : index
    %51 = vector.load %arg4[%c2, %c0_12] : memref<25x64xf32, #tpu.memory_space<vmem>>, vector<1x64xf32>
    %52 = vector.shape_cast %51 : vector<1x64xf32> to vector<64xf32>
    %53 = vector.shape_cast %52 : vector<64xf32> to vector<1x1x64xf32>
    %54 = vector.broadcast %53 : vector<1x1x64xf32> to vector<4x8x64xf32>
    %55 = arith.mulf %54, %32 : vector<4x8x64xf32>
    %56 = arith.addf %50, %55 : vector<4x8x64xf32>
    %c56_i32_13 = arith.constant 56 : i32
    %57 = tpu.dynamic_rotate %32 by %c56_i32_13 dim 2 : vector<4x8x64xf32>, i32 -> vector<4x8x64xf32>
    %cst_14 = arith.constant 0.000000e+00 : f32
    %58 = vector.broadcast %cst_14 : f32 to vector<4x8x64xf32>
    %59 = arith.select %17, %57, %58 : vector<4x8x64xi1>, vector<4x8x64xf32>
    %c3 = arith.constant 3 : index
    %c0_15 = arith.constant 0 : index
    %60 = vector.load %arg4[%c3, %c0_15] : memref<25x64xf32, #tpu.memory_space<vmem>>, vector<1x64xf32>
    %61 = vector.shape_cast %60 : vector<1x64xf32> to vector<64xf32>
    %62 = vector.shape_cast %61 : vector<64xf32> to vector<1x1x64xf32>
    %63 = vector.broadcast %62 : vector<1x1x64xf32> to vector<4x8x64xf32>
    %64 = arith.mulf %63, %59 : vector<4x8x64xf32>
    %65 = arith.addf %56, %64 : vector<4x8x64xf32>
    %c48_i32_16 = arith.constant 48 : i32
    %66 = tpu.dynamic_rotate %32 by %c48_i32_16 dim 2 : vector<4x8x64xf32>, i32 -> vector<4x8x64xf32>
    %cst_17 = arith.constant 0.000000e+00 : f32
    %67 = vector.broadcast %cst_17 : f32 to vector<4x8x64xf32>
    %68 = arith.select %22, %66, %67 : vector<4x8x64xi1>, vector<4x8x64xf32>
    %c4 = arith.constant 4 : index
    %c0_18 = arith.constant 0 : index
    %69 = vector.load %arg4[%c4, %c0_18] : memref<25x64xf32, #tpu.memory_space<vmem>>, vector<1x64xf32>
    %70 = vector.shape_cast %69 : vector<1x64xf32> to vector<64xf32>
    %71 = vector.shape_cast %70 : vector<64xf32> to vector<1x1x64xf32>
    %72 = vector.broadcast %71 : vector<1x1x64xf32> to vector<4x8x64xf32>
    %73 = arith.mulf %72, %68 : vector<4x8x64xf32>
    %74 = arith.addf %65, %73 : vector<4x8x64xf32>
    %c1_i32 = arith.constant 1 : i32
    %75 = tpu.dynamic_rotate %0 by %c1_i32 dim 1 : vector<4x8x64xf32>, i32 -> vector<4x8x64xf32>
    %c1_i32_19 = arith.constant 1 : i32
    %76 = vector.broadcast %c1_i32_19 : i32 to vector<4x8x64xi32>
    %77 = arith.cmpi sge, %1, %76 : vector<4x8x64xi32>
    %c9_i32 = arith.constant 9 : i32
    %78 = vector.broadcast %c9_i32 : i32 to vector<4x8x64xi32>
    %79 = arith.cmpi slt, %1, %78 : vector<4x8x64xi32>
    %80 = arith.andi %77, %79 : vector<4x8x64xi1>
    %cst_20 = arith.constant 0.000000e+00 : f32
    %81 = vector.broadcast %cst_20 : f32 to vector<4x8x64xf32>
    %82 = arith.select %80, %75, %81 : vector<4x8x64xi1>, vector<4x8x64xf32>
    %c16_i32_21 = arith.constant 16 : i32
    %83 = tpu.dynamic_rotate %82 by %c16_i32_21 dim 2 : vector<4x8x64xf32>, i32 -> vector<4x8x64xf32>
    %cst_22 = arith.constant 0.000000e+00 : f32
    %84 = vector.broadcast %cst_22 : f32 to vector<4x8x64xf32>
    %85 = arith.select %7, %83, %84 : vector<4x8x64xi1>, vector<4x8x64xf32>
    %c5 = arith.constant 5 : index
    %c0_23 = arith.constant 0 : index
    %86 = vector.load %arg4[%c5, %c0_23] : memref<25x64xf32, #tpu.memory_space<vmem>>, vector<1x64xf32>
    %87 = vector.shape_cast %86 : vector<1x64xf32> to vector<64xf32>
    %88 = vector.shape_cast %87 : vector<64xf32> to vector<1x1x64xf32>
    %89 = vector.broadcast %88 : vector<1x1x64xf32> to vector<4x8x64xf32>
    %90 = arith.mulf %89, %85 : vector<4x8x64xf32>
    %91 = arith.addf %74, %90 : vector<4x8x64xf32>
    %c8_i32_24 = arith.constant 8 : i32
    %92 = tpu.dynamic_rotate %82 by %c8_i32_24 dim 2 : vector<4x8x64xf32>, i32 -> vector<4x8x64xf32>
    %cst_25 = arith.constant 0.000000e+00 : f32
    %93 = vector.broadcast %cst_25 : f32 to vector<4x8x64xf32>
    %94 = arith.select %12, %92, %93 : vector<4x8x64xi1>, vector<4x8x64xf32>
    %c6 = arith.constant 6 : index
    %c0_26 = arith.constant 0 : index
    %95 = vector.load %arg4[%c6, %c0_26] : memref<25x64xf32, #tpu.memory_space<vmem>>, vector<1x64xf32>
    %96 = vector.shape_cast %95 : vector<1x64xf32> to vector<64xf32>
    %97 = vector.shape_cast %96 : vector<64xf32> to vector<1x1x64xf32>
    %98 = vector.broadcast %97 : vector<1x1x64xf32> to vector<4x8x64xf32>
    %99 = arith.mulf %98, %94 : vector<4x8x64xf32>
    %100 = arith.addf %91, %99 : vector<4x8x64xf32>
    %c0_27 = arith.constant 0 : index
    %c0_28 = arith.constant 0 : index
    %101 = vector.load %arg2[%c0_27, %c0_28] : memref<9x64xf32, #tpu.memory_space<vmem>>, vector<1x64xf32>
    %102 = vector.shape_cast %101 : vector<1x64xf32> to vector<64xf32>
    %103 = vector.shape_cast %102 : vector<64xf32> to vector<1x1x64xf32>
    %104 = vector.broadcast %103 : vector<1x1x64xf32> to vector<4x8x64xf32>
    %105 = arith.mulf %104, %94 : vector<4x8x64xf32>
    %106 = arith.addf %23, %105 : vector<4x8x64xf32>
    %c7 = arith.constant 7 : index
    %c0_29 = arith.constant 0 : index
    %107 = vector.load %arg4[%c7, %c0_29] : memref<25x64xf32, #tpu.memory_space<vmem>>, vector<1x64xf32>
    %108 = vector.shape_cast %107 : vector<1x64xf32> to vector<64xf32>
    %109 = vector.shape_cast %108 : vector<64xf32> to vector<1x1x64xf32>
    %110 = vector.broadcast %109 : vector<1x1x64xf32> to vector<4x8x64xf32>
    %111 = arith.mulf %110, %82 : vector<4x8x64xf32>
    %112 = arith.addf %100, %111 : vector<4x8x64xf32>
    %c1_30 = arith.constant 1 : index
    %c0_31 = arith.constant 0 : index
    %113 = vector.load %arg2[%c1_30, %c0_31] : memref<9x64xf32, #tpu.memory_space<vmem>>, vector<1x64xf32>
    %114 = vector.shape_cast %113 : vector<1x64xf32> to vector<64xf32>
    %115 = vector.shape_cast %114 : vector<64xf32> to vector<1x1x64xf32>
    %116 = vector.broadcast %115 : vector<1x1x64xf32> to vector<4x8x64xf32>
    %117 = arith.mulf %116, %82 : vector<4x8x64xf32>
    %118 = arith.addf %106, %117 : vector<4x8x64xf32>
    %c56_i32_32 = arith.constant 56 : i32
    %119 = tpu.dynamic_rotate %82 by %c56_i32_32 dim 2 : vector<4x8x64xf32>, i32 -> vector<4x8x64xf32>
    %cst_33 = arith.constant 0.000000e+00 : f32
    %120 = vector.broadcast %cst_33 : f32 to vector<4x8x64xf32>
    %121 = arith.select %17, %119, %120 : vector<4x8x64xi1>, vector<4x8x64xf32>
    %c8 = arith.constant 8 : index
    %c0_34 = arith.constant 0 : index
    %122 = vector.load %arg4[%c8, %c0_34] : memref<25x64xf32, #tpu.memory_space<vmem>>, vector<1x64xf32>
    %123 = vector.shape_cast %122 : vector<1x64xf32> to vector<64xf32>
    %124 = vector.shape_cast %123 : vector<64xf32> to vector<1x1x64xf32>
    %125 = vector.broadcast %124 : vector<1x1x64xf32> to vector<4x8x64xf32>
    %126 = arith.mulf %125, %121 : vector<4x8x64xf32>
    %127 = arith.addf %112, %126 : vector<4x8x64xf32>
    %c2_35 = arith.constant 2 : index
    %c0_36 = arith.constant 0 : index
    %128 = vector.load %arg2[%c2_35, %c0_36] : memref<9x64xf32, #tpu.memory_space<vmem>>, vector<1x64xf32>
    %129 = vector.shape_cast %128 : vector<1x64xf32> to vector<64xf32>
    %130 = vector.shape_cast %129 : vector<64xf32> to vector<1x1x64xf32>
    %131 = vector.broadcast %130 : vector<1x1x64xf32> to vector<4x8x64xf32>
    %132 = arith.mulf %131, %121 : vector<4x8x64xf32>
    %133 = arith.addf %118, %132 : vector<4x8x64xf32>
    %c48_i32_37 = arith.constant 48 : i32
    %134 = tpu.dynamic_rotate %82 by %c48_i32_37 dim 2 : vector<4x8x64xf32>, i32 -> vector<4x8x64xf32>
    %cst_38 = arith.constant 0.000000e+00 : f32
    %135 = vector.broadcast %cst_38 : f32 to vector<4x8x64xf32>
    %136 = arith.select %22, %134, %135 : vector<4x8x64xi1>, vector<4x8x64xf32>
    %c9 = arith.constant 9 : index
    %c0_39 = arith.constant 0 : index
    %137 = vector.load %arg4[%c9, %c0_39] : memref<25x64xf32, #tpu.memory_space<vmem>>, vector<1x64xf32>
    %138 = vector.shape_cast %137 : vector<1x64xf32> to vector<64xf32>
    %139 = vector.shape_cast %138 : vector<64xf32> to vector<1x1x64xf32>
    %140 = vector.broadcast %139 : vector<1x1x64xf32> to vector<4x8x64xf32>
    %141 = arith.mulf %140, %136 : vector<4x8x64xf32>
    %142 = arith.addf %127, %141 : vector<4x8x64xf32>
    %c16_i32_40 = arith.constant 16 : i32
    %143 = tpu.dynamic_rotate %0 by %c16_i32_40 dim 2 : vector<4x8x64xf32>, i32 -> vector<4x8x64xf32>
    %cst_41 = arith.constant 0.000000e+00 : f32
    %144 = vector.broadcast %cst_41 : f32 to vector<4x8x64xf32>
    %145 = arith.select %7, %143, %144 : vector<4x8x64xi1>, vector<4x8x64xf32>
    %c10 = arith.constant 10 : index
    %c0_42 = arith.constant 0 : index
    %146 = vector.load %arg4[%c10, %c0_42] : memref<25x64xf32, #tpu.memory_space<vmem>>, vector<1x64xf32>
    %147 = vector.shape_cast %146 : vector<1x64xf32> to vector<64xf32>
    %148 = vector.shape_cast %147 : vector<64xf32> to vector<1x1x64xf32>
    %149 = vector.broadcast %148 : vector<1x1x64xf32> to vector<4x8x64xf32>
    %150 = arith.mulf %149, %145 : vector<4x8x64xf32>
    %151 = arith.addf %142, %150 : vector<4x8x64xf32>
    %c8_i32_43 = arith.constant 8 : i32
    %152 = tpu.dynamic_rotate %0 by %c8_i32_43 dim 2 : vector<4x8x64xf32>, i32 -> vector<4x8x64xf32>
    %cst_44 = arith.constant 0.000000e+00 : f32
    %153 = vector.broadcast %cst_44 : f32 to vector<4x8x64xf32>
    %154 = arith.select %12, %152, %153 : vector<4x8x64xi1>, vector<4x8x64xf32>
    %c11 = arith.constant 11 : index
    %c0_45 = arith.constant 0 : index
    %155 = vector.load %arg4[%c11, %c0_45] : memref<25x64xf32, #tpu.memory_space<vmem>>, vector<1x64xf32>
    %156 = vector.shape_cast %155 : vector<1x64xf32> to vector<64xf32>
    %157 = vector.shape_cast %156 : vector<64xf32> to vector<1x1x64xf32>
    %158 = vector.broadcast %157 : vector<1x1x64xf32> to vector<4x8x64xf32>
    %159 = arith.mulf %158, %154 : vector<4x8x64xf32>
    %160 = arith.addf %151, %159 : vector<4x8x64xf32>
    %c3_46 = arith.constant 3 : index
    %c0_47 = arith.constant 0 : index
    %161 = vector.load %arg2[%c3_46, %c0_47] : memref<9x64xf32, #tpu.memory_space<vmem>>, vector<1x64xf32>
    %162 = vector.shape_cast %161 : vector<1x64xf32> to vector<64xf32>
    %163 = vector.shape_cast %162 : vector<64xf32> to vector<1x1x64xf32>
    %164 = vector.broadcast %163 : vector<1x1x64xf32> to vector<4x8x64xf32>
    %165 = arith.mulf %164, %154 : vector<4x8x64xf32>
    %166 = arith.addf %133, %165 : vector<4x8x64xf32>
    %c12 = arith.constant 12 : index
    %c0_48 = arith.constant 0 : index
    %167 = vector.load %arg4[%c12, %c0_48] : memref<25x64xf32, #tpu.memory_space<vmem>>, vector<1x64xf32>
    %168 = vector.shape_cast %167 : vector<1x64xf32> to vector<64xf32>
    %169 = vector.shape_cast %168 : vector<64xf32> to vector<1x1x64xf32>
    %170 = vector.broadcast %169 : vector<1x1x64xf32> to vector<4x8x64xf32>
    %171 = arith.mulf %170, %0 : vector<4x8x64xf32>
    %172 = arith.addf %160, %171 : vector<4x8x64xf32>
    %c4_49 = arith.constant 4 : index
    %c0_50 = arith.constant 0 : index
    %173 = vector.load %arg2[%c4_49, %c0_50] : memref<9x64xf32, #tpu.memory_space<vmem>>, vector<1x64xf32>
    %174 = vector.shape_cast %173 : vector<1x64xf32> to vector<64xf32>
    %175 = vector.shape_cast %174 : vector<64xf32> to vector<1x1x64xf32>
    %176 = vector.broadcast %175 : vector<1x1x64xf32> to vector<4x8x64xf32>
    %177 = arith.mulf %176, %0 : vector<4x8x64xf32>
    %178 = arith.addf %166, %177 : vector<4x8x64xf32>
    %c56_i32_51 = arith.constant 56 : i32
    %179 = tpu.dynamic_rotate %0 by %c56_i32_51 dim 2 : vector<4x8x64xf32>, i32 -> vector<4x8x64xf32>
    %cst_52 = arith.constant 0.000000e+00 : f32
    %180 = vector.broadcast %cst_52 : f32 to vector<4x8x64xf32>
    %181 = arith.select %17, %179, %180 : vector<4x8x64xi1>, vector<4x8x64xf32>
    %c13 = arith.constant 13 : index
    %c0_53 = arith.constant 0 : index
    %182 = vector.load %arg4[%c13, %c0_53] : memref<25x64xf32, #tpu.memory_space<vmem>>, vector<1x64xf32>
    %183 = vector.shape_cast %182 : vector<1x64xf32> to vector<64xf32>
    %184 = vector.shape_cast %183 : vector<64xf32> to vector<1x1x64xf32>
    %185 = vector.broadcast %184 : vector<1x1x64xf32> to vector<4x8x64xf32>
    %186 = arith.mulf %185, %181 : vector<4x8x64xf32>
    %187 = arith.addf %172, %186 : vector<4x8x64xf32>
    %c5_54 = arith.constant 5 : index
    %c0_55 = arith.constant 0 : index
    %188 = vector.load %arg2[%c5_54, %c0_55] : memref<9x64xf32, #tpu.memory_space<vmem>>, vector<1x64xf32>
    %189 = vector.shape_cast %188 : vector<1x64xf32> to vector<64xf32>
    %190 = vector.shape_cast %189 : vector<64xf32> to vector<1x1x64xf32>
    %191 = vector.broadcast %190 : vector<1x1x64xf32> to vector<4x8x64xf32>
    %192 = arith.mulf %191, %181 : vector<4x8x64xf32>
    %193 = arith.addf %178, %192 : vector<4x8x64xf32>
    %c48_i32_56 = arith.constant 48 : i32
    %194 = tpu.dynamic_rotate %0 by %c48_i32_56 dim 2 : vector<4x8x64xf32>, i32 -> vector<4x8x64xf32>
    %cst_57 = arith.constant 0.000000e+00 : f32
    %195 = vector.broadcast %cst_57 : f32 to vector<4x8x64xf32>
    %196 = arith.select %22, %194, %195 : vector<4x8x64xi1>, vector<4x8x64xf32>
    %c14 = arith.constant 14 : index
    %c0_58 = arith.constant 0 : index
    %197 = vector.load %arg4[%c14, %c0_58] : memref<25x64xf32, #tpu.memory_space<vmem>>, vector<1x64xf32>
    %198 = vector.shape_cast %197 : vector<1x64xf32> to vector<64xf32>
    %199 = vector.shape_cast %198 : vector<64xf32> to vector<1x1x64xf32>
    %200 = vector.broadcast %199 : vector<1x1x64xf32> to vector<4x8x64xf32>
    %201 = arith.mulf %200, %196 : vector<4x8x64xf32>
    %202 = arith.addf %187, %201 : vector<4x8x64xf32>
    %c7_i32 = arith.constant 7 : i32
    %203 = tpu.dynamic_rotate %0 by %c7_i32 dim 1 : vector<4x8x64xf32>, i32 -> vector<4x8x64xf32>
    %c-1_i32 = arith.constant -1 : i32
    %204 = vector.broadcast %c-1_i32 : i32 to vector<4x8x64xi32>
    %205 = arith.cmpi sge, %1, %204 : vector<4x8x64xi32>
    %c7_i32_59 = arith.constant 7 : i32
    %206 = vector.broadcast %c7_i32_59 : i32 to vector<4x8x64xi32>
    %207 = arith.cmpi slt, %1, %206 : vector<4x8x64xi32>
    %208 = arith.andi %205, %207 : vector<4x8x64xi1>
    %cst_60 = arith.constant 0.000000e+00 : f32
    %209 = vector.broadcast %cst_60 : f32 to vector<4x8x64xf32>
    %210 = arith.select %208, %203, %209 : vector<4x8x64xi1>, vector<4x8x64xf32>
    %c16_i32_61 = arith.constant 16 : i32
    %211 = tpu.dynamic_rotate %210 by %c16_i32_61 dim 2 : vector<4x8x64xf32>, i32 -> vector<4x8x64xf32>
    %cst_62 = arith.constant 0.000000e+00 : f32
    %212 = vector.broadcast %cst_62 : f32 to vector<4x8x64xf32>
    %213 = arith.select %7, %211, %212 : vector<4x8x64xi1>, vector<4x8x64xf32>
    %c15 = arith.constant 15 : index
    %c0_63 = arith.constant 0 : index
    %214 = vector.load %arg4[%c15, %c0_63] : memref<25x64xf32, #tpu.memory_space<vmem>>, vector<1x64xf32>
    %215 = vector.shape_cast %214 : vector<1x64xf32> to vector<64xf32>
    %216 = vector.shape_cast %215 : vector<64xf32> to vector<1x1x64xf32>
    %217 = vector.broadcast %216 : vector<1x1x64xf32> to vector<4x8x64xf32>
    %218 = arith.mulf %217, %213 : vector<4x8x64xf32>
    %219 = arith.addf %202, %218 : vector<4x8x64xf32>
    %c8_i32_64 = arith.constant 8 : i32
    %220 = tpu.dynamic_rotate %210 by %c8_i32_64 dim 2 : vector<4x8x64xf32>, i32 -> vector<4x8x64xf32>
    %cst_65 = arith.constant 0.000000e+00 : f32
    %221 = vector.broadcast %cst_65 : f32 to vector<4x8x64xf32>
    %222 = arith.select %12, %220, %221 : vector<4x8x64xi1>, vector<4x8x64xf32>
    %c16 = arith.constant 16 : index
    %c0_66 = arith.constant 0 : index
    %223 = vector.load %arg4[%c16, %c0_66] : memref<25x64xf32, #tpu.memory_space<vmem>>, vector<1x64xf32>
    %224 = vector.shape_cast %223 : vector<1x64xf32> to vector<64xf32>
    %225 = vector.shape_cast %224 : vector<64xf32> to vector<1x1x64xf32>
    %226 = vector.broadcast %225 : vector<1x1x64xf32> to vector<4x8x64xf32>
    %227 = arith.mulf %226, %222 : vector<4x8x64xf32>
    %228 = arith.addf %219, %227 : vector<4x8x64xf32>
    %c6_67 = arith.constant 6 : index
    %c0_68 = arith.constant 0 : index
    %229 = vector.load %arg2[%c6_67, %c0_68] : memref<9x64xf32, #tpu.memory_space<vmem>>, vector<1x64xf32>
    %230 = vector.shape_cast %229 : vector<1x64xf32> to vector<64xf32>
    %231 = vector.shape_cast %230 : vector<64xf32> to vector<1x1x64xf32>
    %232 = vector.broadcast %231 : vector<1x1x64xf32> to vector<4x8x64xf32>
    %233 = arith.mulf %232, %222 : vector<4x8x64xf32>
    %234 = arith.addf %193, %233 : vector<4x8x64xf32>
    %c17 = arith.constant 17 : index
    %c0_69 = arith.constant 0 : index
    %235 = vector.load %arg4[%c17, %c0_69] : memref<25x64xf32, #tpu.memory_space<vmem>>, vector<1x64xf32>
    %236 = vector.shape_cast %235 : vector<1x64xf32> to vector<64xf32>
    %237 = vector.shape_cast %236 : vector<64xf32> to vector<1x1x64xf32>
    %238 = vector.broadcast %237 : vector<1x1x64xf32> to vector<4x8x64xf32>
    %239 = arith.mulf %238, %210 : vector<4x8x64xf32>
    %240 = arith.addf %228, %239 : vector<4x8x64xf32>
    %c7_70 = arith.constant 7 : index
    %c0_71 = arith.constant 0 : index
    %241 = vector.load %arg2[%c7_70, %c0_71] : memref<9x64xf32, #tpu.memory_space<vmem>>, vector<1x64xf32>
    %242 = vector.shape_cast %241 : vector<1x64xf32> to vector<64xf32>
    %243 = vector.shape_cast %242 : vector<64xf32> to vector<1x1x64xf32>
    %244 = vector.broadcast %243 : vector<1x1x64xf32> to vector<4x8x64xf32>
    %245 = arith.mulf %244, %210 : vector<4x8x64xf32>
    %246 = arith.addf %234, %245 : vector<4x8x64xf32>
    %c56_i32_72 = arith.constant 56 : i32
    %247 = tpu.dynamic_rotate %210 by %c56_i32_72 dim 2 : vector<4x8x64xf32>, i32 -> vector<4x8x64xf32>
    %cst_73 = arith.constant 0.000000e+00 : f32
    %248 = vector.broadcast %cst_73 : f32 to vector<4x8x64xf32>
    %249 = arith.select %17, %247, %248 : vector<4x8x64xi1>, vector<4x8x64xf32>
    %c18 = arith.constant 18 : index
    %c0_74 = arith.constant 0 : index
    %250 = vector.load %arg4[%c18, %c0_74] : memref<25x64xf32, #tpu.memory_space<vmem>>, vector<1x64xf32>
    %251 = vector.shape_cast %250 : vector<1x64xf32> to vector<64xf32>
    %252 = vector.shape_cast %251 : vector<64xf32> to vector<1x1x64xf32>
    %253 = vector.broadcast %252 : vector<1x1x64xf32> to vector<4x8x64xf32>
    %254 = arith.mulf %253, %249 : vector<4x8x64xf32>
    %255 = arith.addf %240, %254 : vector<4x8x64xf32>
    %c8_75 = arith.constant 8 : index
    %c0_76 = arith.constant 0 : index
    %256 = vector.load %arg2[%c8_75, %c0_76] : memref<9x64xf32, #tpu.memory_space<vmem>>, vector<1x64xf32>
    %257 = vector.shape_cast %256 : vector<1x64xf32> to vector<64xf32>
    %258 = vector.shape_cast %257 : vector<64xf32> to vector<1x1x64xf32>
    %259 = vector.broadcast %258 : vector<1x1x64xf32> to vector<4x8x64xf32>
    %260 = arith.mulf %259, %249 : vector<4x8x64xf32>
    %261 = arith.addf %246, %260 : vector<4x8x64xf32>
    %c48_i32_77 = arith.constant 48 : i32
    %262 = tpu.dynamic_rotate %210 by %c48_i32_77 dim 2 : vector<4x8x64xf32>, i32 -> vector<4x8x64xf32>
    %cst_78 = arith.constant 0.000000e+00 : f32
    %263 = vector.broadcast %cst_78 : f32 to vector<4x8x64xf32>
    %264 = arith.select %22, %262, %263 : vector<4x8x64xi1>, vector<4x8x64xf32>
    %c19 = arith.constant 19 : index
    %c0_79 = arith.constant 0 : index
    %265 = vector.load %arg4[%c19, %c0_79] : memref<25x64xf32, #tpu.memory_space<vmem>>, vector<1x64xf32>
    %266 = vector.shape_cast %265 : vector<1x64xf32> to vector<64xf32>
    %267 = vector.shape_cast %266 : vector<64xf32> to vector<1x1x64xf32>
    %268 = vector.broadcast %267 : vector<1x1x64xf32> to vector<4x8x64xf32>
    %269 = arith.mulf %268, %264 : vector<4x8x64xf32>
    %270 = arith.addf %255, %269 : vector<4x8x64xf32>
    %c6_i32 = arith.constant 6 : i32
    %271 = tpu.dynamic_rotate %0 by %c6_i32 dim 1 : vector<4x8x64xf32>, i32 -> vector<4x8x64xf32>
    %c-2_i32 = arith.constant -2 : i32
    %272 = vector.broadcast %c-2_i32 : i32 to vector<4x8x64xi32>
    %273 = arith.cmpi sge, %1, %272 : vector<4x8x64xi32>
    %c6_i32_80 = arith.constant 6 : i32
    %274 = vector.broadcast %c6_i32_80 : i32 to vector<4x8x64xi32>
    %275 = arith.cmpi slt, %1, %274 : vector<4x8x64xi32>
    %276 = arith.andi %273, %275 : vector<4x8x64xi1>
    %cst_81 = arith.constant 0.000000e+00 : f32
    %277 = vector.broadcast %cst_81 : f32 to vector<4x8x64xf32>
    %278 = arith.select %276, %271, %277 : vector<4x8x64xi1>, vector<4x8x64xf32>
    %c16_i32_82 = arith.constant 16 : i32
    %279 = tpu.dynamic_rotate %278 by %c16_i32_82 dim 2 : vector<4x8x64xf32>, i32 -> vector<4x8x64xf32>
    %cst_83 = arith.constant 0.000000e+00 : f32
    %280 = vector.broadcast %cst_83 : f32 to vector<4x8x64xf32>
    %281 = arith.select %7, %279, %280 : vector<4x8x64xi1>, vector<4x8x64xf32>
    %c20 = arith.constant 20 : index
    %c0_84 = arith.constant 0 : index
    %282 = vector.load %arg4[%c20, %c0_84] : memref<25x64xf32, #tpu.memory_space<vmem>>, vector<1x64xf32>
    %283 = vector.shape_cast %282 : vector<1x64xf32> to vector<64xf32>
    %284 = vector.shape_cast %283 : vector<64xf32> to vector<1x1x64xf32>
    %285 = vector.broadcast %284 : vector<1x1x64xf32> to vector<4x8x64xf32>
    %286 = arith.mulf %285, %281 : vector<4x8x64xf32>
    %287 = arith.addf %270, %286 : vector<4x8x64xf32>
    %c8_i32_85 = arith.constant 8 : i32
    %288 = tpu.dynamic_rotate %278 by %c8_i32_85 dim 2 : vector<4x8x64xf32>, i32 -> vector<4x8x64xf32>
    %cst_86 = arith.constant 0.000000e+00 : f32
    %289 = vector.broadcast %cst_86 : f32 to vector<4x8x64xf32>
    %290 = arith.select %12, %288, %289 : vector<4x8x64xi1>, vector<4x8x64xf32>
    %c21 = arith.constant 21 : index
    %c0_87 = arith.constant 0 : index
    %291 = vector.load %arg4[%c21, %c0_87] : memref<25x64xf32, #tpu.memory_space<vmem>>, vector<1x64xf32>
    %292 = vector.shape_cast %291 : vector<1x64xf32> to vector<64xf32>
    %293 = vector.shape_cast %292 : vector<64xf32> to vector<1x1x64xf32>
    %294 = vector.broadcast %293 : vector<1x1x64xf32> to vector<4x8x64xf32>
    %295 = arith.mulf %294, %290 : vector<4x8x64xf32>
    %296 = arith.addf %287, %295 : vector<4x8x64xf32>
    %c22 = arith.constant 22 : index
    %c0_88 = arith.constant 0 : index
    %297 = vector.load %arg4[%c22, %c0_88] : memref<25x64xf32, #tpu.memory_space<vmem>>, vector<1x64xf32>
    %298 = vector.shape_cast %297 : vector<1x64xf32> to vector<64xf32>
    %299 = vector.shape_cast %298 : vector<64xf32> to vector<1x1x64xf32>
    %300 = vector.broadcast %299 : vector<1x1x64xf32> to vector<4x8x64xf32>
    %301 = arith.mulf %300, %278 : vector<4x8x64xf32>
    %302 = arith.addf %296, %301 : vector<4x8x64xf32>
    %c56_i32_89 = arith.constant 56 : i32
    %303 = tpu.dynamic_rotate %278 by %c56_i32_89 dim 2 : vector<4x8x64xf32>, i32 -> vector<4x8x64xf32>
    %cst_90 = arith.constant 0.000000e+00 : f32
    %304 = vector.broadcast %cst_90 : f32 to vector<4x8x64xf32>
    %305 = arith.select %17, %303, %304 : vector<4x8x64xi1>, vector<4x8x64xf32>
    %c23 = arith.constant 23 : index
    %c0_91 = arith.constant 0 : index
    %306 = vector.load %arg4[%c23, %c0_91] : memref<25x64xf32, #tpu.memory_space<vmem>>, vector<1x64xf32>
    %307 = vector.shape_cast %306 : vector<1x64xf32> to vector<64xf32>
    %308 = vector.shape_cast %307 : vector<64xf32> to vector<1x1x64xf32>
    %309 = vector.broadcast %308 : vector<1x1x64xf32> to vector<4x8x64xf32>
    %310 = arith.mulf %309, %305 : vector<4x8x64xf32>
    %311 = arith.addf %302, %310 : vector<4x8x64xf32>
    %c48_i32_92 = arith.constant 48 : i32
    %312 = tpu.dynamic_rotate %278 by %c48_i32_92 dim 2 : vector<4x8x64xf32>, i32 -> vector<4x8x64xf32>
    %cst_93 = arith.constant 0.000000e+00 : f32
    %313 = vector.broadcast %cst_93 : f32 to vector<4x8x64xf32>
    %314 = arith.select %22, %312, %313 : vector<4x8x64xi1>, vector<4x8x64xf32>
    %c24 = arith.constant 24 : index
    %c0_94 = arith.constant 0 : index
    %315 = vector.load %arg4[%c24, %c0_94] : memref<25x64xf32, #tpu.memory_space<vmem>>, vector<1x64xf32>
    %316 = vector.shape_cast %315 : vector<1x64xf32> to vector<64xf32>
    %317 = vector.shape_cast %316 : vector<64xf32> to vector<1x1x64xf32>
    %318 = vector.broadcast %317 : vector<1x1x64xf32> to vector<4x8x64xf32>
    %319 = arith.mulf %318, %314 : vector<4x8x64xf32>
    %320 = arith.addf %311, %319 : vector<4x8x64xf32>
    %c0_95 = arith.constant 0 : index
    %c0_96 = arith.constant 0 : index
    %321 = vector.load %arg3[%c0_95, %c0_96] : memref<1x64xf32, #tpu.memory_space<vmem>>, vector<1x64xf32>
    %322 = vector.shape_cast %321 : vector<1x64xf32> to vector<64xf32>
    %323 = vector.shape_cast %322 : vector<64xf32> to vector<1x1x64xf32>
    %324 = vector.broadcast %323 : vector<1x1x64xf32> to vector<4x8x64xf32>
    %325 = arith.addf %261, %324 : vector<4x8x64xf32>
    %c0_97 = arith.constant 0 : index
    %c0_98 = arith.constant 0 : index
    %c0_99 = arith.constant 0 : index
    %326 = vector.load %arg6[%c0_97, %c0_98, %c0_99] : memref<4x8x64xf32, #tpu.memory_space<vmem>>, vector<4x8x64xf32>
    tpu.vector_store %arg6[%c0_97, %c0_98, %c0_99], %325 {strides = array<i32>} : memref<4x8x64xf32, #tpu.memory_space<vmem>>, vector<4x8x64xf32>,
    %c0_100 = arith.constant 0 : index
    %c0_101 = arith.constant 0 : index
    %327 = vector.load %arg5[%c0_100, %c0_101] : memref<1x64xf32, #tpu.memory_space<vmem>>, vector<1x64xf32>
    %328 = vector.shape_cast %327 : vector<1x64xf32> to vector<64xf32>
    %329 = vector.shape_cast %328 : vector<64xf32> to vector<1x1x64xf32>
    %330 = vector.broadcast %329 : vector<1x1x64xf32> to vector<4x8x64xf32>
    %331 = arith.addf %320, %330 : vector<4x8x64xf32>
    %c0_102 = arith.constant 0 : index
    %c0_103 = arith.constant 0 : index
    %c0_104 = arith.constant 0 : index
    %332 = vector.load %arg7[%c0_102, %c0_103, %c0_104] : memref<4x8x64xf32, #tpu.memory_space<vmem>>, vector<4x8x64xf32>
    tpu.vector_store %arg7[%c0_102, %c0_103, %c0_104], %331 {strides = array<i32>} : memref<4x8x64xf32, #tpu.memory_space<vmem>>, vector<4x8x64xf32>,
    return
  }
  func.func @transform_0(%arg0: i32) -> (i32, i32, i32) {
    %c0_i32 = arith.constant 0 : i32
    %c0_i32_0 = arith.constant 0 : i32
    %c0_i32_1 = arith.constant 0 : i32
    return %arg0, %c0_i32, %c0_i32_0 : i32, i32, i32
  }
  func.func @transform_1(%arg0: i32) -> (i32, i32) {
    %c0_i32 = arith.constant 0 : i32
    %c0_i32_0 = arith.constant 0 : i32
    %c0_i32_1 = arith.constant 0 : i32
    return %c0_i32, %c0_i32_0 : i32, i32
  }
  func.func @transform_2(%arg0: i32) -> (i32, i32) {
    %c0_i32 = arith.constant 0 : i32
    %c0_i32_0 = arith.constant 0 : i32
    %c0_i32_1 = arith.constant 0 : i32
    return %c0_i32, %c0_i32_0 : i32, i32
  }
  func.func @transform_3(%arg0: i32) -> (i32, i32) {
    %c0_i32 = arith.constant 0 : i32
    %c0_i32_0 = arith.constant 0 : i32
    %c0_i32_1 = arith.constant 0 : i32
    return %c0_i32, %c0_i32_0 : i32, i32
  }
  func.func @transform_4(%arg0: i32) -> (i32, i32) {
    %c0_i32 = arith.constant 0 : i32
    %c0_i32_0 = arith.constant 0 : i32
    %c0_i32_1 = arith.constant 0 : i32
    return %c0_i32, %c0_i32_0 : i32, i32
  }
  func.func @transform_5(%arg0: i32) -> (i32, i32, i32) {
    %c0_i32 = arith.constant 0 : i32
    %c0_i32_0 = arith.constant 0 : i32
    %c0_i32_1 = arith.constant 0 : i32
    return %arg0, %c0_i32, %c0_i32_0 : i32, i32, i32
  }
  func.func @transform_6(%arg0: i32) -> (i32, i32, i32) {
    %c0_i32 = arith.constant 0 : i32
    %c0_i32_0 = arith.constant 0 : i32
    %c0_i32_1 = arith.constant 0 : i32
    return %arg0, %c0_i32, %c0_i32_0 : i32, i32, i32
  }
}

module attributes {stable_mosaic.version = 11 : i64} {
  func.func @_temporal_kernel(%arg0: i32, %arg1: i32, %arg2: memref<1x8x256xf32, #tpu.memory_space<vmem>>, %arg3: memref<1x8x256xf32, #tpu.memory_space<vmem>>, %arg4: memref<3x256xf32, #tpu.memory_space<vmem>>, %arg5: memref<1x256xf32, #tpu.memory_space<vmem>>, %arg6: memref<5x256xf32, #tpu.memory_space<vmem>>, %arg7: memref<1x256xf32, #tpu.memory_space<vmem>>, %arg8: memref<256x8xf32, #tpu.memory_space<vmem>>, %arg9: memref<1x8x256xf32, #tpu.memory_space<vmem>>, %arg10: memref<1x8x256xf32, #tpu.memory_space<vmem>>, %arg11: memref<1x1x4x8xf32, #tpu.memory_space<vmem>>) attributes {dimension_semantics = [#tpu.dimension_semantics<parallel>, #tpu.dimension_semantics<parallel>], iteration_bounds = array<i64: 1, 2>, scalar_prefetch = 0 : i64, scratch_operands = 0 : i64, tpu.core_type = #tpu.core_type<tc>, window_params = [{transform_indices = @transform_0, window_bounds = array<i64: 1, 8, 256>}, {transform_indices = @transform_1, window_bounds = array<i64: 1, 8, 256>}, {pipeline_mode = #tpu.pipeline_mode<synchronous>, transform_indices = @transform_2, window_bounds = array<i64: 3, 256>}, {pipeline_mode = #tpu.pipeline_mode<synchronous>, transform_indices = @transform_3, window_bounds = array<i64: 1, 256>}, {pipeline_mode = #tpu.pipeline_mode<synchronous>, transform_indices = @transform_4, window_bounds = array<i64: 5, 256>}, {pipeline_mode = #tpu.pipeline_mode<synchronous>, transform_indices = @transform_5, window_bounds = array<i64: 1, 256>}, {pipeline_mode = #tpu.pipeline_mode<synchronous>, transform_indices = @transform_6, window_bounds = array<i64: 256, 8>}, {transform_indices = @transform_7, window_bounds = array<i64: 1, 8, 256>}, {transform_indices = @transform_8, window_bounds = array<i64: 1, 8, 256>}, {transform_indices = @transform_9, window_bounds = array<i64: 1, 1, 4, 8>}]} {
    %c0 = arith.constant 0 : index
    %c0_0 = arith.constant 0 : index
    %c0_1 = arith.constant 0 : index
    %0 = vector.load %arg2[%c0, %c0_0, %c0_1] : memref<1x8x256xf32, #tpu.memory_space<vmem>>, vector<1x8x256xf32>
    %1 = vector.shape_cast %0 : vector<1x8x256xf32> to vector<8x256xf32>
    %c0_2 = arith.constant 0 : index
    %c0_3 = arith.constant 0 : index
    %c0_4 = arith.constant 0 : index
    %2 = vector.load %arg3[%c0_2, %c0_3, %c0_4] : memref<1x8x256xf32, #tpu.memory_space<vmem>>, vector<1x8x256xf32>
    %3 = vector.shape_cast %2 : vector<1x8x256xf32> to vector<8x256xf32>
    %4 = tpu.iota {dimensions = array<i32: 0>} : vector<8x256xi32>
    %cst = arith.constant 0.000000e+00 : f32
    %5 = vector.broadcast %cst : f32 to vector<8x256xf32>
    %c1_i32 = arith.constant 1 : i32
    %6 = tpu.dynamic_rotate %1 by %c1_i32 dim 0 : vector<8x256xf32>, i32 -> vector<8x256xf32>
    %c1_i32_5 = arith.constant 1 : i32
    %7 = vector.broadcast %c1_i32_5 : i32 to vector<8x256xi32>
    %8 = arith.cmpi sge, %4, %7 : vector<8x256xi32>
    %c9_i32 = arith.constant 9 : i32
    %9 = vector.broadcast %c9_i32 : i32 to vector<8x256xi32>
    %10 = arith.cmpi slt, %4, %9 : vector<8x256xi32>
    %11 = arith.andi %8, %10 : vector<8x256xi1>
    %cst_6 = arith.constant 0.000000e+00 : f32
    %12 = vector.broadcast %cst_6 : f32 to vector<8x256xf32>
    %13 = arith.select %11, %6, %12 : vector<8x256xi1>, vector<8x256xf32>
    %c0_7 = arith.constant 0 : index
    %c0_8 = arith.constant 0 : index
    %14 = vector.load %arg4[%c0_7, %c0_8] : memref<3x256xf32, #tpu.memory_space<vmem>>, vector<1x256xf32>
    %15 = vector.shape_cast %14 : vector<1x256xf32> to vector<256xf32>
    %16 = vector.shape_cast %15 : vector<256xf32> to vector<1x256xf32>
    %17 = vector.broadcast %16 : vector<1x256xf32> to vector<8x256xf32>
    %18 = arith.mulf %17, %13 : vector<8x256xf32>
    %19 = arith.addf %5, %18 : vector<8x256xf32>
    %c1 = arith.constant 1 : index
    %c0_9 = arith.constant 0 : index
    %20 = vector.load %arg4[%c1, %c0_9] : memref<3x256xf32, #tpu.memory_space<vmem>>, vector<1x256xf32>
    %21 = vector.shape_cast %20 : vector<1x256xf32> to vector<256xf32>
    %22 = vector.shape_cast %21 : vector<256xf32> to vector<1x256xf32>
    %23 = vector.broadcast %22 : vector<1x256xf32> to vector<8x256xf32>
    %24 = arith.mulf %23, %1 : vector<8x256xf32>
    %25 = arith.addf %19, %24 : vector<8x256xf32>
    %c7_i32 = arith.constant 7 : i32
    %26 = tpu.dynamic_rotate %1 by %c7_i32 dim 0 : vector<8x256xf32>, i32 -> vector<8x256xf32>
    %c-1_i32 = arith.constant -1 : i32
    %27 = vector.broadcast %c-1_i32 : i32 to vector<8x256xi32>
    %28 = arith.cmpi sge, %4, %27 : vector<8x256xi32>
    %c7_i32_10 = arith.constant 7 : i32
    %29 = vector.broadcast %c7_i32_10 : i32 to vector<8x256xi32>
    %30 = arith.cmpi slt, %4, %29 : vector<8x256xi32>
    %31 = arith.andi %28, %30 : vector<8x256xi1>
    %cst_11 = arith.constant 0.000000e+00 : f32
    %32 = vector.broadcast %cst_11 : f32 to vector<8x256xf32>
    %33 = arith.select %31, %26, %32 : vector<8x256xi1>, vector<8x256xf32>
    %c2 = arith.constant 2 : index
    %c0_12 = arith.constant 0 : index
    %34 = vector.load %arg4[%c2, %c0_12] : memref<3x256xf32, #tpu.memory_space<vmem>>, vector<1x256xf32>
    %35 = vector.shape_cast %34 : vector<1x256xf32> to vector<256xf32>
    %36 = vector.shape_cast %35 : vector<256xf32> to vector<1x256xf32>
    %37 = vector.broadcast %36 : vector<1x256xf32> to vector<8x256xf32>
    %38 = arith.mulf %37, %33 : vector<8x256xf32>
    %39 = arith.addf %25, %38 : vector<8x256xf32>
    %c0_13 = arith.constant 0 : index
    %c0_14 = arith.constant 0 : index
    %40 = vector.load %arg5[%c0_13, %c0_14] : memref<1x256xf32, #tpu.memory_space<vmem>>, vector<1x256xf32>
    %41 = vector.shape_cast %40 : vector<1x256xf32> to vector<256xf32>
    %42 = vector.shape_cast %41 : vector<256xf32> to vector<1x256xf32>
    %43 = vector.broadcast %42 : vector<1x256xf32> to vector<8x256xf32>
    %44 = arith.addf %39, %43 : vector<8x256xf32>
    %cst_15 = arith.constant 0.000000e+00 : f32
    %45 = vector.broadcast %cst_15 : f32 to vector<8x256xf32>
    %c2_i32 = arith.constant 2 : i32
    %46 = tpu.dynamic_rotate %3 by %c2_i32 dim 0 : vector<8x256xf32>, i32 -> vector<8x256xf32>
    %c2_i32_16 = arith.constant 2 : i32
    %47 = vector.broadcast %c2_i32_16 : i32 to vector<8x256xi32>
    %48 = arith.cmpi sge, %4, %47 : vector<8x256xi32>
    %c10_i32 = arith.constant 10 : i32
    %49 = vector.broadcast %c10_i32 : i32 to vector<8x256xi32>
    %50 = arith.cmpi slt, %4, %49 : vector<8x256xi32>
    %51 = arith.andi %48, %50 : vector<8x256xi1>
    %cst_17 = arith.constant 0.000000e+00 : f32
    %52 = vector.broadcast %cst_17 : f32 to vector<8x256xf32>
    %53 = arith.select %51, %46, %52 : vector<8x256xi1>, vector<8x256xf32>
    %c0_18 = arith.constant 0 : index
    %c0_19 = arith.constant 0 : index
    %54 = vector.load %arg6[%c0_18, %c0_19] : memref<5x256xf32, #tpu.memory_space<vmem>>, vector<1x256xf32>
    %55 = vector.shape_cast %54 : vector<1x256xf32> to vector<256xf32>
    %56 = vector.shape_cast %55 : vector<256xf32> to vector<1x256xf32>
    %57 = vector.broadcast %56 : vector<1x256xf32> to vector<8x256xf32>
    %58 = arith.mulf %57, %53 : vector<8x256xf32>
    %59 = arith.addf %45, %58 : vector<8x256xf32>
    %c1_i32_20 = arith.constant 1 : i32
    %60 = tpu.dynamic_rotate %3 by %c1_i32_20 dim 0 : vector<8x256xf32>, i32 -> vector<8x256xf32>
    %c1_i32_21 = arith.constant 1 : i32
    %61 = vector.broadcast %c1_i32_21 : i32 to vector<8x256xi32>
    %62 = arith.cmpi sge, %4, %61 : vector<8x256xi32>
    %c9_i32_22 = arith.constant 9 : i32
    %63 = vector.broadcast %c9_i32_22 : i32 to vector<8x256xi32>
    %64 = arith.cmpi slt, %4, %63 : vector<8x256xi32>
    %65 = arith.andi %62, %64 : vector<8x256xi1>
    %cst_23 = arith.constant 0.000000e+00 : f32
    %66 = vector.broadcast %cst_23 : f32 to vector<8x256xf32>
    %67 = arith.select %65, %60, %66 : vector<8x256xi1>, vector<8x256xf32>
    %c1_24 = arith.constant 1 : index
    %c0_25 = arith.constant 0 : index
    %68 = vector.load %arg6[%c1_24, %c0_25] : memref<5x256xf32, #tpu.memory_space<vmem>>, vector<1x256xf32>
    %69 = vector.shape_cast %68 : vector<1x256xf32> to vector<256xf32>
    %70 = vector.shape_cast %69 : vector<256xf32> to vector<1x256xf32>
    %71 = vector.broadcast %70 : vector<1x256xf32> to vector<8x256xf32>
    %72 = arith.mulf %71, %67 : vector<8x256xf32>
    %73 = arith.addf %59, %72 : vector<8x256xf32>
    %c2_26 = arith.constant 2 : index
    %c0_27 = arith.constant 0 : index
    %74 = vector.load %arg6[%c2_26, %c0_27] : memref<5x256xf32, #tpu.memory_space<vmem>>, vector<1x256xf32>
    %75 = vector.shape_cast %74 : vector<1x256xf32> to vector<256xf32>
    %76 = vector.shape_cast %75 : vector<256xf32> to vector<1x256xf32>
    %77 = vector.broadcast %76 : vector<1x256xf32> to vector<8x256xf32>
    %78 = arith.mulf %77, %3 : vector<8x256xf32>
    %79 = arith.addf %73, %78 : vector<8x256xf32>
    %c7_i32_28 = arith.constant 7 : i32
    %80 = tpu.dynamic_rotate %3 by %c7_i32_28 dim 0 : vector<8x256xf32>, i32 -> vector<8x256xf32>
    %c-1_i32_29 = arith.constant -1 : i32
    %81 = vector.broadcast %c-1_i32_29 : i32 to vector<8x256xi32>
    %82 = arith.cmpi sge, %4, %81 : vector<8x256xi32>
    %c7_i32_30 = arith.constant 7 : i32
    %83 = vector.broadcast %c7_i32_30 : i32 to vector<8x256xi32>
    %84 = arith.cmpi slt, %4, %83 : vector<8x256xi32>
    %85 = arith.andi %82, %84 : vector<8x256xi1>
    %cst_31 = arith.constant 0.000000e+00 : f32
    %86 = vector.broadcast %cst_31 : f32 to vector<8x256xf32>
    %87 = arith.select %85, %80, %86 : vector<8x256xi1>, vector<8x256xf32>
    %c3 = arith.constant 3 : index
    %c0_32 = arith.constant 0 : index
    %88 = vector.load %arg6[%c3, %c0_32] : memref<5x256xf32, #tpu.memory_space<vmem>>, vector<1x256xf32>
    %89 = vector.shape_cast %88 : vector<1x256xf32> to vector<256xf32>
    %90 = vector.shape_cast %89 : vector<256xf32> to vector<1x256xf32>
    %91 = vector.broadcast %90 : vector<1x256xf32> to vector<8x256xf32>
    %92 = arith.mulf %91, %87 : vector<8x256xf32>
    %93 = arith.addf %79, %92 : vector<8x256xf32>
    %c6_i32 = arith.constant 6 : i32
    %94 = tpu.dynamic_rotate %3 by %c6_i32 dim 0 : vector<8x256xf32>, i32 -> vector<8x256xf32>
    %c-2_i32 = arith.constant -2 : i32
    %95 = vector.broadcast %c-2_i32 : i32 to vector<8x256xi32>
    %96 = arith.cmpi sge, %4, %95 : vector<8x256xi32>
    %c6_i32_33 = arith.constant 6 : i32
    %97 = vector.broadcast %c6_i32_33 : i32 to vector<8x256xi32>
    %98 = arith.cmpi slt, %4, %97 : vector<8x256xi32>
    %99 = arith.andi %96, %98 : vector<8x256xi1>
    %cst_34 = arith.constant 0.000000e+00 : f32
    %100 = vector.broadcast %cst_34 : f32 to vector<8x256xf32>
    %101 = arith.select %99, %94, %100 : vector<8x256xi1>, vector<8x256xf32>
    %c4 = arith.constant 4 : index
    %c0_35 = arith.constant 0 : index
    %102 = vector.load %arg6[%c4, %c0_35] : memref<5x256xf32, #tpu.memory_space<vmem>>, vector<1x256xf32>
    %103 = vector.shape_cast %102 : vector<1x256xf32> to vector<256xf32>
    %104 = vector.shape_cast %103 : vector<256xf32> to vector<1x256xf32>
    %105 = vector.broadcast %104 : vector<1x256xf32> to vector<8x256xf32>
    %106 = arith.mulf %105, %101 : vector<8x256xf32>
    %107 = arith.addf %93, %106 : vector<8x256xf32>
    %c0_36 = arith.constant 0 : index
    %c0_37 = arith.constant 0 : index
    %108 = vector.load %arg7[%c0_36, %c0_37] : memref<1x256xf32, #tpu.memory_space<vmem>>, vector<1x256xf32>
    %109 = vector.shape_cast %108 : vector<1x256xf32> to vector<256xf32>
    %110 = vector.shape_cast %109 : vector<256xf32> to vector<1x256xf32>
    %111 = vector.broadcast %110 : vector<1x256xf32> to vector<8x256xf32>
    %112 = arith.addf %107, %111 : vector<8x256xf32>
    %c0_38 = arith.constant 0 : index
    %c0_39 = arith.constant 0 : index
    %c0_40 = arith.constant 0 : index
    %113 = vector.load %arg9[%c0_38, %c0_39, %c0_40] : memref<1x8x256xf32, #tpu.memory_space<vmem>>, vector<1x8x256xf32>
    %114 = vector.shape_cast %113 : vector<1x8x256xf32> to vector<8x256xf32>
    %115 = vector.shape_cast %44 : vector<8x256xf32> to vector<1x8x256xf32>
    tpu.vector_store %arg9[%c0_38, %c0_39, %c0_40], %115 {strides = array<i32>} : memref<1x8x256xf32, #tpu.memory_space<vmem>>, vector<1x8x256xf32>,
    %c0_41 = arith.constant 0 : index
    %c0_42 = arith.constant 0 : index
    %c0_43 = arith.constant 0 : index
    %116 = vector.load %arg10[%c0_41, %c0_42, %c0_43] : memref<1x8x256xf32, #tpu.memory_space<vmem>>, vector<1x8x256xf32>
    %117 = vector.shape_cast %116 : vector<1x8x256xf32> to vector<8x256xf32>
    %118 = vector.shape_cast %112 : vector<8x256xf32> to vector<1x8x256xf32>
    tpu.vector_store %arg10[%c0_41, %c0_42, %c0_43], %118 {strides = array<i32>} : memref<1x8x256xf32, #tpu.memory_space<vmem>>, vector<1x8x256xf32>,
    %cst_44 = arith.constant dense<0.000000e+00> : vector<256xf32>
    %119 = vector.multi_reduction <add>, %44, %cst_44 [0] : vector<8x256xf32> to vector<256xf32>
    %120 = vector.shape_cast %119 : vector<256xf32> to vector<1x256xf32>
    %121 = arith.mulf %44, %44 : vector<8x256xf32>
    %cst_45 = arith.constant dense<0.000000e+00> : vector<256xf32>
    %122 = vector.multi_reduction <add>, %121, %cst_45 [0] : vector<8x256xf32> to vector<256xf32>
    %123 = vector.shape_cast %122 : vector<256xf32> to vector<1x256xf32>
    %cst_46 = arith.constant dense<0.000000e+00> : vector<256xf32>
    %124 = vector.multi_reduction <add>, %112, %cst_46 [0] : vector<8x256xf32> to vector<256xf32>
    %125 = vector.shape_cast %124 : vector<256xf32> to vector<1x256xf32>
    %126 = arith.mulf %112, %112 : vector<8x256xf32>
    %cst_47 = arith.constant dense<0.000000e+00> : vector<256xf32>
    %127 = vector.multi_reduction <add>, %126, %cst_47 [0] : vector<8x256xf32> to vector<256xf32>
    %128 = vector.shape_cast %127 : vector<256xf32> to vector<1x256xf32>
    %129 = tpu.concatenate %120, %123, %125, %128 in 0 : vector<1x256xf32>, vector<1x256xf32>, vector<1x256xf32>, vector<1x256xf32> -> vector<4x256xf32>
    %c0_48 = arith.constant 0 : index
    %c0_49 = arith.constant 0 : index
    %130 = vector.load %arg8[%c0_48, %c0_49] : memref<256x8xf32, #tpu.memory_space<vmem>>, vector<256x8xf32>
    %cst_50 = arith.constant dense<0.000000e+00> : vector<4x8xf32>
    %131 = tpu.matmul %129, %130, %cst_50 {dimension_numbers = #tpu.dot_dimension_numbers<[1], [0], [0], [1], [0, 0, 1, 1], [], []>} : vector<4x256xf32>, vector<256x8xf32>, vector<4x8xf32> -> vector<4x8xf32>
    %c0_51 = arith.constant 0 : index
    %c0_52 = arith.constant 0 : index
    %c0_53 = arith.constant 0 : index
    %c0_54 = arith.constant 0 : index
    %132 = vector.load %arg11[%c0_51, %c0_52, %c0_53, %c0_54] : memref<1x1x4x8xf32, #tpu.memory_space<vmem>>, vector<1x1x4x8xf32>
    %133 = vector.shape_cast %132 : vector<1x1x4x8xf32> to vector<4x8xf32>
    %134 = vector.shape_cast %131 : vector<4x8xf32> to vector<1x1x4x8xf32>
    tpu.vector_store %arg11[%c0_51, %c0_52, %c0_53, %c0_54], %134 {strides = array<i32>} : memref<1x1x4x8xf32, #tpu.memory_space<vmem>>, vector<1x1x4x8xf32>,
    return
  }
  func.func @transform_0(%arg0: i32, %arg1: i32) -> (i32, i32, i32) {
    %c0_i32 = arith.constant 0 : i32
    %c0_i32_0 = arith.constant 0 : i32
    return %arg0, %c0_i32, %arg1 : i32, i32, i32
  }
  func.func @transform_1(%arg0: i32, %arg1: i32) -> (i32, i32, i32) {
    %c0_i32 = arith.constant 0 : i32
    %c0_i32_0 = arith.constant 0 : i32
    return %arg0, %c0_i32, %arg1 : i32, i32, i32
  }
  func.func @transform_2(%arg0: i32, %arg1: i32) -> (i32, i32) {
    %c0_i32 = arith.constant 0 : i32
    %c0_i32_0 = arith.constant 0 : i32
    %c0_i32_1 = arith.constant 0 : i32
    return %c0_i32, %c0_i32_0 : i32, i32
  }
  func.func @transform_3(%arg0: i32, %arg1: i32) -> (i32, i32) {
    %c0_i32 = arith.constant 0 : i32
    %c0_i32_0 = arith.constant 0 : i32
    %c0_i32_1 = arith.constant 0 : i32
    return %c0_i32, %c0_i32_0 : i32, i32
  }
  func.func @transform_4(%arg0: i32, %arg1: i32) -> (i32, i32) {
    %c0_i32 = arith.constant 0 : i32
    %c0_i32_0 = arith.constant 0 : i32
    %c0_i32_1 = arith.constant 0 : i32
    return %c0_i32, %c0_i32_0 : i32, i32
  }
  func.func @transform_5(%arg0: i32, %arg1: i32) -> (i32, i32) {
    %c0_i32 = arith.constant 0 : i32
    %c0_i32_0 = arith.constant 0 : i32
    %c0_i32_1 = arith.constant 0 : i32
    return %c0_i32, %c0_i32_0 : i32, i32
  }
  func.func @transform_6(%arg0: i32, %arg1: i32) -> (i32, i32) {
    %c0_i32 = arith.constant 0 : i32
    %c0_i32_0 = arith.constant 0 : i32
    %c0_i32_1 = arith.constant 0 : i32
    return %c0_i32, %c0_i32_0 : i32, i32
  }
  func.func @transform_7(%arg0: i32, %arg1: i32) -> (i32, i32, i32) {
    %c0_i32 = arith.constant 0 : i32
    %c0_i32_0 = arith.constant 0 : i32
    return %arg0, %c0_i32, %arg1 : i32, i32, i32
  }
  func.func @transform_8(%arg0: i32, %arg1: i32) -> (i32, i32, i32) {
    %c0_i32 = arith.constant 0 : i32
    %c0_i32_0 = arith.constant 0 : i32
    return %arg0, %c0_i32, %arg1 : i32, i32, i32
  }
  func.func @transform_9(%arg0: i32, %arg1: i32) -> (i32, i32, i32, i32) {
    %c0_i32 = arith.constant 0 : i32
    %c0_i32_0 = arith.constant 0 : i32
    %c0_i32_1 = arith.constant 0 : i32
    return %arg0, %arg1, %c0_i32, %c0_i32_0 : i32, i32, i32, i32
  }
}

module attributes {stable_mosaic.version = 11 : i64} {
  func.func @_finalize_kernel(%arg0: i32, %arg1: memref<256x8xf32, #tpu.memory_space<vmem>>, %arg2: memref<256x8xf32, #tpu.memory_space<vmem>>, %arg3: memref<256x8xf32, #tpu.memory_space<vmem>>, %arg4: memref<256x8xf32, #tpu.memory_space<vmem>>, %arg5: memref<256x48xf32, #tpu.memory_space<vmem>>, %arg6: memref<4x8xf32, #tpu.memory_space<vmem>>, %arg7: memref<8x48xf32, #tpu.memory_space<vmem>>, %arg8: memref<8x48xf32, #tpu.memory_space<vmem>>, %arg9: memref<1x48xf32, #tpu.memory_space<vmem>>, %arg10: memref<256x48xf32, #tpu.memory_space<vmem>>) attributes {dimension_semantics = [#tpu.dimension_semantics<parallel>], iteration_bounds = array<i64: 2>, scalar_prefetch = 0 : i64, scratch_operands = 0 : i64, tpu.core_type = #tpu.core_type<tc>, window_params = [{transform_indices = @transform_0, window_bounds = array<i64: 256, 8>}, {transform_indices = @transform_1, window_bounds = array<i64: 256, 8>}, {transform_indices = @transform_2, window_bounds = array<i64: 256, 8>}, {transform_indices = @transform_3, window_bounds = array<i64: 256, 8>}, {transform_indices = @transform_4, window_bounds = array<i64: 256, 48>}, {pipeline_mode = #tpu.pipeline_mode<synchronous>, transform_indices = @transform_5, window_bounds = array<i64: 4, 8>}, {pipeline_mode = #tpu.pipeline_mode<synchronous>, transform_indices = @transform_6, window_bounds = array<i64: 8, 48>}, {pipeline_mode = #tpu.pipeline_mode<synchronous>, transform_indices = @transform_7, window_bounds = array<i64: 8, 48>}, {pipeline_mode = #tpu.pipeline_mode<synchronous>, transform_indices = @transform_8, window_bounds = array<i64: 1, 48>}, {transform_indices = @transform_9, window_bounds = array<i64: 256, 48>}]} {
    %c0 = arith.constant 0 : index
    %c0_0 = arith.constant 0 : index
    %0 = vector.load %arg6[%c0, %c0_0] : memref<4x8xf32, #tpu.memory_space<vmem>>, vector<4x8xf32>
    %c0_1 = arith.constant 0 : index
    %c0_2 = arith.constant 0 : index
    %1 = vector.load %arg1[%c0_1, %c0_2] : memref<256x8xf32, #tpu.memory_space<vmem>>, vector<256x8xf32>
    %2 = vector.extract_strided_slice %0 {offsets = [0, 0], sizes = [1, 8], strides = [1, 1]} : vector<4x8xf32> to vector<1x8xf32>
    %3 = vector.shape_cast %2 : vector<1x8xf32> to vector<8xf32>
    %4 = vector.shape_cast %3 : vector<8xf32> to vector<1x8xf32>
    %5 = vector.broadcast %4 : vector<1x8xf32> to vector<256x8xf32>
    %6 = arith.mulf %1, %5 : vector<256x8xf32>
    %7 = vector.extract_strided_slice %0 {offsets = [1, 0], sizes = [1, 8], strides = [1, 1]} : vector<4x8xf32> to vector<1x8xf32>
    %8 = vector.shape_cast %7 : vector<1x8xf32> to vector<8xf32>
    %9 = vector.shape_cast %8 : vector<8xf32> to vector<1x8xf32>
    %10 = vector.broadcast %9 : vector<1x8xf32> to vector<256x8xf32>
    %11 = arith.addf %6, %10 : vector<256x8xf32>
    %cst = arith.constant 0.000000e+00 : f32
    %12 = vector.broadcast %cst : f32 to vector<256x8xf32>
    %13 = arith.maximumf %11, %12 : vector<256x8xf32>
    %c0_3 = arith.constant 0 : index
    %c0_4 = arith.constant 0 : index
    %14 = vector.load %arg2[%c0_3, %c0_4] : memref<256x8xf32, #tpu.memory_space<vmem>>, vector<256x8xf32>
    %15 = vector.extract_strided_slice %0 {offsets = [2, 0], sizes = [1, 8], strides = [1, 1]} : vector<4x8xf32> to vector<1x8xf32>
    %16 = vector.shape_cast %15 : vector<1x8xf32> to vector<8xf32>
    %17 = vector.shape_cast %16 : vector<8xf32> to vector<1x8xf32>
    %18 = vector.broadcast %17 : vector<1x8xf32> to vector<256x8xf32>
    %19 = arith.mulf %14, %18 : vector<256x8xf32>
    %20 = vector.extract_strided_slice %0 {offsets = [3, 0], sizes = [1, 8], strides = [1, 1]} : vector<4x8xf32> to vector<1x8xf32>
    %21 = vector.shape_cast %20 : vector<1x8xf32> to vector<8xf32>
    %22 = vector.shape_cast %21 : vector<8xf32> to vector<1x8xf32>
    %23 = vector.broadcast %22 : vector<1x8xf32> to vector<256x8xf32>
    %24 = arith.addf %19, %23 : vector<256x8xf32>
    %cst_5 = arith.constant 0.000000e+00 : f32
    %25 = vector.broadcast %cst_5 : f32 to vector<256x8xf32>
    %26 = arith.maximumf %24, %25 : vector<256x8xf32>
    %27 = arith.addf %13, %26 : vector<256x8xf32>
    %c0_6 = arith.constant 0 : index
    %c0_7 = arith.constant 0 : index
    %28 = vector.load %arg3[%c0_6, %c0_7] : memref<256x8xf32, #tpu.memory_space<vmem>>, vector<256x8xf32>
    %29 = arith.addf %27, %28 : vector<256x8xf32>
    %c0_8 = arith.constant 0 : index
    %c0_9 = arith.constant 0 : index
    %30 = vector.load %arg4[%c0_8, %c0_9] : memref<256x8xf32, #tpu.memory_space<vmem>>, vector<256x8xf32>
    %c0_10 = arith.constant 0 : index
    %c0_11 = arith.constant 0 : index
    %31 = vector.load %arg7[%c0_10, %c0_11] : memref<8x48xf32, #tpu.memory_space<vmem>>, vector<8x48xf32>
    %cst_12 = arith.constant dense<0.000000e+00> : vector<256x48xf32>
    %32 = tpu.matmul %30, %31, %cst_12 {dimension_numbers = #tpu.dot_dimension_numbers<[1], [0], [0], [1], [0, 0, 1, 1], [], []>} : vector<256x8xf32>, vector<8x48xf32>, vector<256x48xf32> -> vector<256x48xf32>
    %c0_13 = arith.constant 0 : index
    %c0_14 = arith.constant 0 : index
    %33 = vector.load %arg8[%c0_13, %c0_14] : memref<8x48xf32, #tpu.memory_space<vmem>>, vector<8x48xf32>
    %cst_15 = arith.constant dense<0.000000e+00> : vector<256x48xf32>
    %34 = tpu.matmul %29, %33, %cst_15 {dimension_numbers = #tpu.dot_dimension_numbers<[1], [0], [0], [1], [0, 0, 1, 1], [], []>} : vector<256x8xf32>, vector<8x48xf32>, vector<256x48xf32> -> vector<256x48xf32>
    %35 = arith.addf %32, %34 : vector<256x48xf32>
    %c0_16 = arith.constant 0 : index
    %c0_17 = arith.constant 0 : index
    %36 = vector.load %arg9[%c0_16, %c0_17] : memref<1x48xf32, #tpu.memory_space<vmem>>, vector<1x48xf32>
    %37 = vector.broadcast %36 : vector<1x48xf32> to vector<256x48xf32>
    %38 = arith.addf %35, %37 : vector<256x48xf32>
    %c0_18 = arith.constant 0 : index
    %c0_19 = arith.constant 0 : index
    %39 = vector.load %arg5[%c0_18, %c0_19] : memref<256x48xf32, #tpu.memory_space<vmem>>, vector<256x48xf32>
    %cst_20 = arith.constant 5.000000e-01 : f32
    %40 = vector.broadcast %cst_20 : f32 to vector<256x48xf32>
    %41 = arith.mulf %40, %38 : vector<256x48xf32>
    %cst_21 = arith.constant 0.707106769 : f32
    %42 = vector.broadcast %cst_21 : f32 to vector<256x48xf32>
    %43 = arith.mulf %38, %42 : vector<256x48xf32>
    %cst_22 = arith.constant 0.000000e+00 : f32
    %44 = vector.broadcast %cst_22 : f32 to vector<256x48xf32>
    %45 = arith.cmpf oge, %43, %44 : vector<256x48xf32>
    %cst_23 = arith.constant 1.000000e+00 : f32
    %cst_24 = arith.constant -1.000000e+00 : f32
    %46 = vector.broadcast %cst_23 : f32 to vector<256x48xf32>
    %47 = vector.broadcast %cst_24 : f32 to vector<256x48xf32>
    %48 = arith.select %45, %46, %47 : vector<256x48xi1>, vector<256x48xf32>
    %49 = math.absf %43 : vector<256x48xf32>
    %cst_25 = arith.constant 0.327591091 : f32
    %50 = vector.broadcast %cst_25 : f32 to vector<256x48xf32>
    %51 = arith.mulf %50, %49 : vector<256x48xf32>
    %cst_26 = arith.constant 1.000000e+00 : f32
    %52 = vector.broadcast %cst_26 : f32 to vector<256x48xf32>
    %53 = arith.addf %52, %51 : vector<256x48xf32>
    %54 = tpu.reciprocal %53 {approx = true} : vector<256x48xf32> -> vector<256x48xf32>
    %cst_27 = arith.constant 1.06140542 : f32
    %55 = vector.broadcast %cst_27 : f32 to vector<256x48xf32>
    %56 = arith.mulf %55, %54 : vector<256x48xf32>
    %cst_28 = arith.constant -1.45315206 : f32
    %57 = vector.broadcast %cst_28 : f32 to vector<256x48xf32>
    %58 = arith.addf %56, %57 : vector<256x48xf32>
    %59 = arith.mulf %58, %54 : vector<256x48xf32>
    %cst_29 = arith.constant 1.42141378 : f32
    %60 = vector.broadcast %cst_29 : f32 to vector<256x48xf32>
    %61 = arith.addf %59, %60 : vector<256x48xf32>
    %62 = arith.mulf %61, %54 : vector<256x48xf32>
    %cst_30 = arith.constant -0.284496725 : f32
    %63 = vector.broadcast %cst_30 : f32 to vector<256x48xf32>
    %64 = arith.addf %62, %63 : vector<256x48xf32>
    %65 = arith.mulf %64, %54 : vector<256x48xf32>
    %cst_31 = arith.constant 0.254829586 : f32
    %66 = vector.broadcast %cst_31 : f32 to vector<256x48xf32>
    %67 = arith.addf %65, %66 : vector<256x48xf32>
    %68 = arith.mulf %67, %54 : vector<256x48xf32>
    %cst_32 = arith.constant 0.000000e+00 : f32
    %69 = vector.broadcast %cst_32 : f32 to vector<256x48xf32>
    %70 = arith.subf %69, %49 : vector<256x48xf32>
    %71 = arith.mulf %70, %49 : vector<256x48xf32>
    %72 = math.exp %71 : vector<256x48xf32>
    %73 = arith.mulf %68, %72 : vector<256x48xf32>
    %cst_33 = arith.constant 1.000000e+00 : f32
    %74 = vector.broadcast %cst_33 : f32 to vector<256x48xf32>
    %75 = arith.subf %74, %73 : vector<256x48xf32>
    %76 = arith.mulf %48, %75 : vector<256x48xf32>
    %cst_34 = arith.constant 1.000000e+00 : f32
    %77 = vector.broadcast %cst_34 : f32 to vector<256x48xf32>
    %78 = arith.addf %77, %76 : vector<256x48xf32>
    %79 = arith.mulf %41, %78 : vector<256x48xf32>
    %80 = arith.addf %39, %79 : vector<256x48xf32>
    %c0_35 = arith.constant 0 : index
    %c0_36 = arith.constant 0 : index
    %81 = vector.load %arg10[%c0_35, %c0_36] : memref<256x48xf32, #tpu.memory_space<vmem>>, vector<256x48xf32>
    tpu.vector_store %arg10[%c0_35, %c0_36], %80 {strides = array<i32>} : memref<256x48xf32, #tpu.memory_space<vmem>>, vector<256x48xf32>,
    return
  }
  func.func @transform_0(%arg0: i32) -> (i32, i32) {
    %c0_i32 = arith.constant 0 : i32
    %c0_i32_0 = arith.constant 0 : i32
    return %arg0, %c0_i32 : i32, i32
  }
  func.func @transform_1(%arg0: i32) -> (i32, i32) {
    %c0_i32 = arith.constant 0 : i32
    %c0_i32_0 = arith.constant 0 : i32
    return %arg0, %c0_i32 : i32, i32
  }
  func.func @transform_2(%arg0: i32) -> (i32, i32) {
    %c0_i32 = arith.constant 0 : i32
    %c0_i32_0 = arith.constant 0 : i32
    return %arg0, %c0_i32 : i32, i32
  }
  func.func @transform_3(%arg0: i32) -> (i32, i32) {
    %c0_i32 = arith.constant 0 : i32
    %c0_i32_0 = arith.constant 0 : i32
    return %arg0, %c0_i32 : i32, i32
  }
  func.func @transform_4(%arg0: i32) -> (i32, i32) {
    %c0_i32 = arith.constant 0 : i32
    %c0_i32_0 = arith.constant 0 : i32
    return %arg0, %c0_i32 : i32, i32
  }
  func.func @transform_5(%arg0: i32) -> (i32, i32) {
    %c0_i32 = arith.constant 0 : i32
    %c0_i32_0 = arith.constant 0 : i32
    %c0_i32_1 = arith.constant 0 : i32
    return %c0_i32, %c0_i32_0 : i32, i32
  }
  func.func @transform_6(%arg0: i32) -> (i32, i32) {
    %c0_i32 = arith.constant 0 : i32
    %c0_i32_0 = arith.constant 0 : i32
    %c0_i32_1 = arith.constant 0 : i32
    return %c0_i32, %c0_i32_0 : i32, i32
  }
  func.func @transform_7(%arg0: i32) -> (i32, i32) {
    %c0_i32 = arith.constant 0 : i32
    %c0_i32_0 = arith.constant 0 : i32
    %c0_i32_1 = arith.constant 0 : i32
    return %c0_i32, %c0_i32_0 : i32, i32
  }
  func.func @transform_8(%arg0: i32) -> (i32, i32) {
    %c0_i32 = arith.constant 0 : i32
    %c0_i32_0 = arith.constant 0 : i32
    %c0_i32_1 = arith.constant 0 : i32
    return %c0_i32, %c0_i32_0 : i32, i32
  }
  func.func @transform_9(%arg0: i32) -> (i32, i32) {
    %c0_i32 = arith.constant 0 : i32
    %c0_i32_0 = arith.constant 0 : i32
    return %arg0, %c0_i32 : i32, i32
  }
}

</mosaic_0001>

<bundles_post_ra>
// kernel: med_adapter_forward.4
= control target key start
LH: loop header
LB: loop body
LE: loop exit
PB: predicated region body
PF: predicated region fallthrough
CT: control target
= control target key end

     0   :  { %s1576_s12 = smov 0   ;;  %s2509_s0 = inlined_call_operand.vmem [shape: f32[512,48], index: 0, kind: input, shape index: {}]   ;;  %s2510_s1 = inlined_call_operand.vmem [shape: f32[48,8], index: 1, kind: input, shape index: {}]   ;;  %s2511_s2 = inlined_call_operand.vmem [shape: f32[1,8], index: 2, kind: input, shape index: {}]   ;;  %s2512_s3 = inlined_call_operand.vmem [shape: f32[512,8], index: 3, kind: output, shape index: {}]  }
   0x1 LB: > { %s1347_s13 = sadd.s32 4294967295, %s1553_s12   ;;  %p1351_p0 = scmp.ge.s32.totalorder %s1553_s12, 1  ;;  %s1553_s12 = sphi %s1576_s12, %s13_s12  }
   0x2   : > { %p138_p1 = scmp.lt.s32.totalorder %s1553_s12, 3 }
   0x4   : > { %p139_p2 = pnand %p1351_p0, %p138_p1 }
   0x5   : > { %s1352_s18 = sshll.u32 (!%p139_p2), %s1347_s13, 5 }
   0x6   : > { %142 = sbr.rel (%p139_p2) target bundleno = 387 (0x183), region = 32  ;;  %p163_p3 = scmp.lt.s32.totalorder (!%p139_p2), %s1352_s18, 63 }
   0xb   : > { %v211_v0 = vld [vmem:[%s2510_s1 + $0x28] sm:$0xff]  ;;  %v210_v1 = vld [vmem:[%s2510_s1 + $0x20] sm:$0xff]  ;;  %v209_v2 = vld [vmem:[%s2510_s1 + $0x18] sm:$0xff]  ;;  %s2514_s18 = smov (!%p163_p3, %s1352_s18), 63  ;;  %vm216_vm0 = vcmask 392192   ;;  %vm1258_vm6 = vcmask 64512  }
   0xc   : > { %323 = vmatpush.msra.mxu0 %v211_v0  ;;  %1390 = vmatpush.msra.mxu1 %v211_v0  ;;  %v208_v3 = vld [vmem:[%s2510_s1 + $0x10] sm:$0xff]  ;;  %s1353_s23 = sshll.u32 %s2514_s18, 3  ;;  %v207_v4 = vld [vmem:[%s2510_s1 + $0x8] sm:$0xff]  ;;  %v206_v5 = vld [vmem:[%s2510_s1] sm:$0xff] }
   0xd   : > { %1391 = vmatpush.msra.mxu2 %v211_v0  ;;  %1392 = vmatpush.msra.mxu3 %v211_v0  ;;  %s1607_s28 = scalar_lea.vmem %s2509_s0, %s1353_s23  ;;  %v1679_v38 = vld [vmem:[%s2511_s2] ss:$0 sm:$0xff]  ;;  %s1788_s8 = scalar_lea.vmem %s2512_s3, %s1353_s23 }
   0xe   : > { %324 = vmatpush.msra.mxu0 %v210_v1  ;;  %1393 = vmatpush.msra.mxu1 %v210_v1  ;;  %v174_v6 = vld [vmem:[%s1607_s28] sm:$0xff]  ;;  %v175_v10 = vld [vmem:[%s1607_s28 + $0x8] sm:$0xff]  ;;  %v176_v14 = vld [vmem:[%s1607_s28 + $0x10] sm:$0xff] }
   0xf   : > { %1394 = vmatpush.msra.mxu2 %v210_v1  ;;  %1395 = vmatpush.msra.mxu3 %v210_v1  ;;  %v182_v7 = vld [vmem:[%s1607_s28 + $0x40] sm:$0xff]  ;;  %v183_v11 = vld [vmem:[%s1607_s28 + $0x48] sm:$0xff]  ;;  %v184_v15 = vld [vmem:[%s1607_s28 + $0x50] sm:$0xff] }
  0x10   : > { %325 = vmatpush.msra.mxu0 %v209_v2  ;;  %1396 = vmatpush.msra.mxu1 %v209_v2  ;;  %v190_v8 = vld [vmem:[%s1607_s28 + $0x80] sm:$0xff]  ;;  %v191_v12 = vld [vmem:[%s1607_s28 + $0x88] sm:$0xff]  ;;  %v192_v16 = vld [vmem:[%s1607_s28 + $0x90] sm:$0xff] }
  0x11   : > { %1397 = vmatpush.msra.mxu2 %v209_v2  ;;  %1398 = vmatpush.msra.mxu3 %v209_v2  ;;  %v198_v9 = vld [vmem:[%s1607_s28 + $0xc0] sm:$0xff]  ;;  %v199_v13 = vld [vmem:[%s1607_s28 + $0xc8] sm:$0xff]  ;;  %v200_v17 = vld [vmem:[%s1607_s28 + $0xd0] sm:$0xff] }
  0x12   : > { %326 = vmatpush.msra.mxu0 %v208_v3  ;;  %1399 = vmatpush.msra.mxu1 %v208_v3  ;;  %v177_v18 = vld [vmem:[%s1607_s28 + $0x18] sm:$0xff]  ;;  %v178_v22 = vld [vmem:[%s1607_s28 + $0x20] sm:$0xff]  ;;  %v179_v26 = vld [vmem:[%s1607_s28 + $0x28] sm:$0xff] }
  0x13   : > { %1400 = vmatpush.msra.mxu2 %v208_v3  ;;  %1401 = vmatpush.msra.mxu3 %v208_v3  ;;  %v185_v19 = vld [vmem:[%s1607_s28 + $0x58] sm:$0xff]  ;;  %v186_v23 = vld [vmem:[%s1607_s28 + $0x60] sm:$0xff]  ;;  %v187_v27 = vld [vmem:[%s1607_s28 + $0x68] sm:$0xff] }
  0x14   : > { %327 = vmatpush.msra.mxu0 %v207_v4  ;;  %1402 = vmatpush.msra.mxu1 %v207_v4  ;;  %v193_v20 = vld [vmem:[%s1607_s28 + $0x98] sm:$0xff]  ;;  %v194_v24 = vld [vmem:[%s1607_s28 + $0xa0] sm:$0xff]  ;;  %v195_v28 = vld [vmem:[%s1607_s28 + $0xa8] sm:$0xff] }
  0x15   : > { %1403 = vmatpush.msra.mxu2 %v207_v4  ;;  %1404 = vmatpush.msra.mxu3 %v207_v4  ;;  %v201_v21 = vld [vmem:[%s1607_s28 + $0xd8] sm:$0xff]  ;;  %v202_v25 = vld [vmem:[%s1607_s28 + $0xe0] sm:$0xff]  ;;  %v203_v29 = vld [vmem:[%s1607_s28 + $0xe8] sm:$0xff]  ;;  %v1555_v4 = vmov -1.0  }
  0x16   : > { %328 = vmatpush.msra.mxu0 %v206_v5  ;;  %1405 = vmatpush.msra.mxu1 %v206_v5  ;;  %v180_v30 = vld [vmem:[%s1607_s28 + $0x30] sm:$0xff]  ;;  %v181_v34 = vld [vmem:[%s1607_s28 + $0x38] sm:$0xff] }
  0x17   : > { %1406 = vmatpush.msra.mxu2 %v206_v5  ;;  %1407 = vmatpush.msra.mxu3 %v206_v5  ;;  %v188_v31 = vld [vmem:[%s1607_s28 + $0x70] sm:$0xff]  ;;  %v189_v35 = vld [vmem:[%s1607_s28 + $0x78] sm:$0xff] }
  0x18   : > { %1356 = vmatmul.msk.f32.vlgmr.msra.gmra.mxu0 %vm216_vm0, %v174_v6  ;;  %1364 = vmatmul.msk.f32.vlgmr.msra.gmra.mxu1 %vm216_vm0, %v182_v7  ;;  %v196_v32 = vld [vmem:[%s1607_s28 + $0xb0] sm:$0xff]  ;;  %v197_v36 = vld [vmem:[%s1607_s28 + $0xb8] sm:$0xff] }
  0x19   : > { %1372 = vmatmul.msk.f32.vlgmr.msra.gmra.mxu2 %vm216_vm0, %v190_v8  ;;  %1380 = vmatmul.msk.f32.vlgmr.msra.gmra.mxu3 %vm216_vm0, %v198_v9  ;;  %v204_v33 = vld [vmem:[%s1607_s28 + $0xf0] sm:$0xff]  ;;  %v205_v37 = vld [vmem:[%s1607_s28 + $0xf8] sm:$0xff] }
  0x20   : > { %1357 = vmatmul.msk.f32.gmra.mxu0 %vm216_vm0, %v175_v10  ;;  %1365 = vmatmul.msk.f32.gmra.mxu1 %vm216_vm0, %v183_v11 }
  0x21   : > { %1373 = vmatmul.msk.f32.gmra.mxu2 %vm216_vm0, %v191_v12  ;;  %1381 = vmatmul.msk.f32.gmra.mxu3 %vm216_vm0, %v199_v13 }
  0x28   : > { %1358 = vmatmul.msk.f32.gmra.mxu0 %vm216_vm0, %v176_v14  ;;  %1366 = vmatmul.msk.f32.gmra.mxu1 %vm216_vm0, %v184_v15 }
  0x29   : > { %1374 = vmatmul.msk.f32.gmra.mxu2 %vm216_vm0, %v192_v16  ;;  %1382 = vmatmul.msk.f32.gmra.mxu3 %vm216_vm0, %v200_v17 }
  0x30   : > { %1359 = vmatmul.msk.f32.gmra.mxu0 %vm216_vm0, %v177_v18  ;;  %1367 = vmatmul.msk.f32.gmra.mxu1 %vm216_vm0, %v185_v19 }
  0x31   : > { %1375 = vmatmul.msk.f32.gmra.mxu2 %vm216_vm0, %v193_v20  ;;  %1383 = vmatmul.msk.f32.gmra.mxu3 %vm216_vm0, %v201_v21 }
  0x38   : > { %1360 = vmatmul.msk.f32.gmra.mxu0 %vm216_vm0, %v178_v22  ;;  %1368 = vmatmul.msk.f32.gmra.mxu1 %vm216_vm0, %v186_v23 }
  0x39   : > { %1376 = vmatmul.msk.f32.gmra.mxu2 %vm216_vm0, %v194_v24  ;;  %1384 = vmatmul.msk.f32.gmra.mxu3 %vm216_vm0, %v202_v25 }
  0x40   : > { %1361 = vmatmul.msk.f32.gmra.mxu0 %vm216_vm0, %v179_v26  ;;  %1369 = vmatmul.msk.f32.gmra.mxu1 %vm216_vm0, %v187_v27 }
  0x41   : > { %1377 = vmatmul.msk.f32.gmra.mxu2 %vm216_vm0, %v195_v28  ;;  %1385 = vmatmul.msk.f32.gmra.mxu3 %vm216_vm0, %v203_v29 }
  0x48   : > { %1362 = vmatmul.msk.f32.gmra.mxu0 %vm216_vm0, %v180_v30  ;;  %1370 = vmatmul.msk.f32.gmra.mxu1 %vm216_vm0, %v188_v31 }
  0x49   : > { %1378 = vmatmul.msk.f32.gmra.mxu2 %vm216_vm0, %v196_v32  ;;  %1386 = vmatmul.msk.f32.gmra.mxu3 %vm216_vm0, %v204_v33 }
  0x50   : > { %1363 = vmatmul.msk.f32.gmra.mxu0 %vm216_vm0, %v181_v34  ;;  %1371 = vmatmul.msk.f32.gmra.mxu1 %vm216_vm0, %v189_v35 }
  0x51   : > { %1379 = vmatmul.msk.f32.gmra.mxu2 %vm216_vm0, %v197_v36  ;;  %1387 = vmatmul.msk.f32.gmra.mxu3 %vm216_vm0, %v205_v37 }
  0x95   : > { %v330_v39 = vpop.f32.mrf.mxu0  ;;  %v354_v40 = vpop.f32.mrf.mxu1 }
  0x96   : > { %v331_v41 = vadd.f32 %v1679_v38, %v330_v39  ;;  %v355_v42 = vadd.f32 %v1679_v38, %v354_v40 }
  0x98   : > { %v458_v43 = vmul.f32 0.70710677, %v331_v41  ;;  %v466_v44 = vmul.f32 0.70710677, %v355_v42  ;;  %v1688_v0 = vmul.f32 0.5, %v331_v41  ;;  %v1690_v1 = vmul.f32 0.5, %v355_v42 }
  0x9a   : > { %v554_v45 = vand.u32 2147483647, %v458_v43  ;;  %v562_v46 = vand.u32 2147483647, %v466_v44  ;;  %vm490_vm1 = vcmp.ge.f32.partialorder %v458_v43, 0.0  ;;  %vm498_vm2 = vcmp.ge.f32.partialorder %v466_v44, 0.0 }
  0x9b   : > { %v1693_v5 = vsel %vm490_vm1, 1.0, %v1555_v4  ;;  %v1696_v6 = vsel %vm498_vm2, 1.0, %v1555_v4 }
  0x9c   : > { %v586_v47 = vmul.f32 0.3275911, %v554_v45  ;;  %v594_v48 = vmul.f32 0.3275911, %v562_v46  ;;  %v378_v49 = vpop.f32.mrf.mxu2  ;;  %v402_v50 = vpop.f32.mrf.mxu3  ;;  %v970_v55 = vsub.f32 0.0, %v554_v45  ;;  %v978_v60 = vsub.f32 0.0, %v562_v46 }
  0x9d   : > { %v379_v51 = vadd.f32 %v1679_v38, %v378_v49  ;;  %v403_v52 = vadd.f32 %v1679_v38, %v402_v50  ;;  %v333_v53 = vpop.f32.mrf.mxu0  ;;  %v357_v3 = vpop.f32.mrf.mxu1 }
  0x9e   : > { %v618_v54 = vadd.f32 1.0, %v586_v47  ;;  %v626_v56 = vadd.f32 1.0, %v594_v48  ;;  %v1686_v59 = vadd.f32 %v1679_v38, %v333_v53  ;;  %v1002_v62 = vmul.f32 %v970_v55, %v554_v45 }
  0x9f   : > { %v474_v57 = vmul.f32 0.70710677, %v379_v51  ;;  %v482_v58 = vmul.f32 0.70710677, %v403_v52  ;;  %v1010_v9 = vmul.f32 %v978_v60, %v562_v46  ;;  %v1699_v10 = vmul.f32 0.5, %v379_v51 }
  0xa0   : > { %1418 = vrcp.f32 %v618_v54  ;;  %v459_v8 = vmul.f32 0.70710677, %v1686_v59  ;;  %v1034_v14 = vmul.f32 1.442695, %v1002_v62  ;;  %v1704_v17 = vadd.f32 %v1679_v38, %v357_v3 }
  0xa1   : > { %1420 = vrcp.f32 %v626_v56  ;;  %v570_v61 = vand.u32 2147483647, %v474_v57  ;;  %v578_v63 = vand.u32 2147483647, %v482_v58  ;;  %vm506_vm3 = vcmp.ge.f32.partialorder %v474_v57, 0.0 }
  0xa2   : > { %v555_v16 = vand.u32 2147483647, %v459_v8  ;;  %vm514_vm4 = vcmp.ge.f32.partialorder %v482_v58, 0.0  ;;  %v1050_v25 = vmul.f32 1.442695, %v1010_v9  ;;  %v1713_v29 = vmul.f32 0.5, %v403_v52 }
  0xa3   : > { %v602_v2 = vmul.f32 0.3275911, %v570_v61  ;;  %v610_v7 = vmul.f32 0.3275911, %v578_v63  ;;  %v986_v12 = vsub.f32 0.0, %v570_v61  ;;  %v994_v21 = vsub.f32 0.0, %v578_v63 }
  0xa4   : > { %v381_v18 = vpop.f32.mrf.mxu2  ;;  %v587_v23 = vmul.f32 0.3275911, %v555_v16  ;;  %v1716_v31 = vmul.f32 0.70710677, %v1704_v17  ;;  %v1721_v33 = vsel %vm506_vm3, 1.0, %v1555_v4  ;;  %v1724_v34 = vsel %vm514_vm4, 1.0, %v1555_v4  ;;  %v405_v58 = vpop.f32.mrf.mxu3 }
  0xa5   : > { %v634_v11 = vadd.f32 1.0, %v602_v2  ;;  %v642_v15 = vadd.f32 1.0, %v610_v7  ;;  %v1018_v26 = vmul.f32 %v986_v12, %v570_v61  ;;  %v1711_v27 = vadd.f32 %v1679_v38, %v381_v18 }
  0xa6   : > { %v1701_v13 = vpop.eup %1418  ;;  %v619_v30 = vadd.f32 1.0, %v587_v23  ;;  %v1026_v35 = vmul.f32 %v994_v21, %v578_v63  ;;  %vm491_vm5 = vcmp.ge.f32.partialorder %v459_v8, 0.0  ;;  %v563_v37 = vand.u32 2147483647, %v1716_v31 }
  0xa7   : > { %v1706_v19 = vpop.eup %1420  ;;  %v682_v20 = vmul.f32 1.0614054, %v1701_v13  ;;  %1422 = vrcp.f32 %v634_v11  ;;  %v1066_v41 = vmul.f32 1.442695, %v1018_v26  ;;  %v1731_v42 = vmul.f32 0.70710677, %v1711_v27 }
  0xa8   : > { %v690_v22 = vmul.f32 1.0614054, %v1706_v19  ;;  %1424 = vrcp.f32 %v642_v15  ;;  %v595_v46 = vmul.f32 0.3275911, %v563_v37  ;;  %v1739_v49 = vsel %vm491_vm5, 1.0, %v1555_v4 }
  0xa9   : > { %v714_v24 = vadd.f32 -1.4531521, %v682_v20  ;;  %1426 = vrcp.f32 %v619_v30  ;;  %v971_v50 = vsub.f32 0.0, %v555_v16  ;;  %v1082_v53 = vmul.f32 1.442695, %v1026_v35 }
  0xaa   : > { %v722_v28 = vadd.f32 -1.4531521, %v690_v22  ;;  %1428 = vpow2.f32 %v1034_v14  ;;  %v627_v54 = vadd.f32 1.0, %v595_v46  ;;  %v1743_v57 = vand.u32 2147483647, %v1731_v42 }
  0xab   : > { %v746_v32 = vmul.f32 %v1701_v13, %v714_v24  ;;  %1430 = vpow2.f32 %v1050_v25  ;;  %v979_v63 = vsub.f32 0.0, %v563_v37  ;;  %v1003_v8 = vmul.f32 %v971_v50, %v555_v16 }
  0xac   : > { %v754_v36 = vmul.f32 %v1706_v19, %v722_v28  ;;  %1432 = vrcp.f32 %v627_v54  ;;  %v603_v14 = vmul.f32 0.3275911, %v1743_v57  ;;  %v1754_v15 = vadd.f32 %v1679_v38, %v405_v58 }
  0xad   : > { %v1728_v39 = vpop.eup %1422  ;;  %v778_v40 = vadd.f32 1.4214138, %v746_v32  ;;  %1434 = vpow2.f32 %v1066_v41  ;;  %v1011_v24 = vmul.f32 %v979_v63, %v563_v37  ;;  %v1036_v32 = vmul.f32 1.442695, %v1003_v8 }
  0xae   : > { %v1733_v43 = vpop.eup %1424  ;;  %v786_v44 = vadd.f32 1.4214138, %v754_v36  ;;  %v698_v45 = vmul.f32 1.0614054, %v1728_v39  ;;  %v635_v25 = vadd.f32 1.0, %v603_v14  ;;  %v987_v8 = vsub.f32 0.0, %v1743_v57 }
  0xaf   : > { %v810_v47 = vmul.f32 %v1701_v13, %v778_v40  ;;  %v706_v48 = vmul.f32 1.0614054, %v1733_v43  ;;  %v1745_v60 = vpop.eup %1426  ;;  %v1764_v41 = vmul.f32 0.70710677, %v1754_v15  ;;  %vm499_vm7 = vcmp.ge.f32.partialorder %v1716_v31, 0.0 }
  0xb0   : > { %v818_v51 = vmul.f32 %v1706_v19, %v786_v44  ;;  %v730_v52 = vadd.f32 -1.4531521, %v698_v45  ;;  %v683_v7 = vmul.f32 1.0614054, %v1745_v60  ;;  %v1429_v9 = vpop.eup %1428  ;;  %1436 = vrcp.f32 %v635_v25  ;;  %v336_v25 = vpop.f32.mrf.mxu0 }
  0xb1   : > { %v842_v55 = vadd.f32 -0.28449672, %v810_v47  ;;  %v738_v56 = vadd.f32 -1.4531521, %v706_v48  ;;  %v1431_v26 = vpop.eup %1430  ;;  %1438 = vpow2.f32 %v1082_v53  ;;  %v1052_v48 = vmul.f32 1.442695, %v1011_v24 }
  0xb2   : > { %v850_v61 = vadd.f32 -0.28449672, %v818_v51  ;;  %v762_v62 = vmul.f32 %v1728_v39, %v730_v52  ;;  %v715_v21 = vadd.f32 -1.4531521, %v683_v7  ;;  %v1760_v35 = vpop.eup %1432  ;;  %1440 = vpow2.f32 %v1036_v32 }
  0xb3   : > { %v874_v2 = vmul.f32 %v1701_v13, %v842_v55  ;;  %v770_v3 = vmul.f32 %v1733_v43, %v738_v56  ;;  %v1435_v50 = vpop.eup %1434  ;;  %v1771_v58 = vand.u32 2147483647, %v1764_v41  ;;  %v435_v31 = vmul.f32 0.5, %v1704_v17 }
  0xb4   : > { %v882_v11 = vmul.f32 %v1706_v19, %v850_v61  ;;  %v794_v12 = vadd.f32 1.4214138, %v762_v62  ;;  %v747_v30 = vmul.f32 %v1745_v60, %v715_v21  ;;  %vm507_vm8 = vcmp.ge.f32.partialorder %v1731_v42, 0.0 }
  0xb5   : > { %v906_v18 = vadd.f32 0.2548296, %v874_v2  ;;  %v802_v20 = vadd.f32 1.4214138, %v770_v3  ;;  %vm515_vm9 = vcmp.ge.f32.partialorder %v1764_v41, 0.0 }
  0xb6   : > { %v914_v22 = vadd.f32 0.2548296, %v882_v11  ;;  %v826_v23 = vmul.f32 %v1728_v39, %v794_v12  ;;  %v779_v45 = vadd.f32 1.4214138, %v747_v30  ;;  %v1775_v2 = vpop.eup %1436 }
  0xb7   : > { %v938_v16 = vmul.f32 %v1701_v13, %v906_v18  ;;  %v834_v28 = vmul.f32 %v1733_v43, %v802_v20  ;;  %v691_v13 = vmul.f32 1.0614054, %v1760_v35  ;;  %v1439_v18 = vpop.eup %1438  ;;  %v699_v20 = vmul.f32 1.0614054, %v1775_v2 }
  0xb8   : > { %v946_v36 = vmul.f32 %v1706_v19, %v914_v22  ;;  %v858_v40 = vadd.f32 -0.28449672, %v826_v23  ;;  %v811_v19 = vmul.f32 %v1745_v60, %v779_v45 }
  0xb9   : > { %v1098_v37 = vmul.f32 %v1429_v9, %v938_v16  ;;  %v866_v44 = vadd.f32 -0.28449672, %v834_v28  ;;  %v723_v54 = vadd.f32 -1.4531521, %v691_v13  ;;  %v611_v9 = vmul.f32 0.3275911, %v1771_v58 }
  0xba   : > { %v1106_v46 = vmul.f32 %v1431_v26, %v946_v36  ;;  %v890_v47 = vmul.f32 %v1728_v39, %v858_v40  ;;  %v843_v63 = vadd.f32 -0.28449672, %v811_v19  ;;  %v1441_v26 = vpop.eup %1440  ;;  %v731_v30 = vadd.f32 -1.4531521, %v699_v20 }
  0xbb   : > { %v1130_v51 = vsub.f32 1.0, %v1098_v37  ;;  %v898_v52 = vmul.f32 %v1733_v43, %v866_v44  ;;  %v755_v53 = vmul.f32 %v1760_v35, %v723_v54  ;;  %v643_v21 = vadd.f32 1.0, %v611_v9 }
  0xbc   : > { %v1138_v55 = vsub.f32 1.0, %v1106_v46  ;;  %v922_v56 = vadd.f32 0.2548296, %v890_v47  ;;  %v875_v14 = vmul.f32 %v1745_v60, %v843_v63  ;;  %v1019_v37 = vmul.f32 %v987_v8, %v1743_v57  ;;  %v360_v46 = vpop.f32.mrf.mxu1 }
  0xbd   : > { %v1162_v61 = vmul.f32 %v1130_v51, %v1693_v5  ;;  %v930_v62 = vadd.f32 0.2548296, %v898_v52  ;;  %v787_v5 = vadd.f32 1.4214138, %v755_v53  ;;  %1442 = vrcp.f32 %v643_v21 }
  0xbe   : > { %v1170_v3 = vmul.f32 %v1138_v55, %v1696_v6  ;;  %v954_v7 = vmul.f32 %v1728_v39, %v922_v56  ;;  %v907_v23 = vadd.f32 0.2548296, %v875_v14  ;;  %1444 = vpow2.f32 %v1052_v48 }
  0xbf   : > { %v1194_v11 = vadd.f32 1.0, %v1162_v61  ;;  %v962_v12 = vmul.f32 %v1733_v43, %v930_v62  ;;  %v819_v24 = vmul.f32 %v1760_v35, %v787_v5  ;;  %v763_v44 = vmul.f32 %v1775_v2, %v731_v30 }
  0xc0   : > { %v1202_v6 = vadd.f32 1.0, %v1170_v3  ;;  %v1114_v39 = vmul.f32 %v1435_v50, %v954_v7  ;;  %v939_v36 = vmul.f32 %v1745_v60, %v907_v23  ;;  %v995_v50 = vsub.f32 0.0, %v1771_v58 }
  0xc1   : > { %v1226_v22 = vmul.f32 %v1194_v11, %v1688_v0  ;;  %v1122_v43 = vmul.f32 %v1439_v18, %v962_v12  ;;  %v851_v40 = vadd.f32 -0.28449672, %v819_v24  ;;  %v795_v57 = vadd.f32 1.4214138, %v763_v44  ;;  %v384_v12 = vpop.f32.mrf.mxu2 }
  0xc2   : > { %v1234_v16 = vmul.f32 %v1202_v6, %v1690_v1  ;;  %v1146_v28 = vsub.f32 1.0, %v1114_v39  ;;  %v1803_v1 = vadd.f32 %v1679_v38, %v336_v25  ;;  %v1099_v13 = vmul.f32 %v1441_v26, %v939_v36  ;;  %v408_v25 = vpop.f32.mrf.mxu3 }
  0xc3   : > { %1259 = vst.msk [vmem:[%s1788_s8] sm:$0xff] %vm1258_vm6, %v1226_v22  ;;  %v1154_v32 = vsub.f32 1.0, %v1122_v43  ;;  %v883_v60 = vmul.f32 %v1760_v35, %v851_v40  ;;  %v1068_v19 = vmul.f32 1.442695, %v1019_v37  ;;  %v1812_v54 = vpop.eup %1442  ;;  %v827_v55 = vmul.f32 %v1775_v2, %v795_v57 }
  0xc4   : > { %1267 = vst.msk [vmem:[%s1788_s8 + $0x40] sm:$0xff] %vm1258_vm6, %v1234_v16  ;;  %v1178_v0 = vmul.f32 %v1146_v28, %v1721_v33  ;;  %v1810_v33 = vmul.f32 0.70710677, %v1803_v1  ;;  %v1131_v51 = vsub.f32 1.0, %v1099_v13  ;;  %v1820_v61 = vadd.f32 %v1679_v38, %v360_v46  ;;  %v1445_v7 = vpop.eup %1444 }
  0xc5   : > { %v1186_v45 = vmul.f32 %v1154_v32, %v1724_v34  ;;  %v915_v52 = vadd.f32 0.2548296, %v883_v60  ;;  %v707_v3 = vmul.f32 1.0614054, %v1812_v54  ;;  %v859_v8 = vadd.f32 -0.28449672, %v827_v55 }
  0xc6   : > { %v1210_v47 = vadd.f32 1.0, %v1178_v0  ;;  %v1817_v56 = vand.u32 2147483647, %v1810_v33  ;;  %v1163_v63 = vmul.f32 %v1131_v51, %v1739_v49  ;;  %v1027_v9 = vmul.f32 %v995_v50, %v1771_v58 }
  0xc7   : > { %v1218_v48 = vadd.f32 1.0, %v1186_v45  ;;  %v947_v53 = vmul.f32 %v1760_v35, %v915_v52  ;;  %1446 = vpow2.f32 %v1068_v19  ;;  %v739_v35 = vadd.f32 -1.4531521, %v707_v3  ;;  %v339_v52 = vpop.f32.mrf.mxu0 }
  0xc8   : > { %v1242_v34 = vmul.f32 %v1210_v47, %v1699_v10  ;;  %v427_v10 = vmul.f32 0.5, %v1686_v59  ;;  %v588_v11 = vmul.f32 0.3275911, %v1817_v56  ;;  %v531_v14 = vsel %vm499_vm7, 1.0, %v1555_v4 }
  0xc9   : > { %v1250_v62 = vmul.f32 %v1218_v48, %v1713_v29  ;;  %v1195_v29 = vadd.f32 1.0, %v1163_v63  ;;  %v1107_v49 = vmul.f32 %v1445_v7, %v947_v53  ;;  %v891_v5 = vmul.f32 %v1775_v2, %v859_v8 }
  0xca   : > { %1275 = vst.msk [vmem:[%s1788_s8 + $0x80] sm:$0xff] %vm1258_vm6, %v1242_v34  ;;  %v620_v59 = vadd.f32 1.0, %v588_v11  ;;  %v1838_v18 = vmul.f32 0.70710677, %v1820_v61  ;;  %v771_v39 = vmul.f32 %v1812_v54, %v739_v35  ;;  %v1842_v20 = vadd.f32 %v1679_v38, %v384_v12 }
  0xcb   : > { %1283 = vst.msk [vmem:[%s1788_s8 + $0xc0] sm:$0xff] %vm1258_vm6, %v1250_v62  ;;  %v1227_v58 = vmul.f32 %v1195_v29, %v427_v10  ;;  %v1139_v6 = vsub.f32 1.0, %v1107_v49  ;;  %v923_v21 = vadd.f32 0.2548296, %v891_v5  ;;  %v1084_v22 = vmul.f32 1.442695, %v1027_v9  ;;  %v363_v5 = vpop.f32.mrf.mxu1 }
  0xcc   : > { %1448 = vrcp.f32 %v620_v59  ;;  %v1845_v43 = vand.u32 2147483647, %v1838_v18  ;;  %v803_v24 = vadd.f32 1.4214138, %v771_v39  ;;  %v443_v26 = vmul.f32 0.5, %v1711_v27 }
  0xcd   : > { %1260 = vst.msk [vmem:[%s1788_s8 + $0x8] sm:$0xff] %vm1258_vm6, %v1227_v58  ;;  %v1171_v23 = vmul.f32 %v1139_v6, %v531_v14  ;;  %v955_v16 = vmul.f32 %v1775_v2, %v923_v21  ;;  %v1447_v30 = vpop.eup %1446  ;;  %v1857_v17 = vmul.f32 0.70710677, %v1842_v20  ;;  %1450 = vpow2.f32 %v1084_v22 }
  0xce   : > { %v596_v28 = vmul.f32 0.3275911, %v1845_v43  ;;  %v835_v36 = vmul.f32 %v1812_v54, %v803_v24  ;;  %v1860_v27 = vadd.f32 %v1679_v38, %v408_v25  ;;  %v972_v44 = vsub.f32 0.0, %v1817_v56 }
  0xcf   : > { %v1203_v32 = vadd.f32 1.0, %v1171_v23  ;;  %v1115_v40 = vmul.f32 %v1447_v30, %v955_v16  ;;  %v572_v45 = vand.u32 2147483647, %v1857_v17  ;;  %v539_v60 = vsel %vm507_vm8, 1.0, %v1555_v4 }
  0xd0   : > { %v628_v37 = vadd.f32 1.0, %v596_v28  ;;  %v867_v2 = vadd.f32 -0.28449672, %v835_v36  ;;  %v1870_v47 = vmul.f32 0.5, %v1754_v15  ;;  %v547_v57 = vsel %vm515_vm9, 1.0, %v1555_v4 }
  0xd1   : > { %v1235_v0 = vmul.f32 %v1203_v32, %v435_v31  ;;  %v1147_v46 = vsub.f32 1.0, %v1115_v40  ;;  %v604_v51 = vmul.f32 0.3275911, %v572_v45  ;;  %v1880_v42 = vmul.f32 0.5, %v1803_v1 }
  0xd2   : > { %v1864_v13 = vpop.eup %1448  ;;  %1452 = vrcp.f32 %v628_v37  ;;  %v899_v50 = vmul.f32 %v1812_v54, %v867_v2  ;;  %vm492_vm10 = vcmp.ge.f32.partialorder %v1810_v33, 0.0  ;;  %v1884_v15 = vmul.f32 0.70710677, %v1860_v27  ;;  %v387_v37 = vpop.f32.mrf.mxu2 }
  0xd3   : > { %1268 = vst.msk [vmem:[%s1788_s8 + $0x48] sm:$0xff] %vm1258_vm6, %v1235_v0  ;;  %v684_v48 = vmul.f32 1.0614054, %v1864_v13  ;;  %v1179_v19 = vmul.f32 %v1147_v46, %v539_v60  ;;  %v1004_v41 = vmul.f32 %v972_v44, %v1817_v56  ;;  %v636_v62 = vadd.f32 1.0, %v604_v51  ;;  %v1451_v63 = vpop.eup %1450 }
  0xd4   : > { %v931_v34 = vadd.f32 0.2548296, %v899_v50  ;;  %vm500_vm11 = vcmp.ge.f32.partialorder %v1838_v18, 0.0  ;;  %v1889_v3 = vand.u32 2147483647, %v1884_v15  ;;  %v1892_v1 = vadd.f32 %v1679_v38, %v339_v52 }
  0xd5   : > { %v716_v55 = vadd.f32 -1.4531521, %v684_v48  ;;  %v1211_v53 = vadd.f32 1.0, %v1179_v19  ;;  %v980_v8 = vsub.f32 0.0, %v1845_v43  ;;  %1454 = vrcp.f32 %v636_v62 }
  0xd6   : > { %v963_v7 = vmul.f32 %v1812_v54, %v931_v34  ;;  %v1902_v11 = vsel %vm492_vm10, 1.0, %v1555_v4  ;;  %v1905_v12 = vmul.f32 0.5, %v1820_v61  ;;  %v612_v29 = vmul.f32 0.3275911, %v1889_v3 }
  0xd7   : > { %v748_v10 = vmul.f32 %v1864_v13, %v716_v55  ;;  %v1243_v9 = vmul.f32 %v1211_v53, %v443_v26  ;;  %v1038_v35 = vmul.f32 1.442695, %v1004_v41  ;;  %v1914_v59 = vsel %vm500_vm11, 1.0, %v1555_v4 }
  0xd8   : > { %v1897_v56 = vpop.eup %1452  ;;  %v1123_v49 = vmul.f32 %v1451_v63, %v963_v7  ;;  %v988_v33 = vsub.f32 0.0, %v572_v45  ;;  %v644_v58 = vadd.f32 1.0, %v612_v29  ;;  %v1917_v61 = vmul.f32 0.70710677, %v1892_v1 }
  0xd9   : > { %v780_v54 = vadd.f32 1.4214138, %v748_v10  ;;  %v692_v14 = vmul.f32 1.0614054, %v1897_v56  ;;  %1276 = vst.msk [vmem:[%s1788_s8 + $0x88] sm:$0xff] %vm1258_vm6, %v1243_v9  ;;  %v1012_v22 = vmul.f32 %v980_v8, %v1845_v43  ;;  %v1922_v31 = vmul.f32 0.5, %v1842_v20 }
  0xda   : > { %v1155_v6 = vsub.f32 1.0, %v1123_v49  ;;  %1456 = vrcp.f32 %v644_v58  ;;  %v1925_v23 = vand.u32 2147483647, %v1917_v61  ;;  %v1928_v18 = vadd.f32 %v1679_v38, %v363_v5 }
  0xdb   : > { %v812_v39 = vmul.f32 %v1864_v13, %v780_v54  ;;  %v724_v21 = vadd.f32 -1.4531521, %v692_v14  ;;  %v1930_v24 = vpop.eup %1454  ;;  %1458 = vpow2.f32 %v1038_v35  ;;  %vm508_vm12 = vcmp.ge.f32.partialorder %v1857_v17, 0.0  ;;  %v411_v35 = vpop.f32.mrf.mxu3 }
  0xdc   : > { %v1187_v25 = vmul.f32 %v1155_v6, %v547_v57  ;;  %v700_v43 = vmul.f32 1.0614054, %v1930_v24  ;;  %v1020_v20 = vmul.f32 %v988_v33, %v572_v45  ;;  %v589_v28 = vmul.f32 0.3275911, %v1925_v23 }
  0xdd   : > { %v844_v26 = vadd.f32 -0.28449672, %v812_v39  ;;  %v756_v16 = vmul.f32 %v1897_v56, %v724_v21  ;;  %v1054_v40 = vmul.f32 1.442695, %v1012_v22  ;;  %v996_v2 = vsub.f32 0.0, %v1889_v3 }
  0xde   : > { %v1219_v30 = vadd.f32 1.0, %v1187_v25  ;;  %v732_v0 = vadd.f32 -1.4531521, %v700_v43  ;;  %v621_v44 = vadd.f32 1.0, %v589_v28  ;;  %v1939_v60 = vmul.f32 0.70710677, %v1928_v18 }
  0xdf   : > { %v876_v32 = vmul.f32 %v1864_v13, %v844_v26  ;;  %v788_v36 = vadd.f32 1.4214138, %v756_v16  ;;  %v1946_v50 = vsel %vm508_vm12, 1.0, %v1555_v4  ;;  %v1070_v52 = vmul.f32 1.442695, %v1020_v20 }
  0xe0   : > { %v1251_v46 = vmul.f32 %v1219_v30, %v1870_v47  ;;  %v1948_v48 = vpop.eup %1456  ;;  %v764_v51 = vmul.f32 %v1930_v24, %v732_v0  ;;  %1460 = vrcp.f32 %v621_v44  ;;  %v1952_v19 = vadd.f32 %v1679_v38, %v387_v37 }
  0xe1   : > { %v908_v57 = vadd.f32 0.2548296, %v876_v32  ;;  %v820_v45 = vmul.f32 %v1897_v56, %v788_v36  ;;  %v1459_v34 = vpop.eup %1458  ;;  %vm516_vm13 = vcmp.ge.f32.partialorder %v1884_v15, 0.0  ;;  %v708_v17 = vmul.f32 1.0614054, %v1948_v48 }
  0xe2   : > { %1284 = vst.msk [vmem:[%s1788_s8 + $0xc8] sm:$0xff] %vm1258_vm6, %v1251_v46  ;;  %1462 = vpow2.f32 %v1054_v40  ;;  %v796_v41 = vadd.f32 1.4214138, %v764_v51  ;;  %v1028_v62 = vmul.f32 %v996_v2, %v1889_v3  ;;  %v565_v63 = vand.u32 2147483647, %v1939_v60 }
  0xe3   : > { %v940_v47 = vmul.f32 %v1864_v13, %v908_v57  ;;  %v852_v55 = vadd.f32 -0.28449672, %v820_v45  ;;  %v1963_v10 = vmul.f32 0.5, %v1860_v27  ;;  %v740_v8 = vadd.f32 -1.4531521, %v708_v17 }
  0xe4   : > { %v828_v13 = vmul.f32 %v1930_v24, %v796_v41  ;;  %v1967_v9 = vsel %vm516_vm13, 1.0, %v1555_v4  ;;  %v597_v15 = vmul.f32 0.3275911, %v565_v63  ;;  %v1970_v29 = vmul.f32 0.70710677, %v1952_v19 }
  0xe5   : > { %v1100_v53 = vmul.f32 %v1459_v34, %v940_v47  ;;  %v884_v7 = vmul.f32 %v1897_v56, %v852_v55  ;;  %1464 = vpow2.f32 %v1070_v52  ;;  %v772_v54 = vmul.f32 %v1948_v48, %v740_v8 }
  0xe6   : > { %v1973_v14 = vpop.eup %1460  ;;  %v860_v27 = vadd.f32 -0.28449672, %v828_v13  ;;  %v1086_v5 = vmul.f32 1.442695, %v1028_v62  ;;  %v973_v33 = vsub.f32 0.0, %v1925_v23  ;;  %v629_v58 = vadd.f32 1.0, %v597_v15 }
  0xe7   : > { %v1132_v49 = vsub.f32 1.0, %v1100_v53  ;;  %v916_v3 = vadd.f32 0.2548296, %v884_v7  ;;  %v804_v21 = vadd.f32 1.4214138, %v772_v54  ;;  %v1984_v43 = vadd.f32 %v1679_v38, %v411_v35 }
  0xe8   : > { %v685_v22 = vmul.f32 1.0614054, %v1973_v14  ;;  %v1463_v25 = vpop.eup %1462  ;;  %v892_v26 = vmul.f32 %v1930_v24, %v860_v27  ;;  %1466 = vrcp.f32 %v629_v58  ;;  %v1981_v16 = vand.u32 2147483647, %v1970_v29 }
  0xe9   : > { %v1164_v6 = vmul.f32 %v1132_v49, %v1902_v11  ;;  %v948_v39 = vmul.f32 %v1897_v56, %v916_v3  ;;  %v836_v11 = vmul.f32 %v1948_v48, %v804_v21  ;;  %v1988_v32 = vmul.f32 0.5, %v1892_v1 }
  0xea   : > { %v717_v30 = vadd.f32 -1.4531521, %v685_v22  ;;  %v924_v56 = vadd.f32 0.2548296, %v892_v26  ;;  %v1005_v36 = vmul.f32 %v973_v33, %v1925_v23  ;;  %v605_v40 = vmul.f32 0.3275911, %v1981_v16 }
  0xeb   : > { %v1196_v20 = vadd.f32 1.0, %v1164_v6  ;;  %v1108_v28 = vmul.f32 %v1463_v25, %v948_v39  ;;  %v1465_v37 = vpop.eup %1464  ;;  %v868_v44 = vadd.f32 -0.28449672, %v836_v11  ;;  %1468 = vpow2.f32 %v1086_v5  ;;  %v366_v6 = vpop.f32.mrf.mxu1 }
  0xec   : > { %v749_v46 = vmul.f32 %v1973_v14, %v717_v30  ;;  %v956_v57 = vmul.f32 %v1930_v24, %v924_v56  ;;  %v981_v45 = vsub.f32 0.0, %v565_v63  ;;  %v637_v51 = vadd.f32 1.0, %v605_v40 }
  0xed   : > { %v1228_v0 = vmul.f32 %v1196_v20, %v1880_v42  ;;  %v1140_v2 = vsub.f32 1.0, %v1108_v28  ;;  %v900_v23 = vmul.f32 %v1948_v48, %v868_v44  ;;  %v2000_v34 = vmul.f32 0.70710677, %v1984_v43  ;;  %v342_v42 = vpop.f32.mrf.mxu0 }
  0xee   : > { %v781_v52 = vadd.f32 1.4214138, %v749_v46  ;;  %v2002_v47 = vpop.eup %1466  ;;  %v1116_v55 = vmul.f32 %v1465_v37, %v956_v57  ;;  %vm493_vm14 = vcmp.ge.f32.partialorder %v1917_v61, 0.0  ;;  %v1040_v24 = vmul.f32 1.442695, %v1005_v36 }
  0xef   : > { %1261 = vst.msk [vmem:[%s1788_s8 + $0x10] sm:$0xff] %vm1258_vm6, %v1228_v0  ;;  %v1172_v1 = vmul.f32 %v1140_v2, %v1914_v59  ;;  %1470 = vrcp.f32 %v637_v51  ;;  %v932_v41 = vadd.f32 0.2548296, %v900_v23  ;;  %v693_v59 = vmul.f32 1.0614054, %v2002_v47  ;;  %v390_v51 = vpop.f32.mrf.mxu2 }
  0xf0   : > { %v813_v62 = vmul.f32 %v1973_v14, %v781_v52  ;;  %v1148_v53 = vsub.f32 1.0, %v1116_v55  ;;  %v1013_v7 = vmul.f32 %v981_v45, %v565_v63  ;;  %v2008_v8 = vand.u32 2147483647, %v2000_v34 }
  0xf1   : > { %v1204_v17 = vadd.f32 1.0, %v1172_v1  ;;  %v2011_v13 = vadd.f32 %v1679_v38, %v342_v42  ;;  %v964_v49 = vmul.f32 %v1948_v48, %v932_v41  ;;  %v725_v54 = vadd.f32 -1.4531521, %v693_v59  ;;  %v1469_v35 = vpop.eup %1468 }
  0xf2   : > { %v845_v3 = vadd.f32 -0.28449672, %v813_v62  ;;  %v1180_v27 = vmul.f32 %v1148_v53, %v1946_v50  ;;  %v525_v5 = vsel %vm493_vm14, 1.0, %v1555_v4  ;;  %1472 = vpow2.f32 %v1040_v24 }
  0xf3   : > { %v1236_v15 = vmul.f32 %v1204_v17, %v1905_v12  ;;  %v613_v63 = vmul.f32 0.3275911, %v2008_v8  ;;  %v1124_v33 = vmul.f32 %v1469_v35, %v964_v49  ;;  %v757_v12 = vmul.f32 %v2002_v47, %v725_v54  ;;  %v414_v54 = vpop.f32.mrf.mxu3 }
  0xf4   : > { %v877_v58 = vmul.f32 %v1973_v14, %v845_v3  ;;  %v989_v48 = vsub.f32 0.0, %v1981_v16  ;;  %v1212_v50 = vadd.f32 1.0, %v1180_v27  ;;  %v1056_v21 = vmul.f32 1.442695, %v1013_v7 }
  0xf5   : > { %1269 = vst.msk [vmem:[%s1788_s8 + $0x50] sm:$0xff] %vm1258_vm6, %v1236_v15  ;;  %v2025_v39 = vpop.eup %1470  ;;  %v645_v61 = vadd.f32 1.0, %v613_v63  ;;  %v2028_v22 = vmul.f32 0.70710677, %v2011_v13  ;;  %v1156_v25 = vsub.f32 1.0, %v1124_v33  ;;  %vm501_vm15 = vcmp.ge.f32.partialorder %v1939_v60, 0.0 }
  0xf6   : > { %v909_v26 = vadd.f32 0.2548296, %v877_v58  ;;  %v789_v20 = vadd.f32 1.4214138, %v757_v12  ;;  %v1244_v28 = vmul.f32 %v1212_v50, %v1922_v31  ;;  %v701_v11 = vmul.f32 1.0614054, %v2025_v39 }
  0xf7   : > { %1474 = vrcp.f32 %v645_v61  ;;  %v2034_v30 = vadd.f32 %v1679_v38, %v366_v6  ;;  %v1188_v56 = vmul.f32 %v1156_v25, %v1967_v9  ;;  %v1021_v37 = vmul.f32 %v989_v48, %v1981_v16 }
  0xf8   : > { %v941_v36 = vmul.f32 %v1973_v14, %v909_v26  ;;  %v821_v40 = vmul.f32 %v2002_v47, %v789_v20  ;;  %v1473_v0 = vpop.eup %1472  ;;  %1277 = vst.msk [vmem:[%s1788_s8 + $0x90] sm:$0xff] %vm1258_vm6, %v1244_v28  ;;  %v2043_v2 = vmul.f32 0.5, %v1928_v18  ;;  %v733_v31 = vadd.f32 -1.4531521, %v701_v11 }
  0xf9   : > { %v2046_v44 = vand.u32 2147483647, %v2028_v22  ;;  %v1220_v46 = vadd.f32 1.0, %v1188_v56  ;;  %v533_v9 = vsel %vm501_vm15, 1.0, %v1555_v4  ;;  %1476 = vpow2.f32 %v1056_v21 }
  0xfa   : > { %v1101_v57 = vmul.f32 %v1473_v0, %v941_v36  ;;  %v853_v14 = vadd.f32 -0.28449672, %v821_v40  ;;  %v765_v16 = vmul.f32 %v2025_v39, %v733_v31  ;;  %v2054_v18 = vmul.f32 0.70710677, %v2034_v30 }
  0xfb   : > { %v590_v45 = vmul.f32 0.3275911, %v2046_v44  ;;  %v1252_v1 = vmul.f32 %v1220_v46, %v1963_v10  ;;  %v1072_v42 = vmul.f32 1.442695, %v1021_v37  ;;  %v2061_v60 = vmul.f32 0.5, %v1952_v19 }
  0xfc   : > { %v1133_v23 = vsub.f32 1.0, %v1101_v57  ;;  %v885_v52 = vmul.f32 %v2002_v47, %v853_v14  ;;  %v797_v24 = vadd.f32 1.4214138, %v765_v16  ;;  %v997_v17 = vsub.f32 0.0, %v2008_v8 }
  0xfd   : > { %v2058_v55 = vpop.eup %1474  ;;  %v622_v41 = vadd.f32 1.0, %v590_v45  ;;  %1285 = vst.msk [vmem:[%s1788_s8 + $0xd0] sm:$0xff] %vm1258_vm6, %v1252_v1  ;;  %v2068_v10 = vadd.f32 %v1679_v38, %v390_v51  ;;  %vm509_vm0 = vcmp.ge.f32.partialorder %v1970_v29, 0.0  ;;  %v566_v19 = vand.u32 2147483647, %v2054_v18  ;;  %v345_v1 = vpop.f32.mrf.mxu0 }
  0xfe   : > { %v1165_v62 = vmul.f32 %v1133_v23, %v525_v5  ;;  %v917_v59 = vadd.f32 0.2548296, %v885_v52  ;;  %v709_v53 = vmul.f32 1.0614054, %v2058_v55  ;;  %v829_v7 = vmul.f32 %v2025_v39, %v797_v24 }
  0xff   : > { %1478 = vrcp.f32 %v622_v41  ;;  %v1477_v35 = vpop.eup %1476  ;;  %vm517_vm1 = vcmp.ge.f32.partialorder %v2000_v34, 0.0  ;;  %v1029_v5 = vmul.f32 %v997_v17, %v2008_v8  ;;  %v598_v63 = vmul.f32 0.3275911, %v566_v19 }
 0x100   : > { %v1197_v15 = vadd.f32 1.0, %v1165_v62  ;;  %v949_v49 = vmul.f32 %v2002_v47, %v917_v59  ;;  %1480 = vpow2.f32 %v1072_v42  ;;  %v741_v3 = vadd.f32 -1.4531521, %v709_v53 }
 0x101   : > { %v861_v27 = vadd.f32 -0.28449672, %v829_v7  ;;  %v2079_v48 = vmul.f32 0.70710677, %v2068_v10  ;;  %v974_v6 = vsub.f32 0.0, %v2046_v44  ;;  %v630_v50 = vadd.f32 1.0, %v598_v63 }
 0x102   : > { %v1229_v33 = vmul.f32 %v1197_v15, %v1988_v32  ;;  %v1109_v58 = vmul.f32 %v1477_v35, %v949_v49  ;;  %v773_v12 = vmul.f32 %v2058_v55, %v741_v3  ;;  %v2084_v21 = vadd.f32 %v1679_v38, %v414_v54  ;;  %v2136_v7 = vld [vmem:[%s2511_s2] ss:$0 sm:$0xff]  ;;  %v369_v49 = vpop.f32.mrf.mxu1 }
 0x103   : > { %v893_v47 = vmul.f32 %v2025_v39, %v861_v27  ;;  %v541_v32 = vsel %vm509_vm0, 1.0, %v1555_v4  ;;  %v2092_v61 = vmul.f32 0.5, %v1984_v43  ;;  %v2099_v28 = vsel %vm517_vm1, 1.0, %v1555_v4 }
 0x104   : > { %1262 = vst.msk [vmem:[%s1788_s8 + $0x18] sm:$0xff] %vm1258_vm6, %v1229_v33  ;;  %v1141_v8 = vsub.f32 1.0, %v1109_v58  ;;  %v805_v25 = vadd.f32 1.4214138, %v773_v12  ;;  %v1088_v38 = vmul.f32 1.442695, %v1029_v5  ;;  %1482 = vrcp.f32 %v630_v50 }
 0x105   : > { %v2094_v26 = vpop.eup %1478  ;;  %v925_v20 = vadd.f32 0.2548296, %v893_v47  ;;  %v2104_v43 = vand.u32 2147483647, %v2079_v48  ;;  %vm494_vm2 = vcmp.ge.f32.partialorder %v2028_v22, 0.0  ;;  %v1006_v37 = vmul.f32 %v974_v6, %v2046_v44 }
 0x106   : > { %v1481_v11 = vpop.eup %1480  ;;  %v1173_v56 = vmul.f32 %v1141_v8, %v533_v9  ;;  %v837_v36 = vmul.f32 %v2058_v55, %v805_v25  ;;  %v686_v29 = vmul.f32 1.0614054, %v2094_v26  ;;  %v2110_v34 = vmul.f32 0.70710677, %v2084_v21 }
 0x107   : > { %v957_v40 = vmul.f32 %v2025_v39, %v925_v20  ;;  %v982_v57 = vsub.f32 0.0, %v566_v19  ;;  %1484 = vpow2.f32 %v1088_v38  ;;  %v606_v14 = vmul.f32 0.3275911, %v2104_v43 }
 0x108   : > { %v1205_v0 = vadd.f32 1.0, %v1173_v56  ;;  %v869_v31 = vadd.f32 -0.28449672, %v837_v36  ;;  %v718_v46 = vadd.f32 -1.4531521, %v686_v29  ;;  %v2119_v44 = vmul.f32 0.5, %v2011_v13 }
 0x109   : > { %v1117_v9 = vmul.f32 %v1481_v11, %v957_v40  ;;  %v2114_v16 = vand.u32 2147483647, %v2110_v34  ;;  %v1042_v42 = vmul.f32 1.442695, %v1006_v37  ;;  %v638_v24 = vadd.f32 1.0, %v606_v14 }
 0x10a   : > { %v1237_v39 = vmul.f32 %v1205_v0, %v2043_v2  ;;  %v901_v45 = vmul.f32 %v2058_v55, %v869_v31  ;;  %v750_v51 = vmul.f32 %v2094_v26, %v718_v46  ;;  %v2122_v23 = vpop.eup %1482  ;;  %v2130_v2 = vsel %vm494_vm2, 1.0, %v1555_v4 }
 0x10b   : > { %v1149_v52 = vsub.f32 1.0, %v1117_v9  ;;  %v614_v17 = vmul.f32 0.3275911, %v2114_v16  ;;  %v1014_v62 = vmul.f32 %v982_v57, %v566_v19  ;;  %v694_v53 = vmul.f32 1.0614054, %v2122_v23  ;;  %v393_v9 = vpop.f32.mrf.mxu2 }
 0x10c   : > { %1270 = vst.msk [vmem:[%s1788_s8 + $0x58] sm:$0xff] %vm1258_vm6, %v1237_v39  ;;  %v933_v41 = vadd.f32 0.2548296, %v901_v45  ;;  %v782_v13 = vadd.f32 1.4214138, %v750_v51  ;;  %1486 = vrcp.f32 %v638_v24  ;;  %v2139_v15 = vadd.f32 %v2136_v7, %v345_v1 }
 0x10d   : > { %v1181_v59 = vmul.f32 %v1149_v52, %v541_v32  ;;  %v2144_v54 = vmul.f32 0.5, %v2034_v30  ;;  %v646_v19 = vadd.f32 1.0, %v614_v17  ;;  %v1485_v35 = vpop.eup %1484  ;;  %1488 = vpow2.f32 %v1042_v42 }
 0x10e   : > { %v965_v3 = vmul.f32 %v2058_v55, %v933_v41  ;;  %v814_v22 = vmul.f32 %v2094_v26, %v782_v13  ;;  %vm502_vm3 = vcmp.ge.f32.partialorder %v2054_v18, 0.0  ;;  %v726_v5 = vadd.f32 -1.4531521, %v694_v53 }
 0x10f   : > { %v1213_v27 = vadd.f32 1.0, %v1181_v59  ;;  %1490 = vrcp.f32 %v646_v19  ;;  %v2148_v58 = vadd.f32 %v2136_v7, %v369_v49  ;;  %v1058_v30 = vmul.f32 1.442695, %v1014_v62 }
 0x110   : > { %v1125_v63 = vmul.f32 %v1485_v35, %v965_v3  ;;  %v846_v33 = vadd.f32 -0.28449672, %v814_v22  ;;  %v758_v12 = vmul.f32 %v2122_v23, %v726_v5  ;;  %v2153_v47 = vmul.f32 0.70710677, %v2139_v15 }
 0x111   : > { %v1245_v55 = vmul.f32 %v1213_v27, %v2061_v60  ;;  %v2157_v18 = vsel %vm502_vm3, 1.0, %v1555_v4  ;;  %v990_v8 = vsub.f32 0.0, %v2104_v43  ;;  %v998_v60 = vsub.f32 0.0, %v2114_v16 }
 0x112   : > { %v1157_v6 = vsub.f32 1.0, %v1125_v63  ;;  %v878_v50 = vmul.f32 %v2094_v26, %v846_v33  ;;  %v2160_v32 = vpop.eup %1486  ;;  %v790_v25 = vadd.f32 1.4214138, %v758_v12  ;;  %v2166_v20 = vand.u32 2147483647, %v2153_v47  ;;  %v417_v33 = vpop.f32.mrf.mxu3 }
 0x113   : > { %1278 = vst.msk [vmem:[%s1788_s8 + $0x98] sm:$0xff] %vm1258_vm6, %v1245_v55  ;;  %v702_v56 = vmul.f32 1.0614054, %v2160_v32  ;;  %v2171_v36 = vmul.f32 0.70710677, %v2148_v58  ;;  %v1489_v29 = vpop.eup %1488  ;;  %1492 = vpow2.f32 %v1058_v30  ;;  %vm510_vm4 = vcmp.ge.f32.partialorder %v2079_v48, 0.0 }
 0x114   : > { %v1189_v38 = vmul.f32 %v1157_v6, %v2099_v28  ;;  %v910_v11 = vadd.f32 0.2548296, %v878_v50  ;;  %v822_v40 = vmul.f32 %v2122_v23, %v790_v25  ;;  %v591_v37 = vmul.f32 0.3275911, %v2166_v20 }
 0x115   : > { %v2176_v0 = vpop.eup %1490  ;;  %v734_v28 = vadd.f32 -1.4531521, %v702_v56  ;;  %v1022_v57 = vmul.f32 %v990_v8, %v2104_v43  ;;  %v1030_v45 = vmul.f32 %v998_v60, %v2114_v16  ;;  %v2185_v24 = vand.u32 2147483647, %v2171_v36 }
 0x116   : > { %v1221_v31 = vadd.f32 1.0, %v1189_v38  ;;  %v942_v46 = vmul.f32 %v2094_v26, %v910_v11  ;;  %v854_v14 = vadd.f32 -0.28449672, %v822_v40  ;;  %v710_v39 = vmul.f32 1.0614054, %v2176_v0 }
 0x117   : > { %v623_v51 = vadd.f32 1.0, %v591_v37  ;;  %v766_v42 = vmul.f32 %v2160_v32, %v734_v28  ;;  %v2189_v43 = vadd.f32 %v2136_v7, %v393_v9  ;;  %v599_v13 = vmul.f32 0.3275911, %v2185_v24 }
 0x118   : > { %v1253_v1 = vmul.f32 %v1221_v31, %v2092_v61  ;;  %v1102_v52 = vmul.f32 %v1489_v29, %v942_v46  ;;  %v886_v26 = vmul.f32 %v2122_v23, %v854_v14  ;;  %v742_v17 = vadd.f32 -1.4531521, %v710_v39  ;;  %v348_v29 = vpop.f32.mrf.mxu0 }
 0x119   : > { %1494 = vrcp.f32 %v623_v51  ;;  %v798_v16 = vadd.f32 1.4214138, %v766_v42  ;;  %v1493_v61 = vpop.eup %1492  ;;  %v2195_v59 = vmul.f32 0.5, %v2068_v10  ;;  %v1074_v53 = vmul.f32 1.442695, %v1022_v57 }
 0x11a   : > { %1286 = vst.msk [vmem:[%s1788_s8 + $0xd8] sm:$0xff] %vm1258_vm6, %v1253_v1  ;;  %v1134_v41 = vsub.f32 1.0, %v1102_v52  ;;  %v918_v62 = vadd.f32 0.2548296, %v886_v26  ;;  %v774_v49 = vmul.f32 %v2176_v0, %v742_v17  ;;  %v2202_v22 = vsel %vm510_vm4, 1.0, %v1555_v4 }
 0x11b   : > { %v830_v19 = vmul.f32 %v2160_v32, %v798_v16  ;;  %v631_v35 = vadd.f32 1.0, %v599_v13  ;;  %v1090_v63 = vmul.f32 1.442695, %v1030_v45  ;;  %v2207_v10 = vmul.f32 0.70710677, %v2189_v43 }
 0x11c   : > { %v1166_v3 = vmul.f32 %v1134_v41, %v2130_v2  ;;  %v950_v27 = vmul.f32 %v2122_v23, %v918_v62  ;;  %v806_v5 = vadd.f32 1.4214138, %v774_v49  ;;  %v975_v2 = vsub.f32 0.0, %v2166_v20 }
 0x11d   : > { %v862_v12 = vadd.f32 -0.28449672, %v830_v19  ;;  %1496 = vrcp.f32 %v631_v35  ;;  %v2213_v6 = vmul.f32 0.5, %v2084_v21  ;;  %v2220_v60 = vadd.f32 %v2136_v7, %v417_v33 }
 0x11e   : > { %v1198_v55 = vadd.f32 1.0, %v1166_v3  ;;  %v1110_v30 = vmul.f32 %v1493_v61, %v950_v27  ;;  %1498 = vpow2.f32 %v1074_v53  ;;  %v838_v23 = vmul.f32 %v2176_v0, %v806_v5  ;;  %v372_v27 = vpop.f32.mrf.mxu1 }
 0x11f   : > { %v2210_v48 = vpop.eup %1494  ;;  %v894_v8 = vmul.f32 %v2160_v32, %v862_v12  ;;  %1500 = vpow2.f32 %v1090_v63  ;;  %v2223_v56 = vand.u32 2147483647, %v2207_v10  ;;  %v983_v37 = vsub.f32 0.0, %v2185_v24 }
 0x120   : > { %v1230_v50 = vmul.f32 %v1198_v55, %v2119_v44  ;;  %v687_v25 = vmul.f32 1.0614054, %v2210_v48  ;;  %v1142_v38 = vsub.f32 1.0, %v1110_v30  ;;  %v870_v11 = vadd.f32 -0.28449672, %v838_v23 }
 0x121   : > { %v926_v21 = vadd.f32 0.2548296, %v894_v8  ;;  %v1007_v44 = vmul.f32 %v975_v2, %v2166_v20  ;;  %vm518_vm5 = vcmp.ge.f32.partialorder %v2110_v34, 0.0  ;;  %v607_v28 = vmul.f32 0.3275911, %v2223_v56 }
 0x122   : > { %1263 = vst.msk [vmem:[%s1788_s8 + $0x20] sm:$0xff] %vm1258_vm6, %v1230_v50  ;;  %v719_v40 = vadd.f32 -1.4531521, %v687_v25  ;;  %v1174_v31 = vmul.f32 %v1142_v38, %v2157_v18  ;;  %v902_v46 = vmul.f32 %v2176_v0, %v870_v11  ;;  %v2238_v39 = vmul.f32 0.70710677, %v2220_v60 }
 0x123   : > { %v2233_v57 = vpop.eup %1496  ;;  %v958_v9 = vmul.f32 %v2160_v32, %v926_v21  ;;  %v2241_v20 = vadd.f32 %v2136_v7, %v348_v29  ;;  %v639_v52 = vadd.f32 1.0, %v607_v28  ;;  %v1044_v17 = vmul.f32 1.442695, %v1007_v44 }
 0x124   : > { %v751_v14 = vmul.f32 %v2210_v48, %v719_v40  ;;  %v1499_v45 = vpop.eup %1498  ;;  %v1206_v18 = vadd.f32 1.0, %v1174_v31  ;;  %v934_v51 = vadd.f32 0.2548296, %v902_v46  ;;  %v695_v1 = vmul.f32 1.0614054, %v2233_v57 }
 0x125   : > { %v1118_v42 = vmul.f32 %v1499_v45, %v958_v9  ;;  %v1015_v32 = vmul.f32 %v983_v37, %v2185_v24  ;;  %v1501_v41 = vpop.eup %1500  ;;  %1502 = vrcp.f32 %v639_v52  ;;  %v550_v53 = vsel %vm518_vm5, 1.0, %v1555_v4 }
 0x126   : > { %v783_v26 = vadd.f32 1.4214138, %v751_v14  ;;  %v1238_v16 = vmul.f32 %v1206_v18, %v2144_v54  ;;  %v966_v13 = vmul.f32 %v2176_v0, %v934_v51  ;;  %v727_v61 = vadd.f32 -1.4531521, %v695_v1  ;;  %v396_v51 = vpop.f32.mrf.mxu2 }
 0x127   : > { %v1150_v62 = vsub.f32 1.0, %v1118_v42  ;;  %v2251_v49 = vmul.f32 0.5, %v2139_v15  ;;  %v2258_v54 = vand.u32 2147483647, %v2238_v39  ;;  %v2261_v0 = vmul.f32 0.70710677, %v2241_v20 }
 0x128   : > { %v815_v3 = vmul.f32 %v2210_v48, %v783_v26  ;;  %1271 = vst.msk [vmem:[%s1788_s8 + $0x60] sm:$0xff] %vm1258_vm6, %v1238_v16  ;;  %v1126_v24 = vmul.f32 %v1501_v41, %v966_v13  ;;  %v759_v19 = vmul.f32 %v2233_v57, %v727_v61  ;;  %vm495_vm7 = vcmp.ge.f32.partialorder %v2153_v47, 0.0 }
 0x129   : > { %v1182_v35 = vmul.f32 %v1150_v62, %v2202_v22  ;;  %v1060_v15 = vmul.f32 1.442695, %v1015_v32  ;;  %1504 = vpow2.f32 %v1044_v17  ;;  %v615_v33 = vmul.f32 0.3275911, %v2258_v54 }
 0x12a   : > { %v847_v34 = vadd.f32 -0.28449672, %v815_v3  ;;  %v1158_v5 = vsub.f32 1.0, %v1126_v24  ;;  %v791_v63 = vadd.f32 1.4214138, %v759_v19  ;;  %v991_v2 = vsub.f32 0.0, %v2223_v56 }
 0x12b   : > { %v1214_v55 = vadd.f32 1.0, %v1182_v35  ;;  %v2269_v30 = vand.u32 2147483647, %v2261_v0  ;;  %v2271_v22 = vpop.eup %1502  ;;  %v647_v8 = vadd.f32 1.0, %v615_v33  ;;  %v2275_v25 = vadd.f32 %v2136_v7, %v372_v27 }
 0x12c   : > { %v879_v12 = vmul.f32 %v2210_v48, %v847_v34  ;;  %v1190_v23 = vmul.f32 %v1158_v5, %v550_v53  ;;  %v823_v50 = vmul.f32 %v2233_v57, %v791_v63  ;;  %1506 = vpow2.f32 %v1060_v15 }
 0x12d   : > { %v1246_v38 = vmul.f32 %v1214_v55, %v2195_v59  ;;  %v703_v29 = vmul.f32 1.0614054, %v2271_v22  ;;  %v2280_v40 = vmul.f32 0.5, %v2148_v58  ;;  %1508 = vrcp.f32 %v647_v8 }
 0x12e   : > { %v911_v11 = vadd.f32 0.2548296, %v879_v12  ;;  %v1222_v21 = vadd.f32 1.0, %v1190_v23  ;;  %v855_v44 = vadd.f32 -0.28449672, %v823_v50  ;;  %v1023_v46 = vmul.f32 %v991_v2, %v2223_v56 }
 0x12f   : > { %1279 = vst.msk [vmem:[%s1788_s8 + $0xa0] sm:$0xff] %vm1258_vm6, %v1246_v38  ;;  %v735_v31 = vadd.f32 -1.4531521, %v703_v29  ;;  %v592_v59 = vmul.f32 0.3275911, %v2269_v30  ;;  %v1505_v28 = vpop.eup %1504  ;;  %v527_v58 = vsel %vm495_vm7, 1.0, %v1555_v4  ;;  %v2309_v13 = vadd.f32 %v2136_v7, %v396_v51 }
 0x130   : > { %v943_v37 = vmul.f32 %v2210_v48, %v911_v11  ;;  %v1254_v9 = vmul.f32 %v1222_v21, %v2213_v6  ;;  %v887_v14 = vmul.f32 %v2233_v57, %v855_v44  ;;  %v2293_v45 = vmul.f32 0.70710677, %v2275_v25  ;;  %v351_v21 = vpop.f32.mrf.mxu0 }
 0x131   : > { %vm503_vm8 = vcmp.ge.f32.partialorder %v2171_v36, 0.0  ;;  %v767_v48 = vmul.f32 %v2271_v22, %v735_v31  ;;  %v624_v56 = vadd.f32 1.0, %v592_v59  ;;  %v999_v6 = vsub.f32 0.0, %v2258_v54 }
 0x132   : > { %v1103_v18 = vmul.f32 %v1505_v28, %v943_v37  ;;  %1287 = vst.msk [vmem:[%s1788_s8 + $0xe0] sm:$0xff] %vm1258_vm6, %v1254_v9  ;;  %v919_v1 = vadd.f32 0.2548296, %v887_v14  ;;  %v2301_v47 = vand.u32 2147483647, %v2293_v45  ;;  %v1507_v52 = vpop.eup %1506  ;;  %v535_v36 = vsel %vm503_vm8, 1.0, %v1555_v4 }
 0x133   : > { %v799_v26 = vadd.f32 1.4214138, %v767_v48  ;;  %v1076_v17 = vmul.f32 1.442695, %v1023_v46  ;;  %1510 = vrcp.f32 %v624_v56  ;;  %v2303_v32 = vpop.eup %1508  ;;  %v2312_v62 = vmul.f32 0.5, %v2189_v43 }
 0x134   : > { %v1135_v42 = vsub.f32 1.0, %v1103_v18  ;;  %v951_v41 = vmul.f32 %v2233_v57, %v919_v1  ;;  %v600_v16 = vmul.f32 0.3275911, %v2301_v47  ;;  %v711_v3 = vmul.f32 1.0614054, %v2303_v32  ;;  %v420_v57 = vpop.f32.mrf.mxu3 }
 0x135   : > { %v831_v53 = vmul.f32 %v2271_v22, %v799_v26  ;;  %vm511_vm9 = vcmp.ge.f32.partialorder %v2207_v10, 0.0  ;;  %v1031_v19 = vmul.f32 %v999_v6, %v2258_v54  ;;  %1512 = vpow2.f32 %v1076_v17 }
 0x136   : > { %v1167_v61 = vmul.f32 %v1135_v42, %v527_v58  ;;  %v1111_v24 = vmul.f32 %v1507_v52, %v951_v41  ;;  %v632_v35 = vadd.f32 1.0, %v600_v16  ;;  %v743_v27 = vadd.f32 -1.4531521, %v711_v3 }
 0x137   : > { %v863_v15 = vadd.f32 -0.28449672, %v831_v53  ;;  %v976_v43 = vsub.f32 0.0, %v2269_v30  ;;  %v2320_v63 = vmul.f32 0.70710677, %v2309_v13  ;;  %v2328_v2 = vadd.f32 %v2136_v7, %v420_v57 }
 0x138   : > { %v1199_v34 = vadd.f32 1.0, %v1167_v61  ;;  %v1143_v5 = vsub.f32 1.0, %v1111_v24  ;;  %1514 = vrcp.f32 %v632_v35  ;;  %v775_v12 = vmul.f32 %v2303_v32, %v743_v27 }
 0x139   : > { %v2322_v33 = vpop.eup %1510  ;;  %v895_v54 = vmul.f32 %v2271_v22, %v863_v15  ;;  %v2331_v50 = vmul.f32 0.5, %v2220_v60  ;;  %v1092_v8 = vmul.f32 1.442695, %v1031_v19  ;;  %v1008_v31 = vmul.f32 %v976_v43, %v2269_v30 }
 0x13a   : > { %v1231_v55 = vmul.f32 %v1199_v34, %v2251_v49  ;;  %v1175_v23 = vmul.f32 %v1143_v5, %v535_v36  ;;  %v688_v38 = vmul.f32 1.0614054, %v2322_v33  ;;  %v543_v49 = vsel %vm511_vm9, 1.0, %v1555_v4  ;;  %v375_v5 = vpop.f32.mrf.mxu1 }
 0x13b   : > { %v927_v11 = vadd.f32 0.2548296, %v895_v54  ;;  %v807_v29 = vadd.f32 1.4214138, %v775_v12  ;;  %v2341_v60 = vand.u32 2147483647, %v2320_v63  ;;  %v1513_v46 = vpop.eup %1512  ;;  %v2355_v48 = vadd.f32 %v2136_v7, %v351_v21 }
 0x13c   : > { %1264 = vst.msk [vmem:[%s1788_s8 + $0x28] sm:$0xff] %vm1258_vm6, %v1231_v55  ;;  %v1207_v44 = vadd.f32 1.0, %v1175_v23  ;;  %v720_v37 = vadd.f32 -1.4531521, %v688_v38  ;;  %v984_v9 = vsub.f32 0.0, %v2301_v47  ;;  %vm519_vm10 = vcmp.ge.f32.partialorder %v2238_v39, 0.0 }
 0x13d   : > { %v959_v59 = vmul.f32 %v2271_v22, %v927_v11  ;;  %v839_v28 = vmul.f32 %v2303_v32, %v807_v29  ;;  %v2347_v10 = vmul.f32 0.70710677, %v2328_v2  ;;  %v608_v18 = vmul.f32 0.3275911, %v2341_v60 }
 0x13e   : > { %v2349_v58 = vpop.eup %1514  ;;  %v1239_v14 = vmul.f32 %v1207_v44, %v2280_v40  ;;  %v752_v30 = vmul.f32 %v2322_v33, %v720_v37  ;;  %1516 = vpow2.f32 %v1092_v8  ;;  %v1046_v6 = vmul.f32 1.442695, %v1008_v31 }
 0x13f   : > { %v1119_v56 = vmul.f32 %v1513_v46, %v959_v59  ;;  %v871_v22 = vadd.f32 -0.28449672, %v839_v28  ;;  %v696_v51 = vmul.f32 1.0614054, %v2349_v58  ;;  %v640_v52 = vadd.f32 1.0, %v608_v18 }
 0x140   : > { %1272 = vst.msk [vmem:[%s1788_s8 + $0x68] sm:$0xff] %vm1258_vm6, %v1239_v14  ;;  %v784_v1 = vadd.f32 1.4214138, %v752_v30  ;;  %v2363_v17 = vand.u32 2147483647, %v2347_v10  ;;  %v1016_v41 = vmul.f32 %v984_v9, %v2301_v47  ;;  %v551_v19 = vsel %vm519_vm10, 1.0, %v1555_v4  ;;  %v399_v9 = vpop.f32.mrf.mxu2 }
 0x141   : > { %v1151_v40 = vsub.f32 1.0, %v1119_v56  ;;  %v903_v42 = vmul.f32 %v2303_v32, %v871_v22  ;;  %v728_v26 = vadd.f32 -1.4531521, %v696_v51  ;;  %1518 = vrcp.f32 %v640_v52 }
 0x142   : > { %v816_v36 = vmul.f32 %v2322_v33, %v784_v1  ;;  %v2368_v16 = vmul.f32 0.70710677, %v2355_v48  ;;  %v616_v24 = vmul.f32 0.3275911, %v2363_v17  ;;  %v2376_v35 = vmul.f32 0.5, %v2241_v20 }
 0x143   : > { %v1183_v61 = vmul.f32 %v1151_v40, %v543_v49  ;;  %v935_v53 = vadd.f32 0.2548296, %v903_v42  ;;  %v760_v3 = vmul.f32 %v2349_v58, %v728_v26  ;;  %1520 = vpow2.f32 %v1046_v6 }
 0x144   : > { %v848_v57 = vadd.f32 -0.28449672, %v816_v36  ;;  %v648_v27 = vadd.f32 1.0, %v616_v24  ;;  %v1517_v43 = vpop.eup %1516  ;;  %v2381_v54 = vmul.f32 0.5, %v2275_v25  ;;  %v1062_v39 = vmul.f32 1.442695, %v1016_v41 }
 0x145   : > { %v1215_v47 = vadd.f32 1.0, %v1183_v61  ;;  %v967_v34 = vmul.f32 %v2303_v32, %v935_v53  ;;  %v792_v15 = vadd.f32 1.4214138, %v760_v3  ;;  %v2384_v12 = vand.u32 2147483647, %v2368_v16 }
 0x146   : > { %v880_v55 = vmul.f32 %v2322_v33, %v848_v57  ;;  %1522 = vrcp.f32 %v648_v27  ;;  %v992_v49 = vsub.f32 0.0, %v2341_v60  ;;  %v2393_v25 = vadd.f32 %v2136_v7, %v375_v5 }
 0x147   : > { %v1247_v20 = vmul.f32 %v1215_v47, %v2312_v62  ;;  %v1127_v23 = vmul.f32 %v1517_v43, %v967_v34  ;;  %v824_v8 = vmul.f32 %v2349_v58, %v792_v15  ;;  %v2388_v32 = vpop.eup %1518  ;;  %v593_v11 = vmul.f32 0.3275911, %v2384_v12 }
 0x148   : > { %v912_v38 = vadd.f32 0.2548296, %v880_v55  ;;  %v704_v62 = vmul.f32 1.0614054, %v2388_v32  ;;  %vm496_vm11 = vcmp.ge.f32.partialorder %v2261_v0, 0.0  ;;  %1524 = vpow2.f32 %v1062_v39 }
 0x149   : > { %1280 = vst.msk [vmem:[%s1788_s8 + $0xa8] sm:$0xff] %vm1258_vm6, %v1247_v20  ;;  %v1159_v29 = vsub.f32 1.0, %v1127_v23  ;;  %v856_v21 = vadd.f32 -0.28449672, %v824_v8  ;;  %v1521_v44 = vpop.eup %1520  ;;  %v625_v31 = vadd.f32 1.0, %v593_v11  ;;  %vm504_vm12 = vcmp.ge.f32.partialorder %v2293_v45, 0.0 }
 0x14a   : > { %v944_v37 = vmul.f32 %v2322_v33, %v912_v38  ;;  %v736_v28 = vadd.f32 -1.4531521, %v704_v62  ;;  %v1024_v30 = vmul.f32 %v992_v49, %v2341_v60  ;;  %v2404_v18 = vmul.f32 0.70710677, %v2393_v25 }
 0x14b   : > { %v1191_v46 = vmul.f32 %v1159_v29, %v551_v19  ;;  %v888_v59 = vmul.f32 %v2349_v58, %v856_v21  ;;  %1526 = vrcp.f32 %v625_v31  ;;  %v1000_v1 = vsub.f32 0.0, %v2363_v17  ;;  %v423_v19 = vpop.f32.mrf.mxu3 }
 0x14c   : > { %v1104_v14 = vmul.f32 %v1521_v44, %v944_v37  ;;  %v2406_v56 = vpop.eup %1522  ;;  %v768_v51 = vmul.f32 %v2388_v32, %v736_v28  ;;  %v528_v6 = vsel %vm496_vm11, 1.0, %v1555_v4  ;;  %v2415_v40 = vadd.f32 %v2136_v7, %v399_v9 }
 0x14d   : > { %v1223_v22 = vadd.f32 1.0, %v1191_v46  ;;  %v920_v33 = vadd.f32 0.2548296, %v888_v59  ;;  %v712_v60 = vmul.f32 1.0614054, %v2406_v56  ;;  %v536_v26 = vsel %vm504_vm12, 1.0, %v1555_v4 }
 0x14e   : > { %v1136_v52 = vsub.f32 1.0, %v1104_v14  ;;  %v800_v41 = vadd.f32 1.4214138, %v768_v51  ;;  %v1525_v61 = vpop.eup %1524  ;;  %v1078_v3 = vmul.f32 1.442695, %v1024_v30  ;;  %v1032_v47 = vmul.f32 %v1000_v1, %v2363_v17 }
 0x14f   : > { %v1255_v42 = vmul.f32 %v1223_v22, %v2331_v50  ;;  %v952_v36 = vmul.f32 %v2349_v58, %v920_v33  ;;  %v744_v0 = vadd.f32 -1.4531521, %v712_v60  ;;  %v2423_v24 = vand.u32 2147483647, %v2404_v18 }
 0x150   : > { %v1168_v53 = vmul.f32 %v1136_v52, %v528_v6  ;;  %v832_v50 = vmul.f32 %v2388_v32, %v800_v41  ;;  %v977_v45 = vsub.f32 0.0, %v2384_v12  ;;  %v2435_v5 = vmul.f32 0.70710677, %v2415_v40 }
 0x151   : > { %1288 = vst.msk [vmem:[%s1788_s8 + $0xe8] sm:$0xff] %vm1258_vm6, %v1255_v42  ;;  %v1112_v57 = vmul.f32 %v1525_v61, %v952_v36  ;;  %v2430_v34 = vpop.eup %1526  ;;  %v776_v15 = vmul.f32 %v2406_v56, %v744_v0  ;;  %v601_v27 = vmul.f32 0.3275911, %v2423_v24  ;;  %v2439_v20 = vadd.f32 %v2136_v7, %v423_v19 }
 0x152   : > { %v1200_v58 = vadd.f32 1.0, %v1168_v53  ;;  %v864_v55 = vadd.f32 -0.28449672, %v832_v50  ;;  %v689_v39 = vmul.f32 1.0614054, %v2430_v34  ;;  %1528 = vpow2.f32 %v1078_v3 }
 0x153   : > { %v1144_v43 = vsub.f32 1.0, %v1112_v57  ;;  %v808_v23 = vadd.f32 1.4214138, %v776_v15  ;;  %v633_v8 = vadd.f32 1.0, %v601_v27  ;;  %v1094_v11 = vmul.f32 1.442695, %v1032_v47 }
 0x154   : > { %v1232_v17 = vmul.f32 %v1200_v58, %v2376_v35  ;;  %v896_v49 = vmul.f32 %v2388_v32, %v864_v55  ;;  %v721_v29 = vadd.f32 -1.4531521, %v689_v39  ;;  %v1009_v62 = vmul.f32 %v977_v45, %v2384_v12 }
 0x155   : > { %v1176_v38 = vmul.f32 %v1144_v43, %v536_v26  ;;  %v840_v21 = vmul.f32 %v2406_v56, %v808_v23  ;;  %1530 = vrcp.f32 %v633_v8  ;;  %v577_v7 = vand.u32 2147483647, %v2435_v5 }
 0x156   : > { %1265 = vst.msk [vmem:[%s1788_s8 + $0x30] sm:$0xff] %vm1258_vm6, %v1232_v17  ;;  %v928_v35 = vadd.f32 0.2548296, %v896_v49  ;;  %v753_v37 = vmul.f32 %v2430_v34, %v721_v29  ;;  %v2450_v31 = vmul.f32 0.70710677, %v2439_v20  ;;  %1532 = vpow2.f32 %v1094_v11 }
 0x157   : > { %v1208_v44 = vadd.f32 1.0, %v1176_v38  ;;  %v872_v46 = vadd.f32 -0.28449672, %v840_v21  ;;  %v609_v59 = vmul.f32 0.3275911, %v577_v7  ;;  %vm512_vm13 = vcmp.ge.f32.partialorder %v2320_v63, 0.0 }
 0x158   : > { %v960_v9 = vmul.f32 %v2388_v32, %v928_v35  ;;  %v785_v14 = vadd.f32 1.4214138, %v753_v37  ;;  %v1529_v12 = vpop.eup %1528  ;;  %v1048_v22 = vmul.f32 1.442695, %v1009_v62  ;;  %v2460_v6 = vand.u32 2147483647, %v2450_v31 }
 0x159   : > { %v1240_v28 = vmul.f32 %v1208_v44, %v2381_v54  ;;  %v904_v30 = vmul.f32 %v2406_v56, %v872_v46  ;;  %v641_v33 = vadd.f32 1.0, %v609_v59  ;;  %v985_v52 = vsub.f32 0.0, %v2423_v24 }
 0x15a   : > { %v1120_v51 = vmul.f32 %v1529_v12, %v960_v9  ;;  %v817_v1 = vmul.f32 %v2430_v34, %v785_v14  ;;  %v544_v36 = vsel %vm512_vm13, 1.0, %v1555_v4  ;;  %v617_v41 = vmul.f32 0.3275911, %v2460_v6 }
 0x15b   : > { %1273 = vst.msk [vmem:[%s1788_s8 + $0x70] sm:$0xff] %vm1258_vm6, %v1240_v28  ;;  %v2462_v54 = vpop.eup %1530  ;;  %v936_v32 = vadd.f32 0.2548296, %v904_v30  ;;  %1534 = vrcp.f32 %v641_v33  ;;  %vm520_vm14 = vcmp.ge.f32.partialorder %v2347_v10, 0.0  ;;  %v1017_v57 = vmul.f32 %v985_v52, %v2423_v24 }
 0x15c   : > { %v1152_v60 = vsub.f32 1.0, %v1120_v51  ;;  %v849_v42 = vadd.f32 -0.28449672, %v817_v1  ;;  %v697_v26 = vmul.f32 1.0614054, %v2462_v54  ;;  %1536 = vpow2.f32 %v1048_v22  ;;  %v1533_v61 = vpop.eup %1532 }
 0x15d   : > { %v968_v63 = vmul.f32 %v2406_v56, %v936_v32  ;;  %v649_v50 = vadd.f32 1.0, %v617_v41  ;;  %v448_v47 = vmul.f32 0.5, %v2309_v13  ;;  %v552_v27 = vsel %vm520_vm14, 1.0, %v1555_v4 }
 0x15e   : > { %v1184_v53 = vmul.f32 %v1152_v60, %v544_v36  ;;  %v881_v3 = vmul.f32 %v2430_v34, %v849_v42  ;;  %v729_v0 = vadd.f32 -1.4531521, %v697_v26  ;;  %v993_v55 = vsub.f32 0.0, %v577_v7 }
 0x15f   : > { %v1128_v19 = vmul.f32 %v1533_v61, %v968_v63  ;;  %1538 = vrcp.f32 %v649_v50  ;;  %v1064_v38 = vmul.f32 1.442695, %v1017_v57  ;;  %vm497_vm15 = vcmp.ge.f32.partialorder %v2368_v16, 0.0 }
 0x160   : > { %v1216_v45 = vadd.f32 1.0, %v1184_v53  ;;  %v913_v58 = vadd.f32 0.2548296, %v881_v3  ;;  %v761_v56 = vmul.f32 %v2462_v54, %v729_v0  ;;  %v456_v29 = vmul.f32 0.5, %v2328_v2 }
 0x161   : > { %v1535_v15 = vpop.eup %1534  ;;  %v1160_v43 = vsub.f32 1.0, %v1128_v19  ;;  %v1025_v62 = vmul.f32 %v993_v55, %v577_v7  ;;  %v529_v59 = vsel %vm497_vm15, 1.0, %v1555_v4  ;;  %1540 = vpow2.f32 %v1064_v38 }
 0x162   : > { %v1248_v10 = vmul.f32 %v1216_v45, %v448_v47  ;;  %v945_v39 = vmul.f32 %v2430_v34, %v913_v58  ;;  %v793_v17 = vadd.f32 1.4214138, %v761_v56  ;;  %v705_v23 = vmul.f32 1.0614054, %v1535_v15  ;;  %v1537_v24 = vpop.eup %1536 }
 0x163   : > { %v1192_v8 = vmul.f32 %v1160_v43, %v552_v27  ;;  %v1001_v28 = vsub.f32 0.0, %v2460_v6  ;;  %v433_v2 = vmul.f32 0.5, %v2355_v48  ;;  %v1080_v7 = vmul.f32 1.442695, %v1025_v62 }
 0x164   : > { %1281 = vst.msk [vmem:[%s1788_s8 + $0xb0] sm:$0xff] %vm1258_vm6, %v1248_v10  ;;  %v1105_v13 = vmul.f32 %v1537_v24, %v945_v39  ;;  %v825_v49 = vmul.f32 %v2462_v54, %v793_v17  ;;  %v737_v11 = vadd.f32 -1.4531521, %v705_v23  ;;  %vm505_vm0 = vcmp.ge.f32.partialorder %v2404_v18, 0.0 }
 0x165   : > { %v1224_v21 = vadd.f32 1.0, %v1192_v8  ;;  %v1539_v37 = vpop.eup %1538  ;;  %v1033_v1 = vmul.f32 %v1001_v28, %v2460_v6  ;;  %1542 = vpow2.f32 %v1080_v7  ;;  %v537_v6 = vsel %vm505_vm0, 1.0, %v1555_v4 }
 0x166   : > { %v1137_v44 = vsub.f32 1.0, %v1105_v13  ;;  %v857_v34 = vadd.f32 -0.28449672, %v825_v49  ;;  %v769_v35 = vmul.f32 %v1535_v15, %v737_v11  ;;  %v713_v12 = vmul.f32 1.0614054, %v1539_v37 }
 0x167   : > { %v1256_v46 = vmul.f32 %v1224_v21, %v456_v29  ;;  %v1541_v26 = vpop.eup %1540  ;;  %v1096_v41 = vmul.f32 1.442695, %v1033_v1  ;;  %v441_v50 = vmul.f32 0.5, %v2393_v25  ;;  %vm513_vm1 = vcmp.ge.f32.partialorder %v2435_v5, 0.0 }
 0x168   : > { %v1169_v16 = vmul.f32 %v1137_v44, %v529_v59  ;;  %v889_v9 = vmul.f32 %v2462_v54, %v857_v34  ;;  %v801_v14 = vadd.f32 1.4214138, %v769_v35  ;;  %v745_v51 = vadd.f32 -1.4531521, %v713_v12 }
 0x169   : > { %1289 = vst.msk [vmem:[%s1788_s8 + $0xf0] sm:$0xff] %vm1258_vm6, %v1256_v46  ;;  %1544 = vpow2.f32 %v1096_v41  ;;  %v545_v43 = vsel %vm513_vm1, 1.0, %v1555_v4  ;;  %v449_v25 = vmul.f32 0.5, %v2415_v40  ;;  %vm521_vm2 = vcmp.ge.f32.partialorder %v2450_v31, 0.0 }
 0x16a   : > { %v1201_v30 = vadd.f32 1.0, %v1169_v16  ;;  %v921_v22 = vadd.f32 0.2548296, %v889_v9  ;;  %v833_v33 = vmul.f32 %v1535_v15, %v801_v14  ;;  %v777_v42 = vmul.f32 %v1539_v37, %v745_v51 }
 0x16b   : > { %v1543_v57 = vpop.eup %1542  ;;  %v553_v24 = vsel %vm521_vm2, 1.0, %v1555_v4  ;;  %v457_v38 = vmul.f32 0.5, %v2439_v20 }
 0x16c   : > { %v1233_v32 = vmul.f32 %v1201_v30, %v433_v2  ;;  %v953_v52 = vmul.f32 %v2462_v54, %v921_v22  ;;  %v865_v60 = vadd.f32 -0.28449672, %v833_v33  ;;  %v809_v63 = vadd.f32 1.4214138, %v777_v42 }
 0x16e   : > { %1266 = vst.msk [vmem:[%s1788_s8 + $0x38] sm:$0xff] %vm1258_vm6, %v1233_v32  ;;  %v1113_v36 = vmul.f32 %v1541_v26, %v953_v52  ;;  %v897_v48 = vmul.f32 %v1535_v15, %v865_v60  ;;  %v841_v3 = vmul.f32 %v1539_v37, %v809_v63 }
 0x16f   : > { %v1545_v10 = vpop.eup %1544 }
 0x170   : > { %v1145_v61 = vsub.f32 1.0, %v1113_v36  ;;  %v929_v53 = vadd.f32 0.2548296, %v897_v48  ;;  %v873_v19 = vadd.f32 -0.28449672, %v841_v3 }
 0x172   : > { %v1177_v0 = vmul.f32 %v1145_v61, %v537_v6  ;;  %v961_v54 = vmul.f32 %v1535_v15, %v929_v53  ;;  %v905_v45 = vmul.f32 %v1539_v37, %v873_v19 }
 0x174   : > { %v1209_v47 = vadd.f32 1.0, %v1177_v0  ;;  %v1121_v18 = vmul.f32 %v1543_v57, %v961_v54  ;;  %v937_v27 = vadd.f32 0.2548296, %v905_v45 }
 0x176   : > { %v1241_v58 = vmul.f32 %v1209_v47, %v441_v50  ;;  %v1153_v56 = vsub.f32 1.0, %v1121_v18  ;;  %v969_v55 = vmul.f32 %v1539_v37, %v937_v27 }
 0x178   : > { %1274 = vst.msk [vmem:[%s1788_s8 + $0x78] sm:$0xff] %vm1258_vm6, %v1241_v58  ;;  %v1185_v15 = vmul.f32 %v1153_v56, %v545_v43  ;;  %v1129_v5 = vmul.f32 %v1545_v10, %v969_v55 }
 0x17a   : > { %v1217_v39 = vadd.f32 1.0, %v1185_v15  ;;  %v1161_v23 = vsub.f32 1.0, %v1129_v5 }
 0x17c   : > { %v1249_v17 = vmul.f32 %v1217_v39, %v449_v25  ;;  %v1193_v8 = vmul.f32 %v1161_v23, %v553_v24 }
 0x17e   : > { %1282 = vst.msk [vmem:[%s1788_s8 + $0xb8] sm:$0xff] %vm1258_vm6, %v1249_v17  ;;  %v1225_v13 = vadd.f32 1.0, %v1193_v8 }
 0x180   : > { %v1257_v49 = vmul.f32 %v1225_v13, %v457_v38 }
 0x182   : > { %1290 = vst.msk [vmem:[%s1788_s8 + $0xf8] sm:$0xff] %vm1258_vm6, %v1257_v49 }
 0x183 PF: > { %s13_s12 = sadd.s32 1, %s1553_s12  }
 0x184   : > { %p10_p4 = scmp.ge.s32.totalorder %s13_s12, 4  }
 0x186   :  { %12 = sbr.rel (!%p10_p4) target bundleno = 1 (0x1), region = 62 }

// kernel: tile.49
= control target key start
LH: loop header
LB: loop body
LE: loop exit
PB: predicated region body
PF: predicated region fallthrough
CT: control target
= control target key end

     0   :  { %vm4_vm0 = vcmask 1047556   ;;  %s169_s14 = smov 48   ;;  %s170_s15 = smov 56   ;;  %vm6_vm1 = vcmask 64512   ;;  %vm21_vm2 = vcmask 523712   ;;  %vm38_vm3 = vcmask 458112   ;;  %s314_s0 = inlined_call_operand.vmem [shape: f32[9,8,8], index: 0, kind: input, shape index: {}]   ;;  %s315_s1 = inlined_call_operand.vmem [shape: f32[9,64], index: 1, kind: output, shape index: {}]  }
   0x1   :  { %v138_v0 = vld [vmem:[%s314_s0 + $0x6] ss:$8 sm:$0xf]   ;;  %v134_v3 = vld [vmem:[%s314_s0 + $0x7] ss:$8 sm:$0xf]  }
   0x2   :  { %v139_v1 = vld [vmem:[%s314_s0 + $0x6] ss:$8 sm:$0xf0]   ;;  %v135_v4 = vld [vmem:[%s314_s0 + $0x7] ss:$8 sm:$0xf0]  }
   0x3   :  { %v35_v2 = vsel %vm4_vm0, %v139_v1, %v138_v0  ;;  %v18_v5 = vsel %vm4_vm0, %v135_v4, %v134_v3  ;;  %v142_v6 = vld [vmem:[%s314_s0 + $0x5] ss:$8 sm:$0xf]   ;;  %v140_v8 = vld [vmem:[%s314_s0 + $0x46] sm:$0x1]   ;;  %s171_s24 = smov 40  }
   0x4   :  { %36 = vrot.lane.b32.xlu1 %v35_v2, %s169_s14  ;;  %19 = vrot.lane.b32.xlu0 %v18_v5, %s170_s15  ;;  %v143_v7 = vld [vmem:[%s314_s0 + $0x5] ss:$8 sm:$0xf0]   ;;  %v136_v10 = vld [vmem:[%s314_s0 + $0x47] sm:$0x1]   ;;  %s172_s4 = smov 32  }
   0x5   :  { %v52_v9 = vsel %vm4_vm0, %v143_v7, %v142_v6  ;;  %v146_v11 = vld [vmem:[%s314_s0 + $0x4] ss:$8 sm:$0xf]   ;;  %v144_v13 = vld [vmem:[%s314_s0 + $0x45] sm:$0x1]   ;;  %s174_s16 = smov 16  }
   0x6   :  { %53 = vrot.lane.b32.xlu2 %v52_v9, %s171_s24  ;;  %v147_v12 = vld [vmem:[%s314_s0 + $0x4] ss:$8 sm:$0xf0]   ;;  %v150_v16 = vld [vmem:[%s314_s0 + $0x3] ss:$8 sm:$0xf]  }
   0x7   :  { %v148_v14 = vld [vmem:[%s314_s0 + $0x44] sm:$0x1]   ;;  %v69_v15 = vsel %vm4_vm0, %v147_v12, %v146_v11  ;;  %v151_v17 = vld [vmem:[%s314_s0 + $0x3] ss:$8 sm:$0xf0]   ;;  %s175_s25 = smov 8  }
   0x8   :  { %v154_v18 = vld [vmem:[%s314_s0 + $0x2] ss:$8 sm:$0xf]   ;;  %v86_v20 = vsel %vm4_vm0, %v151_v17, %v150_v16  ;;  %v152_v22 = vld [vmem:[%s314_s0 + $0x43] sm:$0x1]   ;;  %vm55_vm4 = vcmask 392512  }
   0x9   :  { %v155_v19 = vld [vmem:[%s314_s0 + $0x2] ss:$8 sm:$0xf0]   ;;  %v158_v23 = vld [vmem:[%s314_s0 + $0x1] ss:$8 sm:$0xf]  }
   0xa   :  { %v103_v21 = vsel %vm4_vm0, %v155_v19, %v154_v18  ;;  %v159_v24 = vld [vmem:[%s314_s0 + $0x1] ss:$8 sm:$0xf0]   ;;  %v156_v25 = vld [vmem:[%s314_s0 + $0x42] sm:$0x1]   ;;  %vm72_vm5 = vcmask 326912  }
   0xb   :  { %v160_v26 = vld [vmem:[%s314_s0 + $0x41] sm:$0x1]   ;;  %v120_v27 = vsel %vm4_vm0, %v159_v24, %v158_v23  ;;  %v2_v28 = vld [vmem:[%s314_s0] ss:$8 sm:$0xf]   ;;  %vm89_vm6 = vcmask 261312  }
   0xc   :  { %42 = vrot.lane.b32.xlu1 %v140_v8, %s169_s14  ;;  %25 = vrot.lane.b32.xlu0 %v136_v10, %s170_s15  ;;  %s173_s15 = smov 24   ;;  %v3_v29 = vld [vmem:[%s314_s0] ss:$8 sm:$0xf0]   ;;  %vm106_vm7 = vcmask 195712   ;;  %vm123_vm8 = vcmask 130112  }
   0xd   :  { %v5_v30 = vsel %vm4_vm0, %v3_v29, %v2_v28  ;;  %v132_v31 = vld [vmem:[%s314_s0 + $0x40] sm:$0x1]  }
   0xe   :  { %59 = vrot.lane.b32.xlu2 %v144_v13, %s171_s24  ;;  %7 = vst.msk [vmem:[%s315_s1] sm:$0xff] %vm6_vm1, %v5_v30  }
   0xf   :  { %133 = vst.msk [vmem:[%s315_s1 + $0x8] sm:$0x1] %vm6_vm1, %v132_v31  }
  0x14   :  { %76 = vrot.lane.b32.xlu1 %v148_v14, %s172_s4  ;;  %70 = vrot.lane.b32.xlu0 %v69_v15, %s172_s4 }
  0x16   :  { %87 = vrot.lane.b32.xlu2 %v86_v20, %s173_s15 }
  0x1c   :  { %104 = vrot.lane.b32.xlu1 %v103_v21, %s174_s16  ;;  %93 = vrot.lane.b32.xlu0 %v152_v22, %s173_s15 }
  0x1e   :  { %110 = vrot.lane.b32.xlu2 %v156_v25, %s174_s16 }
  0x24   :  { %127 = vrot.lane.b32.xlu1 %v160_v26, %s175_s25  ;;  %121 = vrot.lane.b32.xlu0 %v120_v27, %s175_s25 }
  0x60   :  { %v54_v32 = vpop.permute.xlu2 %53  }
  0x68   :  { %v60_v33 = vpop.permute.xlu2 %59  }
  0x70   :  { %v88_v34 = vpop.permute.xlu2 %87  }
  0x76   :  { %v37_v35 = vpop.permute.xlu1 %36   ;;  %v20_v36 = vpop.permute.xlu0 %19  }
  0x77   :  { %22 = vst.msk [vmem:[%s315_s1] sm:$0xff] %vm21_vm2, %v20_v36  }
  0x78   :  { %39 = vst.msk [vmem:[%s315_s1] sm:$0xff] %vm38_vm3, %v37_v35   ;;  %v111_v37 = vpop.permute.xlu2 %110  }
  0x79   :  { %56 = vst.msk [vmem:[%s315_s1] sm:$0xff] %vm55_vm4, %v54_v32  }
  0x7e   :  { %v43_v38 = vpop.permute.xlu1 %42   ;;  %v26_v39 = vpop.permute.xlu0 %25  }
  0x7f   :  { %137 = vst.msk [vmem:[%s315_s1 + $0x8] sm:$0x1] %vm21_vm2, %v26_v39  }
  0x80   :  { %141 = vst.msk [vmem:[%s315_s1 + $0x8] sm:$0x1] %vm38_vm3, %v43_v38  }
  0x81   :  { %145 = vst.msk [vmem:[%s315_s1 + $0x8] sm:$0x1] %vm55_vm4, %v60_v33  }
  0x86   :  { %v77_v40 = vpop.permute.xlu1 %76   ;;  %v71_v41 = vpop.permute.xlu0 %70  }
  0x87   :  { %149 = vst.msk [vmem:[%s315_s1 + $0x8] sm:$0x1] %vm72_vm5, %v77_v40  }
  0x88   :  { %73 = vst.msk [vmem:[%s315_s1] sm:$0xff] %vm72_vm5, %v71_v41  }
  0x89   :  { %90 = vst.msk [vmem:[%s315_s1] sm:$0xff] %vm89_vm6, %v88_v34  }
  0x8e   :  { %v105_v42 = vpop.permute.xlu1 %104   ;;  %v94_v43 = vpop.permute.xlu0 %93  }
  0x8f   :  { %107 = vst.msk [vmem:[%s315_s1] sm:$0xff] %vm106_vm7, %v105_v42  }
  0x90   :  { %153 = vst.msk [vmem:[%s315_s1 + $0x8] sm:$0x1] %vm89_vm6, %v94_v43  }
  0x91   :  { %157 = vst.msk [vmem:[%s315_s1 + $0x8] sm:$0x1] %vm106_vm7, %v111_v37  }
  0x96   :  { %v128_v44 = vpop.permute.xlu1 %127   ;;  %v122_v45 = vpop.permute.xlu0 %121  }
  0x97   :  { %161 = vst.msk [vmem:[%s315_s1 + $0x8] sm:$0x1] %vm123_vm8, %v128_v44  }
  0x98   :  { %124 = vst.msk [vmem:[%s315_s1] sm:$0xff] %vm123_vm8, %v122_v45  }

// kernel: tile.79
= control target key start
LH: loop header
LB: loop body
LE: loop exit
PB: predicated region body
PF: predicated region fallthrough
CT: control target
= control target key end

     0   :  { %vm34_vm0 = vcmask 1041409   ;;  %vm10_vm1 = vcmask 1045508   ;;  %vm38_vm2 = vcmask 1042434   ;;  %vm42_vm3 = vcmask 1043459   ;;  %s875_s18 = smov 120   ;;  %s45_s23 = smov 48  ;;  %s1600_s0 = inlined_call_operand.vmem [shape: f32[5,32,8], index: 0, kind: input, shape index: {}]   ;;  %s1601_s1 = inlined_call_operand.vmem [shape: f32[5,256], index: 1, kind: output, shape index: {}]  }
   0x1   :  { %v703_v0 = vld [vmem:[%s1600_s0 + $0x7f] sm:$0x1]   ;;  %v714_v2 = vld [vmem:[%s1600_s0 + $0x7e] sm:$0x1]   ;;  %v695_v5 = vld [vmem:[%s1600_s0 + $0xf] sm:$0x1]  }
   0x2   :  { %v704_v1 = vld [vmem:[%s1600_s0 + $0x9e] sm:$0x2]   ;;  %v715_v4 = vld [vmem:[%s1600_s0 + $0x9d] sm:$0x2]   ;;  %v696_v6 = vld [vmem:[%s1600_s0 + $0x2e] sm:$0x2]  }
   0x3   :  { %v68_v3 = vsel %vm34_vm0, %v704_v1, %v703_v0  ;;  %v112_v7 = vsel %vm34_vm0, %v715_v4, %v714_v2  ;;  %v35_v8 = vsel %vm34_vm0, %v696_v6, %v695_v5  ;;  %v697_v9 = vld [vmem:[%s1600_s0 + $0x4d] sm:$0x4]   ;;  %vm51_vm4 = vcmask 1046534   ;;  %s876_s24 = smov 112   ;;  %v700_v13 = vld [vmem:[%s1600_s0 + $0x39] sm:$0x40]  }
   0x4   :  { %69 = vrot.lane.b32.xlu0 %v68_v3, %s875_s18  ;;  %v698_v10 = vld [vmem:[%s1600_s0 + $0x6c] sm:$0x8]   ;;  %113 = vrot.lane.b32.xlu1 %v112_v7, %s876_s24  ;;  %v39_v11 = vsel %vm38_vm2, %v697_v9, %v35_v8  ;;  %vm55_vm5 = vcmask 1047559   ;;  %s89_s29 = smov 48  ;;  %v701_v15 = vld [vmem:[%s1600_s0 + $0x58] sm:$0x80]  }
   0x5   :  { %v699_v12 = vld [vmem:[%s1600_s0 + $0x24f] ss:$-112 sm:%s45_s23]   ;;  %v43_v14 = vsel %vm42_vm3, %v698_v10, %v39_v11  ;;  %v706_v16 = vld [vmem:[%s1600_s0 + $0xe] sm:$0x1]   ;;  %v711_v25 = vld [vmem:[%s1600_s0 + $0x38] sm:$0x40]  }
   0x6   :  { %v707_v17 = vld [vmem:[%s1600_s0 + $0x2d] sm:$0x2]   ;;  %v48_v18 = vsel %vm10_vm1, %v699_v12, %v43_v14  ;;  %v712_v26 = vld [vmem:[%s1600_s0 + $0x57] sm:$0x80]   ;;  %v728_v27 = vld [vmem:[%s1600_s0 + $0xc] sm:$0x1]  }
   0x7   :  { %v79_v19 = vsel %vm34_vm0, %v707_v17, %v706_v16  ;;  %v708_v20 = vld [vmem:[%s1600_s0 + $0x4c] sm:$0x4]   ;;  %v52_v23 = vsel %vm51_vm4, %v700_v13, %v48_v18  ;;  %v729_v30 = vld [vmem:[%s1600_s0 + $0x2b] sm:$0x2]   ;;  %s177_s27 = smov 48  ;;  %s877_s20 = smov 104  }
   0x8   :  { %v709_v21 = vld [vmem:[%s1600_s0 + $0x6b] sm:$0x8]   ;;  %v83_v24 = vsel %vm38_vm2, %v708_v20, %v79_v19  ;;  %v56_v28 = vsel %vm55_vm5, %v701_v15, %v52_v23  ;;  %v730_v31 = vld [vmem:[%s1600_s0 + $0x4a] sm:$0x4]   ;;  %v167_v34 = vsel %vm34_vm0, %v729_v30, %v728_v27  ;;  %v733_v38 = vld [vmem:[%s1600_s0 + $0x36] sm:$0x40]  }
   0x9   :  { %v710_v22 = vld [vmem:[%s1600_s0 + $0x24e] ss:$-112 sm:%s89_s29]   ;;  %v87_v29 = vsel %vm42_vm3, %v709_v21, %v83_v24  ;;  %v731_v32 = vld [vmem:[%s1600_s0 + $0x69] sm:$0x8]   ;;  %v171_v36 = vsel %vm38_vm2, %v730_v31, %v167_v34  ;;  %v734_v41 = vld [vmem:[%s1600_s0 + $0x55] sm:$0x80]  }
   0xa   :  { %v92_v33 = vsel %vm10_vm1, %v710_v22, %v87_v29  ;;  %v732_v37 = vld [vmem:[%s1600_s0 + $0x24c] ss:$-112 sm:%s177_s27]   ;;  %v175_v40 = vsel %vm42_vm3, %v731_v32, %v171_v36  ;;  %v725_v43 = vld [vmem:[%s1600_s0 + $0x7d] sm:$0x1]   ;;  %v750_v45 = vld [vmem:[%s1600_s0 + $0xa] sm:$0x1]  }
   0xb   :  { %v96_v35 = vsel %vm51_vm4, %v711_v25, %v92_v33  ;;  %v180_v42 = vsel %vm10_vm1, %v732_v37, %v175_v40  ;;  %v726_v44 = vld [vmem:[%s1600_s0 + $0x9c] sm:$0x2]   ;;  %v751_v48 = vld [vmem:[%s1600_s0 + $0x29] sm:$0x2]   ;;  %v736_v51 = vld [vmem:[%s1600_s0 + $0x7c] sm:$0x1]  }
   0xc   :  { %57 = vrot.lane.b32.xlu0 %v56_v28, %s875_s18  ;;  %v100_v39 = vsel %vm55_vm5, %v712_v26, %v96_v35  ;;  %v184_v46 = vsel %vm51_vm4, %v733_v38, %v180_v42  ;;  %v156_v47 = vsel %vm34_vm0, %v726_v44, %v725_v43  ;;  %v752_v49 = vld [vmem:[%s1600_s0 + $0x48] sm:$0x4]   ;;  %v737_v52 = vld [vmem:[%s1600_s0 + $0x9b] sm:$0x2]   ;;  %v255_v53 = vsel %vm34_vm0, %v751_v48, %v750_v45  ;;  %s265_s21 = smov 48  ;;  %s878_s8 = smov 96  }
   0xd   :  { %101 = vrot.lane.b32.xlu1 %v100_v39, %s876_s24  ;;  %v753_v50 = vld [vmem:[%s1600_s0 + $0x67] sm:$0x8]   ;;  %157 = vrot.lane.b32.xlu2 %v156_v47, %s877_s20  ;;  %v259_v54 = vsel %vm38_vm2, %v752_v49, %v255_v53  ;;  %v761_v55 = vld [vmem:[%s1600_s0 + $0x9] sm:$0x1]   ;;  %v188_v57 = vsel %vm55_vm5, %v734_v41, %v184_v46  ;;  %v200_v60 = vsel %vm34_vm0, %v737_v52, %v736_v51  ;;  %s309_s13 = smov 48  ;;  %s133_s16 = smov 48 }
   0xe   :  { %v762_v56 = vld [vmem:[%s1600_s0 + $0x28] sm:$0x2]   ;;  %v263_v58 = vsel %vm42_vm3, %v753_v50, %v259_v54  ;;  %v754_v59 = vld [vmem:[%s1600_s0 + $0x24a] ss:$-112 sm:%s265_s21]   ;;  %v717_v0 = vld [vmem:[%s1600_s0 + $0xd] sm:$0x1]  }
   0xf   :  { %v755_v61 = vld [vmem:[%s1600_s0 + $0x34] sm:$0x40]   ;;  %v299_v62 = vsel %vm34_vm0, %v762_v56, %v761_v55  ;;  %v763_v63 = vld [vmem:[%s1600_s0 + $0x47] sm:$0x4]   ;;  %v718_v1 = vld [vmem:[%s1600_s0 + $0x2c] sm:$0x2]   ;;  %v268_v4 = vsel %vm10_vm1, %v754_v59, %v263_v58 }
  0x10   :  { %v719_v2 = vld [vmem:[%s1600_s0 + $0x4b] sm:$0x4]   ;;  %v747_v3 = vld [vmem:[%s1600_s0 + $0x7b] sm:$0x1]   ;;  %v764_v5 = vld [vmem:[%s1600_s0 + $0x66] sm:$0x8]   ;;  %v123_v6 = vsel %vm34_vm0, %v718_v1, %v717_v0  ;;  %v303_v8 = vsel %vm38_vm2, %v763_v63, %v299_v62  ;;  %v272_v16 = vsel %vm51_vm4, %v755_v61, %v268_v4 }
  0x11   :  { %v720_v7 = vld [vmem:[%s1600_s0 + $0x6a] sm:$0x8]   ;;  %v127_v9 = vsel %vm38_vm2, %v719_v2, %v123_v6  ;;  %v722_v11 = vld [vmem:[%s1600_s0 + $0x37] sm:$0x40]   ;;  %s221_s23 = smov 48  ;;  %v307_v21 = vsel %vm42_vm3, %v764_v5, %v303_v8  ;;  %s880_s27 = smov 80  }
  0x12   :  { %v721_v10 = vld [vmem:[%s1600_s0 + $0x24d] ss:$-112 sm:%s133_s16]   ;;  %v748_v12 = vld [vmem:[%s1600_s0 + $0x9a] sm:$0x2]   ;;  %v756_v13 = vld [vmem:[%s1600_s0 + $0x53] sm:$0x80]   ;;  %v131_v14 = vsel %vm42_vm3, %v720_v7, %v127_v9 }
  0x13   :  { %v723_v15 = vld [vmem:[%s1600_s0 + $0x56] sm:$0x80]   ;;  %v765_v17 = vld [vmem:[%s1600_s0 + $0x249] ss:$-112 sm:%s309_s13]   ;;  %v136_v18 = vsel %vm10_vm1, %v721_v10, %v131_v14  ;;  %v739_v19 = vld [vmem:[%s1600_s0 + $0xb] sm:$0x1]   ;;  %v244_v27 = vsel %vm34_vm0, %v748_v12, %v747_v3  ;;  %v276_v32 = vsel %vm55_vm5, %v756_v13, %v272_v16 }
  0x14   :  { %189 = vrot.lane.b32.xlu0 %v188_v57, %s878_s8  ;;  %v740_v20 = vld [vmem:[%s1600_s0 + $0x2a] sm:$0x2]   ;;  %v140_v22 = vsel %vm51_vm4, %v722_v11, %v136_v18  ;;  %v744_v30 = vld [vmem:[%s1600_s0 + $0x35] sm:$0x40]   ;;  %v783_v31 = vld [vmem:[%s1600_s0 + $0x7] sm:$0x1]   ;;  %v312_v35 = vsel %vm10_vm1, %v765_v17, %v307_v21 }
  0x15   :  { %201 = vrot.lane.b32.xlu1 %v200_v60, %s878_s8  ;;  %v211_v23 = vsel %vm34_vm0, %v740_v20, %v739_v19  ;;  %v741_v24 = vld [vmem:[%s1600_s0 + $0x49] sm:$0x4]   ;;  %v144_v28 = vsel %vm55_vm5, %v723_v15, %v140_v22  ;;  %v784_v34 = vld [vmem:[%s1600_s0 + $0x26] sm:$0x2]   ;;  %v766_v36 = vld [vmem:[%s1600_s0 + $0x33] sm:$0x40]  }
  0x16   :  { %v742_v25 = vld [vmem:[%s1600_s0 + $0x68] sm:$0x8]   ;;  %v215_v29 = vsel %vm38_vm2, %v741_v24, %v211_v23  ;;  %145 = vrot.lane.b32.xlu2 %v144_v28, %s877_s20  ;;  %v387_v38 = vsel %vm34_vm0, %v784_v34, %v783_v31  ;;  %v785_v39 = vld [vmem:[%s1600_s0 + $0x45] sm:$0x4]   ;;  %v745_v41 = vld [vmem:[%s1600_s0 + $0x54] sm:$0x80]   ;;  %v316_v42 = vsel %vm51_vm4, %v766_v36, %v312_v35 }
  0x17   :  { %v743_v26 = vld [vmem:[%s1600_s0 + $0x24b] ss:$-112 sm:%s221_s23]   ;;  %v219_v33 = vsel %vm42_vm3, %v742_v25, %v215_v29  ;;  %s879_s23 = smov 88   ;;  %s397_s28 = smov 48  ;;  %v767_v43 = vld [vmem:[%s1600_s0 + $0x52] sm:$0x80]   ;;  %v391_v45 = vsel %vm38_vm2, %v785_v39, %v387_v38 }
  0x18   :  { %v224_v37 = vsel %vm10_vm1, %v743_v26, %v219_v33  ;;  %v769_v44 = vld [vmem:[%s1600_s0 + $0x79] sm:$0x1]   ;;  %v786_v46 = vld [vmem:[%s1600_s0 + $0x64] sm:$0x8]   ;;  %v794_v49 = vld [vmem:[%s1600_s0 + $0x6] sm:$0x1]   ;;  %v320_v52 = vsel %vm55_vm5, %v767_v43, %v316_v42 }
  0x19   :  { %v228_v40 = vsel %vm51_vm4, %v744_v30, %v224_v37  ;;  %v770_v47 = vld [vmem:[%s1600_s0 + $0x98] sm:$0x2]   ;;  %v795_v50 = vld [vmem:[%s1600_s0 + $0x25] sm:$0x2]   ;;  %v787_v51 = vld [vmem:[%s1600_s0 + $0x247] ss:$-112 sm:%s397_s28]   ;;  %v395_v53 = vsel %vm42_vm3, %v786_v46, %v391_v45 }
  0x1a   :  { %v232_v48 = vsel %vm55_vm5, %v745_v41, %v228_v40  ;;  %v772_v54 = vld [vmem:[%s1600_s0 + $0x8] sm:$0x1]   ;;  %v332_v57 = vsel %vm34_vm0, %v770_v47, %v769_v44  ;;  %v431_v58 = vsel %vm34_vm0, %v795_v50, %v794_v49  ;;  %v796_v59 = vld [vmem:[%s1600_s0 + $0x44] sm:$0x4]   ;;  %s881_s25 = smov 72   ;;  %v400_v63 = vsel %vm10_vm1, %v787_v51, %v395_v53  ;;  %s441_s4 = smov 48 }
  0x1b   :  { %v773_v55 = vld [vmem:[%s1600_s0 + $0x27] sm:$0x2]   ;;  %v788_v0 = vld [vmem:[%s1600_s0 + $0x31] sm:$0x40]   ;;  %v758_v1 = vld [vmem:[%s1600_s0 + $0x7a] sm:$0x1]   ;;  %v435_v3 = vsel %vm38_vm2, %v796_v59, %v431_v58 }
  0x1c   :  { %245 = vrot.lane.b32.xlu0 %v244_v27, %s879_s23  ;;  %v774_v56 = vld [vmem:[%s1600_s0 + $0x46] sm:$0x4]   ;;  %v343_v60 = vsel %vm34_vm0, %v773_v55, %v772_v54  ;;  %v759_v2 = vld [vmem:[%s1600_s0 + $0x99] sm:$0x2]   ;;  %v797_v4 = vld [vmem:[%s1600_s0 + $0x63] sm:$0x8]   ;;  %v404_v9 = vsel %vm51_vm4, %v788_v0, %v400_v63 }
  0x1d   :  { %277 = vrot.lane.b32.xlu1 %v276_v32, %s880_s27  ;;  %v347_v61 = vsel %vm38_vm2, %v774_v56, %v343_v60  ;;  %v775_v62 = vld [vmem:[%s1600_s0 + $0x65] sm:$0x8]   ;;  %v780_v5 = vld [vmem:[%s1600_s0 + $0x78] sm:$0x1]   ;;  %v789_v10 = vld [vmem:[%s1600_s0 + $0x50] sm:$0x80]   ;;  %v288_v11 = vsel %vm34_vm0, %v759_v2, %v758_v1  ;;  %v439_v12 = vsel %vm42_vm3, %v797_v4, %v435_v3 }
  0x1e   :  { %233 = vrot.lane.b32.xlu2 %v232_v48, %s879_s23  ;;  %s353_s23 = smov 48  ;;  %v781_v6 = vld [vmem:[%s1600_s0 + $0x97] sm:$0x2]   ;;  %v351_v7 = vsel %vm42_vm3, %v775_v62, %v347_v61  ;;  %v798_v13 = vld [vmem:[%s1600_s0 + $0x246] ss:$-112 sm:%s441_s4]   ;;  %v408_v20 = vsel %vm55_vm5, %v789_v10, %v404_v9  ;;  %s882_s4 = smov 64  }
  0x1f   :  { %v776_v8 = vld [vmem:[%s1600_s0 + $0x248] ss:$-112 sm:%s353_s23]   ;;  %v816_v14 = vld [vmem:[%s1600_s0 + $0x4] sm:$0x1]   ;;  %v376_v16 = vsel %vm34_vm0, %v781_v6, %v780_v5  ;;  %v835_v19 = vld [vmem:[%s1600_s0 + $0x73] sm:$0x1]   ;;  %v444_v24 = vsel %vm10_vm1, %v798_v13, %v439_v12 }
  0x20   :  { %v817_v15 = vld [vmem:[%s1600_s0 + $0x23] sm:$0x2]   ;;  %v356_v17 = vsel %vm10_vm1, %v776_v8, %v351_v7  ;;  %v777_v18 = vld [vmem:[%s1600_s0 + $0x32] sm:$0x40]   ;;  %v836_v21 = vld [vmem:[%s1600_s0 + $0x92] sm:$0x2]  }
  0x21   :  { %v846_v22 = vld [vmem:[%s1600_s0 + $0x72] sm:$0x1]   ;;  %v799_v25 = vld [vmem:[%s1600_s0 + $0x30] sm:$0x40]   ;;  %v519_v26 = vsel %vm34_vm0, %v817_v15, %v816_v14  ;;  %v818_v27 = vld [vmem:[%s1600_s0 + $0x42] sm:$0x4]   ;;  %v1247_v28 = vsel %vm34_vm0, %v836_v21, %v835_v19  ;;  %v360_v31 = vsel %vm51_vm4, %v777_v18, %v356_v17 }
  0x22   :  { %v847_v23 = vld [vmem:[%s1600_s0 + $0x91] sm:$0x2]   ;;  %v800_v30 = vld [vmem:[%s1600_s0 + $0x4f] sm:$0x80]   ;;  %v778_v32 = vld [vmem:[%s1600_s0 + $0x51] sm:$0x80]   ;;  %v448_v40 = vsel %vm51_vm4, %v799_v25, %v444_v24  ;;  %v523_v41 = vsel %vm38_vm2, %v818_v27, %v519_v26 }
  0x23   :  { %v1250_v29 = vsel %vm34_vm0, %v847_v23, %v846_v22  ;;  %v819_v33 = vld [vmem:[%s1600_s0 + $0x61] sm:$0x8]   ;;  %s529_s11 = smov 48  ;;  %s661_s12 = smov 48  ;;  %v802_v34 = vld [vmem:[%s1600_s0 + $0x76] sm:$0x1]   ;;  %v364_v46 = vsel %vm55_vm5, %v778_v32, %v360_v31  ;;  %v452_v58 = vsel %vm55_vm5, %v800_v30, %v448_v40 }
  0x24   :  { %321 = vrot.lane.b32.xlu0 %v320_v52, %s881_s25  ;;  %s883_s13 = smov 56   ;;  %v803_v35 = vld [vmem:[%s1600_s0 + $0x95] sm:$0x2]   ;;  %v827_v36 = vld [vmem:[%s1600_s0 + $0x3] sm:$0x1]   ;;  %s1282_s28 = smov 48  ;;  %v527_v59 = vsel %vm42_vm3, %v819_v33, %v523_v41 }
  0x25   :  { %333 = vrot.lane.b32.xlu1 %v332_v57, %s881_s25  ;;  %v828_v37 = vld [vmem:[%s1600_s0 + $0x22] sm:$0x2]   ;;  %v805_v38 = vld [vmem:[%s1600_s0 + $0x5] sm:$0x1]   ;;  %v849_v43 = vld [vmem:[%s1600_s0 + $0x1] sm:$0x1]   ;;  %v464_v2 = vsel %vm34_vm0, %v803_v35, %v802_v34 }
  0x26   :  { %289 = vrot.lane.b32.xlu2 %v288_v11, %s880_s27  ;;  %v806_v39 = vld [vmem:[%s1600_s0 + $0x24] sm:$0x2]   ;;  %v850_v44 = vld [vmem:[%s1600_s0 + $0x20] sm:$0x2]   ;;  %v854_v51 = vld [vmem:[%s1600_s0 + $0x2b] sm:$0x40]   ;;  %v563_v4 = vsel %vm34_vm0, %v828_v37, %v827_v36 }
  0x27   :  { %v807_v42 = vld [vmem:[%s1600_s0 + $0x43] sm:$0x4]   ;;  %v851_v45 = vld [vmem:[%s1600_s0 + $0x3f] sm:$0x4]   ;;  %v820_v47 = vld [vmem:[%s1600_s0 + $0x244] ss:$-112 sm:%s529_s11]   ;;  %v651_v48 = vsel %vm34_vm0, %v850_v44, %v849_v43  ;;  %v475_v53 = vsel %vm34_vm0, %v806_v39, %v805_v38 }
  0x28   :  { %v852_v49 = vld [vmem:[%s1600_s0 + $0x5e] sm:$0x8]   ;;  %v829_v52 = vld [vmem:[%s1600_s0 + $0x41] sm:$0x4]   ;;  %v655_v54 = vsel %vm38_vm2, %v851_v45, %v651_v48  ;;  %v855_v55 = vld [vmem:[%s1600_s0 + $0x4a] sm:$0x80]   ;;  %v479_v10 = vsel %vm38_vm2, %v807_v42, %v475_v53  ;;  %v532_v15 = vsel %vm10_vm1, %v820_v47, %v527_v59 }
  0x29   :  { %v853_v50 = vld [vmem:[%s1600_s0 + $0x241] ss:$-112 sm:%s661_s12]   ;;  %v824_v56 = vld [vmem:[%s1600_s0 + $0x74] sm:$0x1]   ;;  %v808_v60 = vld [vmem:[%s1600_s0 + $0x62] sm:$0x8]   ;;  %v659_v61 = vsel %vm42_vm3, %v852_v49, %v655_v54  ;;  %v567_v21 = vsel %vm38_vm2, %v829_v52, %v563_v4 }
  0x2a   :  { %v825_v57 = vld [vmem:[%s1600_s0 + $0x93] sm:$0x2]   ;;  %v838_v63 = vld [vmem:[%s1600_s0 + $0x2] sm:$0x1]   ;;  %v791_v5 = vld [vmem:[%s1600_s0 + $0x77] sm:$0x1]   ;;  %v664_v6 = vsel %vm10_vm1, %v853_v50, %v659_v61  ;;  %v483_v27 = vsel %vm42_vm3, %v808_v60, %v479_v10 }
  0x2b   :  { %v1333_v62 = vsel %vm34_vm0, %v825_v57, %v824_v56  ;;  %v839_v0 = vld [vmem:[%s1600_s0 + $0x21] sm:$0x2]   ;;  %v821_v3 = vld [vmem:[%s1600_s0 + $0x2e] sm:$0x40]   ;;  %v668_v11 = vsel %vm51_vm4, %v854_v51, %v664_v6  ;;  %v843_v13 = vld [vmem:[%s1600_s0 + $0x2c] sm:$0x40]  }
  0x2c   :  { %377 = vrot.lane.b32.xlu0 %v376_v16, %s882_s4  ;;  %v840_v1 = vld [vmem:[%s1600_s0 + $0x40] sm:$0x4]   ;;  %v607_v7 = vsel %vm34_vm0, %v839_v0, %v838_v63  ;;  %v857_v14 = vld [vmem:[%s1600_s0 + $0x71] sm:$0x1]   ;;  %s884_s16 = smov 48   ;;  %v672_v17 = vsel %vm55_vm5, %v855_v55, %v668_v11  ;;  %s573_s29 = smov 48  ;;  %v536_v32 = vsel %vm51_vm4, %v821_v3, %v532_v15 }
  0x2d   :  { %409 = vrot.lane.b32.xlu1 %v408_v20, %s883_s13  ;;  %v841_v8 = vld [vmem:[%s1600_s0 + $0x5f] sm:$0x8]   ;;  %v611_v12 = vsel %vm38_vm2, %v840_v1, %v607_v7  ;;  %v792_v16 = vld [vmem:[%s1600_s0 + $0x96] sm:$0x2]   ;;  %v844_v19 = vld [vmem:[%s1600_s0 + $0x4b] sm:$0x80]  }
  0x2e   :  { %365 = vrot.lane.b32.xlu2 %v364_v46, %s882_s4  ;;  %v842_v9 = vld [vmem:[%s1600_s0 + $0x242] ss:$-112 sm:%s1282_s28]   ;;  %s485_s28 = smov 48  ;;  %v615_v18 = vsel %vm42_vm3, %v841_v8, %v611_v12  ;;  %v858_v20 = vld [vmem:[%s1600_s0 + $0x90] sm:$0x2]   ;;  %v420_v34 = vsel %vm34_vm0, %v792_v16, %v791_v5  ;;  %s886_s15 = smov 32  }
  0x2f   :  { %v830_v22 = vld [vmem:[%s1600_s0 + $0x60] sm:$0x8]   ;;  %v620_v23 = vsel %vm10_vm1, %v842_v9, %v615_v18  ;;  %v684_v24 = vsel %vm34_vm0, %v858_v20, %v857_v14  ;;  %v813_v25 = vld [vmem:[%s1600_s0 + $0x75] sm:$0x1]   ;;  %v822_v33 = vld [vmem:[%s1600_s0 + $0x4d] sm:$0x80]  }
  0x30   :  { %v814_v26 = vld [vmem:[%s1600_s0 + $0x94] sm:$0x2]   ;;  %v624_v31 = vsel %vm51_vm4, %v843_v13, %v620_v23  ;;  %v571_v36 = vsel %vm42_vm3, %v830_v22, %v567_v21  ;;  %v831_v37 = vld [vmem:[%s1600_s0 + $0x243] ss:$-112 sm:%s573_s29]   ;;  %v540_v41 = vsel %vm55_vm5, %v822_v33, %v536_v32  ;;  %s887_s17 = smov 24   ;;  %s888_s19 = smov 16  }
  0x31   :  { %v809_v30 = vld [vmem:[%s1600_s0 + $0x245] ss:$-112 sm:%s485_s28]   ;;  %v628_v35 = vsel %vm55_vm5, %v844_v19, %v624_v31  ;;  %v508_v38 = vsel %vm34_vm0, %v814_v26, %v813_v25  ;;  %v576_v42 = vsel %vm10_vm1, %v831_v37, %v571_v36  ;;  %v832_v43 = vld [vmem:[%s1600_s0 + $0x2d] sm:$0x40]   ;;  %s885_s28 = smov 40   ;;  %s889_s21 = smov 8  }
  0x32   :  { %v488_v39 = vsel %vm10_vm1, %v809_v30, %v483_v27  ;;  %v810_v40 = vld [vmem:[%s1600_s0 + $0x2f] sm:$0x40]   ;;  %v580_v46 = vsel %vm51_vm4, %v832_v43, %v576_v42  ;;  %v833_v47 = vld [vmem:[%s1600_s0 + $0x4c] sm:$0x80]   ;;  %s2_s22 = smov 3  ;;  %s4_s23 = smov 12 }
  0x33   :  { %v492_v44 = vsel %vm51_vm4, %v810_v40, %v488_v39  ;;  %v811_v45 = vld [vmem:[%s1600_s0 + $0x4e] sm:$0x80]   ;;  %v584_v49 = vsel %vm55_vm5, %v833_v47, %v580_v46  ;;  %s8_s27 = smov 48  ;;  %vm6_vm6 = vcmask 1043458   ;;  %s12_s25 = smov 192  ;;  %vm14_vm7 = vcmask 1047558  }
  0x34   :  { %453 = vrot.lane.b32.xlu0 %v452_v58, %s884_s16  ;;  %v496_v48 = vsel %vm55_vm5, %v811_v45, %v492_v44  ;;  %s25_s26 = smov 3  ;;  %vm16_vm8 = vcmask 64512   ;;  %v9_v50 = vld [vmem:[%s1600_s0] ss:$16 sm:%s8_s27]   ;;  %vm59_vm9 = vcmask 1048512   ;;  %vm103_vm10 = vcmask 982912  }
  0x35   :  { %465 = vrot.lane.b32.xlu1 %v464_v2, %s884_s16  ;;  %v13_v52 = vld [vmem:[%s1600_s0] ss:$16 sm:%s12_s25]   ;;  %vm147_vm11 = vcmask 917312   ;;  %vm191_vm12 = vcmask 851712   ;;  %vm235_vm13 = vcmask 786112   ;;  %vm279_vm14 = vcmask 720512  }
  0x36   :  { %421 = vrot.lane.b32.xlu2 %v420_v34, %s883_s13  ;;  %v693_v54 = vld [vmem:[%s1600_s0 + $0x80] ss:$16 sm:%s25_s26]   ;;  %vm323_vm15 = vcmask 654912   ;;  %vm367_vm0 = vcmask 589312   ;;  %vm455_vm2 = vcmask 458112   ;;  %vm499_vm3 = vcmask 392512  }
  0x37   :  { %694 = vst.msk [vmem:[%s1601_s1 + $0x4] ss:$8 sm:$0x3] %vm16_vm8, %v693_v54   ;;  %vm543_vm4 = vcmask 326912   ;;  %vm587_vm5 = vcmask 261312  }
  0x3c   :  { %509 = vrot.lane.b32.xlu0 %v508_v38, %s885_s28 }
  0x3d   :  { %541 = vrot.lane.b32.xlu1 %v540_v41, %s886_s15 }
  0x3e   :  { %497 = vrot.lane.b32.xlu2 %v496_v48, %s885_s28 }
  0x44   :  { %585 = vrot.lane.b32.xlu0 %v584_v49, %s887_s17 }
  0x45   :  { %597 = vrot.lane.b32.xlu1 %v1247_v28, %s887_s17  ;;  %v3_v28 = vld [vmem:[%s1600_s0] ss:$16 sm:%s2_s22]  }
  0x46   :  { %553 = vrot.lane.b32.xlu2 %v1333_v62, %s886_s15 }
  0x4c   :  { %641 = vrot.lane.b32.xlu0 %v1250_v29, %s888_s19  ;;  %v5_v29 = vld [vmem:[%s1600_s0] ss:$16 sm:%s4_s23]  }
  0x4d   :  { %673 = vrot.lane.b32.xlu1 %v672_v17, %s889_s21  ;;  %v7_v51 = vsel %vm6_vm6, %v5_v29, %v3_v28  ;;  %vm631_vm6 = vcmask 195712  }
  0x4e   :  { %629 = vrot.lane.b32.xlu2 %v628_v35, %s888_s19  ;;  %v11_v53 = vsel %vm10_vm1, %v9_v50, %v7_v51  ;;  %vm411_vm1 = vcmask 523712  }
  0x4f   :  { %v15_v55 = vsel %vm14_vm7, %v13_v52, %v11_v53  ;;  %vm675_vm7 = vcmask 130112  }
  0x50   :  { %692 = vst.msk [vmem:[%s1601_s1 - $0x2d] ss:$8 sm:$0xc0] %vm16_vm8, %v15_v55  }
  0x51   :  { %17 = vst.msk [vmem:[%s1601_s1] ss:$8 sm:$0x3] %vm16_vm8, %v15_v55  }
  0x52   :  { %690 = vst.msk [vmem:[%s1601_s1 - $0xf] ss:$8 sm:$0xc] %vm16_vm8, %v15_v55  }
  0x53   :  { %691 = vst.msk [vmem:[%s1601_s1 - $0x1e] ss:$8 sm:$0x30] %vm16_vm8, %v15_v55  }
  0x56   :  { %685 = vrot.lane.b32.xlu2 %v684_v24, %s889_s21 }
  0x67   :  { %v158_v56 = vpop.permute.xlu2 %157  }
  0x70   :  { %v146_v57 = vpop.permute.xlu2 %145  }
  0x76   :  { %v70_v58 = vpop.permute.xlu0 %69   ;;  %v114_v59 = vpop.permute.xlu1 %113  }
  0x77   :  { %705 = vst.msk [vmem:[%s1601_s1 + $0xb] sm:$0x3] %vm59_vm9, %v70_v58  }
  0x78   :  { %716 = vst.msk [vmem:[%s1601_s1 + $0xb] sm:$0x3] %vm103_vm10, %v114_v59   ;;  %v234_v60 = vpop.permute.xlu2 %233  }
  0x79   :  { %727 = vst.msk [vmem:[%s1601_s1 + $0xb] sm:$0x3] %vm147_vm11, %v158_v56  }
  0x7e   :  { %v58_v61 = vpop.permute.xlu0 %57  }
  0x7f   :  { %60 = vst.msk [vmem:[%s1601_s1] sm:$0x1f] %vm59_vm9, %v58_v61   ;;  %v102_v62 = vpop.permute.xlu1 %101  }
  0x80   :  { %702 = vst.msk [vmem:[%s1601_s1 + $0x3] sm:$0xe0] %vm59_vm9, %v58_v61   ;;  %v290_v63 = vpop.permute.xlu2 %289  }
  0x81   :  { %104 = vst.msk [vmem:[%s1601_s1] sm:$0x1f] %vm103_vm10, %v102_v62  }
  0x82   :  { %713 = vst.msk [vmem:[%s1601_s1 + $0x3] sm:$0xe0] %vm103_vm10, %v102_v62  }
  0x83   :  { %148 = vst.msk [vmem:[%s1601_s1] sm:$0x1f] %vm147_vm11, %v146_v57  }
  0x84   :  { %724 = vst.msk [vmem:[%s1601_s1 + $0x3] sm:$0xe0] %vm147_vm11, %v146_v57  }
  0x86   :  { %v190_v0 = vpop.permute.xlu0 %189  }
  0x87   :  { %192 = vst.msk [vmem:[%s1601_s1] sm:$0x1f] %vm191_vm12, %v190_v0   ;;  %v202_v1 = vpop.permute.xlu1 %201  }
  0x88   :  { %735 = vst.msk [vmem:[%s1601_s1 + $0x3] sm:$0xe0] %vm191_vm12, %v190_v0   ;;  %v366_v2 = vpop.permute.xlu2 %365  }
  0x89   :  { %236 = vst.msk [vmem:[%s1601_s1] sm:$0x1f] %vm235_vm13, %v234_v60  }
  0x8a   :  { %746 = vst.msk [vmem:[%s1601_s1 + $0x3] sm:$0xe0] %vm235_vm13, %v234_v60  }
  0x8b   :  { %738 = vst.msk [vmem:[%s1601_s1 + $0xb] sm:$0x3] %vm191_vm12, %v202_v1  }
  0x8e   :  { %v246_v3 = vpop.permute.xlu0 %245  }
  0x8f   :  { %749 = vst.msk [vmem:[%s1601_s1 + $0xb] sm:$0x3] %vm235_vm13, %v246_v3   ;;  %v278_v4 = vpop.permute.xlu1 %277  }
  0x90   :  { %760 = vst.msk [vmem:[%s1601_s1 + $0xb] sm:$0x3] %vm279_vm14, %v290_v63   ;;  %v422_v5 = vpop.permute.xlu2 %421  }
  0x91   :  { %280 = vst.msk [vmem:[%s1601_s1] sm:$0x1f] %vm279_vm14, %v278_v4  }
  0x92   :  { %757 = vst.msk [vmem:[%s1601_s1 + $0x3] sm:$0xe0] %vm279_vm14, %v278_v4  }
  0x96   :  { %v322_v6 = vpop.permute.xlu0 %321  }
  0x97   :  { %324 = vst.msk [vmem:[%s1601_s1] sm:$0x1f] %vm323_vm15, %v322_v6   ;;  %v334_v7 = vpop.permute.xlu1 %333  }
  0x98   :  { %768 = vst.msk [vmem:[%s1601_s1 + $0x3] sm:$0xe0] %vm323_vm15, %v322_v6   ;;  %v498_v8 = vpop.permute.xlu2 %497  }
  0x99   :  { %368 = vst.msk [vmem:[%s1601_s1] sm:$0x1f] %vm367_vm0, %v366_v2  }
  0x9a   :  { %779 = vst.msk [vmem:[%s1601_s1 + $0x3] sm:$0xe0] %vm367_vm0, %v366_v2  }
  0x9b   :  { %771 = vst.msk [vmem:[%s1601_s1 + $0xb] sm:$0x3] %vm323_vm15, %v334_v7  }
  0x9e   :  { %v378_v9 = vpop.permute.xlu0 %377  }
  0x9f   :  { %782 = vst.msk [vmem:[%s1601_s1 + $0xb] sm:$0x3] %vm367_vm0, %v378_v9   ;;  %v410_v10 = vpop.permute.xlu1 %409  }
  0xa0   :  { %793 = vst.msk [vmem:[%s1601_s1 + $0xb] sm:$0x3] %vm411_vm1, %v422_v5   ;;  %v554_v11 = vpop.permute.xlu2 %553  }
  0xa1   :  { %412 = vst.msk [vmem:[%s1601_s1] sm:$0x1f] %vm411_vm1, %v410_v10  }
  0xa2   :  { %790 = vst.msk [vmem:[%s1601_s1 + $0x3] sm:$0xe0] %vm411_vm1, %v410_v10  }
  0xa6   :  { %v454_v12 = vpop.permute.xlu0 %453  }
  0xa7   :  { %456 = vst.msk [vmem:[%s1601_s1] sm:$0x1f] %vm455_vm2, %v454_v12   ;;  %v466_v13 = vpop.permute.xlu1 %465  }
  0xa8   :  { %801 = vst.msk [vmem:[%s1601_s1 + $0x3] sm:$0xe0] %vm455_vm2, %v454_v12   ;;  %v630_v14 = vpop.permute.xlu2 %629  }
  0xa9   :  { %500 = vst.msk [vmem:[%s1601_s1] sm:$0x1f] %vm499_vm3, %v498_v8  }
  0xaa   :  { %812 = vst.msk [vmem:[%s1601_s1 + $0x3] sm:$0xe0] %vm499_vm3, %v498_v8  }
  0xab   :  { %804 = vst.msk [vmem:[%s1601_s1 + $0xb] sm:$0x3] %vm455_vm2, %v466_v13  }
  0xae   :  { %v510_v15 = vpop.permute.xlu0 %509  }
  0xaf   :  { %815 = vst.msk [vmem:[%s1601_s1 + $0xb] sm:$0x3] %vm499_vm3, %v510_v15   ;;  %v542_v16 = vpop.permute.xlu1 %541  }
  0xb0   :  { %826 = vst.msk [vmem:[%s1601_s1 + $0xb] sm:$0x3] %vm543_vm4, %v554_v11   ;;  %v686_v17 = vpop.permute.xlu2 %685  }
  0xb1   :  { %544 = vst.msk [vmem:[%s1601_s1] sm:$0x1f] %vm543_vm4, %v542_v16  }
  0xb2   :  { %823 = vst.msk [vmem:[%s1601_s1 + $0x3] sm:$0xe0] %vm543_vm4, %v542_v16  }
  0xb6   :  { %v586_v18 = vpop.permute.xlu0 %585  }
  0xb7   :  { %588 = vst.msk [vmem:[%s1601_s1] sm:$0x1f] %vm587_vm5, %v586_v18   ;;  %v598_v19 = vpop.permute.xlu1 %597  }
  0xb8   :  { %834 = vst.msk [vmem:[%s1601_s1 + $0x3] sm:$0xe0] %vm587_vm5, %v586_v18  }
  0xb9   :  { %632 = vst.msk [vmem:[%s1601_s1] sm:$0x1f] %vm631_vm6, %v630_v14  }
  0xba   :  { %845 = vst.msk [vmem:[%s1601_s1 + $0x3] sm:$0xe0] %vm631_vm6, %v630_v14  }
  0xbb   :  { %837 = vst.msk [vmem:[%s1601_s1 + $0xb] sm:$0x3] %vm587_vm5, %v598_v19  }
  0xbe   :  { %v642_v20 = vpop.permute.xlu0 %641  }
  0xbf   :  { %848 = vst.msk [vmem:[%s1601_s1 + $0xb] sm:$0x3] %vm631_vm6, %v642_v20   ;;  %v674_v21 = vpop.permute.xlu1 %673  }
  0xc0   :  { %859 = vst.msk [vmem:[%s1601_s1 + $0xb] sm:$0x3] %vm675_vm7, %v686_v17  }
  0xc1   :  { %676 = vst.msk [vmem:[%s1601_s1] sm:$0x1f] %vm675_vm7, %v674_v21  }
  0xc2   :  { %856 = vst.msk [vmem:[%s1601_s1 + $0x3] sm:$0xe0] %vm675_vm7, %v674_v21  }

// kernel: tile.69
= control target key start
LH: loop header
LB: loop body
LE: loop exit
PB: predicated region body
PF: predicated region fallthrough
CT: control target
= control target key end

     0   :  { %vm6_vm0 = vcmask 1043458   ;;  %vm22_vm1 = vcmask 1041409   ;;  %s25_s10 = smov 12  ;;  %vm31_vm2 = vcmask 1044484   ;;  %vm35_vm3 = vcmask 1045509   ;;  %s75_s21 = smov 12  ;;  %s822_s0 = inlined_call_operand.vmem [shape: f32[3,32,8], index: 0, kind: input, shape index: {}]   ;;  %s823_s1 = inlined_call_operand.vmem [shape: f32[3,256], index: 1, kind: output, shape index: {}]  }
   0x1   :  { %v405_v0 = vld [vmem:[%s822_s0 + $0xf] sm:$0x1]   ;;  %v408_v3 = vld [vmem:[%s822_s0 + $0x3b] sm:$0x10]   ;;  %v415_v6 = vld [vmem:[%s822_s0 + $0xd] sm:$0x1]  }
   0x2   :  { %v406_v1 = vld [vmem:[%s822_s0 + $0x2e] sm:$0x2]   ;;  %v409_v4 = vld [vmem:[%s822_s0 + $0x5a] sm:$0x20]   ;;  %v416_v8 = vld [vmem:[%s822_s0 + $0x2c] sm:$0x2]  }
   0x3   :  { %v23_v2 = vsel %vm22_vm1, %v406_v1, %v405_v0  ;;  %v407_v5 = vld [vmem:[%s822_s0 + $0xaf] ss:$-48 sm:%s25_s10]   ;;  %v418_v9 = vld [vmem:[%s822_s0 + $0x39] sm:$0x10]   ;;  %v73_v11 = vsel %vm22_vm1, %v416_v8, %v415_v6  ;;  %v410_v14 = vld [vmem:[%s822_s0 + $0xe] sm:$0x1]  }
   0x4   :  { %v28_v7 = vsel %vm6_vm0, %v407_v5, %v23_v2  ;;  %v417_v12 = vld [vmem:[%s822_s0 + $0xad] ss:$-48 sm:%s75_s21]   ;;  %v411_v17 = vld [vmem:[%s822_s0 + $0x2d] sm:$0x2]   ;;  %s50_s3 = smov 12  ;;  %s496_s6 = smov 120  }
   0x5   :  { %v32_v10 = vsel %vm31_vm2, %v408_v3, %v28_v7  ;;  %v419_v13 = vld [vmem:[%s822_s0 + $0x58] sm:$0x20]   ;;  %v78_v16 = vsel %vm6_vm0, %v417_v12, %v73_v11  ;;  %v413_v18 = vld [vmem:[%s822_s0 + $0x3a] sm:$0x10]   ;;  %v48_v20 = vsel %vm22_vm1, %v411_v17, %v410_v14  ;;  %s100_s9 = smov 12  ;;  %s497_s16 = smov 104  }
   0x6   :  { %v36_v15 = vsel %vm35_vm3, %v409_v4, %v32_v10  ;;  %v82_v19 = vsel %vm31_vm2, %v418_v9, %v78_v16  ;;  %v412_v21 = vld [vmem:[%s822_s0 + $0xae] ss:$-48 sm:%s50_s3]   ;;  %v420_v24 = vld [vmem:[%s822_s0 + $0xc] sm:$0x1]   ;;  %v423_v30 = vld [vmem:[%s822_s0 + $0x38] sm:$0x10]  }
   0x7   :  { %37 = vrot.lane.b32.xlu0 %v36_v15, %s496_s6  ;;  %v86_v22 = vsel %vm35_vm3, %v419_v13, %v82_v19  ;;  %v53_v23 = vsel %vm6_vm0, %v412_v21, %v48_v20  ;;  %v421_v25 = vld [vmem:[%s822_s0 + $0x2b] sm:$0x2]   ;;  %v414_v28 = vld [vmem:[%s822_s0 + $0x59] sm:$0x20]   ;;  %v435_v31 = vld [vmem:[%s822_s0 + $0x9] sm:$0x1]  }
   0x8   :  { %v422_v26 = vld [vmem:[%s822_s0 + $0xac] ss:$-48 sm:%s100_s9]   ;;  %87 = vrot.lane.b32.xlu1 %v86_v22, %s497_s16  ;;  %v57_v27 = vsel %vm31_vm2, %v413_v18, %v53_v23  ;;  %v98_v29 = vsel %vm22_vm1, %v421_v25, %v420_v24  ;;  %v436_v33 = vld [vmem:[%s822_s0 + $0x28] sm:$0x2]   ;;  %s175_s25 = smov 12  ;;  %s200_s5 = smov 12 }
   0x9   :  { %v103_v32 = vsel %vm6_vm0, %v422_v26, %v98_v29  ;;  %v424_v35 = vld [vmem:[%s822_s0 + $0x57] sm:$0x20]   ;;  %v173_v36 = vsel %vm22_vm1, %v436_v33, %v435_v31  ;;  %v437_v37 = vld [vmem:[%s822_s0 + $0xa9] ss:$-48 sm:%s175_s25]   ;;  %v440_v38 = vld [vmem:[%s822_s0 + $0x8] sm:$0x1]   ;;  %v61_v39 = vsel %vm35_vm3, %v414_v28, %v57_v27 }
   0xa   :  { %v107_v34 = vsel %vm31_vm2, %v423_v30, %v103_v32  ;;  %v441_v40 = vld [vmem:[%s822_s0 + $0x27] sm:$0x2]   ;;  %v178_v44 = vsel %vm6_vm0, %v437_v37, %v173_v36  ;;  %v438_v45 = vld [vmem:[%s822_s0 + $0x35] sm:$0x10]   ;;  %s250_s10 = smov 12  ;;  %s498_s11 = smov 112  }
   0xb   :  { %v198_v41 = vsel %vm22_vm1, %v441_v40, %v440_v38  ;;  %v442_v42 = vld [vmem:[%s822_s0 + $0xa8] ss:$-48 sm:%s200_s5]   ;;  %v111_v43 = vsel %vm35_vm3, %v424_v35, %v107_v34  ;;  %v439_v46 = vld [vmem:[%s822_s0 + $0x54] sm:$0x20]   ;;  %v450_v49 = vld [vmem:[%s822_s0 + $0x6] sm:$0x1]   ;;  %v182_v51 = vsel %vm31_vm2, %v438_v45, %v178_v44 }
   0xc   :  { %v203_v47 = vsel %vm6_vm0, %v442_v42, %v198_v41  ;;  %v443_v48 = vld [vmem:[%s822_s0 + $0x34] sm:$0x10]   ;;  %v451_v50 = vld [vmem:[%s822_s0 + $0x25] sm:$0x2]   ;;  %s499_s20 = smov 96   ;;  %s275_s29 = smov 12  ;;  %v186_v0 = vsel %vm35_vm3, %v439_v46, %v182_v51 }
   0xd   :  { %v452_v52 = vld [vmem:[%s822_s0 + $0xa6] ss:$-48 sm:%s250_s10]   ;;  %v455_v53 = vld [vmem:[%s822_s0 + $0x5] sm:$0x1]   ;;  %v425_v55 = vld [vmem:[%s822_s0 + $0xb] sm:$0x1]   ;;  %v207_v58 = vsel %vm31_vm2, %v443_v48, %v203_v47  ;;  %v248_v60 = vsel %vm22_vm1, %v451_v50, %v450_v49 }
   0xe   :  { %v456_v54 = vld [vmem:[%s822_s0 + $0x24] sm:$0x2]   ;;  %v426_v56 = vld [vmem:[%s822_s0 + $0x2a] sm:$0x2]   ;;  %s125_s3 = smov 12  ;;  %v253_v6 = vsel %vm6_vm0, %v452_v52, %v248_v60  ;;  %s500_s18 = smov 72  }
   0xf   :  { %62 = vrot.lane.b32.xlu0 %v61_v39, %s498_s11  ;;  %v428_v57 = vld [vmem:[%s822_s0 + $0x37] sm:$0x10]   ;;  %v444_v59 = vld [vmem:[%s822_s0 + $0x53] sm:$0x20]   ;;  %v123_v61 = vsel %vm22_vm1, %v426_v56, %v425_v55  ;;  %v273_v2 = vsel %vm22_vm1, %v456_v54, %v455_v53  ;;  %v453_v7 = vld [vmem:[%s822_s0 + $0x32] sm:$0x10]  }
  0x10   :  { %112 = vrot.lane.b32.xlu1 %v111_v43, %s499_s20  ;;  %v427_v62 = vld [vmem:[%s822_s0 + $0xab] ss:$-48 sm:%s125_s3]   ;;  %v211_v5 = vsel %vm35_vm3, %v444_v59, %v207_v58  ;;  %v458_v8 = vld [vmem:[%s822_s0 + $0x31] sm:$0x10]   ;;  %s501_s21 = smov 88   ;;  %s325_s26 = smov 12  ;;  %v257_v18 = vsel %vm31_vm2, %v453_v7, %v253_v6 }
  0x11   :  { %v429_v63 = vld [vmem:[%s822_s0 + $0x56] sm:$0x20]   ;;  %v128_v1 = vsel %vm6_vm0, %v427_v62, %v123_v61  ;;  %v457_v3 = vld [vmem:[%s822_s0 + $0xa5] ss:$-48 sm:%s275_s29]   ;;  %v454_v10 = vld [vmem:[%s822_s0 + $0x51] sm:$0x20]  }
  0x12   :  { %v132_v4 = vsel %vm31_vm2, %v428_v57, %v128_v1  ;;  %v465_v11 = vld [vmem:[%s822_s0 + $0x3] sm:$0x1]   ;;  %s150_s27 = smov 12  ;;  %v278_v13 = vsel %vm6_vm0, %v457_v3, %v273_v2  ;;  %v470_v14 = vld [vmem:[%s822_s0 + $0x2] sm:$0x1]   ;;  %s502_s7 = smov 64   ;;  %v261_v33 = vsel %vm35_vm3, %v454_v10, %v257_v18 }
  0x13   :  { %v136_v9 = vsel %vm35_vm3, %v429_v63, %v132_v4  ;;  %v466_v12 = vld [vmem:[%s822_s0 + $0x22] sm:$0x2]   ;;  %v471_v15 = vld [vmem:[%s822_s0 + $0x21] sm:$0x2]   ;;  %v430_v16 = vld [vmem:[%s822_s0 + $0xa] sm:$0x1]   ;;  %v282_v27 = vsel %vm31_vm2, %v458_v8, %v278_v13 }
  0x14   :  { %137 = vrot.lane.b32.xlu2 %v136_v9, %s501_s21  ;;  %v431_v17 = vld [vmem:[%s822_s0 + $0x29] sm:$0x2]   ;;  %v459_v19 = vld [vmem:[%s822_s0 + $0x50] sm:$0x20]   ;;  %s350_s10 = smov 12  ;;  %s225_s15 = smov 12  ;;  %v323_v28 = vsel %vm22_vm1, %v466_v12, %v465_v11  ;;  %v348_v35 = vsel %vm22_vm1, %v471_v15, %v470_v14 }
  0x15   :  { %v148_v20 = vsel %vm22_vm1, %v431_v17, %v430_v16  ;;  %v432_v21 = vld [vmem:[%s822_s0 + $0xaa] ss:$-48 sm:%s150_s27]   ;;  %v445_v25 = vld [vmem:[%s822_s0 + $0x7] sm:$0x1]   ;;  %v286_v37 = vsel %vm35_vm3, %v459_v19, %v282_v27  ;;  %v468_v39 = vld [vmem:[%s822_s0 + $0x2f] sm:$0x10]  }
  0x16   :  { %v433_v22 = vld [vmem:[%s822_s0 + $0x36] sm:$0x10]   ;;  %v153_v23 = vsel %vm6_vm0, %v432_v21, %v148_v20  ;;  %v446_v26 = vld [vmem:[%s822_s0 + $0x26] sm:$0x2]   ;;  %v467_v29 = vld [vmem:[%s822_s0 + $0xa3] ss:$-48 sm:%s325_s26]  }
  0x17   :  { %187 = vrot.lane.b32.xlu0 %v186_v0, %s500_s18  ;;  %v434_v24 = vld [vmem:[%s822_s0 + $0x55] sm:$0x20]   ;;  %v157_v30 = vsel %vm31_vm2, %v433_v22, %v153_v23  ;;  %v223_v31 = vsel %vm22_vm1, %v446_v26, %v445_v25  ;;  %v447_v32 = vld [vmem:[%s822_s0 + $0xa7] ss:$-48 sm:%s225_s15]   ;;  %v328_v38 = vsel %vm6_vm0, %v467_v29, %v323_v28  ;;  %s503_s3 = smov 48   ;;  %s504_s6 = smov 80  }
  0x18   :  { %212 = vrot.lane.b32.xlu1 %v211_v5, %s502_s7  ;;  %v161_v34 = vsel %vm35_vm3, %v434_v24, %v157_v30  ;;  %v472_v36 = vld [vmem:[%s822_s0 + $0xa2] ss:$-48 sm:%s350_s10]   ;;  %v228_v40 = vsel %vm6_vm0, %v447_v32, %v223_v31  ;;  %v448_v41 = vld [vmem:[%s822_s0 + $0x33] sm:$0x10]   ;;  %s300_s11 = smov 12  ;;  %s505_s12 = smov 40   ;;  %v332_v46 = vsel %vm31_vm2, %v468_v39, %v328_v38 }
  0x19   :  { %v473_v42 = vld [vmem:[%s822_s0 + $0x2e] sm:$0x10]   ;;  %v353_v43 = vsel %vm6_vm0, %v472_v36, %v348_v35  ;;  %v460_v44 = vld [vmem:[%s822_s0 + $0x4] sm:$0x1]   ;;  %v469_v47 = vld [vmem:[%s822_s0 + $0x4e] sm:$0x20]   ;;  %v232_v48 = vsel %vm31_vm2, %v448_v41, %v228_v40 }
  0x1a   :  { %v461_v45 = vld [vmem:[%s822_s0 + $0x23] sm:$0x2]   ;;  %v449_v49 = vld [vmem:[%s822_s0 + $0x52] sm:$0x20]   ;;  %v357_v50 = vsel %vm31_vm2, %v473_v42, %v353_v43  ;;  %v474_v51 = vld [vmem:[%s822_s0 + $0x4d] sm:$0x20]   ;;  %v336_v54 = vsel %vm35_vm3, %v469_v47, %v332_v46 }
  0x1b   :  { %v298_v52 = vsel %vm22_vm1, %v461_v45, %v460_v44  ;;  %v462_v53 = vld [vmem:[%s822_s0 + $0xa4] ss:$-48 sm:%s300_s11]   ;;  %v236_v55 = vsel %vm35_vm3, %v449_v49, %v232_v48  ;;  %v361_v56 = vsel %vm35_vm3, %v474_v51, %v357_v50  ;;  %s506_s23 = smov 24   ;;  %s507_s24 = smov 56   ;;  %v475_v59 = vld [vmem:[%s822_s0 + $0x1] sm:$0x1]  }
  0x1c   :  { %162 = vrot.lane.b32.xlu2 %v161_v34, %s504_s6  ;;  %v303_v57 = vsel %vm6_vm0, %v462_v53, %v298_v52  ;;  %v463_v58 = vld [vmem:[%s822_s0 + $0x30] sm:$0x10]   ;;  %v476_v60 = vld [vmem:[%s822_s0 + $0x20] sm:$0x2]   ;;  %s375_s29 = smov 12  ;;  %s508_s30 = smov 16  }
  0x1d   :  { %v307_v61 = vsel %vm31_vm2, %v463_v58, %v303_v57  ;;  %v464_v62 = vld [vmem:[%s822_s0 + $0x4f] sm:$0x20]   ;;  %v373_v63 = vsel %vm22_vm1, %v476_v60, %v475_v59  ;;  %v477_v0 = vld [vmem:[%s822_s0 + $0xa1] ss:$-48 sm:%s375_s29]   ;;  %s509_s8 = smov 32   ;;  %s510_s11 = smov 8  }
  0x1e   :  { %v311_v1 = vsel %vm35_vm3, %v464_v62, %v307_v61  ;;  %v378_v2 = vsel %vm6_vm0, %v477_v0, %v373_v63  ;;  %v478_v3 = vld [vmem:[%s822_s0 + $0x2d] sm:$0x10]   ;;  %s4_s13 = smov 12  ;;  %s8_s14 = smov 48  ;;  %vm10_vm4 = vcmask 1045508   ;;  %vm12_vm5 = vcmask 64512  }
  0x1f   :  { %262 = vrot.lane.b32.xlu0 %v261_v33, %s503_s3  ;;  %v382_v4 = vsel %vm31_vm2, %v478_v3, %v378_v2  ;;  %v479_v5 = vld [vmem:[%s822_s0 + $0x4c] sm:$0x20]   ;;  %v5_v8 = vld [vmem:[%s822_s0] ss:$16 sm:%s4_s13]   ;;  %vm39_vm6 = vcmask 1048512   ;;  %vm64_vm7 = vcmask 982912  }
  0x20   :  { %287 = vrot.lane.b32.xlu1 %v286_v37, %s505_s12  ;;  %v386_v6 = vsel %vm35_vm3, %v479_v5, %v382_v4  ;;  %s2_s12 = smov 3  ;;  %v9_v9 = vld [vmem:[%s822_s0] ss:$16 sm:%s8_s14]   ;;  %vm89_vm8 = vcmask 917312   ;;  %vm114_vm9 = vcmask 851712   ;;  %vm139_vm10 = vcmask 786112  }
  0x21   :  { %v3_v7 = vld [vmem:[%s822_s0] ss:$16 sm:%s2_s12]   ;;  %vm164_vm11 = vcmask 720512   ;;  %vm189_vm12 = vcmask 654912   ;;  %vm214_vm13 = vcmask 589312   ;;  %vm239_vm14 = vcmask 523712  }
  0x22   :  { %v7_v10 = vsel %vm6_vm0, %v5_v8, %v3_v7  ;;  %vm264_vm15 = vcmask 458112   ;;  %vm289_vm0 = vcmask 392512   ;;  %vm314_vm1 = vcmask 326912  }
  0x23   :  { %v11_v11 = vsel %vm10_vm4, %v9_v9, %v7_v10  ;;  %vm339_vm2 = vcmask 261312   ;;  %vm364_vm3 = vcmask 195712   ;;  %vm389_vm4 = vcmask 130112  }
  0x24   :  { %237 = vrot.lane.b32.xlu2 %v236_v55, %s507_s24  ;;  %13 = vst.msk [vmem:[#allocation0] ss:$8 sm:$0x3] %vm12_vm5, %v11_v11  }
  0x25   :  { %15 = vst.msk [vmem:[#allocation0 - $0xf] ss:$8 sm:$0xc] %vm12_vm5, %v11_v11  }
  0x26   :  { %17 = vst.msk [vmem:[#allocation0 - $0x1e] ss:$8 sm:$0x30] %vm12_vm5, %v11_v11  }
  0x27   :  { %337 = vrot.lane.b32.xlu0 %v336_v54, %s506_s23 }
  0x28   :  { %362 = vrot.lane.b32.xlu1 %v361_v56, %s508_s30 }
  0x2c   :  { %312 = vrot.lane.b32.xlu2 %v311_v1, %s509_s8 }
  0x34   :  { %387 = vrot.lane.b32.xlu2 %v386_v6, %s510_s11 }
  0x6e   :  { %v138_v12 = vpop.permute.xlu2 %137  }
  0x76   :  { %v163_v14 = vpop.permute.xlu2 %162  }
  0x79   :  { %v38_v13 = vpop.permute.xlu0 %37  }
  0x7a   :  { %40 = vst.msk [vmem:[#allocation0] sm:$0x7] %vm39_vm6, %v38_v13   ;;  %v88_v15 = vpop.permute.xlu1 %87  }
  0x7b   :  { %42 = vst.msk [vmem:[#allocation0 + $0x5] sm:$0x38] %vm39_vm6, %v38_v13  }
  0x7e   :  { %v238_v17 = vpop.permute.xlu2 %237  }
  0x81   :  { %v63_v16 = vpop.permute.xlu0 %62  }
  0x82   :  { %65 = vst.msk [vmem:[#allocation0] sm:$0x7] %vm64_vm7, %v63_v16   ;;  %v113_v18 = vpop.permute.xlu1 %112  }
  0x83   :  { %67 = vst.msk [vmem:[#allocation0 + $0x5] sm:$0x38] %vm64_vm7, %v63_v16  }
  0x84   :  { %90 = vst.msk [vmem:[#allocation0] sm:$0x7] %vm89_vm8, %v88_v15  }
  0x85   :  { %92 = vst.msk [vmem:[#allocation0 + $0x5] sm:$0x38] %vm89_vm8, %v88_v15  }
  0x86   :  { %115 = vst.msk [vmem:[#allocation0] sm:$0x7] %vm114_vm9, %v113_v18   ;;  %v313_v20 = vpop.permute.xlu2 %312  }
  0x87   :  { %117 = vst.msk [vmem:[#allocation0 + $0x5] sm:$0x38] %vm114_vm9, %v113_v18  }
  0x88   :  { %140 = vst.msk [vmem:[#allocation0] sm:$0x7] %vm139_vm10, %v138_v12  }
  0x89   :  { %142 = vst.msk [vmem:[#allocation0 + $0x5] sm:$0x38] %vm139_vm10, %v138_v12   ;;  %v188_v19 = vpop.permute.xlu0 %187  }
  0x8a   :  { %165 = vst.msk [vmem:[#allocation0] sm:$0x7] %vm164_vm11, %v163_v14   ;;  %v213_v21 = vpop.permute.xlu1 %212  }
  0x8b   :  { %167 = vst.msk [vmem:[#allocation0 + $0x5] sm:$0x38] %vm164_vm11, %v163_v14  }
  0x8c   :  { %190 = vst.msk [vmem:[#allocation0] sm:$0x7] %vm189_vm12, %v188_v19  }
  0x8d   :  { %192 = vst.msk [vmem:[#allocation0 + $0x5] sm:$0x38] %vm189_vm12, %v188_v19  }
  0x8e   :  { %215 = vst.msk [vmem:[#allocation0] sm:$0x7] %vm214_vm13, %v213_v21   ;;  %v388_v23 = vpop.permute.xlu2 %387  }
  0x8f   :  { %217 = vst.msk [vmem:[#allocation0 + $0x5] sm:$0x38] %vm214_vm13, %v213_v21  }
  0x90   :  { %240 = vst.msk [vmem:[#allocation0] sm:$0x7] %vm239_vm14, %v238_v17  }
  0x91   :  { %242 = vst.msk [vmem:[#allocation0 + $0x5] sm:$0x38] %vm239_vm14, %v238_v17   ;;  %v263_v22 = vpop.permute.xlu0 %262  }
  0x92   :  { %265 = vst.msk [vmem:[#allocation0] sm:$0x7] %vm264_vm15, %v263_v22   ;;  %v288_v24 = vpop.permute.xlu1 %287  }
  0x93   :  { %267 = vst.msk [vmem:[#allocation0 + $0x5] sm:$0x38] %vm264_vm15, %v263_v22  }
  0x94   :  { %290 = vst.msk [vmem:[#allocation0] sm:$0x7] %vm289_vm0, %v288_v24  }
  0x95   :  { %292 = vst.msk [vmem:[#allocation0 + $0x5] sm:$0x38] %vm289_vm0, %v288_v24  }
  0x96   :  { %315 = vst.msk [vmem:[#allocation0] sm:$0x7] %vm314_vm1, %v313_v20  }
  0x97   :  { %317 = vst.msk [vmem:[#allocation0 + $0x5] sm:$0x38] %vm314_vm1, %v313_v20  }
  0x99   :  { %v338_v25 = vpop.permute.xlu0 %337  }
  0x9a   :  { %340 = vst.msk [vmem:[#allocation0] sm:$0x7] %vm339_vm2, %v338_v25   ;;  %v363_v26 = vpop.permute.xlu1 %362  }
  0x9b   :  { %342 = vst.msk [vmem:[#allocation0 + $0x5] sm:$0x38] %vm339_vm2, %v338_v25  }
  0x9c   :  { %365 = vst.msk [vmem:[#allocation0] sm:$0x7] %vm364_vm3, %v363_v26  }
  0x9d   :  { %367 = vst.msk [vmem:[#allocation0 + $0x5] sm:$0x38] %vm364_vm3, %v363_v26  }
  0x9e   :  { %390 = vst.msk [vmem:[#allocation0] sm:$0x7] %vm389_vm4, %v388_v23  }
  0x9f   :  { %392 = vst.msk [vmem:[#allocation0 + $0x5] sm:$0x38] %vm389_vm4, %v388_v23  }
  0xa5   :  { %v395_v27 = vld [vmem:[#allocation0] sm:$0xf] }
  0xa6   :  { %398 = vst [vmem:[%s823_s1] sm:$0xf] %v395_v27  ;;  %v400_v28 = vld [vmem:[#allocation0 + $0x8] sm:$0xf] }
  0xa7   :  { %480 = vst [vmem:[%s823_s1 + $0x4] sm:$0xf] %v400_v28 }

// kernel: med_adapter_forward.6
= control target key start
LH: loop header
LB: loop body
LE: loop exit
PB: predicated region body
PF: predicated region fallthrough
CT: control target
= control target key end

     0   :  { %s1057_s30 = smov 0   ;;  %s1059_s10 = smov 0   ;;  %s1335_s0 = inlined_call_operand.vmem [shape: f32[1,8,512], index: 0, kind: input, shape index: {}]   ;;  %s1336_s1 = inlined_call_operand.vmem [shape: f32[1,8,512], index: 1, kind: input, shape index: {}]   ;;  %s1337_s2 = inlined_call_operand.vmem [shape: f32[3,256], index: 2, kind: input, shape index: {}]   ;;  %s1338_s3 = inlined_call_operand.vmem [shape: f32[1,256], index: 3, kind: input, shape index: {}]   ;;  %s1339_s4 = inlined_call_operand.vmem [shape: f32[5,256], index: 4, kind: input, shape index: {}]   ;;  %s1340_s5 = inlined_call_operand.vmem [shape: f32[1,256], index: 5, kind: input, shape index: {}]   ;;  %s1341_s6 = inlined_call_operand.vmem [shape: f32[256,8], index: 6, kind: input, shape index: {}]   ;;  %s1342_s7 = inlined_call_operand.vmem [shape: f32[1,8,512], index: 7, kind: output, shape index: {0}]   ;;  %s1343_s8 = inlined_call_operand.vmem [shape: f32[1,8,512], index: 8, kind: output, shape index: {1}]   ;;  %s1344_s9 = inlined_call_operand.vmem [shape: f32[1,2,4,8], index: 9, kind: output, shape index: {2}]  }
   0x1   :  { %s1061_s11 = smov 0  }
   0x2 LB: > { %s29_s12 = sadd.s32 1, %s1001_s10  ;;  %p941_p0 = scmp.ge.s32.totalorder %s1005_s11, 1  ;;  %s1005_s11 = sphi %s1061_s11, %s20_s11   ;;  %s1001_s10 = sphi %s1059_s10, %s1346_s10   ;;  %s997_s30 = sphi %s1057_s30, %s1345_s30  }
   0x3   : > { %p30_p1 = scmp.ge.s32.totalorder %s29_s12, 2  ;;  %p334_p2 = scmp.lt.s32.totalorder %s1005_s11, 3 }
   0x5   : > { %s1348_s12 = smov (%p30_p1, %s29_s12), 0  ;;  %p335_p3 = pnand %p941_p0, %p334_p2 }
   0x6   : > { %s942_s19 = sshll.u32 (!%p335_p3), %s997_s30, 1  ;;  %p446_p5 = scmp.lt.s32.totalorder (!%p335_p3), %s997_s30, 1 }
   0x7   : > { %338 = sbr.rel (%p335_p3) target bundleno = 195 (0xc3), region = 48  ;;  %p407_p4 = scmp.lt.s32.totalorder (!%p335_p3), %s942_s19, 3 }
   0xc   : > { %v676_v0 = vld [vmem:[%s1341_s6 + $0x78] sm:$0xff]  ;;  %v675_v2 = vld [vmem:[%s1341_s6 + $0x70] sm:$0xff]  ;;  %v674_v4 = vld [vmem:[%s1341_s6 + $0x68] sm:$0xff]  ;;  %v456_v6 = vlaneseq  ;;  %s1350_s19 = smov (!%p407_p4, %s942_s19), 3  ;;  %vm652_vm4 = vcmask 1040384   ;;  %vm655_vm5 = vcmask 1041408  }
   0xd   : > { %v692_v1 = vld [vmem:[%s1341_s6 + $0xf8] sm:$0xff]  ;;  %693 = vmatpush.msra.mxu0 %v676_v0  ;;  %v691_v3 = vld [vmem:[%s1341_s6 + $0xf0] sm:$0xff]  ;;  %v690_v5 = vld [vmem:[%s1341_s6 + $0xe8] sm:$0xff]  ;;  %s1102_s13 = sshll.u32 %s1350_s19, 3  ;;  %vm658_vm6 = vcmask 1042432   ;;  %s1352_s30 = smov (!%p446_p5, %s997_s30), 1 }
   0xe   : > { %713 = vmatpush.msra.mxu1 %v692_v1  ;;  %v673_v7 = vld [vmem:[%s1341_s6 + $0x60] sm:$0xff]  ;;  %v672_v9 = vld [vmem:[%s1341_s6 + $0x58] sm:$0xff]  ;;  %v1110_v11 = vshrl.u32 %v456_v6, 7  ;;  %s1116_s21 = scalar_lea.vmem %s1335_s0, %s1102_s13  ;;  %v671_v12 = vld [vmem:[%s1341_s6 + $0x50] sm:$0xff]  ;;  %s1128_s27 = scalar_lea.vmem %s1336_s1, %s1102_s13  ;;  %vm733_vm7 = vcmask 60416  }
   0xf   : > { %694 = vmatpush.msra.mxu0 %v675_v2  ;;  %v689_v8 = vld [vmem:[%s1341_s6 + $0xe0] sm:$0xff]  ;;  %v688_v10 = vld [vmem:[%s1341_s6 + $0xd8] sm:$0xff]  ;;  %v687_v13 = vld [vmem:[%s1341_s6 + $0xd0] sm:$0xff]  ;;  %s1248_s15 = scalar_lea.vmem %s1342_s7, %s1102_s13  ;;  %s1291_s14 = scalar_lea.vmem %s1343_s8, %s1102_s13 }
  0x10   : > { %714 = vmatpush.msra.mxu1 %v691_v3  ;;  %v670_v14 = vld [vmem:[%s1341_s6 + $0x48] sm:$0xff]  ;;  %v669_v16 = vld [vmem:[%s1341_s6 + $0x40] sm:$0xff]  ;;  %vm460_vm0 = vcmp.ge.s32.totalorder %v1110_v11, 1  ;;  %vm489_vm1 = vcmp.lt.s32.totalorder %v1110_v11, 7  ;;  %vm514_vm2 = vcmp.ge.s32.totalorder %v1110_v11, 2  ;;  %vm573_vm3 = vcmp.lt.s32.totalorder %v1110_v11, 6 }
  0x11   : > { %695 = vmatpush.msra.mxu0 %v674_v4  ;;  %v686_v15 = vld [vmem:[%s1341_s6 + $0xc8] sm:$0xff]  ;;  %v685_v17 = vld [vmem:[%s1341_s6 + $0xc0] sm:$0xff]  ;;  %v668_v23 = vld [vmem:[%s1341_s6 + $0x38] sm:$0xff]  ;;  %s950_s13 = sshll.u32 %s1352_s30, 2 }
  0x12   : > { %715 = vmatpush.msra.mxu1 %v690_v5  ;;  %v452_v18 = vld [vmem:[%s1116_s21] sm:$0xff]  ;;  %v684_v24 = vld [vmem:[%s1341_s6 + $0xb8] sm:$0xff]  ;;  %v667_v32 = vld [vmem:[%s1341_s6 + $0x30] sm:$0xff]  ;;  %s451_s19 = scalar_lea.vmem %s1344_s9, %s950_s13 }
  0x13   : > { %696 = vmatpush.msra.mxu0 %v673_v7  ;;  %v454_v19 = vld [vmem:[%s1128_s27] sm:$0xff]  ;;  %v458_v20 = vrot.slane %v452_v18, 7  ;;  %v486_v22 = vrot.slane %v452_v18, 1  ;;  %v683_v33 = vld [vmem:[%s1341_s6 + $0xb0] sm:$0xff]  ;;  %v666_v44 = vld [vmem:[%s1341_s6 + $0x28] sm:$0xff] }
  0x14   : > { %716 = vmatpush.msra.mxu1 %v689_v8  ;;  %v1151_v21 = vld [vmem:[%s1337_s2] ss:$4 sm:$0x3]  ;;  %v1163_v26 = vld [vmem:[%s1337_s2 + $0x1] ss:$4 sm:$0x3] }
  0x15   : > { %697 = vmatpush.msra.mxu0 %v672_v9  ;;  %v467_v25 = vperm.slane %v1151_v21, 0  ;;  %v1168_v27 = vld [vmem:[%s1338_s3] sm:$0x3]  ;;  %v463_v28 = vsel %vm460_vm0, %v458_v20, 0.0  ;;  %v478_v29 = vperm.slane %v1163_v26, 0  ;;  %v491_v30 = vsel %vm489_vm1, %v486_v22, 0.0 }
  0x16   : > { %717 = vmatpush.msra.mxu1 %v688_v10  ;;  %v1178_v31 = vld [vmem:[%s1337_s2 + $0x2] ss:$4 sm:$0x3]  ;;  %v506_v36 = vperm.slane %v1168_v27, 0  ;;  %v512_v37 = vrot.slane %v454_v19, 6  ;;  %v529_v41 = vrot.slane %v454_v19, 7 }
  0x17   : > { %698 = vmatpush.msra.mxu0 %v671_v12  ;;  %v471_v34 = vmul.f32 %v467_v25, %v463_v28  ;;  %v496_v35 = vperm.slane %v1178_v31, 0  ;;  %v1191_v38 = vld [vmem:[%s1339_s4] ss:$8 sm:$0x3]  ;;  %v482_v39 = vmul.f32 %v478_v29, %v452_v18  ;;  %v555_v43 = vrot.slane %v454_v19, 1  ;;  %v663_v25 = vld [vmem:[%s1341_s6 + $0x10] sm:$0xff] }
  0x18   : > { %718 = vmatpush.msra.mxu1 %v687_v13  ;;  %v521_v40 = vperm.slane %v1191_v38, 0  ;;  %v1197_v42 = vld [vmem:[%s1339_s4 + $0x1] ss:$8 sm:$0x3]  ;;  %v517_v47 = vsel %vm514_vm2, %v512_v37, 0.0  ;;  %v570_v50 = vrot.slane %v454_v19, 2 }
  0x19   : > { %699 = vmatpush.msra.mxu0 %v670_v14  ;;  %v682_v45 = vld [vmem:[%s1341_s6 + $0xa8] sm:$0xff]  ;;  %v500_v46 = vmul.f32 %v496_v35, %v491_v30  ;;  %v536_v48 = vperm.slane %v1197_v42, 0  ;;  %v484_v51 = vadd.f32 %v482_v39, %v471_v34  ;;  %v531_v53 = vsel %vm460_vm0, %v529_v41, 0.0  ;;  %v1236_v1 = vld [vmem:[%s1340_s5] sm:$0x3] }
  0x1a   : > { %719 = vmatpush.msra.mxu1 %v686_v15  ;;  %v1211_v49 = vld [vmem:[%s1339_s4 + $0x2] ss:$8 sm:$0x3]  ;;  %v525_v52 = vmul.f32 %v521_v40, %v517_v47  ;;  %v1219_v55 = vld [vmem:[%s1339_s4 + $0x3] ss:$8 sm:$0x3] }
  0x1b   : > { %700 = vmatpush.msra.mxu0 %v669_v16  ;;  %v547_v54 = vperm.slane %v1211_v49, 0  ;;  %v453_v56 = vld [vmem:[%s1116_s21 + $0x8] sm:$0xff]  ;;  %v540_v57 = vmul.f32 %v536_v48, %v531_v53  ;;  %v557_v58 = vsel %vm489_vm1, %v555_v43, 0.0  ;;  %v562_v59 = vperm.slane %v1219_v55, 0  ;;  %v665_v3 = vld [vmem:[%s1341_s6 + $0x20] sm:$0xff]  ;;  %v664_v15 = vld [vmem:[%s1341_s6 + $0x18] sm:$0xff] }
  0x1c   : > { %720 = vmatpush.msra.mxu1 %v685_v17  ;;  %v575_v60 = vsel %vm573_vm3, %v570_v50, 0.0  ;;  %v1230_v61 = vld [vmem:[%s1339_s4 + $0x4] ss:$8 sm:$0x3]  ;;  %v502_v62 = vadd.f32 %v500_v46, %v484_v51  ;;  %v459_v2 = vrot.slane %v453_v56, 7  ;;  %v590_v7 = vperm.slane %v1236_v1, 0 }
  0x1d   : > { %701 = vmatpush.msra.mxu0 %v668_v23  ;;  %v551_v63 = vmul.f32 %v547_v54, %v454_v19  ;;  %v580_v0 = vperm.slane %v1230_v61, 0  ;;  %v681_v4 = vld [vmem:[%s1341_s6 + $0xa0] sm:$0xff]  ;;  %v542_v5 = vadd.f32 %v540_v57, %v525_v52  ;;  %v566_v6 = vmul.f32 %v562_v59, %v557_v58  ;;  %v1253_v12 = vld [vmem:[%s1128_s27 + $0x8] sm:$0xff]  ;;  %v680_v16 = vld [vmem:[%s1341_s6 + $0x98] sm:$0xff] }
  0x1e   : > { %721 = vmatpush.msra.mxu1 %v684_v24  ;;  %v468_v8 = vperm.slane %v1151_v21, 1  ;;  %v510_v9 = vadd.f32 %v506_v36, %v502_v62  ;;  %v464_v13 = vsel %vm460_vm0, %v459_v2, 0.0  ;;  %v479_v14 = vperm.slane %v1163_v26, 1  ;;  %v679_v26 = vld [vmem:[%s1341_s6 + $0x90] sm:$0xff]  ;;  %v662_v35 = vld [vmem:[%s1341_s6 + $0x8] sm:$0xff]  ;;  %v661_v46 = vld [vmem:[%s1341_s6] sm:$0xff] }
  0x1f   : > { %702 = vmatpush.msra.mxu0 %v667_v32  ;;  %v584_v10 = vmul.f32 %v580_v0, %v575_v60  ;;  %v553_v17 = vadd.f32 %v551_v63, %v542_v5  ;;  %v487_v19 = vrot.slane %v453_v56, 1  ;;  %v497_v20 = vperm.slane %v1178_v31, 1  ;;  %v678_v36 = vld [vmem:[%s1341_s6 + $0x88] sm:$0xff] }
  0x20   : > { %722 = vmatpush.msra.mxu1 %v683_v33  ;;  %v472_v18 = vmul.f32 %v468_v8, %v464_v13  ;;  %596 = vst [vmem:[%s1248_s15] sm:$0xff] %v510_v9  ;;  %v600_v21 = vrot.slane %v510_v9, 4  ;;  %v612_v22 = vmul.f32 %v510_v9, %v510_v9  ;;  %v483_v23 = vmul.f32 %v479_v14, %v453_v56 }
  0x21   : > { %703 = vmatpush.msra.mxu0 %v666_v44  ;;  %v507_v24 = vperm.slane %v1168_v27, 1  ;;  %v568_v28 = vadd.f32 %v566_v6, %v553_v17  ;;  %v492_v29 = vsel %vm489_vm1, %v487_v19, 0.0  ;;  %v513_v30 = vrot.slane %v1253_v12, 6 }
  0x22   : > { %723 = vmatpush.msra.mxu1 %v682_v45  ;;  %v522_v31 = vperm.slane %v1191_v38, 1  ;;  %v601_v27 = vadd.f32 %v600_v21, %v510_v9  ;;  %v614_v32 = vrot.slane %v612_v22, 4  ;;  %v485_v33 = vadd.f32 %v483_v23, %v472_v18 }
  0x23   : > { %704 = vmatpush.msra.mxu0 %v665_v3  ;;  %v501_v34 = vmul.f32 %v497_v20, %v492_v29  ;;  %v586_v37 = vadd.f32 %v584_v10, %v568_v28  ;;  %v518_v39 = vsel %vm514_vm2, %v513_v30, 0.0  ;;  %v530_v38 = vrot.slane %v1253_v12, 7 }
  0x24   : > { %724 = vmatpush.msra.mxu1 %v681_v4  ;;  %v537_v40 = vperm.slane %v1197_v42, 1  ;;  %v602_v41 = vrot.slane %v601_v27, 2  ;;  %v615_v43 = vadd.f32 %v614_v32, %v612_v22  ;;  %v526_v45 = vmul.f32 %v522_v31, %v518_v39  ;;  %v677_v42 = vld [vmem:[%s1341_s6 + $0x80] sm:$0xff] }
  0x25   : > { %705 = vmatpush.msra.mxu0 %v664_v15  ;;  %v503_v44 = vadd.f32 %v501_v34, %v485_v33  ;;  %v594_v47 = vadd.f32 %v590_v7, %v586_v37  ;;  %v532_v48 = vsel %vm460_vm0, %v530_v38, 0.0  ;;  %v548_v50 = vperm.slane %v1211_v49, 1 }
  0x26   : > { %725 = vmatpush.msra.mxu1 %v680_v16  ;;  %v556_v51 = vrot.slane %v1253_v12, 1  ;;  %v603_v52 = vadd.f32 %v602_v41, %v601_v27  ;;  %v616_v53 = vrot.slane %v615_v43, 2  ;;  %v541_v56 = vmul.f32 %v537_v40, %v532_v48 }
  0x27   : > { %706 = vmatpush.msra.mxu0 %v663_v25  ;;  %v511_v54 = vadd.f32 %v507_v24, %v503_v44  ;;  %598 = vst [vmem:[%s1291_s14] sm:$0xff] %v594_v47  ;;  %v626_v57 = vrot.slane %v594_v47, 4  ;;  %v638_v58 = vmul.f32 %v594_v47, %v594_v47  ;;  %v552_v59 = vmul.f32 %v548_v50, %v1253_v12 }
  0x28   : > { %726 = vmatpush.msra.mxu1 %v679_v26  ;;  %v558_v60 = vsel %vm489_vm1, %v556_v51, 0.0  ;;  %v604_v49 = vrot.slane %v603_v52, 1  ;;  %v617_v62 = vadd.f32 %v616_v53, %v615_v43  ;;  %v543_v63 = vadd.f32 %v541_v56, %v526_v45 }
  0x29   : > { %707 = vmatpush.msra.mxu0 %v662_v35  ;;  %v563_v0 = vperm.slane %v1219_v55, 1  ;;  %597 = vst [vmem:[%s1248_s15 + $0x8] sm:$0xff] %v511_v54  ;;  %v627_v2 = vadd.f32 %v626_v57, %v594_v47  ;;  %v640_v3 = vrot.slane %v638_v58, 4  ;;  %v571_v4 = vrot.slane %v1253_v12, 2 }
  0x2a   : > { %727 = vmatpush.msra.mxu1 %v678_v36  ;;  %v581_v5 = vperm.slane %v1230_v61, 1  ;;  %v605_v6 = vadd.f32 %v604_v49, %v603_v52  ;;  %v618_v7 = vrot.slane %v617_v62, 1  ;;  %v554_v8 = vadd.f32 %v552_v59, %v543_v63 }
  0x2b   : > { %708 = vmatpush.msra.mxu0 %v661_v46  ;;  %v567_v9 = vmul.f32 %v563_v0, %v558_v60  ;;  %v628_v10 = vrot.slane %v627_v2, 2  ;;  %v641_v13 = vadd.f32 %v640_v3, %v638_v58  ;;  %v576_v14 = vsel %vm573_vm3, %v571_v4, 0.0 }
  0x2c   : > { %728 = vmatpush.msra.mxu1 %v677_v42  ;;  %v591_v15 = vperm.slane %v1236_v1, 1  ;;  %v619_v16 = vadd.f32 %v618_v7, %v617_v62  ;;  %v585_v17 = vmul.f32 %v581_v5, %v576_v14  ;;  %v606_v18 = vrot.slane %v511_v54, 4 }
  0x2d   : > { %v569_v55 = vadd.f32 %v567_v9, %v554_v8  ;;  %v629_v19 = vadd.f32 %v628_v10, %v627_v2  ;;  %v642_v20 = vrot.slane %v641_v13, 2  ;;  %v613_v61 = vmul.f32 %v511_v54, %v511_v54 }
  0x2e   : > { %v607_v21 = vadd.f32 %v606_v18, %v511_v54  ;;  %v653_v25 = vsel %vm652_vm4, %v605_v6, %v619_v16 }
  0x2f   : > { %v587_v12 = vadd.f32 %v585_v17, %v569_v55  ;;  %v630_v22 = vrot.slane %v629_v19, 1  ;;  %v643_v23 = vadd.f32 %v642_v20, %v641_v13  ;;  %v620_v24 = vrot.slane %v613_v61, 4 }
  0x30   : > { %v608_v26 = vrot.slane %v607_v21, 2 }
  0x31   : > { %v595_v11 = vadd.f32 %v591_v15, %v587_v12  ;;  %v631_v1 = vadd.f32 %v630_v22, %v629_v19  ;;  %v644_v28 = vrot.slane %v643_v23, 1  ;;  %v621_v29 = vadd.f32 %v620_v24, %v613_v61 }
  0x32   : > { %v609_v30 = vadd.f32 %v608_v26, %v607_v21 }
  0x33   : > { %599 = vst [vmem:[%s1291_s14 + $0x8] sm:$0xff] %v595_v11  ;;  %v632_v31 = vrot.slane %v595_v11, 4  ;;  %v639_v27 = vmul.f32 %v595_v11, %v595_v11  ;;  %v645_v32 = vadd.f32 %v644_v28, %v643_v23  ;;  %v656_v33 = vsel %vm655_vm5, %v653_v25, %v631_v1 }
  0x34   : > { %v622_v34 = vrot.slane %v621_v29, 2  ;;  %v610_v35 = vrot.slane %v609_v30, 1 }
  0x35   : > { %v633_v36 = vadd.f32 %v632_v31, %v595_v11  ;;  %v646_v37 = vrot.slane %v639_v27, 4  ;;  %v659_v39 = vsel %vm658_vm6, %v656_v33, %v645_v32 }
  0x36   : > { %v623_v38 = vadd.f32 %v622_v34, %v621_v29  ;;  %709 = vmatmul.f32.vlgmr.msra.gmra.mxu0 %v659_v39  ;;  %v611_v43 = vadd.f32 %v610_v35, %v609_v30 }
  0x37   : > { %v634_v40 = vrot.slane %v633_v36, 2  ;;  %v647_v41 = vadd.f32 %v646_v37, %v639_v27 }
  0x38   : > { %v624_v44 = vrot.slane %v623_v38, 1 }
  0x39   : > { %v635_v45 = vadd.f32 %v634_v40, %v633_v36  ;;  %v648_v46 = vrot.slane %v647_v41, 2 }
  0x3a   : > { %v625_v42 = vadd.f32 %v624_v44, %v623_v38 }
  0x3b   : > { %v636_v47 = vrot.slane %v635_v45, 1  ;;  %v649_v48 = vadd.f32 %v648_v46, %v647_v41 }
  0x3c   : > { %v654_v50 = vsel %vm652_vm4, %v611_v43, %v625_v42 }
  0x3d   : > { %v637_v51 = vadd.f32 %v636_v47, %v635_v45  ;;  %v650_v52 = vrot.slane %v649_v48, 1 }
  0x3f   : > { %v651_v53 = vadd.f32 %v650_v52, %v649_v48  ;;  %v657_v54 = vsel %vm655_vm5, %v654_v50, %v637_v51 }
  0x41   : > { %v660_v56 = vsel %vm658_vm6, %v657_v54, %v651_v53 }
  0x42   : > { %729 = vmatmul.f32.vlgmr.msra.gmra.mxu1 %v660_v56 }
  0xb3   : > { %v710_v57 = vpop.f32.mrf.mxu0 }
  0xbf   : > { %v730_v58 = vpop.f32.mrf.mxu1 }
  0xc0   : > { %v731_v59 = vadd.f32 %v730_v58, %v710_v57 }
  0xc2   : > { %734 = vst.msk [vmem:[%s451_s19] sm:$0xf] %vm733_vm7, %v731_v59 }
  0xc3 PF: > { %s20_s11 = sadd.s32 1, %s1005_s11   ;;  %s1345_s30 = smov %s1001_s10 }
  0xc4   : > { %p17_p6 = scmp.ge.s32.totalorder %s20_s11, 4   ;;  %s1346_s10 = smov %s1348_s12 }
  0xc6   :  { %19 = sbr.rel (!%p17_p6) target bundleno = 2 (0x2), region = 111 }

// kernel: med_adapter_forward.5
= control target key start
LH: loop header
LB: loop body
LE: loop exit
PB: predicated region body
PF: predicated region fallthrough
CT: control target
= control target key end

     0   :  { %s1362_s21 = smov 0   ;;  %s2292_s0 = inlined_call_operand.vmem [shape: f32[8,8,64], index: 0, kind: input, shape index: {}]   ;;  %s2293_s1 = inlined_call_operand.vmem [shape: f32[9,64], index: 1, kind: input, shape index: {}]   ;;  %s2294_s2 = inlined_call_operand.vmem [shape: f32[1,64], index: 2, kind: input, shape index: {}]   ;;  %s2295_s3 = inlined_call_operand.vmem [shape: f32[25,64], index: 3, kind: input, shape index: {}]   ;;  %s2296_s4 = inlined_call_operand.vmem [shape: f32[1,64], index: 4, kind: input, shape index: {}]   ;;  %s2297_s5 = inlined_call_operand.vmem [shape: f32[8,8,64], index: 5, kind: output, shape index: {0}]   ;;  %s2298_s6 = inlined_call_operand.vmem [shape: f32[8,8,64], index: 6, kind: output, shape index: {1}]  }
   0x1 LB: > { %s1249_s22 = sadd.s32 4294967295, %s1320_s21   ;;  %p1253_p0 = scmp.ge.s32.totalorder %s1320_s21, 1  ;;  %s1320_s21 = sphi %s1362_s21, %s17_s21  }
   0x2   : > { %p216_p1 = scmp.lt.s32.totalorder %s1320_s21, 3 }
   0x4   : > { %p217_p2 = pnand %p1253_p0, %p216_p1 }
   0x6   : > { %220 = sbr.rel (%p217_p2) target bundleno = 601 (0x259), region = 40 }
   0xb   : > { %s1254_s23 = sshll.u32 %s1249_s22, 2  ;;  %v273_v0 = vlaneseq  ;;  %s1322_s28 = smov 64   ;;  %vm300_vm4 = vcmask 1048064   ;;  %vm1142_vm13 = vcmask 523264  }
   0xc   : > { %p252_p3 = scmp.lt.s32.totalorder %s1254_s23, 7  ;;  %s1323_s29 = smov 80  }
   0xd   : > { %v1371_v1 = vshrl.u32 %v273_v0, 7  ;;  %s1324_s30 = smov 72   ;;  %s1325_s7 = smov 120  }
   0xe   : > { %s2360_s23 = smov (!%p252_p3, %s1254_s23), 7  ;;  %s1326_s8 = smov 112  }
   0xf   : > { %s1373_s24 = sshll.u32 %s2360_s23, 3  ;;  %vm293_vm0 = vcmp.ge.s32.totalorder %v1371_v1, 2  ;;  %vm447_vm1 = vcmp.ge.s32.totalorder %v1371_v1, 1  ;;  %vm803_vm2 = vcmp.lt.s32.totalorder %v1371_v1, 7  ;;  %vm986_vm3 = vcmp.lt.s32.totalorder %v1371_v1, 6 }
  0x10   : > { %s1379_s27 = scalar_lea.vmem %s2292_s0, %s1373_s24  ;;  %s2194_s10 = scalar_lea.vmem %s2297_s5, %s1373_s24 }
  0x11   : > { %v1382_v2 = vld [vmem:[%s1379_s27 + $0x10] sm:$0xff]  ;;  %v1386_v3 = vld [vmem:[%s1379_s27] sm:$0xff]  ;;  %v1389_v4 = vld [vmem:[%s1379_s27 + $0x18] sm:$0xff]  ;;  %s2262_s25 = scalar_lea.vmem %s2298_s6, %s1373_s24 }
  0x12   : > { %v291_v5 = vrot.slane %v1382_v2, 6  ;;  %v289_v6 = vrot.slane %v1386_v3, 6  ;;  %v292_v7 = vrot.slane %v1389_v4, 6  ;;  %v1395_v8 = vld [vmem:[%s1379_s27 + $0x8] sm:$0xff]  ;;  %v445_v10 = vrot.slane %v1382_v2, 7 }
  0x13   : > { %v290_v9 = vrot.slane %v1395_v8, 6  ;;  %v444_v16 = vrot.slane %v1395_v8, 7  ;;  %v443_v17 = vrot.slane %v1386_v3, 7  ;;  %v446_v20 = vrot.slane %v1389_v4, 7 }
  0x14   : > { %v1402_v11 = vsel %vm293_vm0, %v291_v5, 0.0  ;;  %v1406_v12 = vsel %vm293_vm0, %v289_v6, 0.0  ;;  %v1414_v13 = vsel %vm293_vm0, %v292_v7, 0.0  ;;  %v1422_v15 = vsel %vm447_vm1, %v445_v10, 0.0 }
  0x15   : > { %307 = vrot.lane.b32.xlu1 %v1402_v11, %s1322_s28  ;;  %301 = vrot.lane.b32.xlu0 %v1406_v12, %s1322_s28  ;;  %v1418_v14 = vsel %vm293_vm0, %v290_v9, 0.0  ;;  %v1436_v18 = vsel %vm447_vm1, %v444_v16, 0.0  ;;  %v1440_v19 = vsel %vm447_vm1, %v443_v17, 0.0  ;;  %v1449_v21 = vsel %vm447_vm1, %v446_v20, 0.0 }
  0x16   : > { %460 = vrot.lane.b32.xlu2 %v1422_v15, %s1322_s28  ;;  %v799_v22 = vrot.slane %v1395_v8, 1  ;;  %v981_v24 = vrot.slane %v1386_v3, 2  ;;  %v800_v26 = vrot.slane %v1382_v2, 1  ;;  %v984_v27 = vrot.slane %v1389_v4, 2 }
  0x17   : > { %v798_v30 = vrot.slane %v1386_v3, 1  ;;  %v801_v32 = vrot.slane %v1389_v4, 1  ;;  %v983_v35 = vrot.slane %v1382_v2, 2  ;;  %v982_v39 = vrot.slane %v1395_v8, 2 }
  0x18   : > { %v1463_v23 = vsel %vm803_vm2, %v799_v22, 0.0  ;;  %v1471_v25 = vsel %vm986_vm3, %v981_v24, 0.0  ;;  %v1479_v28 = vsel %vm803_vm2, %v800_v26, 0.0  ;;  %v1483_v29 = vsel %vm986_vm3, %v984_v27, 0.0 }
  0x19   : > { %2317 = vst [vmem:[#allocation2_spill] sm:$0xff] %v1463_v23  ;;  %v1492_v31 = vsel %vm803_vm2, %v798_v30, 0.0  ;;  %v1499_v34 = vsel %vm803_vm2, %v801_v32, 0.0  ;;  %v1506_v37 = vsel %vm986_vm3, %v983_v35, 0.0  ;;  %v1516_v40 = vsel %vm986_vm3, %v982_v39, 0.0 }
  0x1a   : > { %2318 = vst [vmem:[#allocation3_spill] sm:$0xff] %v1471_v25 }
  0x1b   : > { %2319 = vst [vmem:[#allocation4_spill] sm:$0xff] %v1479_v28 }
  0x1c   : > { %2320 = vst [vmem:[#allocation5_spill] sm:$0xff] %v1483_v29 }
  0x1d   : > { %310 = vrot.lane.b32.xlu1 %v1414_v13, %s1322_s28  ;;  %304 = vrot.lane.b32.xlu0 %v1418_v14, %s1322_s28  ;;  %2321 = vst [vmem:[#allocation6_spill] sm:$0xff] %v1492_v31 }
  0x1e   : > { %632 = vrot.lane.b32.xlu2 %v1382_v2, %s1322_s28  ;;  %2322 = vst [vmem:[#allocation7_spill] sm:$0xff] %v1499_v34 }
  0x1f   : > { %2323 = vst [vmem:[#allocation8_spill] sm:$0xff] %v1506_v37 }
  0x20   : > { %2324 = vst [vmem:[#allocation9_spill] sm:$0xff] %v1516_v40 }
  0x25   : > { %457 = vrot.lane.b32.xlu1 %v1436_v18, %s1322_s28  ;;  %454 = vrot.lane.b32.xlu0 %v1440_v19, %s1322_s28 }
  0x26   : > { %809 = vrot.lane.b32.xlu2 %v1492_v31, %s1322_s28 }
  0x2d   : > { %629 = vrot.lane.b32.xlu1 %v1395_v8, %s1322_s28  ;;  %463 = vrot.lane.b32.xlu0 %v1449_v21, %s1322_s28 }
  0x2e   : > { %818 = vrot.lane.b32.xlu2 %v1499_v34, %s1322_s28 }
  0x35   : > { %626 = vrot.lane.b32.xlu0 %v1386_v3, %s1322_s28  ;;  %815 = vrot.lane.b32.xlu1 %v1479_v28, %s1322_s28 }
  0x36   : > { %998 = vrot.lane.b32.xlu2 %v1506_v37, %s1322_s28 }
  0x3d   : > { %635 = vrot.lane.b32.xlu0 %v1389_v4, %s1322_s28  ;;  %995 = vrot.lane.b32.xlu1 %v1516_v40, %s1322_s28 }
  0x45   : > { %812 = vrot.lane.b32.xlu0 %v1463_v23, %s1322_s28 }
  0x4d   : > { %992 = vrot.lane.b32.xlu0 %v1471_v25, %s1322_s28 }
  0x55   : > { %1001 = vrot.lane.b32.xlu0 %v1483_v29, %s1322_s28 }
  0x70   : > { %v461_v33 = vpop.permute.xlu2 %460 }
  0x71   : > { %v462_v44 = vsel %vm300_vm4, %v461_v33, %v1422_v15 }
  0x78   : > { %v633_v36 = vpop.permute.xlu2 %632 }
  0x79   : > { %v634_v38 = vsel %vm300_vm4, %v633_v36, %v1382_v2 }
  0x7a   : > { %642 = vrot.lane.b32.xlu0 %v634_v38, %s1322_s28 }
  0x80   : > { %v810_v5 = vpop.permute.xlu2 %809 }
  0x81   : > { %v811_v7 = vsel %vm300_vm4, %v810_v5, %v1492_v31 }
  0x87   : > { %v308_v41 = vpop.permute.xlu1 %307  ;;  %v302_v42 = vpop.permute.xlu0 %301 }
  0x88   : > { %v309_v43 = vsel %vm300_vm4, %v308_v41, %v1402_v11  ;;  %v303_v53 = vsel %vm300_vm4, %v302_v42, %v1406_v12  ;;  %v819_v16 = vpop.permute.xlu2 %818 }
  0x89   : > { %317 = vrot.lane.b32.xlu0 %v309_v43, %s1322_s28  ;;  %v820_v20 = vsel %vm300_vm4, %v819_v16, %v1499_v34 }
  0x8f   : > { %v311_v45 = vpop.permute.xlu1 %310  ;;  %v305_v46 = vpop.permute.xlu0 %304 }
  0x90   : > { %v306_v56 = vsel %vm300_vm4, %v305_v46, %v1418_v14  ;;  %v312_v59 = vsel %vm300_vm4, %v311_v45, %v1414_v13  ;;  %v999_v24 = vpop.permute.xlu2 %998 }
  0x91   : > { %470 = vrot.lane.b32.xlu0 %v462_v44, %s1322_s28  ;;  %v1000_v27 = vsel %vm300_vm4, %v999_v24, %v1506_v37 }
  0x97   : > { %v458_v47 = vpop.permute.xlu1 %457  ;;  %v455_v48 = vpop.permute.xlu0 %454 }
  0x98   : > { %v459_v58 = vsel %vm300_vm4, %v458_v47, %v1436_v18  ;;  %v456_v60 = vsel %vm300_vm4, %v455_v48, %v1440_v19 }
  0x9f   : > { %v630_v49 = vpop.permute.xlu1 %629  ;;  %v464_v50 = vpop.permute.xlu0 %463 }
  0xa0   : > { %v631_v51 = vsel %vm300_vm4, %v630_v49, %v1395_v8  ;;  %v465_v61 = vsel %vm300_vm4, %v464_v50, %v1449_v21 }
  0xa1   : > { %640 = vrot.lane.b32.xlu2 %v631_v51, %s1322_s28 }
  0xa7   : > { %v627_v52 = vpop.permute.xlu0 %626  ;;  %v816_v62 = vpop.permute.xlu1 %815 }
  0xa8   : > { %v628_v54 = vsel %vm300_vm4, %v627_v52, %v1386_v3  ;;  %v817_v1 = vsel %vm300_vm4, %v816_v62, %v1479_v28 }
  0xa9   : > { %313 = vrot.lane.b32.xlu2 %v303_v53, %s1322_s28  ;;  %638 = vrot.lane.b32.xlu1 %v628_v54, %s1322_s28 }
  0xaf   : > { %v636_v55 = vpop.permute.xlu0 %635  ;;  %v996_v32 = vpop.permute.xlu1 %995 }
  0xb0   : > { %v637_v57 = vsel %vm300_vm4, %v636_v55, %v1389_v4  ;;  %v997_v33 = vsel %vm300_vm4, %v996_v32, %v1516_v40 }
  0xb1   : > { %315 = vrot.lane.b32.xlu2 %v306_v56, %s1322_s28  ;;  %644 = vrot.lane.b32.xlu1 %v637_v57, %s1322_s28 }
  0xb7   : > { %v813_v63 = vpop.permute.xlu0 %812 }
  0xb8   : > { %v814_v10 = vsel %vm300_vm4, %v813_v63, %v1463_v23 }
  0xb9   : > { %468 = vrot.lane.b32.xlu2 %v459_v58, %s1322_s28  ;;  %319 = vrot.lane.b32.xlu1 %v312_v59, %s1322_s28  ;;  %v1627_v58 = vand.u32 127, %v273_v0 }
  0xba   : > { %823 = vrot.lane.b32.xlu0 %v814_v10, %s1322_s28 }
  0xbb   : > { %vm277_vm5 = vcmp.ge.s32.totalorder %v1627_v58, 16  ;;  %vm278_vm6 = vcmp.lt.s32.totalorder %v1627_v58, 80  ;;  %vm287_vm8 = vcmp.lt.s32.totalorder %v1627_v58, 48  ;;  %vm280_vm9 = vcmp.ge.s32.totalorder %v1627_v58, 8 }
  0xbc   : > { %vm1634_vm7 = vmand %vm277_vm5, %vm278_vm6  ;;  %vm281_vm10 = vcmp.lt.s32.totalorder %v1627_v58, 72  ;;  %vm284_vm12 = vcmp.lt.s32.totalorder %v1627_v58, 56 }
  0xbd   : > { %vm1770_vm11 = vmand %vm280_vm9, %vm281_vm10 }
  0xbf   : > { %v993_v6 = vpop.permute.xlu0 %992 }
  0xc0   : > { %v994_v9 = vsel %vm300_vm4, %v993_v6, %v1471_v25 }
  0xc1   : > { %466 = vrot.lane.b32.xlu1 %v456_v60, %s1322_s28  ;;  %821 = vrot.lane.b32.xlu2 %v811_v7, %s1322_s28 }
  0xc2   : > { %1008 = vrot.lane.b32.xlu0 %v1000_v27, %s1322_s28 }
  0xc7   : > { %v1002_v17 = vpop.permute.xlu0 %1001 }
  0xc8   : > { %v1003_v22 = vsel %vm300_vm4, %v1002_v17, %v1483_v29 }
  0xc9   : > { %472 = vrot.lane.b32.xlu1 %v465_v61, %s1322_s28  ;;  %827 = vrot.lane.b32.xlu2 %v820_v20, %s1322_s28  ;;  %v1309_v61 = vld [vmem:[%s2295_s3 + $0x18] ss:$0 sm:$0xff] }
  0xd1   : > { %825 = vrot.lane.b32.xlu1 %v817_v1, %s1322_s28  ;;  %1006 = vrot.lane.b32.xlu2 %v997_v33, %s1322_s28 }
  0xd9   : > { %1004 = vrot.lane.b32.xlu1 %v994_v9, %s1322_s28 }
  0xe1   : > { %1010 = vrot.lane.b32.xlu1 %v1003_v22, %s1322_s28 }
  0xec   : > { %v643_v26 = vpop.permute.xlu0 %642 }
  0xed   : > { %v648_v30 = vsel %vm300_vm4, %v643_v26, %v1382_v2  ;;  %v1283_v26 = vld [vmem:[%s2295_s3 + $0x3] ss:$0 sm:$0xff] }
  0xee   : > { %658 = vrot.lane.b32.xlu1 %v648_v30, %s1323_s29 }
  0xfb   : > { %v641_v35 = vpop.permute.xlu2 %640  ;;  %v318_v47 = vpop.permute.xlu0 %317 }
  0xfc   : > { %v647_v36 = vsel %vm300_vm4, %v641_v35, %v1395_v8  ;;  %v323_v49 = vsel %vm300_vm4, %v318_v47, %v1402_v11 }
  0xfd   : > { %656 = vrot.lane.b32.xlu0 %v647_v36, %s1323_s29  ;;  %682 = vrot.lane.b32.xlu1 %v647_v36, %s1324_s30 }
 0x103   : > { %v314_v44 = vpop.permute.xlu2 %313  ;;  %v471_v56 = vpop.permute.xlu0 %470 }
 0x104   : > { %v321_v51 = vsel %vm300_vm4, %v314_v44, %v1406_v12  ;;  %v476_v1 = vsel %vm300_vm4, %v471_v56, %v1422_v15 }
 0x10b   : > { %v316_v46 = vpop.permute.xlu2 %315 }
 0x10c   : > { %v322_v48 = vsel %vm300_vm4, %v316_v46, %v1418_v14 }
 0x113   : > { %v469_v55 = vpop.permute.xlu2 %468 }
 0x114   : > { %v475_v63 = vsel %vm300_vm4, %v469_v55, %v1436_v18 }
 0x11b   : > { %v639_v38 = vpop.permute.xlu1 %638  ;;  %v822_v59 = vpop.permute.xlu2 %821 }
 0x11c   : > { %v646_v39 = vsel %vm300_vm4, %v639_v38, %v1386_v3  ;;  %v829_v32 = vsel %vm300_vm4, %v822_v59, %v1492_v31 }
 0x11d   : > { %654 = vrot.lane.b32.xlu2 %v646_v39, %s1323_s29  ;;  %680 = vrot.lane.b32.xlu0 %v646_v39, %s1324_s30 }
 0x11e   : > { %736 = vrot.lane.b32.xlu1 %v646_v39, %s1325_s7 }
 0x123   : > { %v645_v41 = vpop.permute.xlu1 %644  ;;  %v828_v5 = vpop.permute.xlu2 %827 }
 0x124   : > { %v649_v42 = vsel %vm300_vm4, %v645_v41, %v1389_v4 }
 0x125   : > { %660 = vrot.lane.b32.xlu2 %v649_v42, %s1323_s29  ;;  %686 = vrot.lane.b32.xlu0 %v649_v42, %s1324_s30 }
 0x126   : > { %742 = vrot.lane.b32.xlu1 %v649_v42, %s1325_s7 }
 0x12b   : > { %v320_v43 = vpop.permute.xlu1 %319  ;;  %v1656_v9 = vpop.permute.xlu2 %1006 }
 0x12c   : > { %v324_v53 = vsel %vm300_vm4, %v320_v43, %v1414_v13  ;;  %v824_v60 = vpop.permute.xlu0 %823 }
 0x12d   : > { %740 = vrot.lane.b32.xlu0 %v648_v30, %s1325_s7  ;;  %684 = vrot.lane.b32.xlu2 %v648_v30, %s1324_s30  ;;  %v1693_v33 = vsel %vm300_vm4, %v824_v60, %v1463_v23 }
 0x12e   : > { %776 = vrot.lane.b32.xlu1 %v648_v30, %s1326_s8 }
 0x133   : > { %v467_v45 = vpop.permute.xlu1 %466 }
 0x134   : > { %v1649_v6 = vpop.permute.xlu0 %1008  ;;  %v474_v7 = vsel %vm300_vm4, %v467_v45, %v1440_v19 }
 0x135   : > { %774 = vrot.lane.b32.xlu0 %v647_v36, %s1326_s8  ;;  %738 = vrot.lane.b32.xlu2 %v647_v36, %s1325_s7 }
 0x136   : > { %778 = vrot.lane.b32.xlu1 %v649_v42, %s1326_s8 }
 0x13b   : > { %v473_v50 = vpop.permute.xlu1 %472 }
 0x13c   : > { %v477_v17 = vsel %vm300_vm4, %v473_v50, %v1449_v21 }
 0x13d   : > { %331 = vrot.lane.b32.xlu0 %v322_v48, %s1323_s29  ;;  %772 = vrot.lane.b32.xlu2 %v646_v39, %s1326_s8  ;;  %v1707_v39 = vsel %vm300_vm4, %v828_v5, %v1499_v34 }
 0x13e   : > { %333 = vrot.lane.b32.xlu1 %v323_v49, %s1323_s29 }
 0x143   : > { %v1612_v52 = vpop.permute.xlu1 %825 }
 0x144   : > { %v1712_v41 = vsel %vm300_vm4, %v1612_v52, %v1479_v28 }
 0x145   : > { %355 = vrot.lane.b32.xlu0 %v321_v51, %s1324_s30  ;;  %329 = vrot.lane.b32.xlu2 %v321_v51, %s1323_s29 }
 0x146   : > { %357 = vrot.lane.b32.xlu1 %v322_v48, %s1324_s30 }
 0x14b   : > { %v1619_v54 = vpop.permute.xlu1 %1004 }
 0x14c   : > { %v1760_v60 = vsel %vm300_vm4, %v1619_v54, %v1471_v25  ;;  %v1281_v54 = vld [vmem:[%s2295_s3] ss:$0 sm:$0xff] }
 0x14d   : > { %361 = vrot.lane.b32.xlu0 %v324_v53, %s1324_s30  ;;  %335 = vrot.lane.b32.xlu2 %v324_v53, %s1323_s29 }
 0x14e   : > { %391 = vrot.lane.b32.xlu1 %v321_v51, %s1325_s7 }
 0x153   : > { %v1624_v57 = vpop.permute.xlu1 %1010 }
 0x155   : > { %395 = vrot.lane.b32.xlu0 %v323_v49, %s1325_s7  ;;  %359 = vrot.lane.b32.xlu2 %v323_v49, %s1324_s30 }
 0x156   : > { %397 = vrot.lane.b32.xlu1 %v324_v53, %s1325_s7 }
 0x15d   : > { %419 = vrot.lane.b32.xlu0 %v322_v48, %s1326_s8  ;;  %393 = vrot.lane.b32.xlu2 %v322_v48, %s1325_s7 }
 0x15e   : > { %421 = vrot.lane.b32.xlu1 %v323_v49, %s1326_s8 }
 0x160   : > { %v1638_v62 = vpop.permute.xlu1 %658 }
 0x165   : > { %484 = vrot.lane.b32.xlu0 %v475_v63, %s1323_s29  ;;  %417 = vrot.lane.b32.xlu2 %v321_v51, %s1326_s8 }
 0x166   : > { %486 = vrot.lane.b32.xlu1 %v476_v1, %s1323_s29 }
 0x16d   : > { %508 = vrot.lane.b32.xlu0 %v474_v7, %s1324_s30  ;;  %423 = vrot.lane.b32.xlu2 %v324_v53, %s1326_s8 }
 0x16e   : > { %510 = vrot.lane.b32.xlu1 %v475_v63, %s1324_s30 }
 0x16f   : > { %v1659_v10 = vpop.permute.xlu0 %656  ;;  %v1685_v27 = vpop.permute.xlu1 %682 }
 0x175   : > { %514 = vrot.lane.b32.xlu0 %v477_v17, %s1324_s30  ;;  %482 = vrot.lane.b32.xlu2 %v474_v7, %s1323_s29 }
 0x176   : > { %564 = vrot.lane.b32.xlu1 %v474_v7, %s1325_s7 }
 0x177   : > { %v1669_v20 = vpop.permute.xlu2 %654 }
 0x17d   : > { %488 = vrot.lane.b32.xlu2 %v477_v17, %s1323_s29  ;;  %568 = vrot.lane.b32.xlu0 %v476_v1, %s1325_s7 }
 0x17e   : > { %570 = vrot.lane.b32.xlu1 %v477_v17, %s1325_s7 }
 0x17f   : > { %v1677_v24 = vpop.permute.xlu2 %660 }
 0x185   : > { %602 = vrot.lane.b32.xlu0 %v475_v63, %s1326_s8  ;;  %512 = vrot.lane.b32.xlu2 %v476_v1, %s1324_s30 }
 0x186   : > { %604 = vrot.lane.b32.xlu1 %v476_v1, %s1326_s8  ;;  %v2330_v1 = vmov 0 }
 0x187   : > { %v1687_v30 = vpop.permute.xlu2 %684  ;;  %v2331_v1 = vsel %vm1770_vm11, 4294967295, %v2330_v1 }
 0x188   : > { %2332 = vst [vmem:[#allocation13_spill] sm:$0xff] %v2331_v1 }
 0x18d   : > { %837 = vrot.lane.b32.xlu0 %v829_v32, %s1323_s29  ;;  %566 = vrot.lane.b32.xlu2 %v475_v63, %s1325_s7  ;;  %v1282_v63 = vld [vmem:[%s2295_s3 + $0x1] ss:$0 sm:$0xff] }
 0x18e   : > { %839 = vrot.lane.b32.xlu1 %v1693_v33, %s1323_s29 }
 0x18f   : > { %v1699_v35 = vpop.permute.xlu2 %738  ;;  %v1701_v36 = vpop.permute.xlu0 %680 }
 0x190   : > { %v1703_v38 = vpop.permute.xlu1 %736 }
 0x195   : > { %843 = vrot.lane.b32.xlu0 %v1707_v39, %s1323_s29  ;;  %600 = vrot.lane.b32.xlu2 %v474_v7, %s1326_s8 }
 0x196   : > { %867 = vrot.lane.b32.xlu1 %v1712_v41, %s1324_s30 }
 0x197   : > { %v773_v42 = vpop.permute.xlu2 %772  ;;  %v1720_v43 = vpop.permute.xlu0 %686 }
 0x198   : > { %v1724_v44 = vsel %vm287_vm8, %v773_v42, 0.0  ;;  %v1726_v45 = vpop.permute.xlu1 %742 }
 0x19d   : > { %606 = vrot.lane.b32.xlu2 %v477_v17, %s1326_s8  ;;  %865 = vrot.lane.b32.xlu0 %v1693_v33, %s1324_s30 }
 0x19e   : > { %921 = vrot.lane.b32.xlu1 %v1693_v33, %s1325_s7 }
 0x19f   : > { %v330_v46 = vpop.permute.xlu2 %329  ;;  %v1733_v47 = vpop.permute.xlu0 %740 }
 0x1a0   : > { %v341_v48 = vsel %vm1634_vm7, %v330_v46, 0.0  ;;  %v777_v49 = vpop.permute.xlu1 %776 }
 0x1a1   : > { %v1739_v50 = vsel %vm287_vm8, %v777_v49, 0.0 }
 0x1a2   : > { %2327 = vst [vmem:[#allocation10_spill] sm:$0xff] %v1739_v50 }
 0x1a5   : > { %841 = vrot.lane.b32.xlu2 %v1712_v41, %s1323_s29  ;;  %919 = vrot.lane.b32.xlu0 %v829_v32, %s1325_s7 }
 0x1a6   : > { %955 = vrot.lane.b32.xlu1 %v829_v32, %s1326_s8 }
 0x1a7   : > { %v336_v51 = vpop.permute.xlu2 %335  ;;  %v775_v52 = vpop.permute.xlu0 %774 }
 0x1a8   : > { %v344_v53 = vsel %vm1634_vm7, %v336_v51, 0.0  ;;  %v779_v55 = vpop.permute.xlu1 %778  ;;  %v1749_v56 = vsel %vm287_vm8, %v775_v52, 0.0 }
 0x1a9   : > { %2328 = vst [vmem:[#allocation11_spill] sm:$0xff] %v1749_v56  ;;  %v1753_v59 = vsel %vm287_vm8, %v779_v55, 0.0  ;;  %v1786_v55 = vsel %vm300_vm4, %v1649_v6, %v1506_v37 }
 0x1aa   : > { %2329 = vst [vmem:[#allocation12_spill] sm:$0xff] %v1753_v59 }
 0x1ad   : > { %863 = vrot.lane.b32.xlu2 %v829_v32, %s1324_s30  ;;  %925 = vrot.lane.b32.xlu0 %v1707_v39, %s1325_s7 }
 0x1ae   : > { %1020 = vrot.lane.b32.xlu1 %v1760_v60, %s1323_s29 }
 0x1af   : > { %v360_v5 = vpop.permute.xlu2 %359  ;;  %v332_v7 = vpop.permute.xlu0 %331 }
 0x1b0   : > { %v369_v17 = vsel %vm1770_vm11, %v360_v5, 0.0  ;;  %v334_v32 = vpop.permute.xlu1 %333  ;;  %v342_v42 = vsel %vm1634_vm7, %v332_v7, 0.0 }
 0x1b1   : > { %v375_v46 = vmul.f32 %v1282_v63, %v369_v17  ;;  %v343_v49 = vsel %vm1634_vm7, %v334_v32, 0.0  ;;  %v1284_v17 = vld [vmem:[%s2295_s3 + $0x2] ss:$0 sm:$0xff]  ;;  %v348_v0 = vmul.f32 %v1281_v54, %v342_v42 }
 0x1b2   : > { %v349_v51 = vmul.f32 %v1281_v54, %v343_v49  ;;  %v384_v16 = vmul.f32 %v1284_v17, %v1418_v14  ;;  %v383_v14 = vmul.f32 %v1284_v17, %v1406_v12 }
 0x1b4   : > { %v379_v52 = vadd.f32 %v375_v46, %v349_v51  ;;  %v347_v46 = vmul.f32 %v1281_v54, %v341_v48  ;;  %v1811_v48 = vsel %vm300_vm4, %v1656_v9, %v1516_v40  ;;  %v1285_v9 = vld [vmem:[%s2295_s3 + $0x4] ss:$0 sm:$0xff]  ;;  %v1832_v40 = vsel %vm300_vm4, %v1624_v57, %v1483_v29 }
 0x1b5   : > { %869 = vrot.lane.b32.xlu2 %v1707_v39, %s1324_s30  ;;  %959 = vrot.lane.b32.xlu0 %v1712_v41, %s1326_s8 }
 0x1b6   : > { %1024 = vrot.lane.b32.xlu1 %v1786_v55, %s1323_s29 }
 0x1b7   : > { %v394_v5 = vpop.permute.xlu2 %393  ;;  %v356_v7 = vpop.permute.xlu0 %355 }
 0x1b8   : > { %v358_v32 = vpop.permute.xlu1 %357  ;;  %v367_v6 = vsel %vm1770_vm11, %v356_v7, 0.0  ;;  %v404_v37 = vsel %vm284_vm12, %v394_v5, 0.0 }
 0x1b9   : > { %v368_v49 = vsel %vm1770_vm11, %v358_v32, 0.0  ;;  %v373_v51 = vmul.f32 %v1282_v63, %v367_v6  ;;  %v410_v42 = vmul.f32 %v1283_v26, %v404_v37 }
 0x1ba   : > { %v374_v22 = vmul.f32 %v1282_v63, %v368_v49 }
 0x1bb   : > { %v377_v25 = vadd.f32 %v373_v51, %v347_v46 }
 0x1bc   : > { %v378_v7 = vadd.f32 %v374_v22, %v348_v0 }
 0x1bd   : > { %923 = vrot.lane.b32.xlu2 %v1712_v41, %s1325_s7  ;;  %1022 = vrot.lane.b32.xlu0 %v1811_v48, %s1323_s29  ;;  %v387_v12 = vadd.f32 %v383_v14, %v377_v25  ;;  %v386_v25 = vmul.f32 %v1284_v17, %v1414_v13 }
 0x1be   : > { %v388_v32 = vadd.f32 %v384_v16, %v378_v7  ;;  %1048 = vrot.lane.b32.xlu1 %v1811_v48, %s1324_s30  ;;  %v350_v16 = vmul.f32 %v1281_v54, %v344_v53  ;;  %v385_v53 = vmul.f32 %v1284_v17, %v1402_v11 }
 0x1bf   : > { %v418_v5 = vpop.permute.xlu2 %417  ;;  %v362_v6 = vpop.permute.xlu0 %361 }
 0x1c0   : > { %v429_v0 = vsel %vm287_vm8, %v418_v5, 0.0  ;;  %v392_v22 = vpop.permute.xlu1 %391  ;;  %v370_v41 = vsel %vm1770_vm11, %v362_v6, 0.0  ;;  %v414_v37 = vadd.f32 %v410_v42, %v388_v32  ;;  %v389_v6 = vadd.f32 %v385_v53, %v379_v52 }
 0x1c1   : > { %v403_v46 = vsel %vm284_vm12, %v392_v22, 0.0  ;;  %v376_v49 = vmul.f32 %v1282_v63, %v370_v41  ;;  %v435_v34 = vmul.f32 %v1285_v9, %v429_v0 }
 0x1c2   : > { %v409_v51 = vmul.f32 %v1283_v26, %v403_v46 }
 0x1c3   : > { %v380_v7 = vadd.f32 %v376_v49, %v350_v16 }
 0x1c4   : > { %v413_v5 = vadd.f32 %v409_v51, %v387_v12 }
 0x1c5   : > { %957 = vrot.lane.b32.xlu2 %v1693_v33, %s1326_s8  ;;  %1026 = vrot.lane.b32.xlu0 %v1832_v40, %s1323_s29  ;;  %v390_v0 = vadd.f32 %v386_v25, %v380_v7 }
 0x1c6   : > { %1082 = vrot.lane.b32.xlu1 %v1760_v60, %s1325_s7  ;;  %v439_v63 = vadd.f32 %v435_v34, %v413_v5  ;;  %v1286_v34 = vld [vmem:[%s2295_s3 + $0x5] ss:$0 sm:$0xff] }
 0x1c7   : > { %v424_v54 = vpop.permute.xlu2 %423  ;;  %v396_v42 = vpop.permute.xlu0 %395 }
 0x1c8   : > { %v432_v57 = vsel %vm287_vm8, %v424_v54, 0.0  ;;  %v398_v32 = vpop.permute.xlu1 %397  ;;  %v405_v33 = vsel %vm284_vm12, %v396_v42, 0.0 }
 0x1c9   : > { %v406_v14 = vsel %vm284_vm12, %v398_v32, 0.0  ;;  %v411_v11 = vmul.f32 %v1283_v26, %v405_v33  ;;  %v438_v16 = vmul.f32 %v1285_v9, %v432_v57 }
 0x1ca   : > { %v412_v22 = vmul.f32 %v1283_v26, %v406_v14 }
 0x1cb   : > { %v415_v41 = vadd.f32 %v411_v11, %v389_v6 }
 0x1cc   : > { %v416_v13 = vadd.f32 %v412_v22, %v390_v0  ;;  %v1890_v22 = vld [vmem:[%s2295_s3 + $0xa] ss:$0 sm:$0xff] }
 0x1cd   : > { %961 = vrot.lane.b32.xlu2 %v1707_v39, %s1326_s8  ;;  %1052 = vrot.lane.b32.xlu0 %v1832_v40, %s1324_s30 }
 0x1ce   : > { %1108 = vrot.lane.b32.xlu1 %v1760_v60, %s1326_s8  ;;  %v442_v52 = vadd.f32 %v438_v16, %v416_v13 }
 0x1cf   : > { %v483_v17 = vpop.permute.xlu2 %482  ;;  %v420_v46 = vpop.permute.xlu0 %419 }
 0x1d0   : > { %v494_v26 = vsel %vm1634_vm7, %v483_v17, 0.0  ;;  %v422_v49 = vpop.permute.xlu1 %421  ;;  %v430_v39 = vsel %vm287_vm8, %v420_v46, 0.0  ;;  %v1913_v46 = vsel %vm1770_vm11, %v1687_v30, 0.0  ;;  %v692_v30 = vsel %vm1770_vm11, %v1701_v36, 0.0 }
 0x1d1   : > { %v500_v12 = vmul.f32 %v1286_v34, %v494_v26  ;;  %v431_v51 = vsel %vm287_vm8, %v422_v49, 0.0  ;;  %v436_v7 = vmul.f32 %v1285_v9, %v430_v39  ;;  %2334 = vst [vmem:[#allocation15_spill] sm:$0xff] %v1913_v46  ;;  %v1923_v26 = vld [vmem:[%s2293_s1] ss:$0 sm:$0xff]  ;;  %v1289_v49 = vld [vmem:[%s2293_s1 + $0x1] ss:$0 sm:$0xff] }
 0x1d2   : > { %v437_v5 = vmul.f32 %v1285_v9, %v431_v51  ;;  %v748_v39 = vsel %vm284_vm12, %v1703_v38, 0.0  ;;  %v2337_v36 = vsel %vm1634_vm7, %v1659_v10, 0.0  ;;  %v558_v28 = vmul.f32 %v1289_v49, %v1422_v15 }
 0x1d3   : > { %v1863_v53 = vadd.f32 %v500_v12, %v439_v63  ;;  %v440_v25 = vadd.f32 %v436_v7, %v414_v37  ;;  %v2336_v12 = vsel %vm1634_vm7, %v1669_v20, 0.0  ;;  %v1946_v7 = vld [vmem:[%s2295_s3 + $0xb] ss:$0 sm:$0xff]  ;;  %v1287_v20 = vld [vmem:[%s2295_s3 + $0x6] ss:$0 sm:$0xff] }
 0x1d4   : > { %v441_v54 = vadd.f32 %v437_v5, %v415_v41  ;;  %v1277_v41 = vld [vmem:[%s2293_s1 + $0x3] ss:$0 sm:$0xff]  ;;  %v1941_v51 = vmul.f32 %v1890_v22, %v2336_v12  ;;  %v1954_v5 = vmul.f32 %v1890_v22, %v2337_v36  ;;  %v2002_v12 = vld [vmem:[%s2293_s1 + $0x4] ss:$0 sm:$0xff] }
 0x1d5   : > { %1046 = vrot.lane.b32.xlu2 %v1760_v60, %s1324_s30  ;;  %1086 = vrot.lane.b32.xlu0 %v1786_v55, %s1325_s7 }
 0x1d6   : > { %1112 = vrot.lane.b32.xlu1 %v1786_v55, %s1326_s8  ;;  %2338 = vst [vmem:[#allocation17_spill] sm:$0xff] %v1954_v5 }
 0x1d7   : > { %v489_v42 = vpop.permute.xlu2 %488  ;;  %v485_v57 = vpop.permute.xlu0 %484 }
 0x1d8   : > { %v497_v32 = vsel %vm1634_vm7, %v489_v42, 0.0  ;;  %v487_v33 = vpop.permute.xlu1 %486  ;;  %v495_v9 = vsel %vm1634_vm7, %v485_v57, 0.0  ;;  %v1969_v57 = vmul.f32 %v1277_v41, %v1913_v46 }
 0x1d9   : > { %v503_v37 = vmul.f32 %v1286_v34, %v497_v32  ;;  %v496_v63 = vsel %vm1634_vm7, %v487_v33, 0.0  ;;  %v501_v60 = vmul.f32 %v1286_v34, %v495_v9  ;;  %v1978_v32 = vsel %vm1770_vm11, %v1720_v43, 0.0  ;;  %v1290_v33 = vld [vmem:[%s2295_s3 + $0x7] ss:$0 sm:$0xff]  ;;  %v1292_v43 = vld [vmem:[%s2293_s1 + $0x2] ss:$0 sm:$0xff] }
 0x1da   : > { %v502_v14 = vmul.f32 %v1286_v34, %v496_v63  ;;  %v1898_v34 = vsel %vm1770_vm11, %v1685_v27, 0.0  ;;  %v1918_v27 = vsel %vm284_vm12, %v1699_v35, 0.0  ;;  %v1987_v9 = vmul.f32 %v1946_v7, %v692_v30 }
 0x1db   : > { %v1877_v6 = vadd.f32 %v503_v37, %v442_v52  ;;  %v1879_v11 = vadd.f32 %v501_v60, %v440_v25  ;;  %v1908_v52 = vld [vmem:[%s2293_s1 + $0x5] ss:$0 sm:$0xff]  ;;  %2335 = vst [vmem:[#allocation16_spill] sm:$0xff] %v1918_v27  ;;  %v709_v38 = vmul.f32 %v1277_v41, %v1898_v34  ;;  %v557_v37 = vmul.f32 %v1289_v49, %v1436_v18 }
 0x1dc   : > { %v1881_v0 = vadd.f32 %v502_v14, %v441_v54  ;;  %v2339_v54 = vsel %vm1634_vm7, %v1677_v24, 0.0  ;;  %v1973_v10 = vmul.f32 %v1908_v52, %v1918_v27  ;;  %v764_v60 = vmul.f32 %v1908_v52, %v748_v39 }
 0x1dd   : > { %1110 = vrot.lane.b32.xlu0 %v1811_v48, %s1326_s8  ;;  %1050 = vrot.lane.b32.xlu2 %v1786_v55, %s1324_s30  ;;  %v1903_v55 = vld [vmem:[%s2295_s3 + $0xd] ss:$0 sm:$0xff]  ;;  %v1966_v42 = vmul.f32 %v1890_v22, %v2339_v54  ;;  %v708_v14 = vmul.f32 %v1277_v41, %v692_v30  ;;  %v2010_v36 = vmul.f32 %v1277_v41, %v1978_v32 }
 0x1de   : > { %2333 = vst [vmem:[#allocation14_spill] sm:$0xff] %v1903_v55  ;;  %v1984_v24 = vmul.f32 %v1903_v55, %v748_v39  ;;  %v2015_v39 = vsel %vm284_vm12, %v1733_v47, 0.0  ;;  %v547_v23 = vmul.f32 %v1290_v33, %v1436_v18  ;;  %v1291_v47 = vld [vmem:[%s2295_s3 + $0x8] ss:$0 sm:$0xff] }
 0x1df   : > { %v513_v16 = vpop.permute.xlu2 %512  ;;  %v509_v13 = vpop.permute.xlu0 %508  ;;  %2340 = vst [vmem:[#allocation18_spill] sm:$0xff] %v1966_v42 }
 0x1e0   : > { %v511_v17 = vpop.permute.xlu1 %510  ;;  %v520_v25 = vsel %vm1770_vm11, %v509_v13, 0.0  ;;  %v556_v13 = vmul.f32 %v1289_v49, %v1440_v19  ;;  %v522_v31 = vsel %vm1770_vm11, %v513_v16, 0.0  ;;  %v546_v16 = vmul.f32 %v1290_v33, %v1440_v19 }
 0x1e1   : > { %v521_v35 = vsel %vm1770_vm11, %v511_v17, 0.0  ;;  %v536_v17 = vmul.f32 %v1923_v26, %v520_v25  ;;  %v526_v30 = vmul.f32 %v1287_v20, %v520_v25  ;;  %v559_v19 = vmul.f32 %v1289_v49, %v1449_v21 }
 0x1e2   : > { %v537_v63 = vmul.f32 %v1923_v26, %v521_v35 }
 0x1e3   : > { %v560_v55 = vadd.f32 %v556_v13, %v536_v17  ;;  %v530_v27 = vadd.f32 %v526_v30, %v1863_v53 }
 0x1e4   : > { %v561_v59 = vadd.f32 %v557_v37, %v537_v63  ;;  %v538_v37 = vmul.f32 %v1923_v26, %v522_v31  ;;  %v527_v63 = vmul.f32 %v1287_v20, %v521_v35 }
 0x1e5   : > { %1084 = vrot.lane.b32.xlu2 %v1811_v48, %s1325_s7  ;;  %v2007_v48 = vsel %vm284_vm12, %v1726_v45, 0.0  ;;  %v550_v49 = vadd.f32 %v546_v16, %v530_v27 }
 0x1e6   : > { %v531_v35 = vadd.f32 %v527_v63, %v1879_v11  ;;  %v1294_v11 = vld [vmem:[%s2295_s3 + $0xc] ss:$0 sm:$0xff] }
 0x1e7   : > { %v567_v54 = vpop.permute.xlu2 %566  ;;  %v515_v29 = vpop.permute.xlu0 %514 }
 0x1e8   : > { %v577_v45 = vsel %vm284_vm12, %v567_v54, 0.0  ;;  %v565_v41 = vpop.permute.xlu1 %564  ;;  %v523_v56 = vsel %vm1770_vm11, %v515_v29, 0.0  ;;  %v729_v54 = vmul.f32 %v2002_v12, %v1395_v8  ;;  %v728_v29 = vmul.f32 %v2002_v12, %v1386_v3  ;;  %v1293_v8 = vld [vmem:[%s2295_s3 + $0x9] ss:$0 sm:$0xff] }
 0x1e9   : > { %v593_v50 = vmul.f32 %v1292_v43, %v577_v45  ;;  %v576_v25 = vsel %vm284_vm12, %v565_v41, 0.0  ;;  %v529_v42 = vmul.f32 %v1287_v20, %v523_v56  ;;  %v548_v41 = vmul.f32 %v1290_v33, %v1422_v15 }
 0x1ea   : > { %v592_v18 = vmul.f32 %v1292_v43, %v576_v25  ;;  %v582_v17 = vmul.f32 %v1291_v47, %v576_v25  ;;  %v539_v15 = vmul.f32 %v1923_v26, %v523_v56 }
 0x1eb   : > { %v597_v46 = vadd.f32 %v593_v50, %v561_v59  ;;  %v549_v50 = vmul.f32 %v1290_v33, %v1449_v21  ;;  %v528_v59 = vmul.f32 %v1287_v20, %v522_v31 }
 0x1ec   : > { %v596_v5 = vadd.f32 %v592_v18, %v560_v55  ;;  %v730_v55 = vmul.f32 %v2002_v12, %v1382_v2  ;;  %v533_v18 = vadd.f32 %v529_v42, %v1877_v6  ;;  %v586_v26 = vadd.f32 %v582_v17, %v550_v49 }
 0x1ed   : > { %v713_v13 = vadd.f32 %v709_v38, %v597_v46  ;;  %1088 = vrot.lane.b32.xlu2 %v1832_v40, %s1325_s7  ;;  %v562_v46 = vadd.f32 %v558_v28, %v538_v37  ;;  %v563_v27 = vadd.f32 %v559_v19, %v539_v15  ;;  %v532_v33 = vadd.f32 %v528_v59, %v1881_v0 }
 0x1ee   : > { %v712_v53 = vadd.f32 %v708_v14, %v596_v5  ;;  %v583_v14 = vmul.f32 %v1291_v47, %v577_v45  ;;  %v718_v0 = vmul.f32 %v1294_v11, %v1386_v3  ;;  %v553_v45 = vadd.f32 %v549_v50, %v533_v18 }
 0x1ef   : > { %v601_v38 = vpop.permute.xlu2 %600  ;;  %v569_v30 = vpop.permute.xlu0 %568  ;;  %v733_v25 = vadd.f32 %v729_v54, %v713_v13  ;;  %v767_v54 = vmul.f32 %v1908_v52, %v2007_v48  ;;  %v551_v13 = vadd.f32 %v547_v23, %v531_v35 }
 0x1f0   : > { %v612_v1 = vsel %vm287_vm8, %v601_v38, 0.0  ;;  %v571_v21 = vpop.permute.xlu1 %570  ;;  %v578_v31 = vsel %vm284_vm12, %v569_v30, 0.0  ;;  %v732_v56 = vadd.f32 %v728_v29, %v712_v53  ;;  %v731_v29 = vmul.f32 %v2002_v12, %v1389_v4  ;;  %v1280_v4 = vld [vmem:[%s2295_s3 + $0xe] ss:$0 sm:$0xff] }
 0x1f1   : > { %v618_v5 = vmul.f32 %v1293_v8, %v612_v1  ;;  %v579_v2 = vsel %vm284_vm12, %v571_v21, 0.0  ;;  %v594_v28 = vmul.f32 %v1292_v43, %v578_v31  ;;  %v2062_v42 = vadd.f32 %v1973_v10, %v733_v25 }
 0x1f2   : > { %v595_v6 = vmul.f32 %v1292_v43, %v579_v2  ;;  %v2059_v20 = vadd.f32 %v764_v60, %v732_v56  ;;  %v585_v37 = vmul.f32 %v1291_v47, %v579_v2  ;;  %v766_v10 = vmul.f32 %v1908_v52, %v2015_v39  ;;  %v2343_v2 = vld [vmem:[#allocation17_spill] sm:$0xff] }
 0x1f3   : > { %v622_v16 = vadd.f32 %v618_v5, %v586_v26  ;;  %v598_v1 = vadd.f32 %v594_v28, %v562_v46  ;;  %v584_v19 = vmul.f32 %v1291_v47, %v578_v31  ;;  %v587_v23 = vadd.f32 %v583_v14, %v551_v13 }
 0x1f4   : > { %v599_v63 = vadd.f32 %v595_v6, %v563_v27  ;;  %v589_v53 = vadd.f32 %v585_v37, %v553_v45  ;;  %v790_v38 = vmul.f32 %v1280_v4, %v1724_v44  ;;  %v2341_v21 = vsel %vm1634_vm7, %v1638_v62, 0.0  ;;  %v2342_v44 = vld [vmem:[#allocation18_spill] sm:$0xff]  ;;  %v1311_v27 = vld [vmem:[%s1379_s27 + $0x8] sm:$0xff] }
 0x1f5   : > { %v676_v43 = vadd.f32 %v1941_v51, %v622_v16  ;;  %v714_v60 = vadd.f32 %v1969_v57, %v598_v1  ;;  %1114 = vrot.lane.b32.xlu2 %v1832_v40, %s1326_s8  ;;  %v552_v57 = vadd.f32 %v548_v41, %v532_v33  ;;  %v674_v31 = vmul.f32 %v1890_v22, %v2341_v21  ;;  %v2344_v33 = vld [vmem:[#allocation15_spill] sm:$0xff]  ;;  %v1313_v1 = vld [vmem:[%s1379_s27 + $0x18] sm:$0xff] }
 0x1f6   : > { %v715_v17 = vadd.f32 %v2010_v36, %v599_v63  ;;  %v701_v56 = vmul.f32 %v1946_v7, %v1978_v32  ;;  %v719_v6 = vmul.f32 %v1311_v27, %v1294_v11  ;;  %v700_v22 = vmul.f32 %v1946_v7, %v2344_v33 }
 0x1f7   : > { %v702_v51 = vadd.f32 %v1987_v9, %v676_v43  ;;  %v607_v12 = vpop.permute.xlu2 %606  ;;  %v603_v59 = vpop.permute.xlu0 %602  ;;  %v734_v40 = vadd.f32 %v730_v55, %v714_v60  ;;  %v588_v9 = vadd.f32 %v584_v19, %v552_v57  ;;  %v721_v32 = vmul.f32 %v1313_v1, %v1294_v11 }
 0x1f8   : > { %v615_v3 = vsel %vm287_vm8, %v607_v12, 0.0  ;;  %v605_v52 = vpop.permute.xlu1 %604  ;;  %v613_v36 = vsel %vm287_vm8, %v603_v59, 0.0  ;;  %v735_v47 = vadd.f32 %v731_v29, %v715_v17  ;;  %v2347_v12 = vld [vmem:[#allocation11_spill] sm:$0xff] }
 0x1f9   : > { %v621_v50 = vmul.f32 %v1293_v8, %v615_v3  ;;  %v614_v15 = vsel %vm287_vm8, %v605_v52, 0.0  ;;  %v619_v46 = vmul.f32 %v1293_v8, %v613_v36  ;;  %v722_v35 = vadd.f32 %v718_v0, %v702_v51  ;;  %v2345_v0 = vld [vmem:[#allocation16_spill] sm:$0xff]  ;;  %v2348_v52 = vld [vmem:[#allocation10_spill] sm:$0xff] }
 0x1fa   : > { %v620_v41 = vmul.f32 %v1293_v8, %v614_v15  ;;  %v2087_v49 = vadd.f32 %v766_v10, %v734_v40  ;;  %v2089_v55 = vadd.f32 %v767_v54, %v735_v47  ;;  %v699_v8 = vmul.f32 %v1946_v7, %v1898_v34  ;;  %v1312_v34 = vld [vmem:[%s1379_s27 + $0x10] sm:$0xff]  ;;  %v2346_v10 = vld [vmem:[#allocation14_spill] sm:$0xff] }
 0x1fb   : > { %v625_v30 = vadd.f32 %v621_v50, %v589_v53  ;;  %v623_v25 = vadd.f32 %v619_v46, %v587_v23  ;;  %v758_v18 = vadd.f32 %v1984_v24, %v722_v35  ;;  %v1295_v24 = vld [vmem:[%s2295_s3 + $0xf] ss:$0 sm:$0xff]  ;;  %v720_v16 = vmul.f32 %v1312_v34, %v1294_v11 }
 0x1fc   : > { %v624_v26 = vadd.f32 %v620_v41, %v588_v9  ;;  %v755_v45 = vmul.f32 %v2346_v10, %v2345_v0  ;;  %v757_v7 = vmul.f32 %v2346_v10, %v2007_v48  ;;  %v756_v11 = vmul.f32 %v2346_v10, %v2015_v39  ;;  %v2349_v48 = vld [vmem:[#allocation12_spill] sm:$0xff] }
 0x1fd   : > { %v679_v5 = vadd.f32 %v2342_v44, %v625_v30  ;;  %v677_v28 = vadd.f32 %v2343_v2, %v623_v25  ;;  %v794_v62 = vadd.f32 %v790_v38, %v758_v18  ;;  %v791_v59 = vmul.f32 %v1280_v4, %v2347_v12 }
 0x1fe   : > { %v678_v14 = vadd.f32 %v674_v31, %v624_v26  ;;  %v792_v36 = vmul.f32 %v1280_v4, %v2348_v52  ;;  %v793_v47 = vmul.f32 %v1280_v4, %v2349_v48  ;;  %v1297_v4 = vld [vmem:[%s2295_s3 + $0x10] ss:$0 sm:$0xff] }
 0x1ff   : > { %v705_v54 = vadd.f32 %v701_v56, %v679_v5  ;;  %v703_v37 = vadd.f32 %v699_v8, %v677_v28  ;;  %v842_v63 = vpop.permute.xlu2 %841  ;;  %v838_v29 = vpop.permute.xlu0 %837  ;;  %v1298_v5 = vld [vmem:[%s2293_s1 + $0x6] ss:$0 sm:$0xff] }
 0x200   : > { %v704_v13 = vadd.f32 %v700_v22, %v678_v14  ;;  %v840_v43 = vpop.permute.xlu1 %839  ;;  %v849_v60 = vsel %vm1634_vm7, %v838_v29, 0.0  ;;  %v851_v40 = vsel %vm1634_vm7, %v842_v63, 0.0  ;;  %v1302_v22 = vld [vmem:[%s2293_s1 + $0x7] ss:$0 sm:$0xff]  ;;  %v1300_v29 = vld [vmem:[%s2293_s1 + $0x8] ss:$0 sm:$0xff] }
 0x201   : > { %v723_v17 = vadd.f32 %v719_v6, %v703_v37  ;;  %v855_v19 = vmul.f32 %v1295_v24, %v849_v60  ;;  %v850_v51 = vsel %vm1634_vm7, %v840_v43, 0.0  ;;  %v725_v57 = vadd.f32 %v721_v32, %v705_v54  ;;  %v2351_v32 = vld [vmem:[#allocation2_spill] sm:$0xff] }
 0x202   : > { %v724_v23 = vadd.f32 %v720_v16, %v704_v13  ;;  %v856_v39 = vmul.f32 %v1295_v24, %v850_v51  ;;  %v857_v9 = vmul.f32 %v1295_v24, %v851_v40  ;;  %v912_v54 = vmul.f32 %v1302_v22, %v2351_v32  ;;  %v2352_v37 = vld [vmem:[#allocation6_spill] sm:$0xff] }
 0x203   : > { %v759_v53 = vadd.f32 %v755_v45, %v723_v17  ;;  %v859_v3 = vadd.f32 %v855_v19, %v794_v62  ;;  %v761_v15 = vadd.f32 %v757_v7, %v725_v57  ;;  %v2353_v7 = vld [vmem:[#allocation4_spill] sm:$0xff]  ;;  %v911_v19 = vmul.f32 %v1302_v22, %v2352_v37 }
 0x204   : > { %v760_v50 = vadd.f32 %v756_v11, %v724_v23  ;;  %v913_v17 = vmul.f32 %v1302_v22, %v2353_v7  ;;  %v1299_v11 = vld [vmem:[%s2295_s3 + $0x12] ss:$0 sm:$0xff]  ;;  %v2176_v57 = vld [vmem:[%s2295_s3 + $0x13] ss:$0 sm:$0xff] }
 0x205   : > { %v795_v46 = vadd.f32 %v791_v59, %v759_v53  ;;  %v797_v41 = vadd.f32 %v793_v47, %v761_v15 }
 0x206   : > { %v796_v35 = vadd.f32 %v792_v36, %v760_v50 }
 0x207   : > { %v860_v38 = vadd.f32 %v856_v39, %v795_v46  ;;  %v864_v30 = vpop.permute.xlu2 %863  ;;  %v844_v25 = vpop.permute.xlu0 %843  ;;  %v1303_v39 = vld [vmem:[%s2294_s2] ss:$0 sm:$0xff] }
 0x208   : > { %v2127_v18 = vadd.f32 %v857_v9, %v796_v35  ;;  %v868_v21 = vpop.permute.xlu1 %867  ;;  %v852_v31 = vsel %vm1634_vm7, %v844_v25, 0.0  ;;  %v875_v44 = vsel %vm1770_vm11, %v864_v30, 0.0 }
 0x209   : > { %v858_v8 = vmul.f32 %v1295_v24, %v852_v31  ;;  %v881_v2 = vmul.f32 %v1297_v4, %v875_v44  ;;  %v877_v28 = vsel %vm1770_vm11, %v868_v21, 0.0  ;;  %v2146_v24 = vld [vmem:[%s2295_s3 + $0x11] ss:$0 sm:$0xff]  ;;  %v891_v14 = vmul.f32 %v1298_v5, %v875_v44  ;;  %v2354_v21 = vld [vmem:[#allocation7_spill] sm:$0xff] }
 0x20a   : > { %v893_v34 = vmul.f32 %v1298_v5, %v877_v28  ;;  %v901_v63 = vmul.f32 %v2146_v24, %v2352_v37  ;;  %v914_v31 = vmul.f32 %v1302_v22, %v2354_v21 }
 0x20b   : > { %v2134_v56 = vadd.f32 %v858_v8, %v797_v41  ;;  %v885_v1 = vadd.f32 %v881_v2, %v859_v3  ;;  %v895_v10 = vadd.f32 %v891_v14, %v2059_v20 }
 0x20c   : > { %v897_v45 = vadd.f32 %v893_v34, %v2087_v49 }
 0x20d   : > { %v905_v49 = vadd.f32 %v901_v63, %v885_v1  ;;  %v915_v15 = vadd.f32 %v911_v19, %v895_v10  ;;  %v904_v10 = vmul.f32 %v2146_v24, %v2354_v21 }
 0x20e   : > { %v917_v50 = vadd.f32 %v913_v17, %v897_v45 }
 0x20f   : > { %v870_v27 = vpop.permute.xlu2 %869  ;;  %v866_v6 = vpop.permute.xlu0 %865 }
 0x210   : > { %v922_v62 = vpop.permute.xlu1 %921  ;;  %v876_v33 = vsel %vm1770_vm11, %v866_v6, 0.0  ;;  %v878_v43 = vsel %vm1770_vm11, %v870_v27, 0.0 }
 0x211   : > { %v892_v16 = vmul.f32 %v1298_v5, %v876_v33  ;;  %v932_v60 = vsel %vm284_vm12, %v922_v62, 0.0  ;;  %v882_v0 = vmul.f32 %v1297_v4, %v876_v33  ;;  %v894_v12 = vmul.f32 %v1298_v5, %v878_v43 }
 0x212   : > { %v948_v59 = vmul.f32 %v1300_v29, %v932_v60  ;;  %v883_v5 = vmul.f32 %v1297_v4, %v877_v28  ;;  %v884_v27 = vmul.f32 %v1297_v4, %v878_v43  ;;  %v938_v6 = vmul.f32 %v1299_v11, %v932_v60 }
 0x213   : > { %v896_v13 = vadd.f32 %v892_v16, %v2062_v42  ;;  %v902_v42 = vmul.f32 %v2146_v24, %v2351_v32  ;;  %v886_v52 = vadd.f32 %v882_v0, %v860_v38  ;;  %v898_v30 = vadd.f32 %v894_v12, %v2089_v55  ;;  %v1305_v55 = vld [vmem:[%s2295_s3 + $0x14] ss:$0 sm:$0xff] }
 0x214   : > { %v887_v63 = vadd.f32 %v883_v5, %v2127_v18  ;;  %v888_v60 = vadd.f32 %v884_v27, %v2134_v56  ;;  %v2355_v27 = vld [vmem:[#allocation3_spill] sm:$0xff] }
 0x215   : > { %v916_v23 = vadd.f32 %v912_v54, %v896_v13  ;;  %v906_v8 = vadd.f32 %v902_v42, %v886_v52  ;;  %v918_v1 = vadd.f32 %v914_v31, %v898_v30  ;;  %v903_v13 = vmul.f32 %v2146_v24, %v2353_v7 }
 0x217   : > { %v924_v51 = vpop.permute.xlu2 %923  ;;  %v920_v20 = vpop.permute.xlu0 %919  ;;  %v952_v35 = vadd.f32 %v948_v59, %v916_v23  ;;  %v942_v32 = vadd.f32 %v938_v6, %v906_v8  ;;  %v1308_v8 = vld [vmem:[%s2295_s3 + $0x17] ss:$0 sm:$0xff] }
 0x218   : > { %v933_v40 = vsel %vm284_vm12, %v924_v51, 0.0  ;;  %v956_v53 = vpop.permute.xlu1 %955  ;;  %v931_v3 = vsel %vm284_vm12, %v920_v20, 0.0  ;;  %v908_v51 = vadd.f32 %v904_v10, %v888_v60 }
 0x219   : > { %v949_v36 = vmul.f32 %v1300_v29, %v933_v40  ;;  %v967_v48 = vsel %vm287_vm8, %v956_v53, 0.0  ;;  %v937_v47 = vmul.f32 %v1299_v11, %v931_v3  ;;  %v947_v46 = vmul.f32 %v1300_v29, %v931_v3 }
 0x21a   : > { %v973_v9 = vmul.f32 %v2176_v57, %v967_v48  ;;  %v1139_v62 = vadd.f32 %v1303_v39, %v952_v35  ;;  %v939_v17 = vmul.f32 %v1299_v11, %v933_v40  ;;  %v1306_v35 = vld [vmem:[%s2295_s3 + $0x15] ss:$0 sm:$0xff] }
 0x21b   : > { %v941_v41 = vadd.f32 %v937_v47, %v905_v49  ;;  %v953_v38 = vadd.f32 %v949_v36, %v917_v50  ;;  %v951_v25 = vadd.f32 %v947_v46, %v915_v15 }
 0x21c   : > { %1144 = vst.msk [vmem:[%s2194_s10 + $0x8] sm:$0xff] %vm1142_vm13, %v1139_v62 }
 0x21d   : > { %v977_v44 = vadd.f32 %v973_v9, %v941_v41  ;;  %v1138_v2 = vadd.f32 %v1303_v39, %v951_v25  ;;  %v1140_v14 = vadd.f32 %v1303_v39, %v953_v38  ;;  %v1307_v38 = vld [vmem:[%s2295_s3 + $0x16] ss:$0 sm:$0xff] }
 0x21e   : > { %v1074_v6 = vmul.f32 %v1307_v38, %v2355_v27 }
 0x21f   : > { %v958_v33 = vpop.permute.xlu2 %957  ;;  %v926_v22 = vpop.permute.xlu0 %925  ;;  %1143 = vst.msk [vmem:[%s2194_s10] sm:$0xff] %vm1142_vm13, %v1138_v2 }
 0x220   : > { %v968_v34 = vsel %vm287_vm8, %v958_v33, 0.0  ;;  %v1021_v16 = vpop.permute.xlu1 %1020  ;;  %v934_v28 = vsel %vm284_vm12, %v926_v22, 0.0  ;;  %1145 = vst.msk [vmem:[%s2194_s10 + $0x10] sm:$0xff] %vm1142_vm13, %v1140_v14 }
 0x221   : > { %v974_v4 = vmul.f32 %v2176_v57, %v968_v34  ;;  %v1032_v54 = vsel %vm1634_vm7, %v1021_v16, 0.0  ;;  %v950_v37 = vmul.f32 %v1300_v29, %v934_v28  ;;  %v940_v42 = vmul.f32 %v1299_v11, %v934_v28 }
 0x222   : > { %v1038_v43 = vmul.f32 %v1305_v55, %v1032_v54  ;;  %v907_v29 = vadd.f32 %v903_v13, %v887_v63  ;;  %v2356_v13 = vld [vmem:[#allocation8_spill] sm:$0xff] }
 0x223   : > { %v978_v0 = vadd.f32 %v974_v4, %v942_v32  ;;  %v954_v45 = vadd.f32 %v950_v37, %v918_v1  ;;  %v944_v24 = vadd.f32 %v940_v42, %v908_v51  ;;  %v1310_v32 = vld [vmem:[%s2296_s4] ss:$0 sm:$0xff] }
 0x224   : > { %v1042_v19 = vadd.f32 %v1038_v43, %v977_v44  ;;  %v943_v20 = vadd.f32 %v939_v17, %v907_v29  ;;  %v1076_v43 = vmul.f32 %v1307_v38, %v2356_v13 }
 0x225   : > { %v1141_v23 = vadd.f32 %v1303_v39, %v954_v45 }
 0x227   : > { %1146 = vst.msk [vmem:[%s2194_s10 + $0x18] sm:$0xff] %vm1142_vm13, %v1141_v23  ;;  %v962_v18 = vpop.permute.xlu2 %961  ;;  %v960_v7 = vpop.permute.xlu0 %959 }
 0x228   : > { %v970_v49 = vsel %vm287_vm8, %v962_v18, 0.0  ;;  %v1025_v56 = vpop.permute.xlu1 %1024  ;;  %v969_v12 = vsel %vm287_vm8, %v960_v7, 0.0  ;;  %v2357_v7 = vld [vmem:[#allocation9_spill] sm:$0xff] }
 0x229   : > { %v976_v59 = vmul.f32 %v2176_v57, %v970_v49  ;;  %v1034_v11 = vsel %vm1634_vm7, %v1025_v56, 0.0  ;;  %v975_v40 = vmul.f32 %v2176_v57, %v969_v12  ;;  %v2358_v49 = vld [vmem:[#allocation5_spill] sm:$0xff] }
 0x22a   : > { %v1040_v3 = vmul.f32 %v1305_v55, %v1034_v11  ;;  %v1077_v56 = vmul.f32 %v1307_v38, %v2358_v49 }
 0x22b   : > { %v980_v53 = vadd.f32 %v976_v59, %v944_v24  ;;  %v979_v52 = vadd.f32 %v975_v40, %v943_v20  ;;  %v1075_v20 = vmul.f32 %v1307_v38, %v2357_v7 }
 0x22d   : > { %v1044_v36 = vadd.f32 %v1040_v3, %v979_v52 }
 0x22f   : > { %v1047_v48 = vpop.permute.xlu2 %1046  ;;  %v1023_v47 = vpop.permute.xlu0 %1022 }
 0x230   : > { %v1049_v50 = vpop.permute.xlu1 %1048  ;;  %v1033_v15 = vsel %vm1634_vm7, %v1023_v47, 0.0  ;;  %v1058_v9 = vsel %vm1770_vm11, %v1047_v48, 0.0 }
 0x231   : > { %v1039_v46 = vmul.f32 %v1305_v55, %v1033_v15  ;;  %v1064_v30 = vmul.f32 %v1306_v35, %v1058_v9  ;;  %v1059_v60 = vsel %vm1770_vm11, %v1049_v50, 0.0 }
 0x232   : > { %v1065_v23 = vmul.f32 %v1306_v35, %v1059_v60 }
 0x233   : > { %v1043_v39 = vadd.f32 %v1039_v46, %v978_v0  ;;  %v1068_v2 = vadd.f32 %v1064_v30, %v1042_v19 }
 0x235   : > { %v1078_v14 = vadd.f32 %v1074_v6, %v1068_v2  ;;  %v1069_v24 = vadd.f32 %v1065_v23, %v1043_v39 }
 0x237   : > { %v1051_v57 = vpop.permute.xlu2 %1050  ;;  %v1027_v41 = vpop.permute.xlu0 %1026 }
 0x238   : > { %v1083_v25 = vpop.permute.xlu1 %1082  ;;  %v1035_v21 = vsel %vm1634_vm7, %v1027_v41, 0.0  ;;  %v1060_v62 = vsel %vm1770_vm11, %v1051_v57, 0.0 }
 0x239   : > { %v1041_v31 = vmul.f32 %v1305_v55, %v1035_v21  ;;  %v1094_v44 = vsel %vm284_vm12, %v1083_v25, 0.0  ;;  %v1066_v16 = vmul.f32 %v1306_v35, %v1060_v62 }
 0x23a   : > { %v1100_v33 = vmul.f32 %v1308_v8, %v1094_v44 }
 0x23b   : > { %v1045_v5 = vadd.f32 %v1041_v31, %v980_v53  ;;  %v1070_v63 = vadd.f32 %v1066_v16, %v1044_v36  ;;  %v1079_v36 = vadd.f32 %v1075_v20, %v1069_v24 }
 0x23c   : > { %v1104_v28 = vadd.f32 %v1100_v33, %v1078_v14 }
 0x23d   : > { %v1080_v51 = vadd.f32 %v1076_v43, %v1070_v63 }
 0x23f   : > { %v1085_v55 = vpop.permute.xlu2 %1084  ;;  %v1053_v22 = vpop.permute.xlu0 %1052 }
 0x240   : > { %v1109_v34 = vpop.permute.xlu1 %1108  ;;  %v1061_v37 = vsel %vm1770_vm11, %v1053_v22, 0.0  ;;  %v1095_v26 = vsel %vm284_vm12, %v1085_v55, 0.0 }
 0x241   : > { %v1120_v1 = vsel %vm287_vm8, %v1109_v34, 0.0  ;;  %v1067_v10 = vmul.f32 %v1306_v35, %v1061_v37  ;;  %v1101_v53 = vmul.f32 %v1308_v8, %v1095_v26 }
 0x242   : > { %v1126_v4 = vmul.f32 %v1309_v61, %v1120_v1 }
 0x243   : > { %v1071_v59 = vadd.f32 %v1067_v10, %v1045_v5  ;;  %v1105_v39 = vadd.f32 %v1101_v53, %v1079_v36 }
 0x244   : > { %v1130_v54 = vadd.f32 %v1126_v4, %v1104_v28 }
 0x245   : > { %v1081_v48 = vadd.f32 %v1077_v56, %v1071_v59 }
 0x246   : > { %v1151_v0 = vadd.f32 %v1310_v32, %v1130_v54 }
 0x247   : > { %v1089_v45 = vpop.permute.xlu2 %1088  ;;  %v1087_v17 = vpop.permute.xlu0 %1086 }
 0x248   : > { %1155 = vst.msk [vmem:[%s2262_s25] sm:$0xff] %vm1142_vm13, %v1151_v0  ;;  %v1113_v19 = vpop.permute.xlu1 %1112  ;;  %v1096_v42 = vsel %vm284_vm12, %v1087_v17, 0.0  ;;  %v1097_v12 = vsel %vm284_vm12, %v1089_v45, 0.0 }
 0x249   : > { %v1122_v29 = vsel %vm287_vm8, %v1113_v19, 0.0  ;;  %v1102_v18 = vmul.f32 %v1308_v8, %v1096_v42  ;;  %v1103_v3 = vmul.f32 %v1308_v8, %v1097_v12 }
 0x24a   : > { %v1128_v11 = vmul.f32 %v1309_v61, %v1122_v29 }
 0x24b   : > { %v1106_v40 = vadd.f32 %v1102_v18, %v1080_v51  ;;  %v1107_v35 = vadd.f32 %v1103_v3, %v1081_v48 }
 0x24d   : > { %v1132_v52 = vadd.f32 %v1128_v11, %v1106_v40 }
 0x24f   : > { %v1115_v47 = vpop.permute.xlu2 %1114  ;;  %v1111_v50 = vpop.permute.xlu0 %1110  ;;  %v1153_v25 = vadd.f32 %v1310_v32, %v1132_v52 }
 0x250   : > { %v1123_v15 = vsel %vm287_vm8, %v1115_v47, 0.0  ;;  %v1121_v46 = vsel %vm287_vm8, %v1111_v50, 0.0 }
 0x251   : > { %v1129_v9 = vmul.f32 %v1309_v61, %v1123_v15  ;;  %v1127_v57 = vmul.f32 %v1309_v61, %v1121_v46  ;;  %1157 = vst.msk [vmem:[%s2262_s25 + $0x10] sm:$0xff] %vm1142_vm13, %v1153_v25 }
 0x253   : > { %v1133_v41 = vadd.f32 %v1129_v9, %v1107_v35  ;;  %v1131_v30 = vadd.f32 %v1127_v57, %v1105_v39 }
 0x255   : > { %v1152_v38 = vadd.f32 %v1310_v32, %v1131_v30  ;;  %v1154_v21 = vadd.f32 %v1310_v32, %v1133_v41 }
 0x257   : > { %1156 = vst.msk [vmem:[%s2262_s25 + $0x8] sm:$0xff] %vm1142_vm13, %v1152_v38 }
 0x258   : > { %1158 = vst.msk [vmem:[%s2262_s25 + $0x18] sm:$0xff] %vm1142_vm13, %v1154_v21 }
 0x259 PF: > { %s17_s21 = sadd.s32 1, %s1320_s21  }
 0x25a   : > { %p14_p4 = scmp.ge.s32.totalorder %s17_s21, 4  }
 0x25c   :  { %16 = sbr.rel (!%p14_p4) target bundleno = 1 (0x1), region = 82 }

// kernel: med_adapter_forward.7
= control target key start
LH: loop header
LB: loop body
LE: loop exit
PB: predicated region body
PF: predicated region fallthrough
CT: control target
= control target key end

     0   :  { %s2586_s30 = smov 0   ;;  %s3800_s0 = inlined_call_operand.vmem [shape: f32[512,8], index: 0, kind: input, shape index: {}]   ;;  %s3801_s1 = inlined_call_operand.vmem [shape: f32[512,8], index: 1, kind: input, shape index: {}]   ;;  %s3802_s2 = inlined_call_operand.vmem [shape: f32[512,8], index: 2, kind: input, shape index: {}]   ;;  %s3803_s3 = inlined_call_operand.vmem [shape: f32[512,8], index: 3, kind: input, shape index: {}]   ;;  %s3804_s4 = inlined_call_operand.vmem [shape: f32[512,48], index: 4, kind: input, shape index: {}]   ;;  %s3805_s5 = inlined_call_operand.vmem [shape: f32[4,8], index: 5, kind: input, shape index: {}]   ;;  %s3806_s6 = inlined_call_operand.vmem [shape: f32[8,48], index: 6, kind: input, shape index: {}]   ;;  %s3807_s7 = inlined_call_operand.vmem [shape: f32[8,48], index: 7, kind: input, shape index: {}]   ;;  %s3808_s8 = inlined_call_operand.vmem [shape: f32[1,48], index: 8, kind: input, shape index: {}]   ;;  %s3809_s9 = inlined_call_operand.vmem [shape: f32[512,48], index: 9, kind: output, shape index: {}]  }
   0x1 LB: > { %s2303_s10 = sadd.s32 4294967295, %s2533_s30   ;;  %p2307_p0 = scmp.ge.s32.totalorder %s2533_s30, 1  ;;  %s2533_s30 = sphi %s2586_s30, %s19_s30  }
   0x2   : > { %p332_p1 = scmp.lt.s32.totalorder %s2533_s30, 3 }
   0x4   : > { %p333_p2 = pnand %p2307_p0, %p332_p1 }
   0x5   : > { %s2308_s15 = sshll.u32 (!%p333_p2), %s2303_s10, 5 }
   0x6   : > { %336 = sbr.rel (%p333_p2) target bundleno = 414 (0x19e), region = 56  ;;  %p389_p3 = scmp.lt.s32.totalorder (!%p333_p2), %s2308_s15, 63 }
   0xb   : > { %v814_v0 = vld [vmem:[%s3807_s7] sm:$0xff]  ;;  %s3811_s15 = smov (!%p389_p3, %s2308_s15), 63  ;;  %vm815_vm0 = vcmask 64512   ;;  %vm2166_vm5 = vcmask 392192  }
   0xc   : > { %v813_v1 = vld [vmem:[%s3806_s6] sm:$0xff]  ;;  %927 = vmatpush.msra.mxu0 %v814_v0  ;;  %2386 = vmatpush.msra.mxu2 %v814_v0  ;;  %s2607_s18 = sshll.u32 %s3811_s15, 3 }
   0xd   : > { %v424_v2 = vld [vmem:[%s3805_s5] sm:$0xf]  ;;  %1136 = vmatpush.msra.mxu1 %v813_v1  ;;  %2387 = vmatpush.msra.mxu3 %v813_v1  ;;  %s2613_s21 = scalar_lea.vmem %s3800_s0, %s2607_s18  ;;  %s2619_s24 = scalar_lea.vmem %s3801_s1, %s2607_s18 }
   0xe   : > { %v2603_v3 = vperm.slane %v424_v2, 0  ;;  %v2605_v4 = vperm.slane %v424_v2, 2  ;;  %v2621_v5 = vperm.slane %v424_v2, 1  ;;  %v2623_v6 = vperm.slane %v424_v2, 3  ;;  %v425_v7 = vld [vmem:[%s2613_s21] sm:$0xff]  ;;  %s2632_s27 = scalar_lea.vmem %s3803_s3, %s2607_s18  ;;  %v426_v17 = vld [vmem:[%s2613_s21 + $0x8] sm:$0xff]  ;;  %s2646_s10 = scalar_lea.vmem %s3802_s2, %s2607_s18 }
   0xf   : > { %v555_v8 = vld [vmem:[%s2619_s24] sm:$0xff]  ;;  %v556_v21 = vld [vmem:[%s2619_s24 + $0x8] sm:$0xff]  ;;  %v427_v32 = vld [vmem:[%s2613_s21 + $0x10] sm:$0xff]  ;;  %s3053_s15 = scalar_lea.vmem %s3804_s4, %s2607_s18  ;;  %s3073_s19 = scalar_lea.vmem %s3809_s9, %s2607_s18 }
  0x10   : > { %v441_v9 = vld [vmem:[%s2613_s21 + $0x80] sm:$0xff]  ;;  %v458_v10 = vmul.f32 %v2603_v3, %v425_v7  ;;  %v588_v11 = vmul.f32 %v2605_v4, %v555_v8  ;;  %v442_v22 = vld [vmem:[%s2613_s21 + $0x88] sm:$0xff]  ;;  %v459_v24 = vmul.f32 %v2603_v3, %v426_v17  ;;  %v589_v25 = vmul.f32 %v2605_v4, %v556_v21  ;;  %v557_v33 = vld [vmem:[%s2619_s24 + $0x10] sm:$0xff] }
  0x11   : > { %v474_v12 = vmul.f32 %v2603_v3, %v441_v9  ;;  %v571_v13 = vld [vmem:[%s2619_s24 + $0x80] sm:$0xff]  ;;  %v475_v26 = vmul.f32 %v2603_v3, %v442_v22  ;;  %v572_v27 = vld [vmem:[%s2619_s24 + $0x88] sm:$0xff]  ;;  %v460_v42 = vmul.f32 %v2603_v3, %v427_v32  ;;  %v590_v43 = vmul.f32 %v2605_v4, %v557_v33  ;;  %v443_v44 = vld [vmem:[%s2613_s21 + $0x90] sm:$0xff] }
  0x12   : > { %v604_v14 = vmul.f32 %v2605_v4, %v571_v13  ;;  %v781_v15 = vld [vmem:[%s2632_s27] sm:$0xff]  ;;  %v491_v18 = vadd.f32 %v2621_v5, %v458_v10  ;;  %v621_v19 = vadd.f32 %v2623_v6, %v588_v11  ;;  %v605_v31 = vmul.f32 %v2605_v4, %v572_v27  ;;  %v573_v45 = vld [vmem:[%s2619_s24 + $0x90] sm:$0xff]  ;;  %v782_v50 = vld [vmem:[%s2632_s27 + $0x8] sm:$0xff] }
  0x13   : > { %v797_v16 = vld [vmem:[%s2632_s27 + $0x80] sm:$0xff]  ;;  %v507_v20 = vadd.f32 %v2621_v5, %v474_v12  ;;  %2352 = vmatmul.msk.f32.vlgmr.msra.gmra.mxu1 %vm815_vm0, %v781_v15  ;;  %v492_v36 = vadd.f32 %v2621_v5, %v459_v24  ;;  %v622_v37 = vadd.f32 %v2623_v6, %v589_v25  ;;  %v508_v38 = vadd.f32 %v2621_v5, %v475_v26  ;;  %v798_v53 = vld [vmem:[%s2632_s27 + $0x88] sm:$0xff]  ;;  %v428_v1 = vld [vmem:[%s2613_s21 + $0x18] sm:$0xff] }
  0x14   : > { %2368 = vmatmul.msk.f32.vlgmr.msra.gmra.mxu3 %vm815_vm0, %v797_v16  ;;  %v637_v23 = vadd.f32 %v2623_v6, %v604_v14  ;;  %v523_v28 = vmax.f32 %v491_v18, 0.0  ;;  %v653_v29 = vmax.f32 %v621_v19, 0.0  ;;  %v717_v34 = vld [vmem:[%s2646_s10] sm:$0xff]  ;;  %v638_v41 = vadd.f32 %v2623_v6, %v605_v31  ;;  %v718_v60 = vld [vmem:[%s2646_s10 + $0x8] sm:$0xff]  ;;  %v558_v2 = vld [vmem:[%s2619_s24 + $0x18] sm:$0xff] }
  0x15   : > { %v539_v30 = vmax.f32 %v507_v20, 0.0  ;;  %v733_v40 = vld [vmem:[%s2646_s10 + $0x80] sm:$0xff]  ;;  %v524_v47 = vmax.f32 %v492_v36, 0.0  ;;  %v654_v48 = vmax.f32 %v622_v37, 0.0  ;;  %v540_v49 = vmax.f32 %v508_v38, 0.0  ;;  %v734_v62 = vld [vmem:[%s2646_s10 + $0x88] sm:$0xff] }
  0x16   : > { %v669_v35 = vmax.f32 %v637_v23, 0.0  ;;  %v685_v39 = vadd.f32 %v653_v29, %v523_v28  ;;  %v670_v52 = vmax.f32 %v638_v41, 0.0  ;;  %v493_v54 = vadd.f32 %v2621_v5, %v460_v42  ;;  %v444_v7 = vld [vmem:[%s2613_s21 + $0x98] sm:$0xff]  ;;  %v783_v17 = vld [vmem:[%s2632_s27 + $0x10] sm:$0xff]  ;;  %v429_v25 = vld [vmem:[%s2613_s21 + $0x20] sm:$0xff] }
  0x17   : > { %v623_v56 = vadd.f32 %v2623_v6, %v590_v43  ;;  %v476_v57 = vmul.f32 %v2603_v3, %v443_v44  ;;  %v606_v58 = vmul.f32 %v2605_v4, %v573_v45  ;;  %v686_v59 = vadd.f32 %v654_v48, %v524_v47  ;;  %v574_v8 = vld [vmem:[%s2619_s24 + $0x98] sm:$0xff]  ;;  %v799_v20 = vld [vmem:[%s2632_s27 + $0x90] sm:$0xff]  ;;  %v559_v26 = vld [vmem:[%s2619_s24 + $0x20] sm:$0xff] }
  0x18   : > { %v701_v46 = vadd.f32 %v669_v35, %v539_v30  ;;  %v749_v51 = vadd.f32 %v717_v34, %v685_v39  ;;  %v702_v61 = vadd.f32 %v670_v52, %v540_v49  ;;  %v525_v9 = vmax.f32 %v493_v54, 0.0  ;;  %v719_v22 = vld [vmem:[%s2646_s10 + $0x10] sm:$0xff]  ;;  %v445_v30 = vld [vmem:[%s2613_s21 + $0xa0] sm:$0xff]  ;;  %v784_v43 = vld [vmem:[%s2632_s27 + $0x18] sm:$0xff] }
  0x19   : > { %v509_v63 = vadd.f32 %v2621_v5, %v476_v57  ;;  %v639_v0 = vadd.f32 %v2623_v6, %v606_v58  ;;  %v655_v10 = vmax.f32 %v623_v56, 0.0  ;;  %v750_v11 = vadd.f32 %v718_v60, %v686_v59  ;;  %v575_v31 = vld [vmem:[%s2619_s24 + $0xa0] sm:$0xff]  ;;  %v735_v32 = vld [vmem:[%s2646_s10 + $0x90] sm:$0xff]  ;;  %v800_v44 = vld [vmem:[%s2632_s27 + $0x98] sm:$0xff] }
  0x1a   : > { %v765_v55 = vadd.f32 %v733_v40, %v701_v46  ;;  %2320 = vmatmul.msk.f32.vlgmr.msra.gmra.mxu0 %vm815_vm0, %v749_v51  ;;  %v766_v12 = vadd.f32 %v734_v62, %v702_v61  ;;  %v461_v13 = vmul.f32 %v2603_v3, %v428_v1  ;;  %v591_v14 = vmul.f32 %v2605_v4, %v558_v2  ;;  %v720_v51 = vld [vmem:[%s2646_s10 + $0x18] sm:$0xff]  ;;  %v576_v56 = vld [vmem:[%s2619_s24 + $0xa8] sm:$0xff]  ;;  %v785_v1 = vld [vmem:[%s2632_s27 + $0x20] sm:$0xff] }
  0x1b   : > { %2353 = vmatmul.msk.f32.gmra.mxu1 %vm815_vm0, %v782_v50  ;;  %v541_v15 = vmax.f32 %v509_v63, 0.0  ;;  %v671_v16 = vmax.f32 %v639_v0, 0.0  ;;  %v477_v18 = vmul.f32 %v2603_v3, %v444_v7  ;;  %v607_v19 = vmul.f32 %v2605_v4, %v574_v8  ;;  %v430_v50 = vld [vmem:[%s2613_s21 + $0x28] sm:$0xff]  ;;  %v736_v54 = vld [vmem:[%s2646_s10 + $0x98] sm:$0xff]  ;;  %v801_v8 = vld [vmem:[%s2632_s27 + $0xa0] sm:$0xff] }
  0x1c   : > { %2336 = vmatmul.msk.f32.vlgmr.msra.gmra.mxu2 %vm815_vm0, %v765_v55  ;;  %2369 = vmatmul.msk.f32.gmra.mxu3 %vm815_vm0, %v798_v53  ;;  %v687_v21 = vadd.f32 %v655_v10, %v525_v9  ;;  %v494_v23 = vadd.f32 %v2621_v5, %v461_v13  ;;  %v624_v24 = vadd.f32 %v2623_v6, %v591_v14  ;;  %v560_v53 = vld [vmem:[%s2619_s24 + $0x28] sm:$0xff]  ;;  %v721_v10 = vld [vmem:[%s2646_s10 + $0x20] sm:$0xff]  ;;  %v431_v14 = vld [vmem:[%s2613_s21 + $0x30] sm:$0xff] }
  0x1d   : > { %v703_v27 = vadd.f32 %v671_v16, %v541_v15  ;;  %v510_v28 = vadd.f32 %v2621_v5, %v477_v18  ;;  %v640_v29 = vadd.f32 %v2623_v6, %v607_v19  ;;  %v462_v34 = vmul.f32 %v2603_v3, %v429_v25  ;;  %v446_v55 = vld [vmem:[%s2613_s21 + $0xa8] sm:$0xff]  ;;  %v737_v15 = vld [vmem:[%s2646_s10 + $0xa0] sm:$0xff]  ;;  %v561_v18 = vld [vmem:[%s2619_s24 + $0x30] sm:$0xff] }
  0x1e   : > { %v751_v33 = vadd.f32 %v719_v22, %v687_v21  ;;  %v592_v35 = vmul.f32 %v2605_v4, %v559_v26  ;;  %v526_v36 = vmax.f32 %v494_v23, 0.0  ;;  %v656_v37 = vmax.f32 %v624_v24, 0.0  ;;  %v447_v19 = vld [vmem:[%s2613_s21 + $0xb0] sm:$0xff] }
  0x1f   : > { %v478_v38 = vmul.f32 %v2603_v3, %v445_v30  ;;  %v608_v39 = vmul.f32 %v2605_v4, %v575_v31  ;;  %v767_v40 = vadd.f32 %v735_v32, %v703_v27  ;;  %v542_v41 = vmax.f32 %v510_v28, 0.0  ;;  %v802_v32 = vld [vmem:[%s2632_s27 + $0xa8] sm:$0xff] }
  0x20   : > { %v672_v42 = vmax.f32 %v640_v29, 0.0  ;;  %v495_v45 = vadd.f32 %v2621_v5, %v462_v34  ;;  %v625_v46 = vadd.f32 %v2623_v6, %v592_v35  ;;  %v688_v47 = vadd.f32 %v656_v37, %v526_v36  ;;  %v786_v29 = vld [vmem:[%s2632_s27 + $0x28] sm:$0xff]  ;;  %v562_v37 = vld [vmem:[%s2619_s24 + $0x38] sm:$0xff] }
  0x21   : > { %v511_v48 = vadd.f32 %v2621_v5, %v478_v38  ;;  %v641_v49 = vadd.f32 %v2623_v6, %v608_v39  ;;  %v463_v59 = vmul.f32 %v2603_v3, %v430_v50  ;;  %v593_v63 = vmul.f32 %v2605_v4, %v560_v53  ;;  %v448_v38 = vld [vmem:[%s2613_s21 + $0xb8] sm:$0xff] }
  0x22   : > { %2321 = vmatmul.msk.f32.gmra.mxu0 %vm815_vm0, %v750_v11  ;;  %v704_v52 = vadd.f32 %v672_v42, %v542_v41  ;;  %v527_v57 = vmax.f32 %v495_v45, 0.0  ;;  %v657_v58 = vmax.f32 %v625_v46, 0.0  ;;  %v752_v60 = vadd.f32 %v720_v51, %v688_v47  ;;  %v578_v39 = vld [vmem:[%s2619_s24 + $0xb8] sm:$0xff] }
  0x23   : > { %2354 = vmatmul.msk.f32.gmra.mxu1 %vm815_vm0, %v783_v17  ;;  %v543_v61 = vmax.f32 %v511_v48, 0.0  ;;  %v673_v62 = vmax.f32 %v641_v49, 0.0  ;;  %v479_v2 = vmul.f32 %v2603_v3, %v446_v55  ;;  %v609_v7 = vmul.f32 %v2605_v4, %v576_v56  ;;  %v787_v55 = vld [vmem:[%s2632_s27 + $0x30] sm:$0xff] }
  0x24   : > { %2337 = vmatmul.msk.f32.gmra.mxu2 %vm815_vm0, %v766_v12  ;;  %2370 = vmatmul.msk.f32.gmra.mxu3 %vm815_vm0, %v799_v20  ;;  %v768_v0 = vadd.f32 %v736_v54, %v704_v52  ;;  %v689_v9 = vadd.f32 %v657_v58, %v527_v57  ;;  %v496_v12 = vadd.f32 %v2621_v5, %v463_v59  ;;  %v577_v20 = vld [vmem:[%s2619_s24 + $0xb0] sm:$0xff] }
  0x25   : > { %v705_v11 = vadd.f32 %v673_v62, %v543_v61  ;;  %v626_v13 = vadd.f32 %v2623_v6, %v593_v63  ;;  %v512_v16 = vadd.f32 %v2621_v5, %v479_v2  ;;  %v642_v17 = vadd.f32 %v2623_v6, %v609_v7  ;;  %v803_v56 = vld [vmem:[%s2632_s27 + $0xb0] sm:$0xff]  ;;  %v449_v7 = vld [vmem:[%s2613_s21 + $0xc0] sm:$0xff] }
  0x26   : > { %v753_v21 = vadd.f32 %v721_v10, %v689_v9  ;;  %v464_v22 = vmul.f32 %v2603_v3, %v431_v14  ;;  %v528_v24 = vmax.f32 %v496_v12, 0.0  ;;  %v594_v26 = vmul.f32 %v2605_v4, %v561_v18  ;;  %v723_v62 = vld [vmem:[%s2646_s10 + $0x30] sm:$0xff] }
  0x27   : > { %v769_v23 = vadd.f32 %v737_v15, %v705_v11  ;;  %v658_v25 = vmax.f32 %v626_v13, 0.0  ;;  %v544_v27 = vmax.f32 %v512_v16, 0.0  ;;  %v674_v28 = vmax.f32 %v642_v17, 0.0  ;;  %v739_v2 = vld [vmem:[%s2646_s10 + $0xb0] sm:$0xff]  ;;  %v788_v17 = vld [vmem:[%s2632_s27 + $0x38] sm:$0xff] }
  0x28   : > { %v480_v30 = vmul.f32 %v2603_v3, %v447_v19  ;;  %v610_v31 = vmul.f32 %v2605_v4, %v577_v20  ;;  %v497_v35 = vadd.f32 %v2621_v5, %v464_v22  ;;  %v627_v36 = vadd.f32 %v2623_v6, %v594_v26  ;;  %v804_v20 = vld [vmem:[%s2632_s27 + $0xb8] sm:$0xff] }
  0x29   : > { %v690_v34 = vadd.f32 %v658_v25, %v528_v24  ;;  %v706_v41 = vadd.f32 %v674_v28, %v544_v27  ;;  %v595_v46 = vmul.f32 %v2605_v4, %v562_v37  ;;  %v481_v47 = vmul.f32 %v2603_v3, %v448_v38  ;;  %v740_v24 = vld [vmem:[%s2646_s10 + $0xb8] sm:$0xff] }
  0x2a   : > { %2322 = vmatmul.msk.f32.gmra.mxu0 %vm815_vm0, %v751_v33  ;;  %v432_v33 = vld [vmem:[%s2613_s21 + $0x38] sm:$0xff]  ;;  %v513_v42 = vadd.f32 %v2621_v5, %v480_v30  ;;  %v611_v48 = vmul.f32 %v2605_v4, %v578_v39  ;;  %v529_v50 = vmax.f32 %v497_v35, 0.0  ;;  %v659_v51 = vmax.f32 %v627_v36, 0.0  ;;  %v564_v30 = vld [vmem:[%s2619_s24 + $0x48] sm:$0xff] }
  0x2b   : > { %2355 = vmatmul.msk.f32.gmra.mxu1 %vm815_vm0, %v784_v43  ;;  %v643_v43 = vadd.f32 %v2623_v6, %v610_v31  ;;  %v465_v45 = vmul.f32 %v2603_v3, %v432_v33  ;;  %v628_v58 = vadd.f32 %v2623_v6, %v595_v46  ;;  %v514_v59 = vadd.f32 %v2621_v5, %v481_v47  ;;  %v450_v31 = vld [vmem:[%s2613_s21 + $0xc8] sm:$0xff] }
  0x2c   : > { %2338 = vmatmul.msk.f32.gmra.mxu2 %vm815_vm0, %v767_v40  ;;  %2371 = vmatmul.msk.f32.gmra.mxu3 %vm815_vm0, %v800_v44  ;;  %v722_v40 = vld [vmem:[%s2646_s10 + $0x28] sm:$0xff]  ;;  %v545_v53 = vmax.f32 %v513_v42, 0.0  ;;  %v691_v61 = vadd.f32 %v659_v51, %v529_v50  ;;  %v482_v18 = vmul.f32 %v2603_v3, %v449_v7  ;;  %v597_v38 = vmul.f32 %v2605_v4, %v564_v30  ;;  %v451_v50 = vld [vmem:[%s2613_s21 + $0xd0] sm:$0xff] }
  0x2d   : > { %v738_v44 = vld [vmem:[%s2646_s10 + $0xa8] sm:$0xff]  ;;  %v754_v49 = vadd.f32 %v722_v40, %v690_v34  ;;  %v675_v54 = vmax.f32 %v643_v43, 0.0  ;;  %v498_v57 = vadd.f32 %v2621_v5, %v465_v45  ;;  %v660_v10 = vmax.f32 %v628_v58, 0.0  ;;  %v435_v45 = vld [vmem:[%s2613_s21 + $0x50] sm:$0xff] }
  0x2e   : > { %v770_v52 = vadd.f32 %v738_v44, %v706_v41  ;;  %v546_v11 = vmax.f32 %v514_v59, 0.0  ;;  %v755_v13 = vadd.f32 %v723_v62, %v691_v61  ;;  %v515_v27 = vadd.f32 %v2621_v5, %v482_v18  ;;  %v789_v41 = vld [vmem:[%s2632_s27 + $0x40] sm:$0xff]  ;;  %v581_v51 = vld [vmem:[%s2619_s24 + $0xd0] sm:$0xff]  ;;  %v790_v7 = vld [vmem:[%s2632_s27 + $0x48] sm:$0xff] }
  0x2f   : > { %v707_v63 = vadd.f32 %v675_v54, %v545_v53  ;;  %v530_v9 = vmax.f32 %v498_v57, 0.0  ;;  %v483_v42 = vmul.f32 %v2603_v3, %v450_v31  ;;  %v805_v44 = vld [vmem:[%s2632_s27 + $0xc0] sm:$0xff]  ;;  %v468_v57 = vmul.f32 %v2603_v3, %v435_v45  ;;  %v742_v18 = vld [vmem:[%s2646_s10 + $0xc8] sm:$0xff] }
  0x30   : > { %v547_v39 = vmax.f32 %v515_v27, 0.0  ;;  %v484_v59 = vmul.f32 %v2603_v3, %v451_v50 }
  0x31   : > { %v771_v16 = vadd.f32 %v739_v2, %v707_v63  ;;  %v516_v54 = vadd.f32 %v2621_v5, %v483_v42  ;;  %v567_v42 = vld [vmem:[%s2619_s24 + $0x60] sm:$0xff] }
  0x32   : > { %2323 = vmatmul.msk.f32.gmra.mxu0 %vm815_vm0, %v752_v60  ;;  %v644_v60 = vadd.f32 %v2623_v6, %v611_v48  ;;  %v630_v48 = vadd.f32 %v2623_v6, %v597_v38  ;;  %v600_v50 = vmul.f32 %v2605_v4, %v567_v42 }
  0x33   : > { %2356 = vmatmul.msk.f32.gmra.mxu1 %vm815_vm0, %v785_v1  ;;  %v563_v1 = vld [vmem:[%s2619_s24 + $0x40] sm:$0xff] }
  0x34   : > { %2339 = vmatmul.msk.f32.gmra.mxu2 %vm815_vm0, %v768_v0  ;;  %2372 = vmatmul.msk.f32.gmra.mxu3 %vm815_vm0, %v801_v8  ;;  %v433_v0 = vld [vmem:[%s2613_s21 + $0x40] sm:$0xff]  ;;  %v676_v12 = vmax.f32 %v644_v60, 0.0  ;;  %v596_v15 = vmul.f32 %v2605_v4, %v563_v1  ;;  %v614_v60 = vmul.f32 %v2605_v4, %v581_v51  ;;  %v662_v63 = vmax.f32 %v630_v48, 0.0 }
  0x35   : > { %v579_v8 = vld [vmem:[%s2619_s24 + $0xc0] sm:$0xff]  ;;  %v466_v14 = vmul.f32 %v2603_v3, %v433_v0  ;;  %v548_v1 = vmax.f32 %v516_v54, 0.0 }
  0x36   : > { %v612_v19 = vmul.f32 %v2605_v4, %v579_v8  ;;  %v708_v22 = vadd.f32 %v676_v12, %v546_v11  ;;  %v629_v26 = vadd.f32 %v2623_v6, %v596_v15  ;;  %v806_v8 = vld [vmem:[%s2632_s27 + $0xc8] sm:$0xff]  ;;  %v517_v11 = vadd.f32 %v2621_v5, %v484_v59 }
  0x37   : > { %v499_v25 = vadd.f32 %v2621_v5, %v466_v14  ;;  %v647_v12 = vadd.f32 %v2623_v6, %v614_v60  ;;  %v726_v14 = vld [vmem:[%s2646_s10 + $0x48] sm:$0xff]  ;;  %v633_v60 = vadd.f32 %v2623_v6, %v600_v50 }
  0x38   : > { %v645_v28 = vadd.f32 %v2623_v6, %v612_v19  ;;  %v772_v34 = vadd.f32 %v740_v24, %v708_v22  ;;  %v661_v36 = vmax.f32 %v629_v26, 0.0  ;;  %v452_v19 = vld [vmem:[%s2613_s21 + $0xd8] sm:$0xff] }
  0x39   : > { %v531_v35 = vmax.f32 %v499_v25, 0.0  ;;  %v679_v24 = vmax.f32 %v647_v12, 0.0  ;;  %v485_v30 = vmul.f32 %v2603_v3, %v452_v19  ;;  %v793_v19 = vld [vmem:[%s2632_s27 + $0x60] sm:$0xff] }
  0x3a   : > { %2324 = vmatmul.msk.f32.gmra.mxu0 %vm815_vm0, %v753_v21  ;;  %v692_v21 = vadd.f32 %v660_v10, %v530_v9  ;;  %v677_v40 = vmax.f32 %v645_v28, 0.0  ;;  %v501_v9 = vadd.f32 %v2621_v5, %v468_v57  ;;  %v438_v57 = vld [vmem:[%s2613_s21 + $0x68] sm:$0xff] }
  0x3b   : > { %2357 = vmatmul.msk.f32.gmra.mxu1 %vm815_vm0, %v786_v29  ;;  %v434_v29 = vld [vmem:[%s2613_s21 + $0x48] sm:$0xff]  ;;  %v693_v46 = vadd.f32 %v661_v36, %v531_v35  ;;  %v727_v35 = vld [vmem:[%s2646_s10 + $0x50] sm:$0xff] }
  0x3c   : > { %2340 = vmatmul.msk.f32.gmra.mxu2 %vm815_vm0, %v769_v23  ;;  %2373 = vmatmul.msk.f32.gmra.mxu3 %vm815_vm0, %v802_v32  ;;  %v724_v23 = vld [vmem:[%s2646_s10 + $0x38] sm:$0xff]  ;;  %v580_v32 = vld [vmem:[%s2619_s24 + $0xc8] sm:$0xff]  ;;  %v467_v37 = vmul.f32 %v2603_v3, %v434_v29  ;;  %v709_v53 = vadd.f32 %v677_v40, %v547_v39  ;;  %v791_v29 = vld [vmem:[%s2632_s27 + $0x50] sm:$0xff]  ;;  %v518_v39 = vadd.f32 %v2621_v5, %v485_v30 }
  0x3d   : > { %v756_v33 = vadd.f32 %v724_v23, %v692_v21  ;;  %v613_v43 = vmul.f32 %v2605_v4, %v580_v32  ;;  %v533_v21 = vmax.f32 %v501_v9, 0.0  ;;  %v549_v23 = vmax.f32 %v517_v11, 0.0  ;;  %v807_v32 = vld [vmem:[%s2632_s27 + $0xd0] sm:$0xff]  ;;  %v745_v30 = vld [vmem:[%s2646_s10 + $0xe0] sm:$0xff] }
  0x3e   : > { %v500_v47 = vadd.f32 %v2621_v5, %v467_v37  ;;  %v743_v36 = vld [vmem:[%s2646_s10 + $0xd0] sm:$0xff]  ;;  %v550_v51 = vmax.f32 %v518_v39, 0.0  ;;  %v471_v9 = vmul.f32 %v2603_v3, %v438_v57 }
  0x40   : > { %v532_v62 = vmax.f32 %v500_v47, 0.0 }
  0x42   : > { %2325 = vmatmul.msk.f32.gmra.mxu0 %vm815_vm0, %v754_v49  ;;  %v565_v49 = vld [vmem:[%s2619_s24 + $0x50] sm:$0xff] }
  0x43   : > { %2358 = vmatmul.msk.f32.gmra.mxu1 %vm815_vm0, %v787_v55  ;;  %v646_v55 = vadd.f32 %v2623_v6, %v613_v43  ;;  %v598_v58 = vmul.f32 %v2605_v4, %v565_v49  ;;  %v453_v43 = vld [vmem:[%s2613_s21 + $0xe0] sm:$0xff] }
  0x44   : > { %2341 = vmatmul.msk.f32.gmra.mxu2 %vm815_vm0, %v770_v52  ;;  %2374 = vmatmul.msk.f32.gmra.mxu3 %vm815_vm0, %v803_v56  ;;  %v725_v52 = vld [vmem:[%s2646_s10 + $0x40] sm:$0xff]  ;;  %v486_v54 = vmul.f32 %v2603_v3, %v453_v43 }
  0x45   : > { %v741_v56 = vld [vmem:[%s2646_s10 + $0xc0] sm:$0xff]  ;;  %v757_v61 = vadd.f32 %v725_v52, %v693_v46  ;;  %v678_v2 = vmax.f32 %v646_v55, 0.0  ;;  %v631_v10 = vadd.f32 %v2623_v6, %v598_v58 }
  0x46   : > { %v773_v0 = vadd.f32 %v741_v56, %v709_v53  ;;  %v792_v53 = vld [vmem:[%s2632_s27 + $0x58] sm:$0xff] }
  0x47   : > { %v710_v15 = vadd.f32 %v678_v2, %v548_v1  ;;  %v663_v22 = vmax.f32 %v631_v10, 0.0  ;;  %v808_v56 = vld [vmem:[%s2632_s27 + $0xd8] sm:$0xff]  ;;  %v519_v2 = vadd.f32 %v2621_v5, %v486_v54 }
  0x48   : > { %v570_v54 = vld [vmem:[%s2619_s24 + $0x78] sm:$0xff] }
  0x49   : > { %v774_v28 = vadd.f32 %v742_v18, %v710_v15  ;;  %v665_v15 = vmax.f32 %v633_v60, 0.0 }
  0x4a   : > { %2326 = vmatmul.msk.f32.gmra.mxu0 %vm815_vm0, %v755_v13  ;;  %v694_v13 = vadd.f32 %v662_v63, %v532_v62  ;;  %v454_v62 = vld [vmem:[%s2613_s21 + $0xe8] sm:$0xff] }
  0x4b   : > { %2359 = vmatmul.msk.f32.gmra.mxu1 %vm815_vm0, %v788_v17  ;;  %v566_v17 = vld [vmem:[%s2619_s24 + $0x58] sm:$0xff]  ;;  %v584_v63 = vld [vmem:[%s2619_s24 + $0xe8] sm:$0xff]  ;;  %v487_v11 = vmul.f32 %v2603_v3, %v454_v62  ;;  %v603_v62 = vmul.f32 %v2605_v4, %v570_v54 }
  0x4c   : > { %2342 = vmatmul.msk.f32.gmra.mxu2 %vm815_vm0, %v771_v16  ;;  %2375 = vmatmul.msk.f32.gmra.mxu3 %vm815_vm0, %v804_v20  ;;  %v436_v16 = vld [vmem:[%s2613_s21 + $0x58] sm:$0xff]  ;;  %v758_v25 = vadd.f32 %v726_v14, %v694_v13  ;;  %v599_v27 = vmul.f32 %v2605_v4, %v566_v17  ;;  %v617_v12 = vmul.f32 %v2605_v4, %v584_v63  ;;  %v551_v17 = vmax.f32 %v519_v2, 0.0 }
  0x4d   : > { %v582_v20 = vld [vmem:[%s2619_s24 + $0xd8] sm:$0xff]  ;;  %v469_v26 = vmul.f32 %v2603_v3, %v436_v16 }
  0x4e   : > { %v615_v31 = vmul.f32 %v2605_v4, %v582_v20  ;;  %v632_v38 = vadd.f32 %v2623_v6, %v599_v27  ;;  %v809_v20 = vld [vmem:[%s2632_s27 + $0xe0] sm:$0xff] }
  0x4f   : > { %v502_v37 = vadd.f32 %v2621_v5, %v469_v26  ;;  %v729_v26 = vld [vmem:[%s2646_s10 + $0x60] sm:$0xff] }
  0x50   : > { %v648_v40 = vadd.f32 %v2623_v6, %v615_v31  ;;  %v664_v48 = vmax.f32 %v632_v38, 0.0  ;;  %v455_v31 = vld [vmem:[%s2613_s21 + $0xf0] sm:$0xff] }
  0x51   : > { %v534_v47 = vmax.f32 %v502_v37, 0.0  ;;  %v488_v42 = vmul.f32 %v2603_v3, %v455_v31 }
  0x52   : > { %2327 = vmatmul.msk.f32.gmra.mxu0 %vm815_vm0, %v756_v33  ;;  %v695_v33 = vadd.f32 %v663_v22, %v533_v21  ;;  %v680_v52 = vmax.f32 %v648_v40, 0.0  ;;  %v504_v21 = vadd.f32 %v2621_v5, %v471_v9 }
  0x53   : > { %2360 = vmatmul.msk.f32.gmra.mxu1 %vm815_vm0, %v789_v41  ;;  %v437_v41 = vld [vmem:[%s2613_s21 + $0x60] sm:$0xff]  ;;  %v696_v58 = vadd.f32 %v664_v48, %v534_v47  ;;  %v730_v47 = vld [vmem:[%s2646_s10 + $0x68] sm:$0xff] }
  0x54   : > { %2343 = vmatmul.msk.f32.gmra.mxu2 %vm815_vm0, %v772_v34  ;;  %2376 = vmatmul.msk.f32.gmra.mxu3 %vm815_vm0, %v805_v44  ;;  %v711_v34 = vadd.f32 %v679_v24, %v549_v23  ;;  %v583_v44 = vld [vmem:[%s2619_s24 + $0xe0] sm:$0xff]  ;;  %v759_v45 = vadd.f32 %v727_v35, %v695_v33  ;;  %v470_v49 = vmul.f32 %v2603_v3, %v437_v41  ;;  %v536_v33 = vmax.f32 %v504_v21, 0.0  ;;  %v794_v41 = vld [vmem:[%s2632_s27 + $0x68] sm:$0xff]  ;;  %v796_v21 = vld [vmem:[%s2632_s27 + $0x78] sm:$0xff] }
  0x55   : > { %v616_v55 = vmul.f32 %v2605_v4, %v583_v44  ;;  %v712_v1 = vadd.f32 %v680_v52, %v550_v51  ;;  %v520_v23 = vadd.f32 %v2621_v5, %v487_v11  ;;  %v650_v24 = vadd.f32 %v2623_v6, %v617_v12  ;;  %v810_v44 = vld [vmem:[%s2632_s27 + $0xe8] sm:$0xff]  ;;  %v731_v12 = vld [vmem:[%s2646_s10 + $0x70] sm:$0xff] }
  0x56   : > { %v775_v46 = vadd.f32 %v743_v36, %v711_v34  ;;  %v503_v59 = vadd.f32 %v2621_v5, %v470_v49  ;;  %v746_v48 = vld [vmem:[%s2646_s10 + $0xe8] sm:$0xff]  ;;  %v521_v51 = vadd.f32 %v2621_v5, %v488_v42  ;;  %v636_v11 = vadd.f32 %v2623_v6, %v603_v62 }
  0x57   : > { %v552_v35 = vmax.f32 %v520_v23, 0.0  ;;  %v682_v36 = vmax.f32 %v650_v24, 0.0 }
  0x58   : > { %v535_v14 = vmax.f32 %v503_v59, 0.0  ;;  %v553_v63 = vmax.f32 %v521_v51, 0.0 }
  0x5a   : > { %2328 = vmatmul.msk.f32.gmra.mxu0 %vm815_vm0, %v757_v61  ;;  %v568_v61 = vld [vmem:[%s2619_s24 + $0x68] sm:$0xff] }
  0x5b   : > { %2361 = vmatmul.msk.f32.gmra.mxu1 %vm815_vm0, %v790_v7  ;;  %v649_v7 = vadd.f32 %v2623_v6, %v616_v55  ;;  %v601_v10 = vmul.f32 %v2605_v4, %v568_v61  ;;  %v456_v55 = vld [vmem:[%s2613_s21 + $0xf8] sm:$0xff] }
  0x5c   : > { %2344 = vmatmul.msk.f32.gmra.mxu2 %vm815_vm0, %v773_v0  ;;  %2377 = vmatmul.msk.f32.gmra.mxu3 %vm815_vm0, %v806_v8  ;;  %v728_v0 = vld [vmem:[%s2646_s10 + $0x58] sm:$0xff]  ;;  %v489_v2 = vmul.f32 %v2603_v3, %v456_v55 }
  0x5d   : > { %v744_v8 = vld [vmem:[%s2646_s10 + $0xd8] sm:$0xff]  ;;  %v760_v13 = vadd.f32 %v728_v0, %v696_v58  ;;  %v681_v18 = vmax.f32 %v649_v7, 0.0  ;;  %v634_v22 = vadd.f32 %v2623_v6, %v601_v10 }
  0x5e   : > { %v776_v16 = vadd.f32 %v744_v8, %v712_v1  ;;  %v795_v1 = vld [vmem:[%s2632_s27 + $0x70] sm:$0xff] }
  0x5f   : > { %v713_v27 = vadd.f32 %v681_v18, %v551_v17  ;;  %v666_v34 = vmax.f32 %v634_v22, 0.0  ;;  %v811_v8 = vld [vmem:[%s2632_s27 + $0xf0] sm:$0xff]  ;;  %v668_v17 = vmax.f32 %v636_v11, 0.0  ;;  %v812_v22 = vld [vmem:[%s2632_s27 + $0xf8] sm:$0xff] }
  0x61   : > { %v777_v40 = vadd.f32 %v745_v30, %v713_v27 }
  0x62   : > { %2329 = vmatmul.msk.f32.gmra.mxu0 %vm815_vm0, %v758_v25  ;;  %v697_v25 = vadd.f32 %v665_v15, %v535_v14  ;;  %v747_v14 = vld [vmem:[%s2646_s10 + $0xf0] sm:$0xff] }
  0x63   : > { %2362 = vmatmul.msk.f32.gmra.mxu1 %vm815_vm0, %v791_v29  ;;  %v569_v29 = vld [vmem:[%s2619_s24 + $0x70] sm:$0xff] }
  0x64   : > { %2345 = vmatmul.msk.f32.gmra.mxu2 %vm815_vm0, %v774_v28  ;;  %2378 = vmatmul.msk.f32.gmra.mxu3 %vm815_vm0, %v807_v32  ;;  %v439_v28 = vld [vmem:[%s2613_s21 + $0x70] sm:$0xff]  ;;  %v761_v37 = vadd.f32 %v729_v26, %v697_v25  ;;  %v602_v39 = vmul.f32 %v2605_v4, %v569_v29 }
  0x65   : > { %v585_v32 = vld [vmem:[%s2619_s24 + $0xf0] sm:$0xff]  ;;  %v472_v38 = vmul.f32 %v2603_v3, %v439_v28  ;;  %v2960_v28 = vld [vmem:[%s3808_s8] ss:$0 sm:$0xff] }
  0x66   : > { %v618_v43 = vmul.f32 %v2605_v4, %v585_v32  ;;  %v635_v50 = vadd.f32 %v2623_v6, %v602_v39 }
  0x67   : > { %v505_v49 = vadd.f32 %v2621_v5, %v472_v38 }
  0x68   : > { %v651_v52 = vadd.f32 %v2623_v6, %v618_v43  ;;  %v667_v60 = vmax.f32 %v635_v50, 0.0 }
  0x69   : > { %v537_v59 = vmax.f32 %v505_v49, 0.0 }
  0x6a   : > { %2330 = vmatmul.msk.f32.gmra.mxu0 %vm815_vm0, %v759_v45  ;;  %v698_v45 = vadd.f32 %v666_v34, %v536_v33  ;;  %v683_v0 = vmax.f32 %v651_v52, 0.0 }
  0x6b   : > { %2363 = vmatmul.msk.f32.gmra.mxu1 %vm815_vm0, %v792_v53  ;;  %v440_v53 = vld [vmem:[%s2613_s21 + $0x78] sm:$0xff]  ;;  %v699_v9 = vadd.f32 %v667_v60, %v537_v59 }
  0x6c   : > { %2346 = vmatmul.msk.f32.gmra.mxu2 %vm815_vm0, %v775_v46  ;;  %2379 = vmatmul.msk.f32.gmra.mxu3 %vm815_vm0, %v808_v56  ;;  %v714_v46 = vadd.f32 %v682_v36, %v552_v35  ;;  %v586_v56 = vld [vmem:[%s2619_s24 + $0xf8] sm:$0xff]  ;;  %v762_v57 = vadd.f32 %v730_v47, %v698_v45  ;;  %v473_v61 = vmul.f32 %v2603_v3, %v440_v53 }
  0x6d   : > { %v619_v7 = vmul.f32 %v2605_v4, %v586_v56  ;;  %v522_v3 = vadd.f32 %v2621_v5, %v489_v2  ;;  %v763_v15 = vadd.f32 %v731_v12, %v699_v9 }
  0x6e   : > { %v778_v58 = vadd.f32 %v746_v48, %v714_v46  ;;  %v506_v10 = vadd.f32 %v2621_v5, %v473_v61  ;;  %v732_v5 = vld [vmem:[%s2646_s10 + $0x78] sm:$0xff] }
  0x6f   : > { %v652_v4 = vadd.f32 %v2623_v6, %v619_v7  ;;  %v748_v6 = vld [vmem:[%s2646_s10 + $0xf8] sm:$0xff] }
  0x72   : > { %2331 = vmatmul.msk.f32.gmra.mxu0 %vm815_vm0, %v760_v13  ;;  %v715_v13 = vadd.f32 %v683_v0, %v553_v63 }
  0x73   : > { %2364 = vmatmul.msk.f32.gmra.mxu1 %vm815_vm0, %v793_v19  ;;  %v554_v19 = vmax.f32 %v522_v3, 0.0  ;;  %v2535_v3 = vmov -1.0  }
  0x74   : > { %2347 = vmatmul.msk.f32.gmra.mxu2 %vm815_vm0, %v776_v16  ;;  %2380 = vmatmul.msk.f32.gmra.mxu3 %vm815_vm0, %v809_v20  ;;  %v538_v16 = vmax.f32 %v506_v10, 0.0  ;;  %v779_v18 = vadd.f32 %v747_v14, %v715_v13  ;;  %v684_v20 = vmax.f32 %v652_v4, 0.0 }
  0x76   : > { %v700_v23 = vadd.f32 %v668_v17, %v538_v16  ;;  %v716_v24 = vadd.f32 %v684_v20, %v554_v19 }
  0x78   : > { %v764_v25 = vadd.f32 %v732_v5, %v700_v23  ;;  %v780_v26 = vadd.f32 %v748_v6, %v716_v24 }
  0x7a   : > { %2332 = vmatmul.msk.f32.gmra.mxu0 %vm815_vm0, %v761_v37 }
  0x7b   : > { %2365 = vmatmul.msk.f32.gmra.mxu1 %vm815_vm0, %v794_v41 }
  0x7c   : > { %2348 = vmatmul.msk.f32.gmra.mxu2 %vm815_vm0, %v777_v40  ;;  %2381 = vmatmul.msk.f32.gmra.mxu3 %vm815_vm0, %v810_v44 }
  0x82   : > { %2333 = vmatmul.msk.f32.gmra.mxu0 %vm815_vm0, %v762_v57 }
  0x83   : > { %2366 = vmatmul.msk.f32.gmra.mxu1 %vm815_vm0, %v795_v1 }
  0x84   : > { %2349 = vmatmul.msk.f32.gmra.mxu2 %vm815_vm0, %v778_v58  ;;  %2382 = vmatmul.msk.f32.gmra.mxu3 %vm815_vm0, %v811_v8 }
  0x8a   : > { %2334 = vmatmul.msk.f32.gmra.mxu0 %vm815_vm0, %v763_v15 }
  0x8b   : > { %2367 = vmatmul.msk.f32.gmra.mxu1 %vm815_vm0, %v796_v21 }
  0x8c   : > { %2350 = vmatmul.msk.f32.gmra.mxu2 %vm815_vm0, %v779_v18  ;;  %2383 = vmatmul.msk.f32.gmra.mxu3 %vm815_vm0, %v812_v22 }
  0x90   : > { %v1138_v27 = vpop.f32.mrf.mxu1 }
  0x92   : > { %2335 = vmatmul.msk.f32.gmra.mxu0 %vm815_vm0, %v764_v25 }
  0x94   : > { %2351 = vmatmul.msk.f32.gmra.mxu2 %vm815_vm0, %v780_v26 }
  0x97   : > { %v929_v29 = vpop.f32.mrf.mxu0  ;;  %v1186_v31 = vpop.f32.mrf.mxu3 }
  0x98   : > { %v1139_v30 = vadd.f32 %v1138_v27, %v929_v29  ;;  %v1141_v33 = vpop.f32.mrf.mxu1 }
  0x9a   : > { %v1238_v32 = vadd.f32 %v2960_v28, %v1139_v30 }
  0x9c   : > { %v1334_v34 = vmul.f32 0.70710677, %v1238_v32  ;;  %v2983_v10 = vmul.f32 0.5, %v1238_v32 }
  0x9e   : > { %v1430_v35 = vand.u32 2147483647, %v1334_v34  ;;  %vm1366_vm1 = vcmp.ge.f32.partialorder %v1334_v34, 0.0 }
  0x9f   : > { %v977_v36 = vpop.f32.mrf.mxu2  ;;  %v932_v38 = vpop.f32.mrf.mxu0  ;;  %v2987_v4 = vsel %vm1366_vm1, 1.0, %v2535_v3 }
  0xa0   : > { %v1187_v37 = vadd.f32 %v1186_v31, %v977_v36  ;;  %v1462_v39 = vmul.f32 0.3275911, %v1430_v35  ;;  %v1142_v40 = vadd.f32 %v1141_v33, %v932_v38  ;;  %v1189_v45 = vpop.f32.mrf.mxu3  ;;  %v1846_v47 = vsub.f32 0.0, %v1430_v35  ;;  %v1144_v49 = vpop.f32.mrf.mxu1 }
  0xa2   : > { %v1254_v41 = vadd.f32 %v2960_v28, %v1187_v37  ;;  %v1494_v42 = vadd.f32 1.0, %v1462_v39  ;;  %v1239_v43 = vadd.f32 %v2960_v28, %v1142_v40  ;;  %v1878_v57 = vmul.f32 %v1846_v47, %v1430_v35 }
  0xa4   : > { %v2965_v44 = vmul.f32 0.70710677, %v1254_v41  ;;  %2398 = vrcp.f32 %v1494_v42  ;;  %v2967_v46 = vmul.f32 0.70710677, %v1239_v43  ;;  %v1910_v7 = vmul.f32 1.442695, %v1878_v57 }
  0xa5   : > { %v2990_v15 = vmul.f32 0.5, %v1254_v41  ;;  %v2993_v18 = vmul.f32 0.5, %v1239_v43 }
  0xa6   : > { %v1446_v48 = vand.u32 2147483647, %v2965_v44  ;;  %v1431_v50 = vand.u32 2147483647, %v2967_v46  ;;  %vm1382_vm2 = vcmp.ge.f32.partialorder %v2965_v44, 0.0  ;;  %vm1367_vm3 = vcmp.ge.f32.partialorder %v2967_v46, 0.0 }
  0xa7   : > { %v980_v51 = vpop.f32.mrf.mxu2  ;;  %v935_v53 = vpop.f32.mrf.mxu0  ;;  %v3015_v47 = vsel %vm1382_vm2, 1.0, %v2535_v3 }
  0xa8   : > { %v1478_v52 = vmul.f32 0.3275911, %v1446_v48  ;;  %v1463_v54 = vmul.f32 0.3275911, %v1431_v50  ;;  %v1190_v55 = vadd.f32 %v1189_v45, %v980_v51  ;;  %v1145_v56 = vadd.f32 %v1144_v49, %v935_v53  ;;  %v1192_v9 = vpop.f32.mrf.mxu3  ;;  %v1147_v22 = vpop.f32.mrf.mxu1 }
  0xa9   : > { %v1862_v0 = vsub.f32 0.0, %v1446_v48  ;;  %v1847_v11 = vsub.f32 0.0, %v1431_v50  ;;  %v3024_v51 = vsel %vm1367_vm3, 1.0, %v2535_v3 }
  0xaa   : > { %v1510_v58 = vadd.f32 1.0, %v1478_v52  ;;  %v2971_v59 = vpop.eup %2398  ;;  %v1495_v60 = vadd.f32 1.0, %v1463_v54  ;;  %v1255_v61 = vadd.f32 %v2960_v28, %v1190_v55  ;;  %v2975_v62 = vadd.f32 %v2960_v28, %v1145_v56 }
  0xab   : > { %v1558_v63 = vmul.f32 1.0614054, %v2971_v59  ;;  %v1894_v17 = vmul.f32 %v1862_v0, %v1446_v48  ;;  %v1879_v26 = vmul.f32 %v1847_v11, %v1431_v50 }
  0xac   : > { %2400 = vrcp.f32 %v1510_v58  ;;  %v2978_v1 = vmul.f32 0.70710677, %v1255_v61  ;;  %v2981_v8 = vmul.f32 0.70710677, %v2975_v62  ;;  %v3026_v52 = vmul.f32 0.5, %v1255_v61 }
  0xad   : > { %2402 = vrcp.f32 %v1495_v60  ;;  %v1590_v2 = vadd.f32 -1.4531521, %v1558_v63  ;;  %v1942_v35 = vmul.f32 1.442695, %v1894_v17  ;;  %v1912_v40 = vmul.f32 1.442695, %v1879_v26 }
  0xae   : > { %v1447_v12 = vand.u32 2147483647, %v2978_v1  ;;  %v1432_v16 = vand.u32 2147483647, %v2981_v8  ;;  %2404 = vpow2.f32 %v1910_v7  ;;  %vm1383_vm4 = vcmp.ge.f32.partialorder %v2978_v1, 0.0 }
  0xaf   : > { %v983_v13 = vpop.f32.mrf.mxu2  ;;  %v1622_v14 = vmul.f32 %v2971_v59, %v1590_v2  ;;  %v938_v21 = vpop.f32.mrf.mxu0  ;;  %vm1368_vm6 = vcmp.ge.f32.partialorder %v2981_v8, 0.0 }
  0xb0   : > { %v1479_v19 = vmul.f32 0.3275911, %v1447_v12  ;;  %v1193_v20 = vadd.f32 %v1192_v9, %v983_v13  ;;  %v1464_v24 = vmul.f32 0.3275911, %v1432_v16  ;;  %v1148_v33 = vadd.f32 %v1147_v22, %v938_v21  ;;  %v1195_v9 = vpop.f32.mrf.mxu3 }
  0xb1   : > { %v1654_v5 = vadd.f32 1.4214138, %v1622_v14  ;;  %v1863_v38 = vsub.f32 0.0, %v1447_v12  ;;  %v1848_v41 = vsub.f32 0.0, %v1432_v16 }
  0xb2   : > { %v2995_v23 = vpop.eup %2400  ;;  %v1511_v27 = vadd.f32 1.0, %v1479_v19  ;;  %v3002_v29 = vadd.f32 %v2960_v28, %v1193_v20  ;;  %v1496_v32 = vadd.f32 1.0, %v1464_v24  ;;  %v3019_v49 = vadd.f32 %v2960_v28, %v1148_v33 }
  0xb3   : > { %v2998_v6 = vpop.eup %2402  ;;  %v1574_v25 = vmul.f32 1.0614054, %v2995_v23  ;;  %v1686_v30 = vmul.f32 %v2971_v59, %v1654_v5  ;;  %v1895_v55 = vmul.f32 %v1863_v38, %v1447_v12  ;;  %v1880_v58 = vmul.f32 %v1848_v41, %v1432_v16 }
  0xb4   : > { %v1559_v31 = vmul.f32 1.0614054, %v2998_v6  ;;  %2406 = vrcp.f32 %v1511_v27  ;;  %v3009_v42 = vmul.f32 0.70710677, %v3002_v29  ;;  %v2405_v43 = vpop.eup %2404  ;;  %v3038_v2 = vmul.f32 0.70710677, %v3019_v49 }
  0xb5   : > { %v1606_v34 = vadd.f32 -1.4531521, %v1574_v25  ;;  %v1718_v36 = vadd.f32 -0.28449672, %v1686_v30  ;;  %2408 = vrcp.f32 %v1496_v32  ;;  %v1914_v27 = vmul.f32 1.442695, %v1880_v58 }
  0xb6   : > { %v1591_v37 = vadd.f32 -1.4531521, %v1559_v31  ;;  %v1448_v53 = vand.u32 2147483647, %v3009_v42  ;;  %2410 = vpow2.f32 %v1942_v35  ;;  %vm1384_vm7 = vcmp.ge.f32.partialorder %v3009_v42, 0.0 }
  0xb7   : > { %v1638_v39 = vmul.f32 %v2995_v23, %v1606_v34  ;;  %v1750_v45 = vmul.f32 %v2971_v59, %v1718_v36  ;;  %2412 = vpow2.f32 %v1912_v40  ;;  %v986_v7 = vpop.f32.mrf.mxu2  ;;  %v3047_v34 = vand.u32 2147483647, %v3038_v2 }
  0xb8   : > { %v1623_v48 = vmul.f32 %v2998_v6, %v1591_v37  ;;  %v1480_v60 = vmul.f32 0.3275911, %v1448_v53  ;;  %v1864_v14 = vsub.f32 0.0, %v1448_v53  ;;  %v1196_v22 = vadd.f32 %v1195_v9, %v986_v7 }
  0xb9   : > { %v1670_v50 = vadd.f32 1.4214138, %v1638_v39  ;;  %v1782_v54 = vadd.f32 0.2548296, %v1750_v45  ;;  %v1465_v40 = vmul.f32 0.3275911, %v3047_v34 }
  0xba   : > { %v1655_v44 = vadd.f32 1.4214138, %v1623_v48  ;;  %v3029_v56 = vpop.eup %2406  ;;  %v1512_v13 = vadd.f32 1.0, %v1480_v60  ;;  %v1896_v33 = vmul.f32 %v1864_v14, %v1448_v53  ;;  %v3059_v41 = vadd.f32 %v2960_v28, %v1196_v22 }
  0xbb   : > { %v1702_v57 = vmul.f32 %v2995_v23, %v1670_v50  ;;  %v3032_v63 = vpop.eup %2408  ;;  %v1814_v46 = vmul.f32 %v2971_v59, %v1782_v54  ;;  %v1575_v0 = vmul.f32 1.0614054, %v3029_v56  ;;  %v1944_v59 = vmul.f32 1.442695, %v1895_v55 }
  0xbc   : > { %v1687_v61 = vmul.f32 %v2998_v6, %v1655_v44  ;;  %v1560_v12 = vmul.f32 1.0614054, %v3032_v63  ;;  %2414 = vrcp.f32 %v1512_v13  ;;  %v2411_v5 = vpop.eup %2410  ;;  %v1497_v44 = vadd.f32 1.0, %v1465_v40 }
  0xbd   : > { %v1734_v11 = vadd.f32 -0.28449672, %v1702_v57  ;;  %v1974_v16 = vmul.f32 %v2405_v43, %v1814_v46  ;;  %v1607_v19 = vadd.f32 -1.4531521, %v1575_v0  ;;  %v2413_v30 = vpop.eup %2412  ;;  %2416 = vpow2.f32 %v1944_v59  ;;  %v941_v46 = vpop.f32.mrf.mxu0 }
  0xbe   : > { %v1719_v17 = vadd.f32 -0.28449672, %v1687_v61  ;;  %v1592_v21 = vadd.f32 -1.4531521, %v1560_v12  ;;  %2418 = vpow2.f32 %v1914_v27  ;;  %v1150_v61 = vpop.f32.mrf.mxu1  ;;  %v3076_v7 = vmul.f32 0.70710677, %v3059_v41 }
  0xbf   : > { %v1766_v20 = vmul.f32 %v2995_v23, %v1734_v11  ;;  %v2006_v24 = vsub.f32 1.0, %v1974_v16  ;;  %v1639_v26 = vmul.f32 %v3029_v56, %v1607_v19  ;;  %2420 = vrcp.f32 %v1497_v44 }
  0xc0   : > { %v1751_v25 = vmul.f32 %v2998_v6, %v1719_v17  ;;  %v1624_v32 = vmul.f32 %v3032_v63, %v1592_v21  ;;  %v1415_v16 = vsel %vm1383_vm4, 1.0, %v2535_v3  ;;  %v1151_v19 = vadd.f32 %v1150_v61, %v941_v46 }
  0xc1   : > { %v1798_v31 = vadd.f32 0.2548296, %v1766_v20  ;;  %v2038_v35 = vmul.f32 %v2006_v24, %v2987_v4  ;;  %v1671_v37 = vadd.f32 1.4214138, %v1639_v26  ;;  %v1270_v4 = vld [vmem:[%s3053_s15] sm:$0xff]  ;;  %vm1369_vm8 = vcmp.ge.f32.partialorder %v3038_v2, 0.0 }
  0xc2   : > { %v1783_v36 = vadd.f32 0.2548296, %v1751_v25  ;;  %v1656_v39 = vadd.f32 1.4214138, %v1624_v32  ;;  %v3063_v50 = vpop.eup %2414  ;;  %v3090_v1 = vand.u32 2147483647, %v3076_v7 }
  0xc3   : > { %v1830_v38 = vmul.f32 %v2995_v23, %v1798_v31  ;;  %v2070_v43 = vadd.f32 1.0, %v2038_v35  ;;  %v1703_v48 = vmul.f32 %v3029_v56, %v1671_v37  ;;  %v1946_v23 = vmul.f32 1.442695, %v1896_v33  ;;  %v2417_v9 = vpop.eup %2416  ;;  %v1286_v24 = vld [vmem:[%s3053_s15 + $0x80] sm:$0xff]  ;;  %v1198_v31 = vpop.f32.mrf.mxu3  ;;  %v1271_v35 = vld [vmem:[%s3053_s15 + $0x8] sm:$0xff] }
  0xc4   : > { %v1815_v45 = vmul.f32 %v2998_v6, %v1783_v36  ;;  %v1688_v54 = vmul.f32 %v3032_v63, %v1656_v39  ;;  %v1576_v60 = vmul.f32 1.0614054, %v3063_v50  ;;  %v2419_v59 = vpop.eup %2418  ;;  %v1481_v37 = vmul.f32 0.3275911, %v3090_v1 }
  0xc5   : > { %v1990_v53 = vmul.f32 %v2411_v5, %v1830_v38  ;;  %v2102_v55 = vmul.f32 %v2070_v43, %v2983_v10  ;;  %v1735_v58 = vadd.f32 -0.28449672, %v1703_v48  ;;  %2422 = vpow2.f32 %v1946_v23  ;;  %v3095_v32 = vpop.eup %2420  ;;  %v944_v44 = vpop.f32.mrf.mxu0 }
  0xc6   : > { %v1975_v57 = vmul.f32 %v2413_v30, %v1815_v45  ;;  %v1720_v0 = vadd.f32 -0.28449672, %v1688_v54  ;;  %v1608_v13 = vadd.f32 -1.4531521, %v1576_v60  ;;  %v1849_v30 = vsub.f32 0.0, %v3047_v34 }
  0xc7   : > { %v2022_v6 = vsub.f32 1.0, %v1990_v53  ;;  %v2134_v10 = vadd.f32 %v2102_v55, %v1270_v4  ;;  %v1767_v12 = vmul.f32 %v3029_v56, %v1735_v58  ;;  %v3102_v38 = vadd.f32 %v2960_v28, %v1151_v19  ;;  %v1153_v55 = vpop.f32.mrf.mxu1 }
  0xc8   : > { %v2007_v11 = vsub.f32 1.0, %v1975_v57  ;;  %v1752_v17 = vmul.f32 %v3032_v63, %v1720_v0  ;;  %v1640_v22 = vmul.f32 %v3063_v50, %v1608_v13  ;;  %v1561_v43 = vmul.f32 1.0614054, %v3095_v32 }
  0xc9   : > { %v2054_v14 = vmul.f32 %v2022_v6, %v3015_v47  ;;  %2167 = vst.msk [vmem:[%s3073_s19] sm:$0xff] %vm2166_vm5, %v2134_v10  ;;  %v1799_v21 = vadd.f32 0.2548296, %v1767_v12  ;;  %v1881_v60 = vmul.f32 %v1849_v30, %v3047_v34  ;;  %v3118_v0 = vmul.f32 0.70710677, %v3102_v38  ;;  %v1287_v34 = vld [vmem:[%s3053_s15 + $0x88] sm:$0xff] }
  0xca   : > { %v2039_v20 = vmul.f32 %v2007_v11, %v3024_v51  ;;  %v1784_v47 = vadd.f32 0.2548296, %v1752_v17  ;;  %v1672_v27 = vadd.f32 1.4214138, %v1640_v22  ;;  %v989_v51 = vpop.f32.mrf.mxu2  ;;  %v1593_v23 = vadd.f32 -1.4531521, %v1561_v43 }
  0xcb   : > { %v2086_v5 = vadd.f32 1.0, %v2054_v14  ;;  %v1831_v26 = vmul.f32 %v3029_v56, %v1799_v21  ;;  %v1199_v4 = vadd.f32 %v1198_v31, %v989_v51  ;;  %v2423_v57 = vpop.eup %2422  ;;  %v1154_v11 = vadd.f32 %v1153_v55, %v944_v44 }
  0xcc   : > { %v2071_v25 = vadd.f32 1.0, %v2039_v20  ;;  %v1816_v36 = vmul.f32 %v3032_v63, %v1784_v47  ;;  %v1704_v40 = vmul.f32 %v3063_v50, %v1672_v27  ;;  %v1625_v6 = vmul.f32 %v3095_v32, %v1593_v23  ;;  %v1272_v20 = vld [vmem:[%s3053_s15 + $0x10] sm:$0xff] }
  0xcd   : > { %v2118_v33 = vmul.f32 %v2086_v5, %v2990_v15  ;;  %v1991_v39 = vmul.f32 %v2417_v9, %v1831_v26  ;;  %v1513_v15 = vadd.f32 1.0, %v1481_v37  ;;  %v1304_v9 = vmul.f32 0.5, %v2975_v62  ;;  %v1288_v23 = vld [vmem:[%s3053_s15 + $0x90] sm:$0xff] }
  0xce   : > { %v2103_v56 = vmul.f32 %v2071_v25, %v2993_v18  ;;  %v1976_v48 = vmul.f32 %v2419_v59, %v1816_v36  ;;  %v1736_v54 = vadd.f32 -0.28449672, %v1704_v40  ;;  %v1400_v18 = vsel %vm1368_vm6, 1.0, %v2535_v3 }
  0xcf   : > { %v2150_v45 = vadd.f32 %v2118_v33, %v1286_v24  ;;  %v2023_v63 = vsub.f32 1.0, %v1991_v39  ;;  %2424 = vrcp.f32 %v1513_v15  ;;  %v3122_v8 = vadd.f32 %v2960_v28, %v1199_v4  ;;  %v1201_v39 = vpop.f32.mrf.mxu3 }
  0xd0   : > { %v2135_v53 = vadd.f32 %v2103_v56, %v1271_v35  ;;  %v2008_v58 = vsub.f32 1.0, %v1976_v48  ;;  %v1768_v61 = vmul.f32 %v3063_v50, %v1736_v54  ;;  %v1657_v14 = vadd.f32 1.4214138, %v1625_v6 }
  0xd1   : > { %2183 = vst.msk [vmem:[%s3073_s19 + $0x80] sm:$0xff] %vm2166_vm5, %v2150_v45  ;;  %v2055_v46 = vmul.f32 %v2023_v63, %v1415_v16  ;;  %v1916_v17 = vmul.f32 1.442695, %v1881_v60  ;;  %v1434_v19 = vand.u32 2147483647, %v3118_v0  ;;  %v1865_v22 = vsub.f32 0.0, %v3090_v1 }
  0xd2   : > { %2168 = vst.msk [vmem:[%s3073_s19 + $0x8] sm:$0xff] %vm2166_vm5, %v2135_v53  ;;  %v2040_v10 = vmul.f32 %v2008_v58, %v1400_v18  ;;  %v1800_v13 = vadd.f32 0.2548296, %v1768_v61  ;;  %v1689_v21 = vmul.f32 %v3095_v32, %v1657_v14  ;;  %v3135_v25 = vmul.f32 0.70710677, %v3122_v8  ;;  %v992_v56 = vpop.f32.mrf.mxu2  ;;  %v947_v14 = vpop.f32.mrf.mxu0 }
  0xd3   : > { %v2087_v12 = vadd.f32 1.0, %v2055_v46  ;;  %v1466_v24 = vmul.f32 0.3275911, %v1434_v19  ;;  %v3138_v26 = vadd.f32 %v2960_v28, %v1154_v11  ;;  %2426 = vpow2.f32 %v1916_v17 }
  0xd4   : > { %v2072_v16 = vadd.f32 1.0, %v2040_v10  ;;  %v1832_v62 = vmul.f32 %v3063_v50, %v1800_v13  ;;  %v1721_v30 = vadd.f32 -0.28449672, %v1689_v21  ;;  %v1416_v33 = vsel %vm1384_vm7, 1.0, %v2535_v3 }
  0xd5   : > { %v2119_v59 = vmul.f32 %v2087_v12, %v3026_v52  ;;  %v3132_v5 = vpop.eup %2424  ;;  %v1498_v31 = vadd.f32 1.0, %v1466_v24  ;;  %v1897_v40 = vmul.f32 %v1865_v22, %v3090_v1  ;;  %v3152_v43 = vand.u32 2147483647, %v3135_v25 }
  0xd6   : > { %v2104_v47 = vmul.f32 %v2072_v16, %v1304_v9  ;;  %v1992_v27 = vmul.f32 %v2423_v57, %v1832_v62  ;;  %v1577_v50 = vmul.f32 1.0614054, %v3132_v5  ;;  %v1753_v36 = vmul.f32 %v3095_v32, %v1721_v30  ;;  %v1156_v16 = vpop.f32.mrf.mxu1 }
  0xd7   : > { %v2151_v52 = vadd.f32 %v2119_v59, %v1287_v34  ;;  %2428 = vrcp.f32 %v1498_v31  ;;  %v3156_v15 = vmul.f32 0.70710677, %v3138_v26  ;;  %v1320_v4 = vmul.f32 0.5, %v3002_v29 }
  0xd8   : > { %v2136_v51 = vadd.f32 %v2104_v47, %v1272_v20  ;;  %v2024_v35 = vsub.f32 1.0, %v1992_v27  ;;  %v1609_v37 = vadd.f32 -1.4531521, %v1577_v50  ;;  %v1785_v42 = vadd.f32 0.2548296, %v1753_v36 }
  0xd9   : > { %2184 = vst.msk [vmem:[%s3073_s19 + $0x88] sm:$0xff] %vm2166_vm5, %v2151_v52  ;;  %v1850_v53 = vsub.f32 0.0, %v1434_v19  ;;  %v1482_v63 = vmul.f32 0.3275911, %v3152_v43  ;;  %v1202_v54 = vadd.f32 %v1201_v39, %v992_v56  ;;  %v1305_v1 = vmul.f32 0.5, %v3019_v49  ;;  %v2427_v18 = vpop.eup %2426 }
  0xda   : > { %2169 = vst.msk [vmem:[%s3073_s19 + $0x10] sm:$0xff] %vm2166_vm5, %v2136_v51  ;;  %v2056_v45 = vmul.f32 %v2024_v35, %v1416_v33  ;;  %v1641_v48 = vmul.f32 %v3132_v5, %v1609_v37  ;;  %v1817_v55 = vmul.f32 %v3095_v32, %v1785_v42  ;;  %v1401_v58 = vsel %vm1369_vm8, 1.0, %v2535_v3  ;;  %v1273_v51 = vld [vmem:[%s3053_s15 + $0x18] sm:$0xff]  ;;  %v995_v39 = vpop.f32.mrf.mxu2 }
  0xdb   : > { %v1948_v60 = vmul.f32 1.442695, %v1897_v40  ;;  %v1514_v46 = vadd.f32 1.0, %v1482_v63  ;;  %v3167_v29 = vand.u32 2147483647, %v3156_v15  ;;  %v3171_v10 = vadd.f32 %v2960_v28, %v1202_v54  ;;  %v1204_v40 = vpop.f32.mrf.mxu3 }
  0xdc   : > { %v2088_v44 = vadd.f32 1.0, %v2056_v45  ;;  %v1673_v57 = vadd.f32 1.4214138, %v1641_v48  ;;  %v1977_v6 = vmul.f32 %v2427_v18, %v1817_v55  ;;  %vm1385_vm9 = vcmp.ge.f32.partialorder %v3076_v7, 0.0 }
  0xdd   : > { %v3173_v49 = vpop.eup %2428  ;;  %v1882_v32 = vmul.f32 %v1850_v53, %v1434_v19  ;;  %2430 = vrcp.f32 %v1514_v46  ;;  %v1467_v2 = vmul.f32 0.3275911, %v3167_v29  ;;  %v3179_v17 = vmul.f32 0.5, %v3059_v41 }
  0xde   : > { %v2120_v61 = vmul.f32 %v2088_v44, %v1320_v4  ;;  %v1705_v9 = vmul.f32 %v3132_v5, %v1673_v57  ;;  %v2009_v34 = vsub.f32 1.0, %v1977_v6  ;;  %v1562_v13 = vmul.f32 1.0614054, %v3173_v49 }
  0xdf   : > { %2432 = vpow2.f32 %v1948_v60  ;;  %vm1370_vm10 = vcmp.ge.f32.partialorder %v3118_v0, 0.0  ;;  %v1499_v59 = vadd.f32 1.0, %v1467_v2  ;;  %v3186_v21 = vmul.f32 0.70710677, %v3171_v10 }
  0xe0   : > { %v2152_v11 = vadd.f32 %v2120_v61, %v1288_v23  ;;  %v1737_v12 = vadd.f32 -0.28449672, %v1705_v9  ;;  %v2041_v19 = vmul.f32 %v2009_v34, %v1401_v58  ;;  %v1594_v62 = vadd.f32 -1.4531521, %v1562_v13 }
  0xe1   : > { %v1417_v22 = vsel %vm1385_vm9, 1.0, %v2535_v3  ;;  %v1918_v41 = vmul.f32 1.442695, %v1882_v32  ;;  %2434 = vrcp.f32 %v1499_v59  ;;  %v1157_v47 = vadd.f32 %v1156_v16, %v947_v14 }
  0xe2   : > { %2185 = vst.msk [vmem:[%s3073_s19 + $0x90] sm:$0xff] %vm2166_vm5, %v2152_v11  ;;  %v1769_v20 = vmul.f32 %v3132_v5, %v1737_v12  ;;  %v2073_v24 = vadd.f32 1.0, %v2041_v19  ;;  %v3192_v27 = vmul.f32 0.5, %v3102_v38  ;;  %v1626_v30 = vmul.f32 %v3173_v49, %v1594_v62  ;;  %v950_v19 = vpop.f32.mrf.mxu0  ;;  %v1289_v62 = vld [vmem:[%s3053_s15 + $0x98] sm:$0xff] }
  0xe3   : > { %v3195_v50 = vpop.eup %2430  ;;  %v3201_v31 = vsel %vm1370_vm10, 1.0, %v2535_v3  ;;  %v1866_v7 = vsub.f32 0.0, %v3152_v43  ;;  %v3205_v33 = vand.u32 2147483647, %v3186_v21  ;;  %v3208_v35 = vadd.f32 %v2960_v28, %v1157_v47 }
  0xe4   : > { %v1801_v52 = vadd.f32 0.2548296, %v1769_v20  ;;  %v2105_v38 = vmul.f32 %v2073_v24, %v1305_v1  ;;  %v1658_v37 = vadd.f32 1.4214138, %v1626_v30  ;;  %v1578_v56 = vmul.f32 1.0614054, %v3195_v50  ;;  %v1159_v20 = vpop.f32.mrf.mxu1 }
  0xe5   : > { %v2433_v0 = vpop.eup %2432  ;;  %2436 = vpow2.f32 %v1918_v41  ;;  %v1851_v45 = vsub.f32 0.0, %v3167_v29  ;;  %v1483_v42 = vmul.f32 0.3275911, %v3205_v33  ;;  %v3215_v48 = vmul.f32 0.70710677, %v3208_v35 }
  0xe6   : > { %v1833_v36 = vmul.f32 %v3132_v5, %v1801_v52  ;;  %v2137_v4 = vadd.f32 %v2105_v38, %v1273_v51  ;;  %v1690_v63 = vmul.f32 %v3173_v49, %v1658_v37  ;;  %v1610_v5 = vadd.f32 -1.4531521, %v1578_v56 }
  0xe7   : > { %v3218_v54 = vpop.eup %2434  ;;  %v1898_v23 = vmul.f32 %v1866_v7, %v3152_v43  ;;  %v1515_v44 = vadd.f32 1.0, %v1483_v42  ;;  %v3222_v1 = vand.u32 2147483647, %v3215_v48  ;;  %v1205_v55 = vadd.f32 %v1204_v40, %v995_v39 }
  0xe8   : > { %v1993_v53 = vmul.f32 %v2433_v0, %v1833_v36  ;;  %2170 = vst.msk [vmem:[%s3073_s19 + $0x18] sm:$0xff] %vm2166_vm5, %v2137_v4  ;;  %v1722_v18 = vadd.f32 -0.28449672, %v1690_v63  ;;  %v1642_v58 = vmul.f32 %v3195_v50, %v1610_v5  ;;  %v1563_v60 = vmul.f32 1.0614054, %v3218_v54 }
  0xe9   : > { %vm1386_vm11 = vcmp.ge.f32.partialorder %v3135_v25, 0.0  ;;  %v1883_v46 = vmul.f32 %v1851_v45, %v3167_v29  ;;  %2438 = vrcp.f32 %v1515_v44  ;;  %v1468_v43 = vmul.f32 0.3275911, %v3222_v1 }
  0xea   : > { %v2025_v57 = vsub.f32 1.0, %v1993_v53  ;;  %v1754_v6 = vmul.f32 %v3173_v49, %v1722_v18  ;;  %v1674_v9 = vadd.f32 1.4214138, %v1642_v58  ;;  %v1595_v32 = vadd.f32 -1.4531521, %v1563_v60  ;;  %v998_v58 = vpop.f32.mrf.mxu2  ;;  %v1207_v60 = vpop.f32.mrf.mxu3 }
  0xeb   : > { %v2437_v2 = vpop.eup %2436  ;;  %v3233_v11 = vmul.f32 0.5, %v3122_v8  ;;  %v1950_v34 = vmul.f32 1.442695, %v1898_v23  ;;  %v1500_v12 = vadd.f32 1.0, %v1468_v43  ;;  %v3236_v13 = vadd.f32 %v2960_v28, %v1205_v55 }
  0xec   : > { %v2057_v61 = vmul.f32 %v2025_v57, %v1417_v22  ;;  %v1786_v29 = vadd.f32 0.2548296, %v1754_v6  ;;  %v1706_v16 = vmul.f32 %v3195_v50, %v1674_v9  ;;  %v1627_v59 = vmul.f32 %v3218_v54, %v1595_v32  ;;  %v1274_v6 = vld [vmem:[%s3053_s15 + $0x20] sm:$0xff] }
  0xed   : > { %v1418_v22 = vsel %vm1386_vm11, 1.0, %v2535_v3  ;;  %v1920_v8 = vmul.f32 1.442695, %v1883_v46  ;;  %2440 = vrcp.f32 %v1500_v12  ;;  %v3245_v41 = vmul.f32 0.70710677, %v3236_v13 }
  0xee   : > { %v2089_v14 = vadd.f32 1.0, %v2057_v61  ;;  %v1818_v24 = vmul.f32 %v3173_v49, %v1786_v29  ;;  %v1738_v52 = vadd.f32 -0.28449672, %v1706_v16  ;;  %v1659_v30 = vadd.f32 1.4214138, %v1627_v59 }
  0xef   : > { %v3249_v51 = vpop.eup %2438  ;;  %2442 = vpow2.f32 %v1950_v34  ;;  %v1867_v7 = vsub.f32 0.0, %v3205_v33  ;;  %v3253_v25 = vand.u32 2147483647, %v3245_v41  ;;  %v1160_v38 = vadd.f32 %v1159_v20, %v950_v19 }
  0xf0   : > { %v2121_v47 = vmul.f32 %v2089_v14, %v3179_v17  ;;  %v1978_v37 = vmul.f32 %v2437_v2, %v1818_v24  ;;  %v1770_v56 = vmul.f32 %v3195_v50, %v1738_v52  ;;  %v1691_v17 = vmul.f32 %v3218_v54, %v1659_v30 }
  0xf1   : > { %vm1371_vm12 = vcmp.ge.f32.partialorder %v3156_v15, 0.0  ;;  %v1579_v49 = vmul.f32 1.0614054, %v3249_v51  ;;  %v1852_v39 = vsub.f32 0.0, %v3222_v1  ;;  %v1484_v40 = vmul.f32 0.3275911, %v3253_v25 }
  0xf2   : > { %v2153_v36 = vadd.f32 %v2121_v47, %v1289_v62  ;;  %v2010_v0 = vsub.f32 1.0, %v1978_v37  ;;  %v1802_v45 = vadd.f32 0.2548296, %v1770_v56  ;;  %v1723_v42 = vadd.f32 -0.28449672, %v1691_v17 }
  0xf3   : > { %2444 = vpow2.f32 %v1920_v8  ;;  %v3263_v4 = vpop.eup %2440  ;;  %v1611_v53 = vadd.f32 -1.4531521, %v1579_v49  ;;  %v1899_v63 = vmul.f32 %v1867_v7, %v3205_v33  ;;  %v1516_v5 = vadd.f32 1.0, %v1484_v40 }
  0xf4   : > { %2186 = vst.msk [vmem:[%s3073_s19 + $0x98] sm:$0xff] %vm2166_vm5, %v2153_v36  ;;  %v3267_v23 = vadd.f32 %v2960_v28, %v1160_v38  ;;  %v2042_v44 = vmul.f32 %v2010_v0, %v3201_v31  ;;  %v1834_v55 = vmul.f32 %v3195_v50, %v1802_v45  ;;  %v1755_v57 = vmul.f32 %v3218_v54, %v1723_v42 }
  0xf5   : > { %v1564_v18 = vmul.f32 1.0614054, %v3263_v4  ;;  %v2443_v46 = vpop.eup %2442  ;;  %v1403_v43 = vsel %vm1371_vm12, 1.0, %v2535_v3  ;;  %v1643_v33 = vmul.f32 %v3249_v51, %v1611_v53  ;;  %v1884_v61 = vmul.f32 %v1852_v39, %v3222_v1 }
  0xf6   : > { %2446 = vrcp.f32 %v1516_v5  ;;  %v2074_v31 = vadd.f32 1.0, %v2042_v44  ;;  %v1994_v9 = vmul.f32 %v2443_v46, %v1834_v55  ;;  %v1787_v50 = vadd.f32 0.2548296, %v1755_v57  ;;  %v1275_v46 = vld [vmem:[%s3053_s15 + $0x28] sm:$0xff] }
  0xf7   : > { %vm1387_vm13 = vcmp.ge.f32.partialorder %v3186_v21, 0.0  ;;  %v1596_v32 = vadd.f32 -1.4531521, %v1564_v18  ;;  %v1675_v2 = vadd.f32 1.4214138, %v1643_v33  ;;  %v1208_v14 = vadd.f32 %v1207_v60, %v998_v58  ;;  %v953_v58 = vpop.f32.mrf.mxu0  ;;  %v1162_v60 = vpop.f32.mrf.mxu1 }
  0xf8   : > { %v1952_v34 = vmul.f32 1.442695, %v1899_v63  ;;  %v3281_v12 = vmul.f32 0.70710677, %v3267_v23  ;;  %v2106_v29 = vmul.f32 %v2074_v31, %v3192_v27  ;;  %v2026_v16 = vsub.f32 1.0, %v1994_v9  ;;  %v1210_v31 = vpop.f32.mrf.mxu3 }
  0xf9   : > { %v2445_v15 = vpop.eup %2444  ;;  %v1819_v1 = vmul.f32 %v3218_v54, %v1787_v50  ;;  %v1628_v59 = vmul.f32 %v3263_v4, %v1596_v32  ;;  %v1707_v19 = vmul.f32 %v3249_v51, %v1675_v2  ;;  %v1922_v20 = vmul.f32 1.442695, %v1884_v61 }
  0xfa   : > { %v1868_v62 = vsub.f32 0.0, %v3253_v25  ;;  %v3289_v8 = vand.u32 2147483647, %v3281_v12  ;;  %v2138_v47 = vadd.f32 %v2106_v29, %v1274_v6  ;;  %v2058_v24 = vmul.f32 %v2026_v16, %v1418_v22  ;;  %v1290_v22 = vld [vmem:[%s3053_s15 + $0xa0] sm:$0xff]  ;;  %v1001_v6 = vpop.f32.mrf.mxu2 }
  0xfb   : > { %v1979_v52 = vmul.f32 %v2445_v15, %v1819_v1  ;;  %v1660_v30 = vadd.f32 1.4214138, %v1628_v59  ;;  %v1739_v7 = vadd.f32 -0.28449672, %v1707_v19  ;;  %2448 = vpow2.f32 %v1952_v34 }
  0xfc   : > { %v3291_v27 = vpop.eup %2446  ;;  %v1469_v54 = vmul.f32 0.3275911, %v3289_v8  ;;  %v3295_v38 = vadd.f32 %v2960_v28, %v1208_v14  ;;  %2171 = vst.msk [vmem:[%s3073_s19 + $0x20] sm:$0xff] %vm2166_vm5, %v2138_v47  ;;  %v2090_v36 = vadd.f32 1.0, %v2058_v24  ;;  %2450 = vpow2.f32 %v1922_v20 }
  0xfd   : > { %v2011_v37 = vsub.f32 1.0, %v1979_v52  ;;  %v1692_v56 = vmul.f32 %v3263_v4, %v1660_v30  ;;  %v1580_v17 = vmul.f32 1.0614054, %v3291_v27  ;;  %v1771_v49 = vmul.f32 %v3249_v51, %v1739_v7 }
  0xfe   : > { %v1900_v39 = vmul.f32 %v1868_v62, %v3253_v25  ;;  %v1501_v40 = vadd.f32 1.0, %v1469_v54  ;;  %v2122_v0 = vmul.f32 %v2090_v36, %v3233_v11  ;;  %v1307_v63 = vmul.f32 0.5, %v3138_v26 }
  0xff   : > { %v2043_v45 = vmul.f32 %v2011_v37, %v1403_v43  ;;  %v1724_v42 = vadd.f32 -0.28449672, %v1692_v56  ;;  %v1612_v53 = vadd.f32 -1.4531521, %v1580_v17  ;;  %v1803_v5 = vadd.f32 0.2548296, %v1771_v49 }
 0x100   : > { %2452 = vrcp.f32 %v1501_v40  ;;  %v3307_v44 = vmul.f32 0.70710677, %v3295_v38  ;;  %v2154_v55 = vadd.f32 %v2122_v0, %v1290_v22  ;;  %v1419_v26 = vsel %vm1387_vm13, 1.0, %v2535_v3 }
 0x101   : > { %v2075_v57 = vadd.f32 1.0, %v2043_v45  ;;  %v1756_v18 = vmul.f32 %v3263_v4, %v1724_v42  ;;  %v1644_v25 = vmul.f32 %v3291_v27, %v1612_v53  ;;  %v2449_v11 = vpop.eup %2448  ;;  %v1835_v43 = vmul.f32 %v3249_v51, %v1803_v5  ;;  %v956_v45 = vpop.f32.mrf.mxu0 }
 0x102   : > { %v1954_v33 = vmul.f32 1.442695, %v1900_v39  ;;  %v3317_v61 = vand.u32 2147483647, %v3307_v44  ;;  %2187 = vst.msk [vmem:[%s3073_s19 + $0xa0] sm:$0xff] %vm2166_vm5, %v2154_v55  ;;  %vm1372_vm14 = vcmp.ge.f32.partialorder %v3215_v48, 0.0  ;;  %v2451_v2 = vpop.eup %2450  ;;  %v1163_v14 = vadd.f32 %v1162_v60, %v953_v58  ;;  %v1165_v42 = vpop.f32.mrf.mxu1 }
 0x103   : > { %v2107_v9 = vmul.f32 %v2075_v57, %v1307_v63  ;;  %v1788_v50 = vadd.f32 0.2548296, %v1756_v18  ;;  %v1676_v32 = vadd.f32 1.4214138, %v1644_v25  ;;  %v1995_v34 = vmul.f32 %v2449_v11, %v1835_v43  ;;  %v1276_v60 = vld [vmem:[%s3053_s15 + $0x30] sm:$0xff] }
 0x104   : > { %v1853_v21 = vsub.f32 0.0, %v3289_v8  ;;  %v1485_v51 = vmul.f32 0.3275911, %v3317_v61  ;;  %v1211_v1 = vadd.f32 %v1210_v31, %v1001_v6  ;;  %2454 = vpow2.f32 %v1954_v33 }
 0x105   : > { %v2139_v15 = vadd.f32 %v2107_v9, %v1275_v46  ;;  %v1820_v29 = vmul.f32 %v3263_v4, %v1788_v50  ;;  %v1708_v16 = vmul.f32 %v3291_v27, %v1676_v32  ;;  %v2027_v19 = vsub.f32 1.0, %v1995_v34  ;;  %v1004_v34 = vpop.f32.mrf.mxu2 }
 0x106   : > { %v3326_v59 = vpop.eup %2452  ;;  %v1517_v20 = vadd.f32 1.0, %v1485_v51  ;;  %v3329_v62 = vadd.f32 %v2960_v28, %v1163_v14  ;;  %v3335_v4 = vadd.f32 %v2960_v28, %v1211_v1  ;;  %v1323_v30 = vmul.f32 0.5, %v3171_v10  ;;  %v1291_v10 = vld [vmem:[%s3053_s15 + $0xa8] sm:$0xff] }
 0x107   : > { %2172 = vst.msk [vmem:[%s3073_s19 + $0x28] sm:$0xff] %vm2166_vm5, %v2139_v15  ;;  %v1980_v47 = vmul.f32 %v2451_v2, %v1820_v29  ;;  %v1740_v24 = vadd.f32 -0.28449672, %v1708_v16  ;;  %v1565_v52 = vmul.f32 1.0614054, %v3326_v59  ;;  %v2059_v7 = vmul.f32 %v2027_v19, %v1419_v26 }
 0x108   : > { %v1885_v54 = vmul.f32 %v1853_v21, %v3289_v8  ;;  %2456 = vrcp.f32 %v1517_v20  ;;  %v3341_v17 = vmul.f32 0.70710677, %v3329_v62  ;;  %v1404_v49 = vsel %vm1372_vm14, 1.0, %v2535_v3  ;;  %v1213_v21 = vpop.f32.mrf.mxu3 }
 0x109   : > { %v2012_v36 = vsub.f32 1.0, %v1980_v47  ;;  %v1772_v37 = vmul.f32 %v3291_v27, %v1740_v24  ;;  %v1597_v56 = vadd.f32 -1.4531521, %v1565_v52  ;;  %v2091_v22 = vadd.f32 1.0, %v2059_v7 }
 0x10a   : > { %vm1388_vm15 = vcmp.ge.f32.partialorder %v3245_v41, 0.0  ;;  %v3348_v28 = vmul.f32 0.70710677, %v3335_v4  ;;  %v1308_v8 = vmul.f32 0.5, %v3208_v35  ;;  %v2455_v53 = vpop.eup %2454  ;;  %v1324_v48 = vmul.f32 0.5, %v3236_v13  ;;  %v1168_v7 = vpop.f32.mrf.mxu1 }
 0x10b   : > { %v2044_v39 = vmul.f32 %v2012_v36, %v1404_v49  ;;  %v1804_v40 = vadd.f32 0.2548296, %v1772_v37  ;;  %v1629_v0 = vmul.f32 %v3326_v59, %v1597_v56  ;;  %v2123_v63 = vmul.f32 %v2091_v22, %v1323_v30  ;;  %v959_v30 = vpop.f32.mrf.mxu0  ;;  %v1292_v36 = vld [vmem:[%s3053_s15 + $0xb0] sm:$0xff] }
 0x10c   : > { %v1924_v5 = vmul.f32 1.442695, %v1885_v54  ;;  %v3355_v41 = vand.u32 2147483647, %v3341_v17  ;;  %v1420_v57 = vsel %vm1388_vm15, 1.0, %v2535_v3  ;;  %v1869_v11 = vsub.f32 0.0, %v3317_v61 }
 0x10d   : > { %v2076_v55 = vadd.f32 1.0, %v2044_v39  ;;  %v1836_v35 = vmul.f32 %v3291_v27, %v1804_v40  ;;  %v1661_v18 = vadd.f32 1.4214138, %v1629_v0  ;;  %v2155_v58 = vadd.f32 %v2123_v63, %v1291_v10 }
 0x10e   : > { %v3359_v25 = vpop.eup %2456  ;;  %v1470_v46 = vmul.f32 0.3275911, %v3355_v41  ;;  %v3365_v13 = vand.u32 2147483647, %v3348_v28  ;;  %vm1373_vm0 = vcmp.ge.f32.partialorder %v3281_v12, 0.0  ;;  %2458 = vpow2.f32 %v1924_v5 }
 0x10f   : > { %v2108_v26 = vmul.f32 %v2076_v55, %v1308_v8  ;;  %v1996_v43 = vmul.f32 %v2455_v53, %v1836_v35  ;;  %v1693_v33 = vmul.f32 %v3326_v59, %v1661_v18  ;;  %v1581_v6 = vmul.f32 1.0614054, %v3359_v25  ;;  %2188 = vst.msk [vmem:[%s3073_s19 + $0xa8] sm:$0xff] %vm2166_vm5, %v2155_v58  ;;  %v3393_v12 = vld [vmem:[%s3808_s8] ss:$0 sm:$0xff] }
 0x110   : > { %v1502_v27 = vadd.f32 1.0, %v1470_v46  ;;  %v1486_v31 = vmul.f32 0.3275911, %v3365_v13  ;;  %v3374_v51 = vmul.f32 0.5, %v3267_v23  ;;  %v1901_v14 = vmul.f32 %v1869_v11, %v3317_v61 }
 0x111   : > { %v2140_v9 = vadd.f32 %v2108_v26, %v1276_v60  ;;  %v2028_v50 = vsub.f32 1.0, %v1996_v43  ;;  %v1725_v32 = vadd.f32 -0.28449672, %v1693_v33  ;;  %v1613_v2 = vadd.f32 -1.4531521, %v1581_v6 }
 0x112   : > { %2460 = vrcp.f32 %v1502_v27  ;;  %v1518_v15 = vadd.f32 1.0, %v1486_v31  ;;  %v1166_v19 = vadd.f32 %v1165_v42, %v956_v45  ;;  %v1405_v20 = vsel %vm1373_vm0, 1.0, %v2535_v3  ;;  %v1007_v27 = vpop.f32.mrf.mxu2 }
 0x113   : > { %2173 = vst.msk [vmem:[%s3073_s19 + $0x30] sm:$0xff] %vm2166_vm5, %v2140_v9  ;;  %v2060_v29 = vmul.f32 %v2028_v50, %v1420_v57  ;;  %v1757_v16 = vmul.f32 %v3326_v59, %v1725_v32  ;;  %v1645_v1 = vmul.f32 %v3359_v25, %v1613_v2  ;;  %v3385_v23 = vmul.f32 0.5, %v3295_v38 }
 0x114   : > { %vm1389_vm1 = vcmp.ge.f32.partialorder %v3307_v44, 0.0  ;;  %v1214_v61 = vadd.f32 %v1213_v21, %v1004_v34  ;;  %2462 = vrcp.f32 %v1518_v15  ;;  %v2459_v54 = vpop.eup %2458  ;;  %v1956_v37 = vmul.f32 1.442695, %v1901_v14 }
 0x115   : > { %v2092_v47 = vadd.f32 1.0, %v2060_v29  ;;  %v1789_v24 = vadd.f32 0.2548296, %v1757_v16  ;;  %v1677_v52 = vadd.f32 1.4214138, %v1645_v1  ;;  %v1854_v56 = vsub.f32 0.0, %v3355_v41 }
 0x116   : > { %v3396_v38 = vadd.f32 %v3393_v12, %v1166_v19  ;;  %v3399_v22 = vadd.f32 %v3393_v12, %v1214_v61  ;;  %v3405_v8 = vsel %vm1389_vm1, 1.0, %v2535_v3  ;;  %v3411_v0 = vmul.f32 0.5, %v3329_v62  ;;  %v1277_v29 = vld [vmem:[%s3053_s15 + $0x38] sm:$0xff] }
 0x117   : > { %v2124_v49 = vmul.f32 %v2092_v47, %v1324_v48  ;;  %v1821_v10 = vmul.f32 %v3326_v59, %v1789_v24  ;;  %v1709_v39 = vmul.f32 %v3359_v25, %v1677_v52  ;;  %v1169_v59 = vadd.f32 %v1168_v7, %v959_v30 }
 0x118   : > { %v3408_v40 = vpop.eup %2460  ;;  %v3414_v45 = vmul.f32 0.70710677, %v3396_v38  ;;  %v3417_v42 = vmul.f32 0.70710677, %v3399_v22  ;;  %2464 = vpow2.f32 %v1956_v37  ;;  %v1886_v5 = vmul.f32 %v1854_v56, %v3355_v41  ;;  %v1171_v37 = vpop.f32.mrf.mxu1 }
 0x119   : > { %v2156_v53 = vadd.f32 %v2124_v49, %v1292_v36  ;;  %v1981_v63 = vmul.f32 %v2459_v54, %v1821_v10  ;;  %v1741_v44 = vadd.f32 -0.28449672, %v1709_v39  ;;  %v1566_v48 = vmul.f32 1.0614054, %v3408_v40  ;;  %v962_v36 = vpop.f32.mrf.mxu0 }
 0x11a   : > { %v1870_v55 = vsub.f32 0.0, %v3365_v13  ;;  %v3423_v62 = vand.u32 2147483647, %v3414_v45  ;;  %v3425_v57 = vpop.eup %2462  ;;  %v3431_v60 = vmul.f32 0.5, %v3335_v4  ;;  %vm1374_vm2 = vcmp.ge.f32.partialorder %v3341_v17, 0.0  ;;  %v1216_v4 = vpop.f32.mrf.mxu3 }
 0x11b   : > { %2189 = vst.msk [vmem:[%s3073_s19 + $0xb0] sm:$0xff] %vm2166_vm5, %v2156_v53  ;;  %v2013_v35 = vsub.f32 1.0, %v1981_v63  ;;  %v1773_v18 = vmul.f32 %v3359_v25, %v1741_v44  ;;  %v1598_v58 = vadd.f32 -1.4531521, %v1566_v48  ;;  %v1582_v41 = vmul.f32 1.0614054, %v3425_v57 }
 0x11c   : > { %v1471_v11 = vmul.f32 0.3275911, %v3423_v62  ;;  %v3437_v46 = vadd.f32 %v3393_v12, %v1169_v59  ;;  %v3441_v6 = vand.u32 2147483647, %v3417_v42  ;;  %v1926_v31 = vmul.f32 1.442695, %v1886_v5 }
 0x11d   : > { %v2045_v26 = vmul.f32 %v2013_v35, %v1405_v20  ;;  %v1805_v43 = vadd.f32 0.2548296, %v1773_v18  ;;  %v1630_v33 = vmul.f32 %v3408_v40, %v1598_v58  ;;  %v1614_v9 = vadd.f32 -1.4531521, %v1582_v41  ;;  %v1293_v18 = vld [vmem:[%s3053_s15 + $0xb8] sm:$0xff] }
 0x11e   : > { %v1902_v50 = vmul.f32 %v1870_v55, %v3365_v13  ;;  %v1503_v32 = vadd.f32 1.0, %v1471_v11  ;;  %v1487_v14 = vmul.f32 0.3275911, %v3441_v6  ;;  %v2465_v15 = vpop.eup %2464  ;;  %v3449_v1 = vmul.f32 0.70710677, %v3437_v46 }
 0x11f   : > { %v2077_v2 = vadd.f32 1.0, %v2045_v26  ;;  %v1837_v34 = vmul.f32 %v3359_v25, %v1805_v43  ;;  %v1662_v21 = vadd.f32 1.4214138, %v1630_v33  ;;  %v1646_v16 = vmul.f32 %v3425_v57, %v1614_v9 }
 0x120   : > { %2466 = vrcp.f32 %v1503_v32  ;;  %v1217_v19 = vadd.f32 %v1216_v4, %v1007_v27  ;;  %v1519_v47 = vadd.f32 1.0, %v1487_v14  ;;  %v1406_v25 = vsel %vm1374_vm2, 1.0, %v2535_v3 }
 0x121   : > { %v2109_v20 = vmul.f32 %v2077_v2, %v3374_v51  ;;  %v1997_v61 = vmul.f32 %v2465_v15, %v1837_v34  ;;  %v1694_v13 = vmul.f32 %v3408_v40, %v1662_v21  ;;  %vm1390_vm3 = vcmp.ge.f32.partialorder %v3348_v28, 0.0 }
 0x122   : > { %v1678_v24 = vadd.f32 1.4214138, %v1646_v16  ;;  %v1958_v52 = vmul.f32 1.442695, %v1902_v50  ;;  %2468 = vrcp.f32 %v1519_v47  ;;  %v1855_v56 = vsub.f32 0.0, %v3423_v62 }
 0x123   : > { %v2141_v30 = vadd.f32 %v2109_v20, %v1277_v29  ;;  %v2029_v7 = vsub.f32 1.0, %v1997_v61  ;;  %v1726_v54 = vadd.f32 -0.28449672, %v1694_v13  ;;  %2470 = vpow2.f32 %v1926_v31 }
 0x124   : > { %v1710_v51 = vmul.f32 %v3425_v57, %v1678_v24  ;;  %v3460_v49 = vand.u32 2147483647, %v3449_v1  ;;  %v1422_v39 = vsel %vm1390_vm3, 1.0, %v2535_v3  ;;  %v3470_v59 = vadd.f32 %v3393_v12, %v1217_v19  ;;  %v1010_v24 = vpop.f32.mrf.mxu2 }
 0x125   : > { %2174 = vst.msk [vmem:[%s3073_s19 + $0x38] sm:$0xff] %vm2166_vm5, %v2141_v30  ;;  %v2061_v17 = vmul.f32 %v2029_v7, %v3405_v8  ;;  %v1758_v10 = vmul.f32 %v3408_v40, %v1726_v54  ;;  %2472 = vpow2.f32 %v1958_v52  ;;  %v1172_v48 = vadd.f32 %v1171_v37, %v962_v36  ;;  %v1219_v52 = vpop.f32.mrf.mxu3 }
 0x126   : > { %v3472_v53 = vpop.eup %2466  ;;  %v1742_v63 = vadd.f32 -0.28449672, %v1710_v51  ;;  %v1472_v44 = vmul.f32 0.3275911, %v3460_v49  ;;  %v1871_v35 = vsub.f32 0.0, %v3441_v6  ;;  %v3480_v58 = vmul.f32 0.5, %v3396_v38 }
 0x127   : > { %v2093_v5 = vadd.f32 1.0, %v2061_v17  ;;  %v1790_v55 = vadd.f32 0.2548296, %v1758_v10  ;;  %v1567_v8 = vmul.f32 1.0614054, %v3472_v53  ;;  %v1887_v41 = vmul.f32 %v1855_v56, %v3423_v62  ;;  %v1278_v10 = vld [vmem:[%s3053_s15 + $0x40] sm:$0xff] }
 0x128   : > { %v1774_v28 = vmul.f32 %v3425_v57, %v1742_v63  ;;  %v1504_v11 = vadd.f32 1.0, %v1472_v44  ;;  %v3483_v26 = vpop.eup %2468  ;;  %v3488_v4 = vmul.f32 0.70710677, %v3470_v59  ;;  %v3492_v38 = vadd.f32 %v3393_v12, %v1172_v48 }
 0x129   : > { %v2125_v43 = vmul.f32 %v2093_v5, %v3385_v23  ;;  %v1822_v33 = vmul.f32 %v3408_v40, %v1790_v55  ;;  %v1599_v27 = vadd.f32 -1.4531521, %v1567_v8  ;;  %v2471_v31 = vpop.eup %2470  ;;  %v1583_v50 = vmul.f32 1.0614054, %v3483_v26 }
 0x12a   : > { %v1806_v9 = vadd.f32 0.2548296, %v1774_v28  ;;  %2474 = vrcp.f32 %v1504_v11  ;;  %v1903_v23 = vmul.f32 %v1871_v35, %v3441_v6  ;;  %vm1375_vm4 = vcmp.ge.f32.partialorder %v3414_v45, 0.0  ;;  %v1294_v11 = vld [vmem:[%s3053_s15 + $0xc0] sm:$0xff] }
 0x12b   : > { %v2157_v62 = vadd.f32 %v2125_v43, %v1293_v18  ;;  %v1982_v32 = vmul.f32 %v2471_v31, %v1822_v33  ;;  %v1631_v2 = vmul.f32 %v3472_v53, %v1599_v27  ;;  %v2473_v40 = vpop.eup %2472  ;;  %v3499_v21 = vmul.f32 0.5, %v3399_v22  ;;  %v965_v27 = vpop.f32.mrf.mxu0 }
 0x12c   : > { %v1838_v34 = vmul.f32 %v3425_v57, %v1806_v9  ;;  %v1615_v14 = vadd.f32 -1.4531521, %v1583_v50  ;;  %v3504_v16 = vand.u32 2147483647, %v3488_v4  ;;  %v1928_v20 = vmul.f32 1.442695, %v1887_v41  ;;  %v1174_v31 = vpop.f32.mrf.mxu1 }
 0x12d   : > { %2190 = vst.msk [vmem:[%s3073_s19 + $0xb8] sm:$0xff] %vm2166_vm5, %v2157_v62  ;;  %v2014_v15 = vsub.f32 1.0, %v1982_v32  ;;  %v1663_v29 = vadd.f32 1.4214138, %v1631_v2  ;;  %v3508_v61 = vmul.f32 0.70710677, %v3492_v38  ;;  %v1220_v48 = vadd.f32 %v1219_v52, %v1010_v24 }
 0x12e   : > { %v1998_v19 = vmul.f32 %v2473_v40, %v1838_v34  ;;  %v1647_v6 = vmul.f32 %v3483_v26, %v1615_v14  ;;  %v1960_v13 = vmul.f32 1.442695, %v1903_v23  ;;  %v1488_v47 = vmul.f32 0.3275911, %v3504_v16 }
 0x12f   : > { %v2046_v57 = vmul.f32 %v2014_v15, %v1406_v25  ;;  %v1695_v22 = vmul.f32 %v3472_v53, %v1663_v29  ;;  %v1856_v36 = vsub.f32 0.0, %v3460_v49  ;;  %v3516_v37 = vand.u32 2147483647, %v3508_v61 }
 0x130   : > { %v3512_v30 = vpop.eup %2474  ;;  %v2030_v7 = vsub.f32 1.0, %v1998_v19  ;;  %v1679_v54 = vadd.f32 1.4214138, %v1647_v6  ;;  %v1520_v17 = vadd.f32 1.0, %v1488_v47  ;;  %2476 = vpow2.f32 %v1928_v20  ;;  %v1222_v47 = vpop.f32.mrf.mxu3 }
 0x131   : > { %v2078_v51 = vadd.f32 1.0, %v2046_v57  ;;  %v1727_v56 = vadd.f32 -0.28449672, %v1695_v22  ;;  %v1568_v25 = vmul.f32 1.0614054, %v3512_v30  ;;  %v1888_v28 = vmul.f32 %v1856_v36, %v3460_v49 }
 0x132   : > { %v2062_v63 = vmul.f32 %v2030_v7, %v1422_v39  ;;  %v1711_v44 = vmul.f32 %v3483_v26, %v1679_v54  ;;  %2478 = vrcp.f32 %v1520_v17  ;;  %v1473_v33 = vmul.f32 0.3275911, %v3516_v37 }
 0x133   : > { %v2110_v5 = vmul.f32 %v2078_v51, %v3411_v0  ;;  %v1759_v55 = vmul.f32 %v3472_v53, %v1727_v56  ;;  %v1600_v8 = vadd.f32 -1.4531521, %v1568_v25  ;;  %2480 = vpow2.f32 %v1960_v13  ;;  %v1013_v13 = vpop.f32.mrf.mxu2 }
 0x134   : > { %v2094_v35 = vadd.f32 1.0, %v2062_v63  ;;  %v1743_v18 = vadd.f32 -0.28449672, %v1711_v44  ;;  %v1407_v9 = vsel %vm1375_vm4, 1.0, %v2535_v3  ;;  %vm1391_vm6 = vcmp.ge.f32.partialorder %v3417_v42, 0.0 }
 0x135   : > { %v2142_v41 = vadd.f32 %v2110_v5, %v1278_v10  ;;  %v1791_v43 = vadd.f32 0.2548296, %v1759_v55  ;;  %v1632_v39 = vmul.f32 %v3512_v30, %v1600_v8  ;;  %v1505_v32 = vadd.f32 1.0, %v1473_v33 }
 0x136   : > { %v2126_v0 = vmul.f32 %v2094_v35, %v3431_v60  ;;  %v1775_v50 = vmul.f32 %v3483_v26, %v1743_v18  ;;  %v3537_v2 = vadd.f32 %v3393_v12, %v1220_v48  ;;  %v2477_v23 = vpop.eup %2476  ;;  %v1930_v34 = vmul.f32 1.442695, %v1888_v28  ;;  %v1279_v18 = vld [vmem:[%s3053_s15 + $0x48] sm:$0xff] }
 0x137   : > { %2175 = vst.msk [vmem:[%s3073_s19 + $0x40] sm:$0xff] %vm2166_vm5, %v2142_v41  ;;  %v1823_v49 = vmul.f32 %v3472_v53, %v1791_v43  ;;  %v1664_v62 = vadd.f32 1.4214138, %v1632_v39  ;;  %v1175_v45 = vadd.f32 %v1174_v31, %v965_v27  ;;  %v1872_v19 = vsub.f32 0.0, %v3504_v16 }
 0x138   : > { %v2158_v60 = vadd.f32 %v2126_v0, %v1294_v11  ;;  %v1807_v40 = vadd.f32 0.2548296, %v1775_v50  ;;  %v3539_v14 = vpop.eup %2478  ;;  %2482 = vrcp.f32 %v1505_v32  ;;  %v1423_v53 = vsel %vm1391_vm6, 1.0, %v2535_v3 }
 0x139   : > { %v1983_v15 = vmul.f32 %v2477_v23, %v1823_v49  ;;  %v1696_v29 = vmul.f32 %v3512_v30, %v1664_v62  ;;  %v2481_v20 = vpop.eup %2480  ;;  %v1584_v57 = vmul.f32 1.0614054, %v3539_v14  ;;  %v3551_v22 = vmul.f32 0.70710677, %v3537_v2  ;;  %v1295_v49 = vld [vmem:[%s3053_s15 + $0xc8] sm:$0xff] }
 0x13a   : > { %2191 = vst.msk [vmem:[%s3073_s19 + $0xc0] sm:$0xff] %vm2166_vm5, %v2158_v60  ;;  %v1839_v6 = vmul.f32 %v3483_v26, %v1807_v40  ;;  %v1857_v7 = vsub.f32 0.0, %v3516_v37  ;;  %v3555_v54 = vadd.f32 %v3393_v12, %v1175_v45  ;;  %2484 = vpow2.f32 %v1930_v34 }
 0x13b   : > { %v2015_v24 = vsub.f32 1.0, %v1983_v15  ;;  %v1728_v52 = vadd.f32 -0.28449672, %v1696_v29  ;;  %v1616_v42 = vadd.f32 -1.4531521, %v1584_v57  ;;  %v1904_v25 = vmul.f32 %v1872_v19, %v3504_v16  ;;  %v968_v57 = vpop.f32.mrf.mxu0 }
 0x13c   : > { %v1999_v36 = vmul.f32 %v2481_v20, %v1839_v6  ;;  %v3558_v26 = vand.u32 2147483647, %v3551_v22  ;;  %v1223_v17 = vadd.f32 %v1222_v47, %v1013_v13  ;;  %vm1376_vm7 = vcmp.ge.f32.partialorder %v3449_v1, 0.0  ;;  %v1177_v13 = vpop.f32.mrf.mxu1 }
 0x13d   : > { %v2047_v51 = vmul.f32 %v2015_v24, %v1407_v9  ;;  %v1760_v56 = vmul.f32 %v3512_v30, %v1728_v52  ;;  %v1648_v63 = vmul.f32 %v3539_v14, %v1616_v42  ;;  %v1889_v8 = vmul.f32 %v1857_v7, %v3516_v37 }
 0x13e   : > { %v2031_v10 = vsub.f32 1.0, %v1999_v36  ;;  %v1489_v44 = vmul.f32 0.3275911, %v3558_v26  ;;  %v3565_v48 = vpop.eup %2482  ;;  %v3569_v35 = vmul.f32 0.70710677, %v3555_v54  ;;  %v3576_v27 = vadd.f32 %v3393_v12, %v1223_v17 }
 0x13f   : > { %v2079_v5 = vadd.f32 1.0, %v2047_v51  ;;  %v1792_v55 = vadd.f32 0.2548296, %v1760_v56  ;;  %v1680_v28 = vadd.f32 1.4214138, %v1648_v63  ;;  %v1408_v62 = vsel %vm1376_vm7, 1.0, %v2535_v3  ;;  %v1225_v63 = vpop.f32.mrf.mxu3 }
 0x140   : > { %v2063_v16 = vmul.f32 %v2031_v10, %v1423_v53  ;;  %v1569_v41 = vmul.f32 1.0614054, %v3565_v48  ;;  %v1521_v11 = vadd.f32 1.0, %v1489_v44  ;;  %v1962_v33 = vmul.f32 1.442695, %v1904_v25  ;;  %v2485_v37 = vpop.eup %2484  ;;  %v1280_v51 = vld [vmem:[%s3053_s15 + $0x50] sm:$0xff]  ;;  %v1016_v10 = vpop.f32.mrf.mxu2 }
 0x141   : > { %v2111_v43 = vmul.f32 %v2079_v5, %v3480_v58  ;;  %v1824_v39 = vmul.f32 %v3512_v30, %v1792_v55  ;;  %v1712_v0 = vmul.f32 %v3539_v14, %v1680_v28  ;;  %v1932_v32 = vmul.f32 1.442695, %v1889_v8 }
 0x142   : > { %v2095_v31 = vadd.f32 1.0, %v2063_v16  ;;  %v1601_v9 = vadd.f32 -1.4531521, %v1569_v41  ;;  %2486 = vrcp.f32 %v1521_v11  ;;  %v1442_v40 = vand.u32 2147483647, %v3569_v35 }
 0x143   : > { %v2143_v50 = vadd.f32 %v2111_v43, %v1279_v18  ;;  %v1984_v58 = vmul.f32 %v2485_v37, %v1824_v39  ;;  %v1744_v23 = vadd.f32 -0.28449672, %v1712_v0  ;;  %2488 = vpow2.f32 %v1962_v33 }
 0x144   : > { %v2127_v30 = vmul.f32 %v2095_v31, %v3499_v21  ;;  %v1633_v60 = vmul.f32 %v3565_v48, %v1601_v9  ;;  %v1873_v45 = vsub.f32 0.0, %v3558_v26  ;;  %v3590_v15 = vmul.f32 0.70710677, %v3576_v27 }
 0x145   : > { %2176 = vst.msk [vmem:[%s3073_s19 + $0x48] sm:$0xff] %vm2166_vm5, %v2143_v50  ;;  %v2016_v34 = vsub.f32 1.0, %v1984_v58  ;;  %v1776_v29 = vmul.f32 %v3539_v14, %v1744_v23  ;;  %v1474_v21 = vmul.f32 0.3275911, %v1442_v40  ;;  %v1312_v20 = vmul.f32 0.5, %v3437_v46 }
 0x146   : > { %v2159_v1 = vadd.f32 %v2127_v30, %v1295_v49  ;;  %v1665_v19 = vadd.f32 1.4214138, %v1633_v60  ;;  %v3595_v6 = vand.u32 2147483647, %v3590_v15  ;;  %vm1392_vm8 = vcmp.ge.f32.partialorder %v3488_v4, 0.0 }
 0x147   : > { %v2048_v53 = vmul.f32 %v2016_v34, %v1408_v62  ;;  %v1808_v24 = vadd.f32 0.2548296, %v1776_v29  ;;  %v1506_v7 = vadd.f32 1.0, %v1474_v21  ;;  %2490 = vpow2.f32 %v1932_v32  ;;  %v971_v34 = vpop.f32.mrf.mxu0 }
 0x148   : > { %v3597_v47 = vpop.eup %2486  ;;  %2192 = vst.msk [vmem:[%s3073_s19 + $0xc8] sm:$0xff] %vm2166_vm5, %v2159_v1  ;;  %v1697_v52 = vmul.f32 %v3565_v48, %v1665_v19  ;;  %v1490_v42 = vmul.f32 0.3275911, %v3595_v6  ;;  %v1905_v17 = vmul.f32 %v1873_v45, %v3558_v26  ;;  %v1858_v8 = vsub.f32 0.0, %v1442_v40  ;;  %v1180_v45 = vpop.f32.mrf.mxu1  ;;  %v1296_v1 = vld [vmem:[%s3053_s15 + $0xd0] sm:$0xff] }
 0x149   : > { %v2080_v36 = vadd.f32 1.0, %v2048_v53  ;;  %v1585_v46 = vmul.f32 1.0614054, %v3597_v47  ;;  %v1840_v56 = vmul.f32 %v3539_v14, %v1808_v24  ;;  %2492 = vrcp.f32 %v1506_v7  ;;  %v2489_v44 = vpop.eup %2488 }
 0x14a   : > { %v1729_v25 = vadd.f32 -0.28449672, %v1697_v52  ;;  %v1522_v18 = vadd.f32 1.0, %v1490_v42  ;;  %v1178_v41 = vadd.f32 %v1177_v13, %v968_v57  ;;  %v1424_v14 = vsel %vm1392_vm8, 1.0, %v2535_v3 }
 0x14b   : > { %v2112_v5 = vmul.f32 %v2080_v36, %v1312_v20  ;;  %v1617_v55 = vadd.f32 -1.4531521, %v1585_v46  ;;  %v2000_v16 = vmul.f32 %v2489_v44, %v1840_v56  ;;  %v1226_v43 = vadd.f32 %v1225_v63, %v1016_v10 }
 0x14c   : > { %v1761_v28 = vmul.f32 %v3565_v48, %v1729_v25  ;;  %vm1377_vm9 = vcmp.ge.f32.partialorder %v3508_v61, 0.0  ;;  %2494 = vrcp.f32 %v1522_v18  ;;  %v1964_v0 = vmul.f32 1.442695, %v1905_v17 }
 0x14d   : > { %v2144_v11 = vadd.f32 %v2112_v5, %v1280_v51  ;;  %v1649_v26 = vmul.f32 %v3597_v47, %v1617_v55  ;;  %v2032_v39 = vsub.f32 1.0, %v2000_v16  ;;  %v2491_v37 = vpop.eup %2490  ;;  %v1890_v9 = vmul.f32 %v1858_v8, %v1442_v40  ;;  %v1019_v5 = vpop.f32.mrf.mxu2 }
 0x14e   : > { %v1793_v33 = vadd.f32 0.2548296, %v1761_v28  ;;  %v3617_v50 = vadd.f32 %v3393_v12, %v1178_v41  ;;  %v1328_v49 = vmul.f32 0.5, %v3470_v59  ;;  %v1313_v58 = vmul.f32 0.5, %v3492_v38  ;;  %v1228_v55 = vpop.f32.mrf.mxu3  ;;  %v1281_v41 = vld [vmem:[%s3053_s15 + $0x58] sm:$0xff] }
 0x14f   : > { %2177 = vst.msk [vmem:[%s3073_s19 + $0x50] sm:$0xff] %vm2166_vm5, %v2144_v11  ;;  %v1681_v31 = vadd.f32 1.4214138, %v1649_v26  ;;  %v3619_v4 = vpop.eup %2492  ;;  %v2064_v62 = vmul.f32 %v2032_v39, %v1424_v14  ;;  %v3630_v40 = vadd.f32 %v3393_v12, %v1226_v43  ;;  %v1409_v59 = vsel %vm1377_vm9, 1.0, %v2535_v3 }
 0x150   : > { %v1825_v32 = vmul.f32 %v3565_v48, %v1793_v33  ;;  %v1570_v23 = vmul.f32 1.0614054, %v3619_v4  ;;  %v3627_v60 = vmul.f32 0.70710677, %v3617_v50  ;;  %v1874_v48 = vsub.f32 0.0, %v3595_v6 }
 0x151   : > { %v1713_v30 = vmul.f32 %v3597_v47, %v1681_v31  ;;  %v2096_v29 = vadd.f32 1.0, %v2064_v62  ;;  %2496 = vpow2.f32 %v1964_v0  ;;  %v1934_v20 = vmul.f32 1.442695, %v1890_v9 }
 0x152   : > { %v1985_v38 = vmul.f32 %v2491_v37, %v1825_v32  ;;  %v1602_v21 = vadd.f32 -1.4531521, %v1570_v23  ;;  %v3637_v53 = vpop.eup %2494  ;;  %v1443_v24 = vand.u32 2147483647, %v3627_v60  ;;  %v1181_v52 = vadd.f32 %v1180_v45, %v971_v34 }
 0x153   : > { %v1745_v19 = vadd.f32 -0.28449672, %v1713_v30  ;;  %v2128_v57 = vmul.f32 %v2096_v29, %v1328_v49  ;;  %v1586_v36 = vmul.f32 1.0614054, %v3637_v53  ;;  %v3644_v46 = vmul.f32 0.70710677, %v3630_v40 }
 0x154   : > { %v2017_v13 = vsub.f32 1.0, %v1985_v38  ;;  %v1634_v61 = vmul.f32 %v3619_v4, %v1602_v21  ;;  %v1329_v56 = vmul.f32 0.5, %v3537_v2  ;;  %v1475_v25 = vmul.f32 0.3275911, %v1443_v24 }
 0x155   : > { %v1777_v7 = vmul.f32 %v3597_v47, %v1745_v19  ;;  %v2160_v42 = vadd.f32 %v2128_v57, %v1296_v1  ;;  %v1618_v63 = vadd.f32 -1.4531521, %v1586_v36  ;;  %v1906_v44 = vmul.f32 %v1874_v48, %v3595_v6 }
 0x156   : > { %v2049_v51 = vmul.f32 %v2017_v13, %v1409_v59  ;;  %v1666_v10 = vadd.f32 1.4214138, %v1634_v61  ;;  %2498 = vpow2.f32 %v1934_v20  ;;  %v1507_v18 = vadd.f32 1.0, %v1475_v25 }
 0x157   : > { %v1809_v17 = vadd.f32 0.2548296, %v1777_v7  ;;  %2193 = vst.msk [vmem:[%s3073_s19 + $0xd0] sm:$0xff] %vm2166_vm5, %v2160_v42  ;;  %v3651_v16 = vadd.f32 %v3393_v12, %v1181_v52  ;;  %v2497_v28 = vpop.eup %2496  ;;  %v1650_v14 = vmul.f32 %v3637_v53, %v1618_v63  ;;  %v3658_v6 = vand.u32 2147483647, %v3644_v46  ;;  %v1297_v7 = vld [vmem:[%s3053_s15 + $0xd8] sm:$0xff] }
 0x158   : > { %v2081_v8 = vadd.f32 1.0, %v2049_v51  ;;  %v1698_v11 = vmul.f32 %v3619_v4, %v1666_v10  ;;  %vm1393_vm10 = vcmp.ge.f32.partialorder %v3551_v22, 0.0  ;;  %2500 = vrcp.f32 %v1507_v18 }
 0x159   : > { %v1841_v2 = vmul.f32 %v3597_v47, %v1809_v17  ;;  %v1229_v43 = vadd.f32 %v1228_v55, %v1019_v5  ;;  %v1682_v37 = vadd.f32 1.4214138, %v1650_v14  ;;  %v1491_v31 = vmul.f32 0.3275911, %v3658_v6 }
 0x15a   : > { %v2113_v26 = vmul.f32 %v2081_v8, %v1313_v58  ;;  %v1730_v33 = vadd.f32 -0.28449672, %v1698_v11  ;;  %v1966_v47 = vmul.f32 1.442695, %v1906_v44  ;;  %v1859_v9 = vsub.f32 0.0, %v1443_v24  ;;  %v1183_v44 = vpop.f32.mrf.mxu1 }
 0x15b   : > { %v2001_v39 = vmul.f32 %v2497_v28, %v1841_v2  ;;  %v3663_v49 = vmul.f32 0.70710677, %v3651_v16  ;;  %v1714_v58 = vmul.f32 %v3637_v53, %v1682_v37  ;;  %v1523_v30 = vadd.f32 1.0, %v1491_v31  ;;  %v1022_v28 = vpop.f32.mrf.mxu2 }
 0x15c   : > { %v2145_v0 = vadd.f32 %v2113_v26, %v1281_v41  ;;  %v1762_v32 = vmul.f32 %v3619_v4, %v1730_v33  ;;  %v2499_v23 = vpop.eup %2498  ;;  %v1425_v34 = vsel %vm1393_vm10, 1.0, %v2535_v3  ;;  %vm1378_vm11 = vcmp.ge.f32.partialorder %v3569_v35, 0.0  ;;  %v974_v35 = vpop.f32.mrf.mxu0 }
 0x15d   : > { %v2033_v62 = vsub.f32 1.0, %v2001_v39  ;;  %v1444_v45 = vand.u32 2147483647, %v3663_v49  ;;  %v3675_v1 = vadd.f32 %v3393_v12, %v1229_v43  ;;  %v1746_v38 = vadd.f32 -0.28449672, %v1714_v58  ;;  %v1231_v41 = vpop.f32.mrf.mxu3  ;;  %v1282_v58 = vld [vmem:[%s3053_s15 + $0x60] sm:$0xff] }
 0x15e   : > { %2178 = vst.msk [vmem:[%s3073_s19 + $0x58] sm:$0xff] %vm2166_vm5, %v2145_v0  ;;  %v1794_v59 = vadd.f32 0.2548296, %v1762_v32  ;;  %2502 = vrcp.f32 %v1523_v30  ;;  %v3677_v48 = vpop.eup %2500  ;;  %v1314_v19 = vmul.f32 0.5, %v3555_v54  ;;  %v1891_v21 = vmul.f32 %v1859_v9, %v1443_v24 }
 0x15f   : > { %v2065_v29 = vmul.f32 %v2033_v62, %v1425_v34  ;;  %2504 = vpow2.f32 %v1966_v47  ;;  %v1476_v22 = vmul.f32 0.3275911, %v1444_v45  ;;  %v1778_v13 = vmul.f32 %v3637_v53, %v1746_v38 }
 0x160   : > { %v1826_v57 = vmul.f32 %v3619_v4, %v1794_v59  ;;  %v1571_v52 = vmul.f32 1.0614054, %v3677_v48  ;;  %v1410_v61 = vsel %vm1378_vm11, 1.0, %v2535_v3  ;;  %v1875_v36 = vsub.f32 0.0, %v3658_v6 }
 0x161   : > { %v2097_v20 = vadd.f32 1.0, %v2065_v29  ;;  %v1508_v42 = vadd.f32 1.0, %v1476_v22  ;;  %v3689_v54 = vmul.f32 0.70710677, %v3675_v1  ;;  %v1810_v25 = vadd.f32 0.2548296, %v1778_v13 }
 0x162   : > { %v1986_v51 = vmul.f32 %v2499_v23, %v1826_v57  ;;  %v1603_v17 = vadd.f32 -1.4531521, %v1571_v52  ;;  %v1330_v4 = vmul.f32 0.5, %v3576_v27  ;;  %v1936_v10 = vmul.f32 1.442695, %v1891_v21 }
 0x163   : > { %v2129_v24 = vmul.f32 %v2097_v20, %v1329_v56  ;;  %2506 = vrcp.f32 %v1508_v42  ;;  %v3693_v63 = vand.u32 2147483647, %v3689_v54  ;;  %v1842_v18 = vmul.f32 %v3637_v53, %v1810_v25 }
 0x164   : > { %v3695_v5 = vpop.eup %2502  ;;  %v2018_v8 = vsub.f32 1.0, %v1986_v51  ;;  %v1635_v56 = vmul.f32 %v3677_v48, %v1603_v17  ;;  %vm1394_vm12 = vcmp.ge.f32.partialorder %v3590_v15, 0.0  ;;  %v1860_v11 = vsub.f32 0.0, %v1444_v45 }
 0x165   : > { %v2161_v55 = vadd.f32 %v2129_v24, %v1297_v7  ;;  %v2505_v2 = vpop.eup %2504  ;;  %v1587_v27 = vmul.f32 1.0614054, %v3695_v5  ;;  %v1492_v14 = vmul.f32 0.3275911, %v3693_v63  ;;  %v1907_v53 = vmul.f32 %v1875_v36, %v3658_v6  ;;  %v1298_v7 = vld [vmem:[%s3053_s15 + $0xe0] sm:$0xff] }
 0x166   : > { %v2050_v26 = vmul.f32 %v2018_v8, %v1410_v61  ;;  %v2002_v43 = vmul.f32 %v2505_v2, %v1842_v18  ;;  %v1667_v39 = vadd.f32 1.4214138, %v1635_v56  ;;  %v1184_v31 = vadd.f32 %v1183_v44, %v974_v35 }
 0x167   : > { %2194 = vst.msk [vmem:[%s3073_s19 + $0xd8] sm:$0xff] %vm2166_vm5, %v2161_v55  ;;  %v1619_v33 = vadd.f32 -1.4531521, %v1587_v27  ;;  %v1524_v37 = vadd.f32 1.0, %v1492_v14  ;;  %v1232_v0 = vadd.f32 %v1231_v41, %v1022_v28  ;;  %v1426_v15 = vsel %vm1394_vm12, 1.0, %v2535_v3 }
 0x168   : > { %v2082_v47 = vadd.f32 1.0, %v2050_v26  ;;  %v2034_v9 = vsub.f32 1.0, %v2002_v43  ;;  %v1699_v62 = vmul.f32 %v3677_v48, %v1667_v39  ;;  %v1892_v23 = vmul.f32 %v1860_v11, %v1444_v45 }
 0x169   : > { %v3707_v32 = vpop.eup %2506  ;;  %v1651_v30 = vmul.f32 %v3695_v5, %v1619_v33  ;;  %2508 = vrcp.f32 %v1524_v37  ;;  %v3712_v6 = vadd.f32 %v3393_v12, %v1184_v31  ;;  %v1968_v22 = vmul.f32 1.442695, %v1907_v53 }
 0x16a   : > { %v2114_v34 = vmul.f32 %v2082_v47, %v1314_v19  ;;  %v2066_v29 = vmul.f32 %v2034_v9, %v1426_v15  ;;  %v1731_v59 = vadd.f32 -0.28449672, %v1699_v62  ;;  %v1572_v38 = vmul.f32 1.0614054, %v3707_v32 }
 0x16b   : > { %2510 = vpow2.f32 %v1936_v10  ;;  %v1683_v21 = vadd.f32 1.4214138, %v1651_v30  ;;  %v3716_v20 = vadd.f32 %v3393_v12, %v1232_v0  ;;  %v1938_v19 = vmul.f32 1.442695, %v1892_v23 }
 0x16c   : > { %v2146_v57 = vadd.f32 %v2114_v34, %v1282_v58  ;;  %v2098_v13 = vadd.f32 1.0, %v2066_v29  ;;  %v1763_v45 = vmul.f32 %v3677_v48, %v1731_v59  ;;  %v1604_v52 = vadd.f32 -1.4531521, %v1572_v38  ;;  %v1283_v29 = vld [vmem:[%s3053_s15 + $0x68] sm:$0xff] }
 0x16d   : > { %v1715_v61 = vmul.f32 %v3695_v5, %v1683_v21  ;;  %v3722_v36 = vmul.f32 0.70710677, %v3712_v6  ;;  %v1876_v51 = vsub.f32 0.0, %v3693_v63  ;;  %2512 = vpow2.f32 %v1968_v22 }
 0x16e   : > { %2179 = vst.msk [vmem:[%s3073_s19 + $0x60] sm:$0xff] %vm2166_vm5, %v2146_v57  ;;  %v2130_v42 = vmul.f32 %v2098_v13, %v1330_v4  ;;  %v1795_v24 = vadd.f32 0.2548296, %v1763_v45  ;;  %v1636_v12 = vmul.f32 %v3707_v32, %v1604_v52  ;;  %v3734_v35 = vmul.f32 0.70710677, %v3716_v20 }
 0x16f   : > { %v3728_v25 = vpop.eup %2508  ;;  %v1747_v17 = vadd.f32 -0.28449672, %v1715_v61  ;;  %v3731_v10 = vand.u32 2147483647, %v3722_v36  ;;  %vm1379_vm13 = vcmp.ge.f32.partialorder %v3627_v60, 0.0  ;;  %v1908_v14 = vmul.f32 %v1876_v51, %v3693_v63 }
 0x170   : > { %v2162_v44 = vadd.f32 %v2130_v42, %v1298_v7  ;;  %v1827_v55 = vmul.f32 %v3677_v48, %v1795_v24  ;;  %v1668_v4 = vadd.f32 1.4214138, %v1636_v12  ;;  %v1588_v8 = vmul.f32 1.0614054, %v3728_v25 }
 0x171   : > { %v2511_v18 = vpop.eup %2510  ;;  %v1779_v56 = vmul.f32 %v3695_v5, %v1747_v17  ;;  %v1477_v28 = vmul.f32 0.3275911, %v3731_v10  ;;  %v3746_v26 = vand.u32 2147483647, %v3734_v35  ;;  %2514 = vpow2.f32 %v1938_v19  ;;  %v1299_v19 = vld [vmem:[%s3053_s15 + $0xe8] sm:$0xff] }
 0x172   : > { %2195 = vst.msk [vmem:[%s3073_s19 + $0xe0] sm:$0xff] %vm2166_vm5, %v2162_v44  ;;  %v1987_v41 = vmul.f32 %v2511_v18, %v1827_v55  ;;  %v1700_v2 = vmul.f32 %v3707_v32, %v1668_v4  ;;  %v1620_v27 = vadd.f32 -1.4531521, %v1588_v8  ;;  %v1411_v60 = vsel %vm1379_vm13, 1.0, %v2535_v3 }
 0x173   : > { %v1811_v11 = vadd.f32 0.2548296, %v1779_v56  ;;  %v1509_v48 = vadd.f32 1.0, %v1477_v28  ;;  %v2513_v33 = vpop.eup %2512  ;;  %v1493_v31 = vmul.f32 0.3275911, %v3746_v26  ;;  %vm1395_vm14 = vcmp.ge.f32.partialorder %v3644_v46, 0.0 }
 0x174   : > { %v2019_v43 = vsub.f32 1.0, %v1987_v41  ;;  %v1732_v39 = vadd.f32 -0.28449672, %v1700_v2  ;;  %v1652_v53 = vmul.f32 %v3728_v25, %v1620_v27  ;;  %v1970_v9 = vmul.f32 1.442695, %v1908_v14 }
 0x175   : > { %v1843_v37 = vmul.f32 %v3695_v5, %v1811_v11  ;;  %2516 = vrcp.f32 %v1509_v48  ;;  %v1525_v62 = vadd.f32 1.0, %v1493_v31  ;;  %v1315_v58 = vmul.f32 0.5, %v3617_v50 }
 0x176   : > { %v2051_v0 = vmul.f32 %v2019_v43, %v1411_v60  ;;  %v1764_v63 = vmul.f32 %v3707_v32, %v1732_v39  ;;  %v1684_v47 = vadd.f32 1.4214138, %v1652_v53  ;;  %v1427_v21 = vsel %vm1395_vm14, 1.0, %v2535_v3 }
 0x177   : > { %v2003_v15 = vmul.f32 %v2513_v33, %v1843_v37  ;;  %2518 = vrcp.f32 %v1525_v62  ;;  %v2515_v59 = vpop.eup %2514  ;;  %vm1380_vm15 = vcmp.ge.f32.partialorder %v3663_v49, 0.0  ;;  %v1861_v50 = vsub.f32 0.0, %v3731_v10  ;;  %v1300_v62 = vld [vmem:[%s3053_s15 + $0xf0] sm:$0xff] }
 0x178   : > { %v2083_v30 = vadd.f32 1.0, %v2051_v0  ;;  %v1796_v23 = vadd.f32 0.2548296, %v1764_v63  ;;  %v1716_v34 = vmul.f32 %v3728_v25, %v1684_v47  ;;  %2520 = vpow2.f32 %v1970_v9 }
 0x179   : > { %v2035_v5 = vsub.f32 1.0, %v2003_v15  ;;  %v1331_v42 = vmul.f32 0.5, %v3630_v40  ;;  %v1412_v55 = vsel %vm1380_vm15, 1.0, %v2535_v3  ;;  %v1893_v4 = vmul.f32 %v1861_v50, %v3731_v10  ;;  %v1284_v10 = vld [vmem:[%s3053_s15 + $0x70] sm:$0xff] }
 0x17a   : > { %v2115_v38 = vmul.f32 %v2083_v30, %v1315_v58  ;;  %v1828_v46 = vmul.f32 %v3707_v32, %v1796_v23  ;;  %v1748_v22 = vadd.f32 -0.28449672, %v1716_v34  ;;  %v1877_v8 = vsub.f32 0.0, %v3746_v26 }
 0x17b   : > { %v2517_v57 = vpop.eup %2516  ;;  %v2067_v13 = vmul.f32 %v2035_v5, %v1427_v21  ;;  %v1316_v27 = vmul.f32 0.5, %v3651_v16  ;;  %vm1396_vm0 = vcmp.ge.f32.partialorder %v3689_v54, 0.0  ;;  %v1940_v43 = vmul.f32 1.442695, %v1893_v4 }
 0x17c   : > { %v2147_v45 = vadd.f32 %v2115_v38, %v1283_v29  ;;  %v1988_v52 = vmul.f32 %v2515_v59, %v1828_v46  ;;  %v1780_v7 = vmul.f32 %v3728_v25, %v1748_v22  ;;  %v1573_v61 = vmul.f32 1.0614054, %v2517_v57 }
 0x17d   : > { %v2099_v24 = vadd.f32 1.0, %v2067_v13  ;;  %v2519_v17 = vpop.eup %2518  ;;  %v1909_v39 = vmul.f32 %v1877_v8, %v3746_v26  ;;  %v1428_v16 = vsel %vm1396_vm0, 1.0, %v2535_v3  ;;  %2522 = vpow2.f32 %v1940_v43 }
 0x17e   : > { %2180 = vst.msk [vmem:[%s3073_s19 + $0x68] sm:$0xff] %vm2166_vm5, %v2147_v45  ;;  %v2020_v32 = vsub.f32 1.0, %v1988_v52  ;;  %v1812_v12 = vadd.f32 0.2548296, %v1780_v7  ;;  %v1605_v51 = vadd.f32 -1.4531521, %v1573_v61  ;;  %v2521_v41 = vpop.eup %2520 }
 0x17f   : > { %v2131_v44 = vmul.f32 %v2099_v24, %v1331_v42  ;;  %v1589_v28 = vmul.f32 1.0614054, %v2519_v17  ;;  %v1972_v63 = vmul.f32 1.442695, %v1909_v39  ;;  %v1332_v47 = vmul.f32 0.5, %v3675_v1  ;;  %v1285_v61 = vld [vmem:[%s3053_s15 + $0x78] sm:$0xff] }
 0x180   : > { %v2052_v18 = vmul.f32 %v2020_v32, %v1412_v55  ;;  %v1844_v40 = vmul.f32 %v3728_v25, %v1812_v12  ;;  %v1637_v56 = vmul.f32 %v2517_v57, %v1605_v51  ;;  %vm1381_vm1 = vcmp.ge.f32.partialorder %v3722_v36, 0.0  ;;  %v1301_v51 = vld [vmem:[%s3053_s15 + $0xf8] sm:$0xff] }
 0x181   : > { %v2163_v2 = vadd.f32 %v2131_v44, %v1299_v19  ;;  %v1621_v48 = vadd.f32 -1.4531521, %v1589_v28  ;;  %2524 = vpow2.f32 %v1972_v63  ;;  %v1413_v13 = vsel %vm1381_vm1, 1.0, %v2535_v3 }
 0x182   : > { %v2084_v11 = vadd.f32 1.0, %v2052_v18  ;;  %v2004_v49 = vmul.f32 %v2521_v41, %v1844_v40  ;;  %v1669_v14 = vadd.f32 1.4214138, %v1637_v56  ;;  %vm1397_vm2 = vcmp.ge.f32.partialorder %v3734_v35, 0.0 }
 0x183   : > { %2196 = vst.msk [vmem:[%s3073_s19 + $0xe8] sm:$0xff] %vm2166_vm5, %v2163_v2  ;;  %v1653_v60 = vmul.f32 %v2519_v17, %v1621_v48  ;;  %v2523_v59 = vpop.eup %2522  ;;  %v1317_v45 = vmul.f32 0.5, %v3712_v6  ;;  %v1429_v36 = vsel %vm1397_vm2, 1.0, %v2535_v3  ;;  %v1333_v32 = vmul.f32 0.5, %v3716_v20 }
 0x184   : > { %v2116_v25 = vmul.f32 %v2084_v11, %v1316_v27  ;;  %v2036_v53 = vsub.f32 1.0, %v2004_v49  ;;  %v1701_v33 = vmul.f32 %v2517_v57, %v1669_v14 }
 0x185   : > { %v1685_v0 = vadd.f32 1.4214138, %v1653_v60 }
 0x186   : > { %v2148_v37 = vadd.f32 %v2116_v25, %v1284_v10  ;;  %v2068_v54 = vmul.f32 %v2036_v53, %v1428_v16  ;;  %v1733_v31 = vadd.f32 -0.28449672, %v1701_v33 }
 0x187   : > { %v1717_v9 = vmul.f32 %v2519_v17, %v1685_v0  ;;  %v2525_v22 = vpop.eup %2524 }
 0x188   : > { %2181 = vst.msk [vmem:[%s3073_s19 + $0x70] sm:$0xff] %vm2166_vm5, %v2148_v37  ;;  %v2100_v15 = vadd.f32 1.0, %v2068_v54  ;;  %v1765_v26 = vmul.f32 %v2517_v57, %v1733_v31 }
 0x189   : > { %v1749_v23 = vadd.f32 -0.28449672, %v1717_v9 }
 0x18a   : > { %v2132_v58 = vmul.f32 %v2100_v15, %v1332_v47  ;;  %v1797_v30 = vadd.f32 0.2548296, %v1765_v26 }
 0x18b   : > { %v1781_v5 = vmul.f32 %v2519_v17, %v1749_v23 }
 0x18c   : > { %v2164_v34 = vadd.f32 %v2132_v58, %v1300_v62  ;;  %v1829_v29 = vmul.f32 %v2517_v57, %v1797_v30 }
 0x18d   : > { %v1813_v21 = vadd.f32 0.2548296, %v1781_v5 }
 0x18e   : > { %2197 = vst.msk [vmem:[%s3073_s19 + $0xf0] sm:$0xff] %vm2166_vm5, %v2164_v34  ;;  %v1989_v38 = vmul.f32 %v2523_v59, %v1829_v29 }
 0x18f   : > { %v1845_v46 = vmul.f32 %v2519_v17, %v1813_v21 }
 0x190   : > { %v2021_v1 = vsub.f32 1.0, %v1989_v38 }
 0x191   : > { %v2005_v57 = vmul.f32 %v2525_v22, %v1845_v46 }
 0x192   : > { %v2053_v50 = vmul.f32 %v2021_v1, %v1413_v13 }
 0x193   : > { %v2037_v7 = vsub.f32 1.0, %v2005_v57 }
 0x194   : > { %v2085_v52 = vadd.f32 1.0, %v2053_v50 }
 0x195   : > { %v2069_v42 = vmul.f32 %v2037_v7, %v1429_v36 }
 0x196   : > { %v2117_v19 = vmul.f32 %v2085_v52, %v1317_v45 }
 0x197   : > { %v2101_v12 = vadd.f32 1.0, %v2069_v42 }
 0x198   : > { %v2149_v24 = vadd.f32 %v2117_v19, %v1285_v61 }
 0x199   : > { %v2133_v17 = vmul.f32 %v2101_v12, %v1333_v32 }
 0x19a   : > { %2182 = vst.msk [vmem:[%s3073_s19 + $0x78] sm:$0xff] %vm2166_vm5, %v2149_v24 }
 0x19b   : > { %v2165_v35 = vadd.f32 %v2133_v17, %v1301_v51 }
 0x19d   : > { %2198 = vst.msk [vmem:[%s3073_s19 + $0xf8] sm:$0xff] %vm2166_vm5, %v2165_v35 }
 0x19e PF: > { %s19_s30 = sadd.s32 1, %s2533_s30  }
 0x19f   : > { %p16_p4 = scmp.ge.s32.totalorder %s19_s30, 4  }
 0x1a1   :  { %18 = sbr.rel (!%p16_p4) target bundleno = 1 (0x1), region = 98 }

</bundles_post_ra>
